<compile_context>
chip_gen: v7x
topology: tpu7x:2x2x1
jax: 0.10.0
libtpu: 0.0.40
codegen_flags: <defaults>
</compile_context>

<pallas_src>
import jax
import jax.numpy as jnp
from jax.experimental import pallas as pl
from jax.experimental.pallas import tpu as pltpu


# ---------------------------------------------------------------------------
# In-kernel helpers (trace-time Python, fully unrolled — all shapes are tiny)
# ---------------------------------------------------------------------------
def _pool2x2(a):
    """2x2 / stride-2 max pool of a 2-D f32 array held in vregs.

    Adjacent-pair maxima use unit-stride slices; picking every other row/col is
    done with tiny 0/1 selection matmuls because the TPU has no native
    lane-strided vector load.  Multiplying by exact 0/1 keeps this bit-faithful.
    """
    H, W = a.shape
    Ho, Wo = H // 2, W // 2
    th = jnp.maximum(a[0:H - 1, :], a[1:H, :])        # row i -> max(a[i], a[i+1])
    tw = jnp.maximum(th[:, 0:W - 1], th[:, 1:W])      # col j -> max(.., ..)
    # sel_w[i, j] = 1 iff i == 2j   (picks even columns)
    iw = jax.lax.broadcasted_iota(jnp.int32, (W - 1, Wo), 0)
    jw = jax.lax.broadcasted_iota(jnp.int32, (W - 1, Wo), 1)
    sel_w = jnp.where(iw == 2 * jw, 1.0, 0.0).astype(jnp.float32)
    # sel_h_t[i, k] = 1 iff k == 2i (picks even rows; built pre-transposed)
    ih = jax.lax.broadcasted_iota(jnp.int32, (Ho, H - 1), 0)
    kh = jax.lax.broadcasted_iota(jnp.int32, (Ho, H - 1), 1)
    sel_h_t = jnp.where(kh == 2 * ih, 1.0, 0.0).astype(jnp.float32)
    cols = jnp.dot(tw, sel_w, preferred_element_type=jnp.float32)       # (H-1, Wo)
    return jnp.dot(sel_h_t, cols, preferred_element_type=jnp.float32)   # (Ho, Wo)


def _conv3x3_relu(taps, w_ref, b_ref, *, cin, cout):
    """taps[ci][kh*3+kw] is the (Ho, Wo) shifted slab of input channel ci.

    Weights / biases are SMEM scalars -> each tap is one scalar*vector MAC on
    the VPU.  Bias add + ReLU happen once per output channel (no re-broadcast
    inside the tap loop)."""
    outs = []
    for co in range(cout):
        acc = None
        for ci in range(cin):
            for k in range(9):
                term = w_ref[co, ci * 9 + k] * taps[ci][k]
                acc = term if acc is None else acc + term
        outs.append(jnp.maximum(acc + b_ref[co], 0.0))
    return outs


# ---------------------------------------------------------------------------
# Fused DNet kernel (one grid step = one batch element)
# ---------------------------------------------------------------------------
def _dnet_kernel(x_ref, w1_ref, b1_ref, w2_ref, b2_ref, w3_ref, b3_ref,
                 wfc_ref, bfc_ref, o_ref, pad1_ref, pad2_ref):
    f32 = jnp.float32

    # ---- conv1: 1 -> 2, 3x3, pad 1, ReLU (on a zero-padded 30x30 VMEM map) ----
    pad1_ref[...] = jnp.zeros(pad1_ref.shape, f32)
    pad1_ref[1:29, 1:29] = x_ref[0]
    taps1 = [[pad1_ref[kh:kh + 28, kw:kw + 28]
              for kh in range(3) for kw in range(3)]]
    c1 = _conv3x3_relu(taps1, w1_ref, b1_ref, cin=1, cout=2)     # 2 x (28, 28)
    p1 = [_pool2x2(c) for c in c1]                               # 2 x (14, 14)

    # ---- conv2: 2 -> 4, 3x3, pad 1, ReLU --------------------------------------
    pad2_ref[...] = jnp.zeros(pad2_ref.shape, f32)
    for ci in range(2):
        pad2_ref[ci, 1:15, 1:15] = p1[ci]
    taps2 = [[pad2_ref[ci, kh:kh + 14, kw:kw + 14]
              for kh in range(3) for kw in range(3)] for ci in range(2)]
    c2 = _conv3x3_relu(taps2, w2_ref, b2_ref, cin=2, cout=4)     # 4 x (14, 14)
    p2 = [_pool2x2(c) for c in c2]                               # 4 x (7, 7)

    # ---- conv3: 4 -> 8, 3x3, no pad, ReLU (pure value slices) -----------------
    taps3 = [[p2[ci][kh:kh + 5, kw:kw + 5]
              for kh in range(3) for kw in range(3)] for ci in range(4)]
    c3 = _conv3x3_relu(taps3, w3_ref, b3_ref, cin=4, cout=8)     # 8 x (5, 5)

    # ---- fc: 200 -> 1 as VPU multiply + reduce --------------------------------
    # wfc_ref is pre-reshaped to (8, 5, 5), matching PyTorch's NCHW flatten.
    prod = None
    for co in range(8):
        term = c3[co] * wfc_ref[co]
        prod = term if prod is None else prod + term
    r = jnp.sum(prod, axis=1, keepdims=True)                     # (5, 1)
    r = jnp.sum(r, axis=0, keepdims=True)                        # (1, 1)
    o_ref[...] = (r + bfc_ref[0]).reshape(1, 1, 1)


# ---------------------------------------------------------------------------
# Wrapper
# ---------------------------------------------------------------------------
def dnet_forward(x_nchw, p):
    B = x_nchw.shape[0]
    x = x_nchw.reshape(B, 28, 28).astype(jnp.float32)            # drop Cin=1
    w1 = p["w1"].reshape(2, 9).astype(jnp.float32)               # [co, kh*3+kw]
    w2 = p["w2"].reshape(4, 18).astype(jnp.float32)              # [co, ci*9+kh*3+kw]
    w3 = p["w3"].reshape(8, 36).astype(jnp.float32)
    wfc = p["wfc"].reshape(8, 5, 5).astype(jnp.float32)          # NCHW flatten baked in

    smem = pl.BlockSpec(memory_space=pltpu.MemorySpace.SMEM)
    out = pl.pallas_call(
        _dnet_kernel,
        out_shape=jax.ShapeDtypeStruct((B, 1, 1), jnp.float32),
        grid=(B,),
        in_specs=[
            pl.BlockSpec((1, 28, 28), lambda b: (b, 0, 0)),      # x     (VMEM)
            smem, smem,                                          # w1, b1 (SMEM scalars)
            smem, smem,                                          # w2, b2
            smem, smem,                                          # w3, b3
            pl.BlockSpec((8, 5, 5), lambda b: (0, 0, 0)),        # wfc   (VMEM)
            smem,                                                # bfc
        ],
        out_specs=pl.BlockSpec((1, 1, 1), lambda b: (b, 0, 0)),
        scratch_shapes=[
            pltpu.VMEM((30, 30), jnp.float32),                   # padded conv1 input
            pltpu.VMEM((2, 16, 16), jnp.float32),                # padded conv2 input
        ],
        compiler_params=pltpu.CompilerParams(
            dimension_semantics=("parallel",)),                  # v7x: 2 TCs share batch
    )(x, w1, p["b1"], w2, p["b2"], w3, p["b3"], wfc, p["bfc"])
    return out.reshape(B, 1)


# ---------------------------------------------------------------------------
# Deterministic parameter init (kaiming_uniform weights, zero biases),
# matching DNet._weight_init shapes.
# ---------------------------------------------------------------------------
def init_dnet_params(key):
    def kaiming_uniform(k, shape, fan_in):
        bound = (6.0 / fan_in) ** 0.5
        return jax.random.uniform(k, shape, jnp.float32, -bound, bound)

    k1, k2, k3, k4 = jax.random.split(key, 4)
    return {
        "w1": kaiming_uniform(k1, (2, 1, 3, 3), 1 * 9),
        "b1": jnp.zeros((2,), jnp.float32),
        "w2": kaiming_uniform(k2, (4, 2, 3, 3), 2 * 9),
        "b2": jnp.zeros((4,), jnp.float32),
        "w3": kaiming_uniform(k3, (8, 4, 3, 3), 4 * 9),
        "b3": jnp.zeros((8,), jnp.float32),
        "wfc": kaiming_uniform(k4, (1, 200), 200),
        "bfc": jnp.zeros((1,), jnp.float32),
    }


# Pure-JAX reference (XLA conv / reduce_window), used only as a sanity check.
def dnet_reference(x_nchw, p):
    def conv(x, w, b, pad):
        y = jax.lax.conv_general_dilated(
            x, w, window_strides=(1, 1), padding=pad,
            dimension_numbers=("NCHW", "OIHW", "NCHW"))
        return jax.nn.relu(y + b.reshape(1, -1, 1, 1))

    def pool(x):
        return jax.lax.reduce_window(x, -jnp.inf, jax.lax.max,
                                     (1, 1, 2, 2), (1, 1, 2, 2), "VALID")

    y = pool(conv(x_nchw, p["w1"], p["b1"], [(1, 1), (1, 1)]))
    y = pool(conv(y, p["w2"], p["b2"], [(1, 1), (1, 1)]))
    y = conv(y, p["w3"], p["b3"], [(0, 0), (0, 0)])
    feat = y.reshape(y.shape[0], -1)
    return feat @ p["wfc"].T + p["bfc"][None, :]


if __name__ == "__main__":
    key = jax.random.PRNGKey(0)
    kp, kx = jax.random.split(key)
    params = init_dnet_params(kp)
    # DNet's fc expects 200 = 8*5*5 features, which forces 28x28 spatial input.
    x = jax.random.normal(kx, (2, 1, 28, 28), dtype=jnp.float32)

    out = jax.jit(dnet_forward)(x, params)
    out = jax.block_until_ready(out)
    assert out.shape == (2, 1) and out.dtype == jnp.float32

    ref = jax.block_until_ready(dnet_reference(x, params))
    max_err = float(jnp.max(jnp.abs(out - ref)))
    assert jnp.allclose(out, ref, rtol=3e-2, atol=3e-2), f"max_abs_err={max_err}"

    print("KERNEL_OK")
</pallas_src>

<mosaic_0001>
module attributes {stable_mosaic.version = 11 : i64} {
  func.func @_dnet_kernel(%arg0: i32, %arg1: memref<1x28x28xf32, #tpu.memory_space<vmem>>, %arg2: memref<2x9xf32, #tpu.memory_space<smem>>, %arg3: memref<2xf32, #tpu.memory_space<smem>>, %arg4: memref<4x18xf32, #tpu.memory_space<smem>>, %arg5: memref<4xf32, #tpu.memory_space<smem>>, %arg6: memref<8x36xf32, #tpu.memory_space<smem>>, %arg7: memref<8xf32, #tpu.memory_space<smem>>, %arg8: memref<8x5x5xf32, #tpu.memory_space<vmem>>, %arg9: memref<1xf32, #tpu.memory_space<smem>>, %arg10: memref<1x1x1xf32, #tpu.memory_space<vmem>>, %arg11: memref<30x30xf32, #tpu.memory_space<vmem>>, %arg12: memref<2x16x16xf32, #tpu.memory_space<vmem>>) attributes {dimension_semantics = [#tpu.dimension_semantics<parallel>], iteration_bounds = array<i64: 2>, scalar_prefetch = 0 : i64, scratch_operands = 2 : i64, tpu.core_type = #tpu.core_type<tc>, window_params = [{transform_indices = @transform_0, window_bounds = array<i64: 1, 28, 28>}, {transform_indices = @transform_1, window_bounds = array<i64: 2, 9>}, {transform_indices = @transform_2, window_bounds = array<i64: 2>}, {transform_indices = @transform_3, window_bounds = array<i64: 4, 18>}, {transform_indices = @transform_4, window_bounds = array<i64: 4>}, {transform_indices = @transform_5, window_bounds = array<i64: 8, 36>}, {transform_indices = @transform_6, window_bounds = array<i64: 8>}, {pipeline_mode = #tpu.pipeline_mode<synchronous>, transform_indices = @transform_7, window_bounds = array<i64: 8, 5, 5>}, {transform_indices = @transform_8, window_bounds = array<i64: 1>}, {transform_indices = @transform_9, window_bounds = array<i64: 1, 1, 1>}]} {
    %cst = arith.constant 0.000000e+00 : f32
    %0 = vector.broadcast %cst : f32 to vector<30x30xf32>
    %c0 = arith.constant 0 : index
    %c0_0 = arith.constant 0 : index
    %1 = vector.load %arg11[%c0, %c0_0] : memref<30x30xf32, #tpu.memory_space<vmem>>, vector<30x30xf32>
    tpu.vector_store %arg11[%c0, %c0_0], %0 {strides = array<i32>} : memref<30x30xf32, #tpu.memory_space<vmem>>, vector<30x30xf32>,
    %c0_1 = arith.constant 0 : index
    %c0_2 = arith.constant 0 : index
    %c0_3 = arith.constant 0 : index
    %2 = vector.load %arg1[%c0_1, %c0_2, %c0_3] : memref<1x28x28xf32, #tpu.memory_space<vmem>>, vector<1x28x28xf32>
    %3 = vector.shape_cast %2 : vector<1x28x28xf32> to vector<28x28xf32>
    %c1 = arith.constant 1 : index
    %c1_4 = arith.constant 1 : index
    %4 = vector.load %arg11[%c1, %c1_4] : memref<30x30xf32, #tpu.memory_space<vmem>>, vector<28x28xf32>
    tpu.vector_store %arg11[%c1, %c1_4], %3 {strides = array<i32>} : memref<30x30xf32, #tpu.memory_space<vmem>>, vector<28x28xf32>,
    %c0_5 = arith.constant 0 : index
    %c0_6 = arith.constant 0 : index
    %5 = vector.load %arg11[%c0_5, %c0_6] : memref<30x30xf32, #tpu.memory_space<vmem>>, vector<28x28xf32>
    %c0_7 = arith.constant 0 : index
    %c1_8 = arith.constant 1 : index
    %6 = vector.load %arg11[%c0_7, %c1_8] : memref<30x30xf32, #tpu.memory_space<vmem>>, vector<28x28xf32>
    %c0_9 = arith.constant 0 : index
    %c2 = arith.constant 2 : index
    %7 = vector.load %arg11[%c0_9, %c2] : memref<30x30xf32, #tpu.memory_space<vmem>>, vector<28x28xf32>
    %c1_10 = arith.constant 1 : index
    %c0_11 = arith.constant 0 : index
    %8 = vector.load %arg11[%c1_10, %c0_11] : memref<30x30xf32, #tpu.memory_space<vmem>>, vector<28x28xf32>
    %c1_12 = arith.constant 1 : index
    %c1_13 = arith.constant 1 : index
    %9 = vector.load %arg11[%c1_12, %c1_13] : memref<30x30xf32, #tpu.memory_space<vmem>>, vector<28x28xf32>
    %c1_14 = arith.constant 1 : index
    %c2_15 = arith.constant 2 : index
    %10 = vector.load %arg11[%c1_14, %c2_15] : memref<30x30xf32, #tpu.memory_space<vmem>>, vector<28x28xf32>
    %c2_16 = arith.constant 2 : index
    %c0_17 = arith.constant 0 : index
    %11 = vector.load %arg11[%c2_16, %c0_17] : memref<30x30xf32, #tpu.memory_space<vmem>>, vector<28x28xf32>
    %c2_18 = arith.constant 2 : index
    %c1_19 = arith.constant 1 : index
    %12 = vector.load %arg11[%c2_18, %c1_19] : memref<30x30xf32, #tpu.memory_space<vmem>>, vector<28x28xf32>
    %c2_20 = arith.constant 2 : index
    %c2_21 = arith.constant 2 : index
    %13 = vector.load %arg11[%c2_20, %c2_21] : memref<30x30xf32, #tpu.memory_space<vmem>>, vector<28x28xf32>
    %c0_22 = arith.constant 0 : index
    %c0_23 = arith.constant 0 : index
    %14 = memref.load %arg2[%c0_22, %c0_23] : memref<2x9xf32, #tpu.memory_space<smem>>
    %15 = vector.broadcast %14 : f32 to vector<28x28xf32>
    %16 = arith.mulf %15, %5 : vector<28x28xf32>
    %c0_24 = arith.constant 0 : index
    %c1_25 = arith.constant 1 : index
    %17 = memref.load %arg2[%c0_24, %c1_25] : memref<2x9xf32, #tpu.memory_space<smem>>
    %18 = vector.broadcast %17 : f32 to vector<28x28xf32>
    %19 = arith.mulf %18, %6 : vector<28x28xf32>
    %20 = arith.addf %16, %19 : vector<28x28xf32>
    %c0_26 = arith.constant 0 : index
    %c2_27 = arith.constant 2 : index
    %21 = memref.load %arg2[%c0_26, %c2_27] : memref<2x9xf32, #tpu.memory_space<smem>>
    %22 = vector.broadcast %21 : f32 to vector<28x28xf32>
    %23 = arith.mulf %22, %7 : vector<28x28xf32>
    %24 = arith.addf %20, %23 : vector<28x28xf32>
    %c0_28 = arith.constant 0 : index
    %c3 = arith.constant 3 : index
    %25 = memref.load %arg2[%c0_28, %c3] : memref<2x9xf32, #tpu.memory_space<smem>>
    %26 = vector.broadcast %25 : f32 to vector<28x28xf32>
    %27 = arith.mulf %26, %8 : vector<28x28xf32>
    %28 = arith.addf %24, %27 : vector<28x28xf32>
    %c0_29 = arith.constant 0 : index
    %c4 = arith.constant 4 : index
    %29 = memref.load %arg2[%c0_29, %c4] : memref<2x9xf32, #tpu.memory_space<smem>>
    %30 = vector.broadcast %29 : f32 to vector<28x28xf32>
    %31 = arith.mulf %30, %9 : vector<28x28xf32>
    %32 = arith.addf %28, %31 : vector<28x28xf32>
    %c0_30 = arith.constant 0 : index
    %c5 = arith.constant 5 : index
    %33 = memref.load %arg2[%c0_30, %c5] : memref<2x9xf32, #tpu.memory_space<smem>>
    %34 = vector.broadcast %33 : f32 to vector<28x28xf32>
    %35 = arith.mulf %34, %10 : vector<28x28xf32>
    %36 = arith.addf %32, %35 : vector<28x28xf32>
    %c0_31 = arith.constant 0 : index
    %c6 = arith.constant 6 : index
    %37 = memref.load %arg2[%c0_31, %c6] : memref<2x9xf32, #tpu.memory_space<smem>>
    %38 = vector.broadcast %37 : f32 to vector<28x28xf32>
    %39 = arith.mulf %38, %11 : vector<28x28xf32>
    %40 = arith.addf %36, %39 : vector<28x28xf32>
    %c0_32 = arith.constant 0 : index
    %c7 = arith.constant 7 : index
    %41 = memref.load %arg2[%c0_32, %c7] : memref<2x9xf32, #tpu.memory_space<smem>>
    %42 = vector.broadcast %41 : f32 to vector<28x28xf32>
    %43 = arith.mulf %42, %12 : vector<28x28xf32>
    %44 = arith.addf %40, %43 : vector<28x28xf32>
    %c0_33 = arith.constant 0 : index
    %c8 = arith.constant 8 : index
    %45 = memref.load %arg2[%c0_33, %c8] : memref<2x9xf32, #tpu.memory_space<smem>>
    %46 = vector.broadcast %45 : f32 to vector<28x28xf32>
    %47 = arith.mulf %46, %13 : vector<28x28xf32>
    %48 = arith.addf %44, %47 : vector<28x28xf32>
    %c0_34 = arith.constant 0 : index
    %49 = memref.load %arg3[%c0_34] : memref<2xf32, #tpu.memory_space<smem>>
    %50 = vector.broadcast %49 : f32 to vector<28x28xf32>
    %51 = arith.addf %48, %50 : vector<28x28xf32>
    %cst_35 = arith.constant 0.000000e+00 : f32
    %52 = vector.broadcast %cst_35 : f32 to vector<28x28xf32>
    %53 = arith.maximumf %51, %52 : vector<28x28xf32>
    %c1_36 = arith.constant 1 : index
    %c0_37 = arith.constant 0 : index
    %54 = memref.load %arg2[%c1_36, %c0_37] : memref<2x9xf32, #tpu.memory_space<smem>>
    %55 = vector.broadcast %54 : f32 to vector<28x28xf32>
    %56 = arith.mulf %55, %5 : vector<28x28xf32>
    %c1_38 = arith.constant 1 : index
    %c1_39 = arith.constant 1 : index
    %57 = memref.load %arg2[%c1_38, %c1_39] : memref<2x9xf32, #tpu.memory_space<smem>>
    %58 = vector.broadcast %57 : f32 to vector<28x28xf32>
    %59 = arith.mulf %58, %6 : vector<28x28xf32>
    %60 = arith.addf %56, %59 : vector<28x28xf32>
    %c1_40 = arith.constant 1 : index
    %c2_41 = arith.constant 2 : index
    %61 = memref.load %arg2[%c1_40, %c2_41] : memref<2x9xf32, #tpu.memory_space<smem>>
    %62 = vector.broadcast %61 : f32 to vector<28x28xf32>
    %63 = arith.mulf %62, %7 : vector<28x28xf32>
    %64 = arith.addf %60, %63 : vector<28x28xf32>
    %c1_42 = arith.constant 1 : index
    %c3_43 = arith.constant 3 : index
    %65 = memref.load %arg2[%c1_42, %c3_43] : memref<2x9xf32, #tpu.memory_space<smem>>
    %66 = vector.broadcast %65 : f32 to vector<28x28xf32>
    %67 = arith.mulf %66, %8 : vector<28x28xf32>
    %68 = arith.addf %64, %67 : vector<28x28xf32>
    %c1_44 = arith.constant 1 : index
    %c4_45 = arith.constant 4 : index
    %69 = memref.load %arg2[%c1_44, %c4_45] : memref<2x9xf32, #tpu.memory_space<smem>>
    %70 = vector.broadcast %69 : f32 to vector<28x28xf32>
    %71 = arith.mulf %70, %9 : vector<28x28xf32>
    %72 = arith.addf %68, %71 : vector<28x28xf32>
    %c1_46 = arith.constant 1 : index
    %c5_47 = arith.constant 5 : index
    %73 = memref.load %arg2[%c1_46, %c5_47] : memref<2x9xf32, #tpu.memory_space<smem>>
    %74 = vector.broadcast %73 : f32 to vector<28x28xf32>
    %75 = arith.mulf %74, %10 : vector<28x28xf32>
    %76 = arith.addf %72, %75 : vector<28x28xf32>
    %c1_48 = arith.constant 1 : index
    %c6_49 = arith.constant 6 : index
    %77 = memref.load %arg2[%c1_48, %c6_49] : memref<2x9xf32, #tpu.memory_space<smem>>
    %78 = vector.broadcast %77 : f32 to vector<28x28xf32>
    %79 = arith.mulf %78, %11 : vector<28x28xf32>
    %80 = arith.addf %76, %79 : vector<28x28xf32>
    %c1_50 = arith.constant 1 : index
    %c7_51 = arith.constant 7 : index
    %81 = memref.load %arg2[%c1_50, %c7_51] : memref<2x9xf32, #tpu.memory_space<smem>>
    %82 = vector.broadcast %81 : f32 to vector<28x28xf32>
    %83 = arith.mulf %82, %12 : vector<28x28xf32>
    %84 = arith.addf %80, %83 : vector<28x28xf32>
    %c1_52 = arith.constant 1 : index
    %c8_53 = arith.constant 8 : index
    %85 = memref.load %arg2[%c1_52, %c8_53] : memref<2x9xf32, #tpu.memory_space<smem>>
    %86 = vector.broadcast %85 : f32 to vector<28x28xf32>
    %87 = arith.mulf %86, %13 : vector<28x28xf32>
    %88 = arith.addf %84, %87 : vector<28x28xf32>
    %c1_54 = arith.constant 1 : index
    %89 = memref.load %arg3[%c1_54] : memref<2xf32, #tpu.memory_space<smem>>
    %90 = vector.broadcast %89 : f32 to vector<28x28xf32>
    %91 = arith.addf %88, %90 : vector<28x28xf32>
    %cst_55 = arith.constant 0.000000e+00 : f32
    %92 = vector.broadcast %cst_55 : f32 to vector<28x28xf32>
    %93 = arith.maximumf %91, %92 : vector<28x28xf32>
    %94 = vector.extract_strided_slice %53 {offsets = [0, 0], sizes = [27, 28], strides = [1, 1]} : vector<28x28xf32> to vector<27x28xf32>
    %95 = vector.extract_strided_slice %53 {offsets = [1, 0], sizes = [27, 28], strides = [1, 1]} : vector<28x28xf32> to vector<27x28xf32>
    %96 = arith.maximumf %94, %95 : vector<27x28xf32>
    %97 = vector.extract_strided_slice %96 {offsets = [0, 0], sizes = [27, 27], strides = [1, 1]} : vector<27x28xf32> to vector<27x27xf32>
    %98 = vector.extract_strided_slice %96 {offsets = [0, 1], sizes = [27, 27], strides = [1, 1]} : vector<27x28xf32> to vector<27x27xf32>
    %99 = arith.maximumf %97, %98 : vector<27x27xf32>
    %100 = tpu.iota {dimensions = array<i32: 0>} : vector<27x14xi32>
    %101 = tpu.iota {dimensions = array<i32: 1>} : vector<27x14xi32>
    %c2_i32 = arith.constant 2 : i32
    %102 = vector.broadcast %c2_i32 : i32 to vector<27x14xi32>
    %103 = arith.muli %102, %101 : vector<27x14xi32>
    %104 = arith.cmpi eq, %100, %103 : vector<27x14xi32>
    %cst_56 = arith.constant 1.000000e+00 : f32
    %cst_57 = arith.constant 0.000000e+00 : f32
    %105 = vector.broadcast %cst_56 : f32 to vector<27x14xf32>
    %106 = vector.broadcast %cst_57 : f32 to vector<27x14xf32>
    %107 = arith.select %104, %105, %106 : vector<27x14xi1>, vector<27x14xf32>
    %108 = tpu.iota {dimensions = array<i32: 0>} : vector<14x27xi32>
    %109 = tpu.iota {dimensions = array<i32: 1>} : vector<14x27xi32>
    %c2_i32_58 = arith.constant 2 : i32
    %110 = vector.broadcast %c2_i32_58 : i32 to vector<14x27xi32>
    %111 = arith.muli %110, %108 : vector<14x27xi32>
    %112 = arith.cmpi eq, %109, %111 : vector<14x27xi32>
    %cst_59 = arith.constant 1.000000e+00 : f32
    %cst_60 = arith.constant 0.000000e+00 : f32
    %113 = vector.broadcast %cst_59 : f32 to vector<14x27xf32>
    %114 = vector.broadcast %cst_60 : f32 to vector<14x27xf32>
    %115 = arith.select %112, %113, %114 : vector<14x27xi1>, vector<14x27xf32>
    %cst_61 = arith.constant dense<0.000000e+00> : vector<27x14xf32>
    %116 = tpu.matmul %99, %107, %cst_61 {dimension_numbers = #tpu.dot_dimension_numbers<[1], [0], [0], [1], [0, 0, 1, 1], [], []>} : vector<27x27xf32>, vector<27x14xf32>, vector<27x14xf32> -> vector<27x14xf32>
    %cst_62 = arith.constant dense<0.000000e+00> : vector<14x14xf32>
    %117 = tpu.matmul %115, %116, %cst_62 {dimension_numbers = #tpu.dot_dimension_numbers<[1], [0], [0], [1], [0, 0, 1, 1], [], []>} : vector<14x27xf32>, vector<27x14xf32>, vector<14x14xf32> -> vector<14x14xf32>
    %118 = vector.extract_strided_slice %93 {offsets = [0, 0], sizes = [27, 28], strides = [1, 1]} : vector<28x28xf32> to vector<27x28xf32>
    %119 = vector.extract_strided_slice %93 {offsets = [1, 0], sizes = [27, 28], strides = [1, 1]} : vector<28x28xf32> to vector<27x28xf32>
    %120 = arith.maximumf %118, %119 : vector<27x28xf32>
    %121 = vector.extract_strided_slice %120 {offsets = [0, 0], sizes = [27, 27], strides = [1, 1]} : vector<27x28xf32> to vector<27x27xf32>
    %122 = vector.extract_strided_slice %120 {offsets = [0, 1], sizes = [27, 27], strides = [1, 1]} : vector<27x28xf32> to vector<27x27xf32>
    %123 = arith.maximumf %121, %122 : vector<27x27xf32>
    %124 = tpu.iota {dimensions = array<i32: 0>} : vector<27x14xi32>
    %125 = tpu.iota {dimensions = array<i32: 1>} : vector<27x14xi32>
    %c2_i32_63 = arith.constant 2 : i32
    %126 = vector.broadcast %c2_i32_63 : i32 to vector<27x14xi32>
    %127 = arith.muli %126, %125 : vector<27x14xi32>
    %128 = arith.cmpi eq, %124, %127 : vector<27x14xi32>
    %cst_64 = arith.constant 1.000000e+00 : f32
    %cst_65 = arith.constant 0.000000e+00 : f32
    %129 = vector.broadcast %cst_64 : f32 to vector<27x14xf32>
    %130 = vector.broadcast %cst_65 : f32 to vector<27x14xf32>
    %131 = arith.select %128, %129, %130 : vector<27x14xi1>, vector<27x14xf32>
    %132 = tpu.iota {dimensions = array<i32: 0>} : vector<14x27xi32>
    %133 = tpu.iota {dimensions = array<i32: 1>} : vector<14x27xi32>
    %c2_i32_66 = arith.constant 2 : i32
    %134 = vector.broadcast %c2_i32_66 : i32 to vector<14x27xi32>
    %135 = arith.muli %134, %132 : vector<14x27xi32>
    %136 = arith.cmpi eq, %133, %135 : vector<14x27xi32>
    %cst_67 = arith.constant 1.000000e+00 : f32
    %cst_68 = arith.constant 0.000000e+00 : f32
    %137 = vector.broadcast %cst_67 : f32 to vector<14x27xf32>
    %138 = vector.broadcast %cst_68 : f32 to vector<14x27xf32>
    %139 = arith.select %136, %137, %138 : vector<14x27xi1>, vector<14x27xf32>
    %cst_69 = arith.constant dense<0.000000e+00> : vector<27x14xf32>
    %140 = tpu.matmul %123, %131, %cst_69 {dimension_numbers = #tpu.dot_dimension_numbers<[1], [0], [0], [1], [0, 0, 1, 1], [], []>} : vector<27x27xf32>, vector<27x14xf32>, vector<27x14xf32> -> vector<27x14xf32>
    %cst_70 = arith.constant dense<0.000000e+00> : vector<14x14xf32>
    %141 = tpu.matmul %139, %140, %cst_70 {dimension_numbers = #tpu.dot_dimension_numbers<[1], [0], [0], [1], [0, 0, 1, 1], [], []>} : vector<14x27xf32>, vector<27x14xf32>, vector<14x14xf32> -> vector<14x14xf32>
    %cst_71 = arith.constant 0.000000e+00 : f32
    %142 = vector.broadcast %cst_71 : f32 to vector<2x16x16xf32>
    %c0_72 = arith.constant 0 : index
    %c0_73 = arith.constant 0 : index
    %c0_74 = arith.constant 0 : index
    %143 = vector.load %arg12[%c0_72, %c0_73, %c0_74] : memref<2x16x16xf32, #tpu.memory_space<vmem>>, vector<2x16x16xf32>
    tpu.vector_store %arg12[%c0_72, %c0_73, %c0_74], %142 {strides = array<i32>} : memref<2x16x16xf32, #tpu.memory_space<vmem>>, vector<2x16x16xf32>,
    %c0_75 = arith.constant 0 : index
    %c1_76 = arith.constant 1 : index
    %c1_77 = arith.constant 1 : index
    %144 = vector.load %arg12[%c0_75, %c1_76, %c1_77] : memref<2x16x16xf32, #tpu.memory_space<vmem>>, vector<1x14x14xf32>
    %145 = vector.shape_cast %144 : vector<1x14x14xf32> to vector<14x14xf32>
    %146 = vector.shape_cast %117 : vector<14x14xf32> to vector<1x14x14xf32>
    tpu.vector_store %arg12[%c0_75, %c1_76, %c1_77], %146 {strides = array<i32>} : memref<2x16x16xf32, #tpu.memory_space<vmem>>, vector<1x14x14xf32>,
    %c1_78 = arith.constant 1 : index
    %c1_79 = arith.constant 1 : index
    %c1_80 = arith.constant 1 : index
    %147 = vector.load %arg12[%c1_78, %c1_79, %c1_80] : memref<2x16x16xf32, #tpu.memory_space<vmem>>, vector<1x14x14xf32>
    %148 = vector.shape_cast %147 : vector<1x14x14xf32> to vector<14x14xf32>
    %149 = vector.shape_cast %141 : vector<14x14xf32> to vector<1x14x14xf32>
    tpu.vector_store %arg12[%c1_78, %c1_79, %c1_80], %149 {strides = array<i32>} : memref<2x16x16xf32, #tpu.memory_space<vmem>>, vector<1x14x14xf32>,
    %c0_81 = arith.constant 0 : index
    %c0_82 = arith.constant 0 : index
    %c0_83 = arith.constant 0 : index
    %150 = vector.load %arg12[%c0_81, %c0_82, %c0_83] : memref<2x16x16xf32, #tpu.memory_space<vmem>>, vector<1x14x14xf32>
    %151 = vector.shape_cast %150 : vector<1x14x14xf32> to vector<14x14xf32>
    %c0_84 = arith.constant 0 : index
    %c0_85 = arith.constant 0 : index
    %c1_86 = arith.constant 1 : index
    %152 = vector.load %arg12[%c0_84, %c0_85, %c1_86] : memref<2x16x16xf32, #tpu.memory_space<vmem>>, vector<1x14x14xf32>
    %153 = vector.shape_cast %152 : vector<1x14x14xf32> to vector<14x14xf32>
    %c0_87 = arith.constant 0 : index
    %c0_88 = arith.constant 0 : index
    %c2_89 = arith.constant 2 : index
    %154 = vector.load %arg12[%c0_87, %c0_88, %c2_89] : memref<2x16x16xf32, #tpu.memory_space<vmem>>, vector<1x14x14xf32>
    %155 = vector.shape_cast %154 : vector<1x14x14xf32> to vector<14x14xf32>
    %c0_90 = arith.constant 0 : index
    %c1_91 = arith.constant 1 : index
    %c0_92 = arith.constant 0 : index
    %156 = vector.load %arg12[%c0_90, %c1_91, %c0_92] : memref<2x16x16xf32, #tpu.memory_space<vmem>>, vector<1x14x14xf32>
    %157 = vector.shape_cast %156 : vector<1x14x14xf32> to vector<14x14xf32>
    %c0_93 = arith.constant 0 : index
    %c1_94 = arith.constant 1 : index
    %c1_95 = arith.constant 1 : index
    %158 = vector.load %arg12[%c0_93, %c1_94, %c1_95] : memref<2x16x16xf32, #tpu.memory_space<vmem>>, vector<1x14x14xf32>
    %159 = vector.shape_cast %158 : vector<1x14x14xf32> to vector<14x14xf32>
    %c0_96 = arith.constant 0 : index
    %c1_97 = arith.constant 1 : index
    %c2_98 = arith.constant 2 : index
    %160 = vector.load %arg12[%c0_96, %c1_97, %c2_98] : memref<2x16x16xf32, #tpu.memory_space<vmem>>, vector<1x14x14xf32>
    %161 = vector.shape_cast %160 : vector<1x14x14xf32> to vector<14x14xf32>
    %c0_99 = arith.constant 0 : index
    %c2_100 = arith.constant 2 : index
    %c0_101 = arith.constant 0 : index
    %162 = vector.load %arg12[%c0_99, %c2_100, %c0_101] : memref<2x16x16xf32, #tpu.memory_space<vmem>>, vector<1x14x14xf32>
    %163 = vector.shape_cast %162 : vector<1x14x14xf32> to vector<14x14xf32>
    %c0_102 = arith.constant 0 : index
    %c2_103 = arith.constant 2 : index
    %c1_104 = arith.constant 1 : index
    %164 = vector.load %arg12[%c0_102, %c2_103, %c1_104] : memref<2x16x16xf32, #tpu.memory_space<vmem>>, vector<1x14x14xf32>
    %165 = vector.shape_cast %164 : vector<1x14x14xf32> to vector<14x14xf32>
    %c0_105 = arith.constant 0 : index
    %c2_106 = arith.constant 2 : index
    %c2_107 = arith.constant 2 : index
    %166 = vector.load %arg12[%c0_105, %c2_106, %c2_107] : memref<2x16x16xf32, #tpu.memory_space<vmem>>, vector<1x14x14xf32>
    %167 = vector.shape_cast %166 : vector<1x14x14xf32> to vector<14x14xf32>
    %c1_108 = arith.constant 1 : index
    %c0_109 = arith.constant 0 : index
    %c0_110 = arith.constant 0 : index
    %168 = vector.load %arg12[%c1_108, %c0_109, %c0_110] : memref<2x16x16xf32, #tpu.memory_space<vmem>>, vector<1x14x14xf32>
    %169 = vector.shape_cast %168 : vector<1x14x14xf32> to vector<14x14xf32>
    %c1_111 = arith.constant 1 : index
    %c0_112 = arith.constant 0 : index
    %c1_113 = arith.constant 1 : index
    %170 = vector.load %arg12[%c1_111, %c0_112, %c1_113] : memref<2x16x16xf32, #tpu.memory_space<vmem>>, vector<1x14x14xf32>
    %171 = vector.shape_cast %170 : vector<1x14x14xf32> to vector<14x14xf32>
    %c1_114 = arith.constant 1 : index
    %c0_115 = arith.constant 0 : index
    %c2_116 = arith.constant 2 : index
    %172 = vector.load %arg12[%c1_114, %c0_115, %c2_116] : memref<2x16x16xf32, #tpu.memory_space<vmem>>, vector<1x14x14xf32>
    %173 = vector.shape_cast %172 : vector<1x14x14xf32> to vector<14x14xf32>
    %c1_117 = arith.constant 1 : index
    %c1_118 = arith.constant 1 : index
    %c0_119 = arith.constant 0 : index
    %174 = vector.load %arg12[%c1_117, %c1_118, %c0_119] : memref<2x16x16xf32, #tpu.memory_space<vmem>>, vector<1x14x14xf32>
    %175 = vector.shape_cast %174 : vector<1x14x14xf32> to vector<14x14xf32>
    %c1_120 = arith.constant 1 : index
    %c1_121 = arith.constant 1 : index
    %c1_122 = arith.constant 1 : index
    %176 = vector.load %arg12[%c1_120, %c1_121, %c1_122] : memref<2x16x16xf32, #tpu.memory_space<vmem>>, vector<1x14x14xf32>
    %177 = vector.shape_cast %176 : vector<1x14x14xf32> to vector<14x14xf32>
    %c1_123 = arith.constant 1 : index
    %c1_124 = arith.constant 1 : index
    %c2_125 = arith.constant 2 : index
    %178 = vector.load %arg12[%c1_123, %c1_124, %c2_125] : memref<2x16x16xf32, #tpu.memory_space<vmem>>, vector<1x14x14xf32>
    %179 = vector.shape_cast %178 : vector<1x14x14xf32> to vector<14x14xf32>
    %c1_126 = arith.constant 1 : index
    %c2_127 = arith.constant 2 : index
    %c0_128 = arith.constant 0 : index
    %180 = vector.load %arg12[%c1_126, %c2_127, %c0_128] : memref<2x16x16xf32, #tpu.memory_space<vmem>>, vector<1x14x14xf32>
    %181 = vector.shape_cast %180 : vector<1x14x14xf32> to vector<14x14xf32>
    %c1_129 = arith.constant 1 : index
    %c2_130 = arith.constant 2 : index
    %c1_131 = arith.constant 1 : index
    %182 = vector.load %arg12[%c1_129, %c2_130, %c1_131] : memref<2x16x16xf32, #tpu.memory_space<vmem>>, vector<1x14x14xf32>
    %183 = vector.shape_cast %182 : vector<1x14x14xf32> to vector<14x14xf32>
    %c1_132 = arith.constant 1 : index
    %c2_133 = arith.constant 2 : index
    %c2_134 = arith.constant 2 : index
    %184 = vector.load %arg12[%c1_132, %c2_133, %c2_134] : memref<2x16x16xf32, #tpu.memory_space<vmem>>, vector<1x14x14xf32>
    %185 = vector.shape_cast %184 : vector<1x14x14xf32> to vector<14x14xf32>
    %c0_135 = arith.constant 0 : index
    %c0_136 = arith.constant 0 : index
    %186 = memref.load %arg4[%c0_135, %c0_136] : memref<4x18xf32, #tpu.memory_space<smem>>
    %187 = vector.broadcast %186 : f32 to vector<14x14xf32>
    %188 = arith.mulf %187, %151 : vector<14x14xf32>
    %c0_137 = arith.constant 0 : index
    %c1_138 = arith.constant 1 : index
    %189 = memref.load %arg4[%c0_137, %c1_138] : memref<4x18xf32, #tpu.memory_space<smem>>
    %190 = vector.broadcast %189 : f32 to vector<14x14xf32>
    %191 = arith.mulf %190, %153 : vector<14x14xf32>
    %192 = arith.addf %188, %191 : vector<14x14xf32>
    %c0_139 = arith.constant 0 : index
    %c2_140 = arith.constant 2 : index
    %193 = memref.load %arg4[%c0_139, %c2_140] : memref<4x18xf32, #tpu.memory_space<smem>>
    %194 = vector.broadcast %193 : f32 to vector<14x14xf32>
    %195 = arith.mulf %194, %155 : vector<14x14xf32>
    %196 = arith.addf %192, %195 : vector<14x14xf32>
    %c0_141 = arith.constant 0 : index
    %c3_142 = arith.constant 3 : index
    %197 = memref.load %arg4[%c0_141, %c3_142] : memref<4x18xf32, #tpu.memory_space<smem>>
    %198 = vector.broadcast %197 : f32 to vector<14x14xf32>
    %199 = arith.mulf %198, %157 : vector<14x14xf32>
    %200 = arith.addf %196, %199 : vector<14x14xf32>
    %c0_143 = arith.constant 0 : index
    %c4_144 = arith.constant 4 : index
    %201 = memref.load %arg4[%c0_143, %c4_144] : memref<4x18xf32, #tpu.memory_space<smem>>
    %202 = vector.broadcast %201 : f32 to vector<14x14xf32>
    %203 = arith.mulf %202, %159 : vector<14x14xf32>
    %204 = arith.addf %200, %203 : vector<14x14xf32>
    %c0_145 = arith.constant 0 : index
    %c5_146 = arith.constant 5 : index
    %205 = memref.load %arg4[%c0_145, %c5_146] : memref<4x18xf32, #tpu.memory_space<smem>>
    %206 = vector.broadcast %205 : f32 to vector<14x14xf32>
    %207 = arith.mulf %206, %161 : vector<14x14xf32>
    %208 = arith.addf %204, %207 : vector<14x14xf32>
    %c0_147 = arith.constant 0 : index
    %c6_148 = arith.constant 6 : index
    %209 = memref.load %arg4[%c0_147, %c6_148] : memref<4x18xf32, #tpu.memory_space<smem>>
    %210 = vector.broadcast %209 : f32 to vector<14x14xf32>
    %211 = arith.mulf %210, %163 : vector<14x14xf32>
    %212 = arith.addf %208, %211 : vector<14x14xf32>
    %c0_149 = arith.constant 0 : index
    %c7_150 = arith.constant 7 : index
    %213 = memref.load %arg4[%c0_149, %c7_150] : memref<4x18xf32, #tpu.memory_space<smem>>
    %214 = vector.broadcast %213 : f32 to vector<14x14xf32>
    %215 = arith.mulf %214, %165 : vector<14x14xf32>
    %216 = arith.addf %212, %215 : vector<14x14xf32>
    %c0_151 = arith.constant 0 : index
    %c8_152 = arith.constant 8 : index
    %217 = memref.load %arg4[%c0_151, %c8_152] : memref<4x18xf32, #tpu.memory_space<smem>>
    %218 = vector.broadcast %217 : f32 to vector<14x14xf32>
    %219 = arith.mulf %218, %167 : vector<14x14xf32>
    %220 = arith.addf %216, %219 : vector<14x14xf32>
    %c0_153 = arith.constant 0 : index
    %c9 = arith.constant 9 : index
    %221 = memref.load %arg4[%c0_153, %c9] : memref<4x18xf32, #tpu.memory_space<smem>>
    %222 = vector.broadcast %221 : f32 to vector<14x14xf32>
    %223 = arith.mulf %222, %169 : vector<14x14xf32>
    %224 = arith.addf %220, %223 : vector<14x14xf32>
    %c0_154 = arith.constant 0 : index
    %c10 = arith.constant 10 : index
    %225 = memref.load %arg4[%c0_154, %c10] : memref<4x18xf32, #tpu.memory_space<smem>>
    %226 = vector.broadcast %225 : f32 to vector<14x14xf32>
    %227 = arith.mulf %226, %171 : vector<14x14xf32>
    %228 = arith.addf %224, %227 : vector<14x14xf32>
    %c0_155 = arith.constant 0 : index
    %c11 = arith.constant 11 : index
    %229 = memref.load %arg4[%c0_155, %c11] : memref<4x18xf32, #tpu.memory_space<smem>>
    %230 = vector.broadcast %229 : f32 to vector<14x14xf32>
    %231 = arith.mulf %230, %173 : vector<14x14xf32>
    %232 = arith.addf %228, %231 : vector<14x14xf32>
    %c0_156 = arith.constant 0 : index
    %c12 = arith.constant 12 : index
    %233 = memref.load %arg4[%c0_156, %c12] : memref<4x18xf32, #tpu.memory_space<smem>>
    %234 = vector.broadcast %233 : f32 to vector<14x14xf32>
    %235 = arith.mulf %234, %175 : vector<14x14xf32>
    %236 = arith.addf %232, %235 : vector<14x14xf32>
    %c0_157 = arith.constant 0 : index
    %c13 = arith.constant 13 : index
    %237 = memref.load %arg4[%c0_157, %c13] : memref<4x18xf32, #tpu.memory_space<smem>>
    %238 = vector.broadcast %237 : f32 to vector<14x14xf32>
    %239 = arith.mulf %238, %177 : vector<14x14xf32>
    %240 = arith.addf %236, %239 : vector<14x14xf32>
    %c0_158 = arith.constant 0 : index
    %c14 = arith.constant 14 : index
    %241 = memref.load %arg4[%c0_158, %c14] : memref<4x18xf32, #tpu.memory_space<smem>>
    %242 = vector.broadcast %241 : f32 to vector<14x14xf32>
    %243 = arith.mulf %242, %179 : vector<14x14xf32>
    %244 = arith.addf %240, %243 : vector<14x14xf32>
    %c0_159 = arith.constant 0 : index
    %c15 = arith.constant 15 : index
    %245 = memref.load %arg4[%c0_159, %c15] : memref<4x18xf32, #tpu.memory_space<smem>>
    %246 = vector.broadcast %245 : f32 to vector<14x14xf32>
    %247 = arith.mulf %246, %181 : vector<14x14xf32>
    %248 = arith.addf %244, %247 : vector<14x14xf32>
    %c0_160 = arith.constant 0 : index
    %c16 = arith.constant 16 : index
    %249 = memref.load %arg4[%c0_160, %c16] : memref<4x18xf32, #tpu.memory_space<smem>>
    %250 = vector.broadcast %249 : f32 to vector<14x14xf32>
    %251 = arith.mulf %250, %183 : vector<14x14xf32>
    %252 = arith.addf %248, %251 : vector<14x14xf32>
    %c0_161 = arith.constant 0 : index
    %c17 = arith.constant 17 : index
    %253 = memref.load %arg4[%c0_161, %c17] : memref<4x18xf32, #tpu.memory_space<smem>>
    %254 = vector.broadcast %253 : f32 to vector<14x14xf32>
    %255 = arith.mulf %254, %185 : vector<14x14xf32>
    %256 = arith.addf %252, %255 : vector<14x14xf32>
    %c0_162 = arith.constant 0 : index
    %257 = memref.load %arg5[%c0_162] : memref<4xf32, #tpu.memory_space<smem>>
    %258 = vector.broadcast %257 : f32 to vector<14x14xf32>
    %259 = arith.addf %256, %258 : vector<14x14xf32>
    %cst_163 = arith.constant 0.000000e+00 : f32
    %260 = vector.broadcast %cst_163 : f32 to vector<14x14xf32>
    %261 = arith.maximumf %259, %260 : vector<14x14xf32>
    %c1_164 = arith.constant 1 : index
    %c0_165 = arith.constant 0 : index
    %262 = memref.load %arg4[%c1_164, %c0_165] : memref<4x18xf32, #tpu.memory_space<smem>>
    %263 = vector.broadcast %262 : f32 to vector<14x14xf32>
    %264 = arith.mulf %263, %151 : vector<14x14xf32>
    %c1_166 = arith.constant 1 : index
    %c1_167 = arith.constant 1 : index
    %265 = memref.load %arg4[%c1_166, %c1_167] : memref<4x18xf32, #tpu.memory_space<smem>>
    %266 = vector.broadcast %265 : f32 to vector<14x14xf32>
    %267 = arith.mulf %266, %153 : vector<14x14xf32>
    %268 = arith.addf %264, %267 : vector<14x14xf32>
    %c1_168 = arith.constant 1 : index
    %c2_169 = arith.constant 2 : index
    %269 = memref.load %arg4[%c1_168, %c2_169] : memref<4x18xf32, #tpu.memory_space<smem>>
    %270 = vector.broadcast %269 : f32 to vector<14x14xf32>
    %271 = arith.mulf %270, %155 : vector<14x14xf32>
    %272 = arith.addf %268, %271 : vector<14x14xf32>
    %c1_170 = arith.constant 1 : index
    %c3_171 = arith.constant 3 : index
    %273 = memref.load %arg4[%c1_170, %c3_171] : memref<4x18xf32, #tpu.memory_space<smem>>
    %274 = vector.broadcast %273 : f32 to vector<14x14xf32>
    %275 = arith.mulf %274, %157 : vector<14x14xf32>
    %276 = arith.addf %272, %275 : vector<14x14xf32>
    %c1_172 = arith.constant 1 : index
    %c4_173 = arith.constant 4 : index
    %277 = memref.load %arg4[%c1_172, %c4_173] : memref<4x18xf32, #tpu.memory_space<smem>>
    %278 = vector.broadcast %277 : f32 to vector<14x14xf32>
    %279 = arith.mulf %278, %159 : vector<14x14xf32>
    %280 = arith.addf %276, %279 : vector<14x14xf32>
    %c1_174 = arith.constant 1 : index
    %c5_175 = arith.constant 5 : index
    %281 = memref.load %arg4[%c1_174, %c5_175] : memref<4x18xf32, #tpu.memory_space<smem>>
    %282 = vector.broadcast %281 : f32 to vector<14x14xf32>
    %283 = arith.mulf %282, %161 : vector<14x14xf32>
    %284 = arith.addf %280, %283 : vector<14x14xf32>
    %c1_176 = arith.constant 1 : index
    %c6_177 = arith.constant 6 : index
    %285 = memref.load %arg4[%c1_176, %c6_177] : memref<4x18xf32, #tpu.memory_space<smem>>
    %286 = vector.broadcast %285 : f32 to vector<14x14xf32>
    %287 = arith.mulf %286, %163 : vector<14x14xf32>
    %288 = arith.addf %284, %287 : vector<14x14xf32>
    %c1_178 = arith.constant 1 : index
    %c7_179 = arith.constant 7 : index
    %289 = memref.load %arg4[%c1_178, %c7_179] : memref<4x18xf32, #tpu.memory_space<smem>>
    %290 = vector.broadcast %289 : f32 to vector<14x14xf32>
    %291 = arith.mulf %290, %165 : vector<14x14xf32>
    %292 = arith.addf %288, %291 : vector<14x14xf32>
    %c1_180 = arith.constant 1 : index
    %c8_181 = arith.constant 8 : index
    %293 = memref.load %arg4[%c1_180, %c8_181] : memref<4x18xf32, #tpu.memory_space<smem>>
    %294 = vector.broadcast %293 : f32 to vector<14x14xf32>
    %295 = arith.mulf %294, %167 : vector<14x14xf32>
    %296 = arith.addf %292, %295 : vector<14x14xf32>
    %c1_182 = arith.constant 1 : index
    %c9_183 = arith.constant 9 : index
    %297 = memref.load %arg4[%c1_182, %c9_183] : memref<4x18xf32, #tpu.memory_space<smem>>
    %298 = vector.broadcast %297 : f32 to vector<14x14xf32>
    %299 = arith.mulf %298, %169 : vector<14x14xf32>
    %300 = arith.addf %296, %299 : vector<14x14xf32>
    %c1_184 = arith.constant 1 : index
    %c10_185 = arith.constant 10 : index
    %301 = memref.load %arg4[%c1_184, %c10_185] : memref<4x18xf32, #tpu.memory_space<smem>>
    %302 = vector.broadcast %301 : f32 to vector<14x14xf32>
    %303 = arith.mulf %302, %171 : vector<14x14xf32>
    %304 = arith.addf %300, %303 : vector<14x14xf32>
    %c1_186 = arith.constant 1 : index
    %c11_187 = arith.constant 11 : index
    %305 = memref.load %arg4[%c1_186, %c11_187] : memref<4x18xf32, #tpu.memory_space<smem>>
    %306 = vector.broadcast %305 : f32 to vector<14x14xf32>
    %307 = arith.mulf %306, %173 : vector<14x14xf32>
    %308 = arith.addf %304, %307 : vector<14x14xf32>
    %c1_188 = arith.constant 1 : index
    %c12_189 = arith.constant 12 : index
    %309 = memref.load %arg4[%c1_188, %c12_189] : memref<4x18xf32, #tpu.memory_space<smem>>
    %310 = vector.broadcast %309 : f32 to vector<14x14xf32>
    %311 = arith.mulf %310, %175 : vector<14x14xf32>
    %312 = arith.addf %308, %311 : vector<14x14xf32>
    %c1_190 = arith.constant 1 : index
    %c13_191 = arith.constant 13 : index
    %313 = memref.load %arg4[%c1_190, %c13_191] : memref<4x18xf32, #tpu.memory_space<smem>>
    %314 = vector.broadcast %313 : f32 to vector<14x14xf32>
    %315 = arith.mulf %314, %177 : vector<14x14xf32>
    %316 = arith.addf %312, %315 : vector<14x14xf32>
    %c1_192 = arith.constant 1 : index
    %c14_193 = arith.constant 14 : index
    %317 = memref.load %arg4[%c1_192, %c14_193] : memref<4x18xf32, #tpu.memory_space<smem>>
    %318 = vector.broadcast %317 : f32 to vector<14x14xf32>
    %319 = arith.mulf %318, %179 : vector<14x14xf32>
    %320 = arith.addf %316, %319 : vector<14x14xf32>
    %c1_194 = arith.constant 1 : index
    %c15_195 = arith.constant 15 : index
    %321 = memref.load %arg4[%c1_194, %c15_195] : memref<4x18xf32, #tpu.memory_space<smem>>
    %322 = vector.broadcast %321 : f32 to vector<14x14xf32>
    %323 = arith.mulf %322, %181 : vector<14x14xf32>
    %324 = arith.addf %320, %323 : vector<14x14xf32>
    %c1_196 = arith.constant 1 : index
    %c16_197 = arith.constant 16 : index
    %325 = memref.load %arg4[%c1_196, %c16_197] : memref<4x18xf32, #tpu.memory_space<smem>>
    %326 = vector.broadcast %325 : f32 to vector<14x14xf32>
    %327 = arith.mulf %326, %183 : vector<14x14xf32>
    %328 = arith.addf %324, %327 : vector<14x14xf32>
    %c1_198 = arith.constant 1 : index
    %c17_199 = arith.constant 17 : index
    %329 = memref.load %arg4[%c1_198, %c17_199] : memref<4x18xf32, #tpu.memory_space<smem>>
    %330 = vector.broadcast %329 : f32 to vector<14x14xf32>
    %331 = arith.mulf %330, %185 : vector<14x14xf32>
    %332 = arith.addf %328, %331 : vector<14x14xf32>
    %c1_200 = arith.constant 1 : index
    %333 = memref.load %arg5[%c1_200] : memref<4xf32, #tpu.memory_space<smem>>
    %334 = vector.broadcast %333 : f32 to vector<14x14xf32>
    %335 = arith.addf %332, %334 : vector<14x14xf32>
    %cst_201 = arith.constant 0.000000e+00 : f32
    %336 = vector.broadcast %cst_201 : f32 to vector<14x14xf32>
    %337 = arith.maximumf %335, %336 : vector<14x14xf32>
    %c2_202 = arith.constant 2 : index
    %c0_203 = arith.constant 0 : index
    %338 = memref.load %arg4[%c2_202, %c0_203] : memref<4x18xf32, #tpu.memory_space<smem>>
    %339 = vector.broadcast %338 : f32 to vector<14x14xf32>
    %340 = arith.mulf %339, %151 : vector<14x14xf32>
    %c2_204 = arith.constant 2 : index
    %c1_205 = arith.constant 1 : index
    %341 = memref.load %arg4[%c2_204, %c1_205] : memref<4x18xf32, #tpu.memory_space<smem>>
    %342 = vector.broadcast %341 : f32 to vector<14x14xf32>
    %343 = arith.mulf %342, %153 : vector<14x14xf32>
    %344 = arith.addf %340, %343 : vector<14x14xf32>
    %c2_206 = arith.constant 2 : index
    %c2_207 = arith.constant 2 : index
    %345 = memref.load %arg4[%c2_206, %c2_207] : memref<4x18xf32, #tpu.memory_space<smem>>
    %346 = vector.broadcast %345 : f32 to vector<14x14xf32>
    %347 = arith.mulf %346, %155 : vector<14x14xf32>
    %348 = arith.addf %344, %347 : vector<14x14xf32>
    %c2_208 = arith.constant 2 : index
    %c3_209 = arith.constant 3 : index
    %349 = memref.load %arg4[%c2_208, %c3_209] : memref<4x18xf32, #tpu.memory_space<smem>>
    %350 = vector.broadcast %349 : f32 to vector<14x14xf32>
    %351 = arith.mulf %350, %157 : vector<14x14xf32>
    %352 = arith.addf %348, %351 : vector<14x14xf32>
    %c2_210 = arith.constant 2 : index
    %c4_211 = arith.constant 4 : index
    %353 = memref.load %arg4[%c2_210, %c4_211] : memref<4x18xf32, #tpu.memory_space<smem>>
    %354 = vector.broadcast %353 : f32 to vector<14x14xf32>
    %355 = arith.mulf %354, %159 : vector<14x14xf32>
    %356 = arith.addf %352, %355 : vector<14x14xf32>
    %c2_212 = arith.constant 2 : index
    %c5_213 = arith.constant 5 : index
    %357 = memref.load %arg4[%c2_212, %c5_213] : memref<4x18xf32, #tpu.memory_space<smem>>
    %358 = vector.broadcast %357 : f32 to vector<14x14xf32>
    %359 = arith.mulf %358, %161 : vector<14x14xf32>
    %360 = arith.addf %356, %359 : vector<14x14xf32>
    %c2_214 = arith.constant 2 : index
    %c6_215 = arith.constant 6 : index
    %361 = memref.load %arg4[%c2_214, %c6_215] : memref<4x18xf32, #tpu.memory_space<smem>>
    %362 = vector.broadcast %361 : f32 to vector<14x14xf32>
    %363 = arith.mulf %362, %163 : vector<14x14xf32>
    %364 = arith.addf %360, %363 : vector<14x14xf32>
    %c2_216 = arith.constant 2 : index
    %c7_217 = arith.constant 7 : index
    %365 = memref.load %arg4[%c2_216, %c7_217] : memref<4x18xf32, #tpu.memory_space<smem>>
    %366 = vector.broadcast %365 : f32 to vector<14x14xf32>
    %367 = arith.mulf %366, %165 : vector<14x14xf32>
    %368 = arith.addf %364, %367 : vector<14x14xf32>
    %c2_218 = arith.constant 2 : index
    %c8_219 = arith.constant 8 : index
    %369 = memref.load %arg4[%c2_218, %c8_219] : memref<4x18xf32, #tpu.memory_space<smem>>
    %370 = vector.broadcast %369 : f32 to vector<14x14xf32>
    %371 = arith.mulf %370, %167 : vector<14x14xf32>
    %372 = arith.addf %368, %371 : vector<14x14xf32>
    %c2_220 = arith.constant 2 : index
    %c9_221 = arith.constant 9 : index
    %373 = memref.load %arg4[%c2_220, %c9_221] : memref<4x18xf32, #tpu.memory_space<smem>>
    %374 = vector.broadcast %373 : f32 to vector<14x14xf32>
    %375 = arith.mulf %374, %169 : vector<14x14xf32>
    %376 = arith.addf %372, %375 : vector<14x14xf32>
    %c2_222 = arith.constant 2 : index
    %c10_223 = arith.constant 10 : index
    %377 = memref.load %arg4[%c2_222, %c10_223] : memref<4x18xf32, #tpu.memory_space<smem>>
    %378 = vector.broadcast %377 : f32 to vector<14x14xf32>
    %379 = arith.mulf %378, %171 : vector<14x14xf32>
    %380 = arith.addf %376, %379 : vector<14x14xf32>
    %c2_224 = arith.constant 2 : index
    %c11_225 = arith.constant 11 : index
    %381 = memref.load %arg4[%c2_224, %c11_225] : memref<4x18xf32, #tpu.memory_space<smem>>
    %382 = vector.broadcast %381 : f32 to vector<14x14xf32>
    %383 = arith.mulf %382, %173 : vector<14x14xf32>
    %384 = arith.addf %380, %383 : vector<14x14xf32>
    %c2_226 = arith.constant 2 : index
    %c12_227 = arith.constant 12 : index
    %385 = memref.load %arg4[%c2_226, %c12_227] : memref<4x18xf32, #tpu.memory_space<smem>>
    %386 = vector.broadcast %385 : f32 to vector<14x14xf32>
    %387 = arith.mulf %386, %175 : vector<14x14xf32>
    %388 = arith.addf %384, %387 : vector<14x14xf32>
    %c2_228 = arith.constant 2 : index
    %c13_229 = arith.constant 13 : index
    %389 = memref.load %arg4[%c2_228, %c13_229] : memref<4x18xf32, #tpu.memory_space<smem>>
    %390 = vector.broadcast %389 : f32 to vector<14x14xf32>
    %391 = arith.mulf %390, %177 : vector<14x14xf32>
    %392 = arith.addf %388, %391 : vector<14x14xf32>
    %c2_230 = arith.constant 2 : index
    %c14_231 = arith.constant 14 : index
    %393 = memref.load %arg4[%c2_230, %c14_231] : memref<4x18xf32, #tpu.memory_space<smem>>
    %394 = vector.broadcast %393 : f32 to vector<14x14xf32>
    %395 = arith.mulf %394, %179 : vector<14x14xf32>
    %396 = arith.addf %392, %395 : vector<14x14xf32>
    %c2_232 = arith.constant 2 : index
    %c15_233 = arith.constant 15 : index
    %397 = memref.load %arg4[%c2_232, %c15_233] : memref<4x18xf32, #tpu.memory_space<smem>>
    %398 = vector.broadcast %397 : f32 to vector<14x14xf32>
    %399 = arith.mulf %398, %181 : vector<14x14xf32>
    %400 = arith.addf %396, %399 : vector<14x14xf32>
    %c2_234 = arith.constant 2 : index
    %c16_235 = arith.constant 16 : index
    %401 = memref.load %arg4[%c2_234, %c16_235] : memref<4x18xf32, #tpu.memory_space<smem>>
    %402 = vector.broadcast %401 : f32 to vector<14x14xf32>
    %403 = arith.mulf %402, %183 : vector<14x14xf32>
    %404 = arith.addf %400, %403 : vector<14x14xf32>
    %c2_236 = arith.constant 2 : index
    %c17_237 = arith.constant 17 : index
    %405 = memref.load %arg4[%c2_236, %c17_237] : memref<4x18xf32, #tpu.memory_space<smem>>
    %406 = vector.broadcast %405 : f32 to vector<14x14xf32>
    %407 = arith.mulf %406, %185 : vector<14x14xf32>
    %408 = arith.addf %404, %407 : vector<14x14xf32>
    %c2_238 = arith.constant 2 : index
    %409 = memref.load %arg5[%c2_238] : memref<4xf32, #tpu.memory_space<smem>>
    %410 = vector.broadcast %409 : f32 to vector<14x14xf32>
    %411 = arith.addf %408, %410 : vector<14x14xf32>
    %cst_239 = arith.constant 0.000000e+00 : f32
    %412 = vector.broadcast %cst_239 : f32 to vector<14x14xf32>
    %413 = arith.maximumf %411, %412 : vector<14x14xf32>
    %c3_240 = arith.constant 3 : index
    %c0_241 = arith.constant 0 : index
    %414 = memref.load %arg4[%c3_240, %c0_241] : memref<4x18xf32, #tpu.memory_space<smem>>
    %415 = vector.broadcast %414 : f32 to vector<14x14xf32>
    %416 = arith.mulf %415, %151 : vector<14x14xf32>
    %c3_242 = arith.constant 3 : index
    %c1_243 = arith.constant 1 : index
    %417 = memref.load %arg4[%c3_242, %c1_243] : memref<4x18xf32, #tpu.memory_space<smem>>
    %418 = vector.broadcast %417 : f32 to vector<14x14xf32>
    %419 = arith.mulf %418, %153 : vector<14x14xf32>
    %420 = arith.addf %416, %419 : vector<14x14xf32>
    %c3_244 = arith.constant 3 : index
    %c2_245 = arith.constant 2 : index
    %421 = memref.load %arg4[%c3_244, %c2_245] : memref<4x18xf32, #tpu.memory_space<smem>>
    %422 = vector.broadcast %421 : f32 to vector<14x14xf32>
    %423 = arith.mulf %422, %155 : vector<14x14xf32>
    %424 = arith.addf %420, %423 : vector<14x14xf32>
    %c3_246 = arith.constant 3 : index
    %c3_247 = arith.constant 3 : index
    %425 = memref.load %arg4[%c3_246, %c3_247] : memref<4x18xf32, #tpu.memory_space<smem>>
    %426 = vector.broadcast %425 : f32 to vector<14x14xf32>
    %427 = arith.mulf %426, %157 : vector<14x14xf32>
    %428 = arith.addf %424, %427 : vector<14x14xf32>
    %c3_248 = arith.constant 3 : index
    %c4_249 = arith.constant 4 : index
    %429 = memref.load %arg4[%c3_248, %c4_249] : memref<4x18xf32, #tpu.memory_space<smem>>
    %430 = vector.broadcast %429 : f32 to vector<14x14xf32>
    %431 = arith.mulf %430, %159 : vector<14x14xf32>
    %432 = arith.addf %428, %431 : vector<14x14xf32>
    %c3_250 = arith.constant 3 : index
    %c5_251 = arith.constant 5 : index
    %433 = memref.load %arg4[%c3_250, %c5_251] : memref<4x18xf32, #tpu.memory_space<smem>>
    %434 = vector.broadcast %433 : f32 to vector<14x14xf32>
    %435 = arith.mulf %434, %161 : vector<14x14xf32>
    %436 = arith.addf %432, %435 : vector<14x14xf32>
    %c3_252 = arith.constant 3 : index
    %c6_253 = arith.constant 6 : index
    %437 = memref.load %arg4[%c3_252, %c6_253] : memref<4x18xf32, #tpu.memory_space<smem>>
    %438 = vector.broadcast %437 : f32 to vector<14x14xf32>
    %439 = arith.mulf %438, %163 : vector<14x14xf32>
    %440 = arith.addf %436, %439 : vector<14x14xf32>
    %c3_254 = arith.constant 3 : index
    %c7_255 = arith.constant 7 : index
    %441 = memref.load %arg4[%c3_254, %c7_255] : memref<4x18xf32, #tpu.memory_space<smem>>
    %442 = vector.broadcast %441 : f32 to vector<14x14xf32>
    %443 = arith.mulf %442, %165 : vector<14x14xf32>
    %444 = arith.addf %440, %443 : vector<14x14xf32>
    %c3_256 = arith.constant 3 : index
    %c8_257 = arith.constant 8 : index
    %445 = memref.load %arg4[%c3_256, %c8_257] : memref<4x18xf32, #tpu.memory_space<smem>>
    %446 = vector.broadcast %445 : f32 to vector<14x14xf32>
    %447 = arith.mulf %446, %167 : vector<14x14xf32>
    %448 = arith.addf %444, %447 : vector<14x14xf32>
    %c3_258 = arith.constant 3 : index
    %c9_259 = arith.constant 9 : index
    %449 = memref.load %arg4[%c3_258, %c9_259] : memref<4x18xf32, #tpu.memory_space<smem>>
    %450 = vector.broadcast %449 : f32 to vector<14x14xf32>
    %451 = arith.mulf %450, %169 : vector<14x14xf32>
    %452 = arith.addf %448, %451 : vector<14x14xf32>
    %c3_260 = arith.constant 3 : index
    %c10_261 = arith.constant 10 : index
    %453 = memref.load %arg4[%c3_260, %c10_261] : memref<4x18xf32, #tpu.memory_space<smem>>
    %454 = vector.broadcast %453 : f32 to vector<14x14xf32>
    %455 = arith.mulf %454, %171 : vector<14x14xf32>
    %456 = arith.addf %452, %455 : vector<14x14xf32>
    %c3_262 = arith.constant 3 : index
    %c11_263 = arith.constant 11 : index
    %457 = memref.load %arg4[%c3_262, %c11_263] : memref<4x18xf32, #tpu.memory_space<smem>>
    %458 = vector.broadcast %457 : f32 to vector<14x14xf32>
    %459 = arith.mulf %458, %173 : vector<14x14xf32>
    %460 = arith.addf %456, %459 : vector<14x14xf32>
    %c3_264 = arith.constant 3 : index
    %c12_265 = arith.constant 12 : index
    %461 = memref.load %arg4[%c3_264, %c12_265] : memref<4x18xf32, #tpu.memory_space<smem>>
    %462 = vector.broadcast %461 : f32 to vector<14x14xf32>
    %463 = arith.mulf %462, %175 : vector<14x14xf32>
    %464 = arith.addf %460, %463 : vector<14x14xf32>
    %c3_266 = arith.constant 3 : index
    %c13_267 = arith.constant 13 : index
    %465 = memref.load %arg4[%c3_266, %c13_267] : memref<4x18xf32, #tpu.memory_space<smem>>
    %466 = vector.broadcast %465 : f32 to vector<14x14xf32>
    %467 = arith.mulf %466, %177 : vector<14x14xf32>
    %468 = arith.addf %464, %467 : vector<14x14xf32>
    %c3_268 = arith.constant 3 : index
    %c14_269 = arith.constant 14 : index
    %469 = memref.load %arg4[%c3_268, %c14_269] : memref<4x18xf32, #tpu.memory_space<smem>>
    %470 = vector.broadcast %469 : f32 to vector<14x14xf32>
    %471 = arith.mulf %470, %179 : vector<14x14xf32>
    %472 = arith.addf %468, %471 : vector<14x14xf32>
    %c3_270 = arith.constant 3 : index
    %c15_271 = arith.constant 15 : index
    %473 = memref.load %arg4[%c3_270, %c15_271] : memref<4x18xf32, #tpu.memory_space<smem>>
    %474 = vector.broadcast %473 : f32 to vector<14x14xf32>
    %475 = arith.mulf %474, %181 : vector<14x14xf32>
    %476 = arith.addf %472, %475 : vector<14x14xf32>
    %c3_272 = arith.constant 3 : index
    %c16_273 = arith.constant 16 : index
    %477 = memref.load %arg4[%c3_272, %c16_273] : memref<4x18xf32, #tpu.memory_space<smem>>
    %478 = vector.broadcast %477 : f32 to vector<14x14xf32>
    %479 = arith.mulf %478, %183 : vector<14x14xf32>
    %480 = arith.addf %476, %479 : vector<14x14xf32>
    %c3_274 = arith.constant 3 : index
    %c17_275 = arith.constant 17 : index
    %481 = memref.load %arg4[%c3_274, %c17_275] : memref<4x18xf32, #tpu.memory_space<smem>>
    %482 = vector.broadcast %481 : f32 to vector<14x14xf32>
    %483 = arith.mulf %482, %185 : vector<14x14xf32>
    %484 = arith.addf %480, %483 : vector<14x14xf32>
    %c3_276 = arith.constant 3 : index
    %485 = memref.load %arg5[%c3_276] : memref<4xf32, #tpu.memory_space<smem>>
    %486 = vector.broadcast %485 : f32 to vector<14x14xf32>
    %487 = arith.addf %484, %486 : vector<14x14xf32>
    %cst_277 = arith.constant 0.000000e+00 : f32
    %488 = vector.broadcast %cst_277 : f32 to vector<14x14xf32>
    %489 = arith.maximumf %487, %488 : vector<14x14xf32>
    %490 = vector.extract_strided_slice %261 {offsets = [0, 0], sizes = [13, 14], strides = [1, 1]} : vector<14x14xf32> to vector<13x14xf32>
    %491 = vector.extract_strided_slice %261 {offsets = [1, 0], sizes = [13, 14], strides = [1, 1]} : vector<14x14xf32> to vector<13x14xf32>
    %492 = arith.maximumf %490, %491 : vector<13x14xf32>
    %493 = vector.extract_strided_slice %492 {offsets = [0, 0], sizes = [13, 13], strides = [1, 1]} : vector<13x14xf32> to vector<13x13xf32>
    %494 = vector.extract_strided_slice %492 {offsets = [0, 1], sizes = [13, 13], strides = [1, 1]} : vector<13x14xf32> to vector<13x13xf32>
    %495 = arith.maximumf %493, %494 : vector<13x13xf32>
    %496 = tpu.iota {dimensions = array<i32: 0>} : vector<13x7xi32>
    %497 = tpu.iota {dimensions = array<i32: 1>} : vector<13x7xi32>
    %c2_i32_278 = arith.constant 2 : i32
    %498 = vector.broadcast %c2_i32_278 : i32 to vector<13x7xi32>
    %499 = arith.muli %498, %497 : vector<13x7xi32>
    %500 = arith.cmpi eq, %496, %499 : vector<13x7xi32>
    %cst_279 = arith.constant 1.000000e+00 : f32
    %cst_280 = arith.constant 0.000000e+00 : f32
    %501 = vector.broadcast %cst_279 : f32 to vector<13x7xf32>
    %502 = vector.broadcast %cst_280 : f32 to vector<13x7xf32>
    %503 = arith.select %500, %501, %502 : vector<13x7xi1>, vector<13x7xf32>
    %504 = tpu.iota {dimensions = array<i32: 0>} : vector<7x13xi32>
    %505 = tpu.iota {dimensions = array<i32: 1>} : vector<7x13xi32>
    %c2_i32_281 = arith.constant 2 : i32
    %506 = vector.broadcast %c2_i32_281 : i32 to vector<7x13xi32>
    %507 = arith.muli %506, %504 : vector<7x13xi32>
    %508 = arith.cmpi eq, %505, %507 : vector<7x13xi32>
    %cst_282 = arith.constant 1.000000e+00 : f32
    %cst_283 = arith.constant 0.000000e+00 : f32
    %509 = vector.broadcast %cst_282 : f32 to vector<7x13xf32>
    %510 = vector.broadcast %cst_283 : f32 to vector<7x13xf32>
    %511 = arith.select %508, %509, %510 : vector<7x13xi1>, vector<7x13xf32>
    %cst_284 = arith.constant dense<0.000000e+00> : vector<13x7xf32>
    %512 = tpu.matmul %495, %503, %cst_284 {dimension_numbers = #tpu.dot_dimension_numbers<[1], [0], [0], [1], [0, 0, 1, 1], [], []>} : vector<13x13xf32>, vector<13x7xf32>, vector<13x7xf32> -> vector<13x7xf32>
    %cst_285 = arith.constant dense<0.000000e+00> : vector<7x7xf32>
    %513 = tpu.matmul %511, %512, %cst_285 {dimension_numbers = #tpu.dot_dimension_numbers<[1], [0], [0], [1], [0, 0, 1, 1], [], []>} : vector<7x13xf32>, vector<13x7xf32>, vector<7x7xf32> -> vector<7x7xf32>
    %514 = vector.extract_strided_slice %337 {offsets = [0, 0], sizes = [13, 14], strides = [1, 1]} : vector<14x14xf32> to vector<13x14xf32>
    %515 = vector.extract_strided_slice %337 {offsets = [1, 0], sizes = [13, 14], strides = [1, 1]} : vector<14x14xf32> to vector<13x14xf32>
    %516 = arith.maximumf %514, %515 : vector<13x14xf32>
    %517 = vector.extract_strided_slice %516 {offsets = [0, 0], sizes = [13, 13], strides = [1, 1]} : vector<13x14xf32> to vector<13x13xf32>
    %518 = vector.extract_strided_slice %516 {offsets = [0, 1], sizes = [13, 13], strides = [1, 1]} : vector<13x14xf32> to vector<13x13xf32>
    %519 = arith.maximumf %517, %518 : vector<13x13xf32>
    %520 = tpu.iota {dimensions = array<i32: 0>} : vector<13x7xi32>
    %521 = tpu.iota {dimensions = array<i32: 1>} : vector<13x7xi32>
    %c2_i32_286 = arith.constant 2 : i32
    %522 = vector.broadcast %c2_i32_286 : i32 to vector<13x7xi32>
    %523 = arith.muli %522, %521 : vector<13x7xi32>
    %524 = arith.cmpi eq, %520, %523 : vector<13x7xi32>
    %cst_287 = arith.constant 1.000000e+00 : f32
    %cst_288 = arith.constant 0.000000e+00 : f32
    %525 = vector.broadcast %cst_287 : f32 to vector<13x7xf32>
    %526 = vector.broadcast %cst_288 : f32 to vector<13x7xf32>
    %527 = arith.select %524, %525, %526 : vector<13x7xi1>, vector<13x7xf32>
    %528 = tpu.iota {dimensions = array<i32: 0>} : vector<7x13xi32>
    %529 = tpu.iota {dimensions = array<i32: 1>} : vector<7x13xi32>
    %c2_i32_289 = arith.constant 2 : i32
    %530 = vector.broadcast %c2_i32_289 : i32 to vector<7x13xi32>
    %531 = arith.muli %530, %528 : vector<7x13xi32>
    %532 = arith.cmpi eq, %529, %531 : vector<7x13xi32>
    %cst_290 = arith.constant 1.000000e+00 : f32
    %cst_291 = arith.constant 0.000000e+00 : f32
    %533 = vector.broadcast %cst_290 : f32 to vector<7x13xf32>
    %534 = vector.broadcast %cst_291 : f32 to vector<7x13xf32>
    %535 = arith.select %532, %533, %534 : vector<7x13xi1>, vector<7x13xf32>
    %cst_292 = arith.constant dense<0.000000e+00> : vector<13x7xf32>
    %536 = tpu.matmul %519, %527, %cst_292 {dimension_numbers = #tpu.dot_dimension_numbers<[1], [0], [0], [1], [0, 0, 1, 1], [], []>} : vector<13x13xf32>, vector<13x7xf32>, vector<13x7xf32> -> vector<13x7xf32>
    %cst_293 = arith.constant dense<0.000000e+00> : vector<7x7xf32>
    %537 = tpu.matmul %535, %536, %cst_293 {dimension_numbers = #tpu.dot_dimension_numbers<[1], [0], [0], [1], [0, 0, 1, 1], [], []>} : vector<7x13xf32>, vector<13x7xf32>, vector<7x7xf32> -> vector<7x7xf32>
    %538 = vector.extract_strided_slice %413 {offsets = [0, 0], sizes = [13, 14], strides = [1, 1]} : vector<14x14xf32> to vector<13x14xf32>
    %539 = vector.extract_strided_slice %413 {offsets = [1, 0], sizes = [13, 14], strides = [1, 1]} : vector<14x14xf32> to vector<13x14xf32>
    %540 = arith.maximumf %538, %539 : vector<13x14xf32>
    %541 = vector.extract_strided_slice %540 {offsets = [0, 0], sizes = [13, 13], strides = [1, 1]} : vector<13x14xf32> to vector<13x13xf32>
    %542 = vector.extract_strided_slice %540 {offsets = [0, 1], sizes = [13, 13], strides = [1, 1]} : vector<13x14xf32> to vector<13x13xf32>
    %543 = arith.maximumf %541, %542 : vector<13x13xf32>
    %544 = tpu.iota {dimensions = array<i32: 0>} : vector<13x7xi32>
    %545 = tpu.iota {dimensions = array<i32: 1>} : vector<13x7xi32>
    %c2_i32_294 = arith.constant 2 : i32
    %546 = vector.broadcast %c2_i32_294 : i32 to vector<13x7xi32>
    %547 = arith.muli %546, %545 : vector<13x7xi32>
    %548 = arith.cmpi eq, %544, %547 : vector<13x7xi32>
    %cst_295 = arith.constant 1.000000e+00 : f32
    %cst_296 = arith.constant 0.000000e+00 : f32
    %549 = vector.broadcast %cst_295 : f32 to vector<13x7xf32>
    %550 = vector.broadcast %cst_296 : f32 to vector<13x7xf32>
    %551 = arith.select %548, %549, %550 : vector<13x7xi1>, vector<13x7xf32>
    %552 = tpu.iota {dimensions = array<i32: 0>} : vector<7x13xi32>
    %553 = tpu.iota {dimensions = array<i32: 1>} : vector<7x13xi32>
    %c2_i32_297 = arith.constant 2 : i32
    %554 = vector.broadcast %c2_i32_297 : i32 to vector<7x13xi32>
    %555 = arith.muli %554, %552 : vector<7x13xi32>
    %556 = arith.cmpi eq, %553, %555 : vector<7x13xi32>
    %cst_298 = arith.constant 1.000000e+00 : f32
    %cst_299 = arith.constant 0.000000e+00 : f32
    %557 = vector.broadcast %cst_298 : f32 to vector<7x13xf32>
    %558 = vector.broadcast %cst_299 : f32 to vector<7x13xf32>
    %559 = arith.select %556, %557, %558 : vector<7x13xi1>, vector<7x13xf32>
    %cst_300 = arith.constant dense<0.000000e+00> : vector<13x7xf32>
    %560 = tpu.matmul %543, %551, %cst_300 {dimension_numbers = #tpu.dot_dimension_numbers<[1], [0], [0], [1], [0, 0, 1, 1], [], []>} : vector<13x13xf32>, vector<13x7xf32>, vector<13x7xf32> -> vector<13x7xf32>
    %cst_301 = arith.constant dense<0.000000e+00> : vector<7x7xf32>
    %561 = tpu.matmul %559, %560, %cst_301 {dimension_numbers = #tpu.dot_dimension_numbers<[1], [0], [0], [1], [0, 0, 1, 1], [], []>} : vector<7x13xf32>, vector<13x7xf32>, vector<7x7xf32> -> vector<7x7xf32>
    %562 = vector.extract_strided_slice %489 {offsets = [0, 0], sizes = [13, 14], strides = [1, 1]} : vector<14x14xf32> to vector<13x14xf32>
    %563 = vector.extract_strided_slice %489 {offsets = [1, 0], sizes = [13, 14], strides = [1, 1]} : vector<14x14xf32> to vector<13x14xf32>
    %564 = arith.maximumf %562, %563 : vector<13x14xf32>
    %565 = vector.extract_strided_slice %564 {offsets = [0, 0], sizes = [13, 13], strides = [1, 1]} : vector<13x14xf32> to vector<13x13xf32>
    %566 = vector.extract_strided_slice %564 {offsets = [0, 1], sizes = [13, 13], strides = [1, 1]} : vector<13x14xf32> to vector<13x13xf32>
    %567 = arith.maximumf %565, %566 : vector<13x13xf32>
    %568 = tpu.iota {dimensions = array<i32: 0>} : vector<13x7xi32>
    %569 = tpu.iota {dimensions = array<i32: 1>} : vector<13x7xi32>
    %c2_i32_302 = arith.constant 2 : i32
    %570 = vector.broadcast %c2_i32_302 : i32 to vector<13x7xi32>
    %571 = arith.muli %570, %569 : vector<13x7xi32>
    %572 = arith.cmpi eq, %568, %571 : vector<13x7xi32>
    %cst_303 = arith.constant 1.000000e+00 : f32
    %cst_304 = arith.constant 0.000000e+00 : f32
    %573 = vector.broadcast %cst_303 : f32 to vector<13x7xf32>
    %574 = vector.broadcast %cst_304 : f32 to vector<13x7xf32>
    %575 = arith.select %572, %573, %574 : vector<13x7xi1>, vector<13x7xf32>
    %576 = tpu.iota {dimensions = array<i32: 0>} : vector<7x13xi32>
    %577 = tpu.iota {dimensions = array<i32: 1>} : vector<7x13xi32>
    %c2_i32_305 = arith.constant 2 : i32
    %578 = vector.broadcast %c2_i32_305 : i32 to vector<7x13xi32>
    %579 = arith.muli %578, %576 : vector<7x13xi32>
    %580 = arith.cmpi eq, %577, %579 : vector<7x13xi32>
    %cst_306 = arith.constant 1.000000e+00 : f32
    %cst_307 = arith.constant 0.000000e+00 : f32
    %581 = vector.broadcast %cst_306 : f32 to vector<7x13xf32>
    %582 = vector.broadcast %cst_307 : f32 to vector<7x13xf32>
    %583 = arith.select %580, %581, %582 : vector<7x13xi1>, vector<7x13xf32>
    %cst_308 = arith.constant dense<0.000000e+00> : vector<13x7xf32>
    %584 = tpu.matmul %567, %575, %cst_308 {dimension_numbers = #tpu.dot_dimension_numbers<[1], [0], [0], [1], [0, 0, 1, 1], [], []>} : vector<13x13xf32>, vector<13x7xf32>, vector<13x7xf32> -> vector<13x7xf32>
    %cst_309 = arith.constant dense<0.000000e+00> : vector<7x7xf32>
    %585 = tpu.matmul %583, %584, %cst_309 {dimension_numbers = #tpu.dot_dimension_numbers<[1], [0], [0], [1], [0, 0, 1, 1], [], []>} : vector<7x13xf32>, vector<13x7xf32>, vector<7x7xf32> -> vector<7x7xf32>
    %586 = vector.extract_strided_slice %513 {offsets = [0, 0], sizes = [5, 5], strides = [1, 1]} : vector<7x7xf32> to vector<5x5xf32>
    %587 = vector.extract_strided_slice %513 {offsets = [0, 1], sizes = [5, 5], strides = [1, 1]} : vector<7x7xf32> to vector<5x5xf32>
    %588 = vector.extract_strided_slice %513 {offsets = [0, 2], sizes = [5, 5], strides = [1, 1]} : vector<7x7xf32> to vector<5x5xf32>
    %589 = vector.extract_strided_slice %513 {offsets = [1, 0], sizes = [5, 5], strides = [1, 1]} : vector<7x7xf32> to vector<5x5xf32>
    %590 = vector.extract_strided_slice %513 {offsets = [1, 1], sizes = [5, 5], strides = [1, 1]} : vector<7x7xf32> to vector<5x5xf32>
    %591 = vector.extract_strided_slice %513 {offsets = [1, 2], sizes = [5, 5], strides = [1, 1]} : vector<7x7xf32> to vector<5x5xf32>
    %592 = vector.extract_strided_slice %513 {offsets = [2, 0], sizes = [5, 5], strides = [1, 1]} : vector<7x7xf32> to vector<5x5xf32>
    %593 = vector.extract_strided_slice %513 {offsets = [2, 1], sizes = [5, 5], strides = [1, 1]} : vector<7x7xf32> to vector<5x5xf32>
    %594 = vector.extract_strided_slice %513 {offsets = [2, 2], sizes = [5, 5], strides = [1, 1]} : vector<7x7xf32> to vector<5x5xf32>
    %595 = vector.extract_strided_slice %537 {offsets = [0, 0], sizes = [5, 5], strides = [1, 1]} : vector<7x7xf32> to vector<5x5xf32>
    %596 = vector.extract_strided_slice %537 {offsets = [0, 1], sizes = [5, 5], strides = [1, 1]} : vector<7x7xf32> to vector<5x5xf32>
    %597 = vector.extract_strided_slice %537 {offsets = [0, 2], sizes = [5, 5], strides = [1, 1]} : vector<7x7xf32> to vector<5x5xf32>
    %598 = vector.extract_strided_slice %537 {offsets = [1, 0], sizes = [5, 5], strides = [1, 1]} : vector<7x7xf32> to vector<5x5xf32>
    %599 = vector.extract_strided_slice %537 {offsets = [1, 1], sizes = [5, 5], strides = [1, 1]} : vector<7x7xf32> to vector<5x5xf32>
    %600 = vector.extract_strided_slice %537 {offsets = [1, 2], sizes = [5, 5], strides = [1, 1]} : vector<7x7xf32> to vector<5x5xf32>
    %601 = vector.extract_strided_slice %537 {offsets = [2, 0], sizes = [5, 5], strides = [1, 1]} : vector<7x7xf32> to vector<5x5xf32>
    %602 = vector.extract_strided_slice %537 {offsets = [2, 1], sizes = [5, 5], strides = [1, 1]} : vector<7x7xf32> to vector<5x5xf32>
    %603 = vector.extract_strided_slice %537 {offsets = [2, 2], sizes = [5, 5], strides = [1, 1]} : vector<7x7xf32> to vector<5x5xf32>
    %604 = vector.extract_strided_slice %561 {offsets = [0, 0], sizes = [5, 5], strides = [1, 1]} : vector<7x7xf32> to vector<5x5xf32>
    %605 = vector.extract_strided_slice %561 {offsets = [0, 1], sizes = [5, 5], strides = [1, 1]} : vector<7x7xf32> to vector<5x5xf32>
    %606 = vector.extract_strided_slice %561 {offsets = [0, 2], sizes = [5, 5], strides = [1, 1]} : vector<7x7xf32> to vector<5x5xf32>
    %607 = vector.extract_strided_slice %561 {offsets = [1, 0], sizes = [5, 5], strides = [1, 1]} : vector<7x7xf32> to vector<5x5xf32>
    %608 = vector.extract_strided_slice %561 {offsets = [1, 1], sizes = [5, 5], strides = [1, 1]} : vector<7x7xf32> to vector<5x5xf32>
    %609 = vector.extract_strided_slice %561 {offsets = [1, 2], sizes = [5, 5], strides = [1, 1]} : vector<7x7xf32> to vector<5x5xf32>
    %610 = vector.extract_strided_slice %561 {offsets = [2, 0], sizes = [5, 5], strides = [1, 1]} : vector<7x7xf32> to vector<5x5xf32>
    %611 = vector.extract_strided_slice %561 {offsets = [2, 1], sizes = [5, 5], strides = [1, 1]} : vector<7x7xf32> to vector<5x5xf32>
    %612 = vector.extract_strided_slice %561 {offsets = [2, 2], sizes = [5, 5], strides = [1, 1]} : vector<7x7xf32> to vector<5x5xf32>
    %613 = vector.extract_strided_slice %585 {offsets = [0, 0], sizes = [5, 5], strides = [1, 1]} : vector<7x7xf32> to vector<5x5xf32>
    %614 = vector.extract_strided_slice %585 {offsets = [0, 1], sizes = [5, 5], strides = [1, 1]} : vector<7x7xf32> to vector<5x5xf32>
    %615 = vector.extract_strided_slice %585 {offsets = [0, 2], sizes = [5, 5], strides = [1, 1]} : vector<7x7xf32> to vector<5x5xf32>
    %616 = vector.extract_strided_slice %585 {offsets = [1, 0], sizes = [5, 5], strides = [1, 1]} : vector<7x7xf32> to vector<5x5xf32>
    %617 = vector.extract_strided_slice %585 {offsets = [1, 1], sizes = [5, 5], strides = [1, 1]} : vector<7x7xf32> to vector<5x5xf32>
    %618 = vector.extract_strided_slice %585 {offsets = [1, 2], sizes = [5, 5], strides = [1, 1]} : vector<7x7xf32> to vector<5x5xf32>
    %619 = vector.extract_strided_slice %585 {offsets = [2, 0], sizes = [5, 5], strides = [1, 1]} : vector<7x7xf32> to vector<5x5xf32>
    %620 = vector.extract_strided_slice %585 {offsets = [2, 1], sizes = [5, 5], strides = [1, 1]} : vector<7x7xf32> to vector<5x5xf32>
    %621 = vector.extract_strided_slice %585 {offsets = [2, 2], sizes = [5, 5], strides = [1, 1]} : vector<7x7xf32> to vector<5x5xf32>
    %c0_310 = arith.constant 0 : index
    %c0_311 = arith.constant 0 : index
    %622 = memref.load %arg6[%c0_310, %c0_311] : memref<8x36xf32, #tpu.memory_space<smem>>
    %623 = vector.broadcast %622 : f32 to vector<5x5xf32>
    %624 = arith.mulf %623, %586 : vector<5x5xf32>
    %c0_312 = arith.constant 0 : index
    %c1_313 = arith.constant 1 : index
    %625 = memref.load %arg6[%c0_312, %c1_313] : memref<8x36xf32, #tpu.memory_space<smem>>
    %626 = vector.broadcast %625 : f32 to vector<5x5xf32>
    %627 = arith.mulf %626, %587 : vector<5x5xf32>
    %628 = arith.addf %624, %627 : vector<5x5xf32>
    %c0_314 = arith.constant 0 : index
    %c2_315 = arith.constant 2 : index
    %629 = memref.load %arg6[%c0_314, %c2_315] : memref<8x36xf32, #tpu.memory_space<smem>>
    %630 = vector.broadcast %629 : f32 to vector<5x5xf32>
    %631 = arith.mulf %630, %588 : vector<5x5xf32>
    %632 = arith.addf %628, %631 : vector<5x5xf32>
    %c0_316 = arith.constant 0 : index
    %c3_317 = arith.constant 3 : index
    %633 = memref.load %arg6[%c0_316, %c3_317] : memref<8x36xf32, #tpu.memory_space<smem>>
    %634 = vector.broadcast %633 : f32 to vector<5x5xf32>
    %635 = arith.mulf %634, %589 : vector<5x5xf32>
    %636 = arith.addf %632, %635 : vector<5x5xf32>
    %c0_318 = arith.constant 0 : index
    %c4_319 = arith.constant 4 : index
    %637 = memref.load %arg6[%c0_318, %c4_319] : memref<8x36xf32, #tpu.memory_space<smem>>
    %638 = vector.broadcast %637 : f32 to vector<5x5xf32>
    %639 = arith.mulf %638, %590 : vector<5x5xf32>
    %640 = arith.addf %636, %639 : vector<5x5xf32>
    %c0_320 = arith.constant 0 : index
    %c5_321 = arith.constant 5 : index
    %641 = memref.load %arg6[%c0_320, %c5_321] : memref<8x36xf32, #tpu.memory_space<smem>>
    %642 = vector.broadcast %641 : f32 to vector<5x5xf32>
    %643 = arith.mulf %642, %591 : vector<5x5xf32>
    %644 = arith.addf %640, %643 : vector<5x5xf32>
    %c0_322 = arith.constant 0 : index
    %c6_323 = arith.constant 6 : index
    %645 = memref.load %arg6[%c0_322, %c6_323] : memref<8x36xf32, #tpu.memory_space<smem>>
    %646 = vector.broadcast %645 : f32 to vector<5x5xf32>
    %647 = arith.mulf %646, %592 : vector<5x5xf32>
    %648 = arith.addf %644, %647 : vector<5x5xf32>
    %c0_324 = arith.constant 0 : index
    %c7_325 = arith.constant 7 : index
    %649 = memref.load %arg6[%c0_324, %c7_325] : memref<8x36xf32, #tpu.memory_space<smem>>
    %650 = vector.broadcast %649 : f32 to vector<5x5xf32>
    %651 = arith.mulf %650, %593 : vector<5x5xf32>
    %652 = arith.addf %648, %651 : vector<5x5xf32>
    %c0_326 = arith.constant 0 : index
    %c8_327 = arith.constant 8 : index
    %653 = memref.load %arg6[%c0_326, %c8_327] : memref<8x36xf32, #tpu.memory_space<smem>>
    %654 = vector.broadcast %653 : f32 to vector<5x5xf32>
    %655 = arith.mulf %654, %594 : vector<5x5xf32>
    %656 = arith.addf %652, %655 : vector<5x5xf32>
    %c0_328 = arith.constant 0 : index
    %c9_329 = arith.constant 9 : index
    %657 = memref.load %arg6[%c0_328, %c9_329] : memref<8x36xf32, #tpu.memory_space<smem>>
    %658 = vector.broadcast %657 : f32 to vector<5x5xf32>
    %659 = arith.mulf %658, %595 : vector<5x5xf32>
    %660 = arith.addf %656, %659 : vector<5x5xf32>
    %c0_330 = arith.constant 0 : index
    %c10_331 = arith.constant 10 : index
    %661 = memref.load %arg6[%c0_330, %c10_331] : memref<8x36xf32, #tpu.memory_space<smem>>
    %662 = vector.broadcast %661 : f32 to vector<5x5xf32>
    %663 = arith.mulf %662, %596 : vector<5x5xf32>
    %664 = arith.addf %660, %663 : vector<5x5xf32>
    %c0_332 = arith.constant 0 : index
    %c11_333 = arith.constant 11 : index
    %665 = memref.load %arg6[%c0_332, %c11_333] : memref<8x36xf32, #tpu.memory_space<smem>>
    %666 = vector.broadcast %665 : f32 to vector<5x5xf32>
    %667 = arith.mulf %666, %597 : vector<5x5xf32>
    %668 = arith.addf %664, %667 : vector<5x5xf32>
    %c0_334 = arith.constant 0 : index
    %c12_335 = arith.constant 12 : index
    %669 = memref.load %arg6[%c0_334, %c12_335] : memref<8x36xf32, #tpu.memory_space<smem>>
    %670 = vector.broadcast %669 : f32 to vector<5x5xf32>
    %671 = arith.mulf %670, %598 : vector<5x5xf32>
    %672 = arith.addf %668, %671 : vector<5x5xf32>
    %c0_336 = arith.constant 0 : index
    %c13_337 = arith.constant 13 : index
    %673 = memref.load %arg6[%c0_336, %c13_337] : memref<8x36xf32, #tpu.memory_space<smem>>
    %674 = vector.broadcast %673 : f32 to vector<5x5xf32>
    %675 = arith.mulf %674, %599 : vector<5x5xf32>
    %676 = arith.addf %672, %675 : vector<5x5xf32>
    %c0_338 = arith.constant 0 : index
    %c14_339 = arith.constant 14 : index
    %677 = memref.load %arg6[%c0_338, %c14_339] : memref<8x36xf32, #tpu.memory_space<smem>>
    %678 = vector.broadcast %677 : f32 to vector<5x5xf32>
    %679 = arith.mulf %678, %600 : vector<5x5xf32>
    %680 = arith.addf %676, %679 : vector<5x5xf32>
    %c0_340 = arith.constant 0 : index
    %c15_341 = arith.constant 15 : index
    %681 = memref.load %arg6[%c0_340, %c15_341] : memref<8x36xf32, #tpu.memory_space<smem>>
    %682 = vector.broadcast %681 : f32 to vector<5x5xf32>
    %683 = arith.mulf %682, %601 : vector<5x5xf32>
    %684 = arith.addf %680, %683 : vector<5x5xf32>
    %c0_342 = arith.constant 0 : index
    %c16_343 = arith.constant 16 : index
    %685 = memref.load %arg6[%c0_342, %c16_343] : memref<8x36xf32, #tpu.memory_space<smem>>
    %686 = vector.broadcast %685 : f32 to vector<5x5xf32>
    %687 = arith.mulf %686, %602 : vector<5x5xf32>
    %688 = arith.addf %684, %687 : vector<5x5xf32>
    %c0_344 = arith.constant 0 : index
    %c17_345 = arith.constant 17 : index
    %689 = memref.load %arg6[%c0_344, %c17_345] : memref<8x36xf32, #tpu.memory_space<smem>>
    %690 = vector.broadcast %689 : f32 to vector<5x5xf32>
    %691 = arith.mulf %690, %603 : vector<5x5xf32>
    %692 = arith.addf %688, %691 : vector<5x5xf32>
    %c0_346 = arith.constant 0 : index
    %c18 = arith.constant 18 : index
    %693 = memref.load %arg6[%c0_346, %c18] : memref<8x36xf32, #tpu.memory_space<smem>>
    %694 = vector.broadcast %693 : f32 to vector<5x5xf32>
    %695 = arith.mulf %694, %604 : vector<5x5xf32>
    %696 = arith.addf %692, %695 : vector<5x5xf32>
    %c0_347 = arith.constant 0 : index
    %c19 = arith.constant 19 : index
    %697 = memref.load %arg6[%c0_347, %c19] : memref<8x36xf32, #tpu.memory_space<smem>>
    %698 = vector.broadcast %697 : f32 to vector<5x5xf32>
    %699 = arith.mulf %698, %605 : vector<5x5xf32>
    %700 = arith.addf %696, %699 : vector<5x5xf32>
    %c0_348 = arith.constant 0 : index
    %c20 = arith.constant 20 : index
    %701 = memref.load %arg6[%c0_348, %c20] : memref<8x36xf32, #tpu.memory_space<smem>>
    %702 = vector.broadcast %701 : f32 to vector<5x5xf32>
    %703 = arith.mulf %702, %606 : vector<5x5xf32>
    %704 = arith.addf %700, %703 : vector<5x5xf32>
    %c0_349 = arith.constant 0 : index
    %c21 = arith.constant 21 : index
    %705 = memref.load %arg6[%c0_349, %c21] : memref<8x36xf32, #tpu.memory_space<smem>>
    %706 = vector.broadcast %705 : f32 to vector<5x5xf32>
    %707 = arith.mulf %706, %607 : vector<5x5xf32>
    %708 = arith.addf %704, %707 : vector<5x5xf32>
    %c0_350 = arith.constant 0 : index
    %c22 = arith.constant 22 : index
    %709 = memref.load %arg6[%c0_350, %c22] : memref<8x36xf32, #tpu.memory_space<smem>>
    %710 = vector.broadcast %709 : f32 to vector<5x5xf32>
    %711 = arith.mulf %710, %608 : vector<5x5xf32>
    %712 = arith.addf %708, %711 : vector<5x5xf32>
    %c0_351 = arith.constant 0 : index
    %c23 = arith.constant 23 : index
    %713 = memref.load %arg6[%c0_351, %c23] : memref<8x36xf32, #tpu.memory_space<smem>>
    %714 = vector.broadcast %713 : f32 to vector<5x5xf32>
    %715 = arith.mulf %714, %609 : vector<5x5xf32>
    %716 = arith.addf %712, %715 : vector<5x5xf32>
    %c0_352 = arith.constant 0 : index
    %c24 = arith.constant 24 : index
    %717 = memref.load %arg6[%c0_352, %c24] : memref<8x36xf32, #tpu.memory_space<smem>>
    %718 = vector.broadcast %717 : f32 to vector<5x5xf32>
    %719 = arith.mulf %718, %610 : vector<5x5xf32>
    %720 = arith.addf %716, %719 : vector<5x5xf32>
    %c0_353 = arith.constant 0 : index
    %c25 = arith.constant 25 : index
    %721 = memref.load %arg6[%c0_353, %c25] : memref<8x36xf32, #tpu.memory_space<smem>>
    %722 = vector.broadcast %721 : f32 to vector<5x5xf32>
    %723 = arith.mulf %722, %611 : vector<5x5xf32>
    %724 = arith.addf %720, %723 : vector<5x5xf32>
    %c0_354 = arith.constant 0 : index
    %c26 = arith.constant 26 : index
    %725 = memref.load %arg6[%c0_354, %c26] : memref<8x36xf32, #tpu.memory_space<smem>>
    %726 = vector.broadcast %725 : f32 to vector<5x5xf32>
    %727 = arith.mulf %726, %612 : vector<5x5xf32>
    %728 = arith.addf %724, %727 : vector<5x5xf32>
    %c0_355 = arith.constant 0 : index
    %c27 = arith.constant 27 : index
    %729 = memref.load %arg6[%c0_355, %c27] : memref<8x36xf32, #tpu.memory_space<smem>>
    %730 = vector.broadcast %729 : f32 to vector<5x5xf32>
    %731 = arith.mulf %730, %613 : vector<5x5xf32>
    %732 = arith.addf %728, %731 : vector<5x5xf32>
    %c0_356 = arith.constant 0 : index
    %c28 = arith.constant 28 : index
    %733 = memref.load %arg6[%c0_356, %c28] : memref<8x36xf32, #tpu.memory_space<smem>>
    %734 = vector.broadcast %733 : f32 to vector<5x5xf32>
    %735 = arith.mulf %734, %614 : vector<5x5xf32>
    %736 = arith.addf %732, %735 : vector<5x5xf32>
    %c0_357 = arith.constant 0 : index
    %c29 = arith.constant 29 : index
    %737 = memref.load %arg6[%c0_357, %c29] : memref<8x36xf32, #tpu.memory_space<smem>>
    %738 = vector.broadcast %737 : f32 to vector<5x5xf32>
    %739 = arith.mulf %738, %615 : vector<5x5xf32>
    %740 = arith.addf %736, %739 : vector<5x5xf32>
    %c0_358 = arith.constant 0 : index
    %c30 = arith.constant 30 : index
    %741 = memref.load %arg6[%c0_358, %c30] : memref<8x36xf32, #tpu.memory_space<smem>>
    %742 = vector.broadcast %741 : f32 to vector<5x5xf32>
    %743 = arith.mulf %742, %616 : vector<5x5xf32>
    %744 = arith.addf %740, %743 : vector<5x5xf32>
    %c0_359 = arith.constant 0 : index
    %c31 = arith.constant 31 : index
    %745 = memref.load %arg6[%c0_359, %c31] : memref<8x36xf32, #tpu.memory_space<smem>>
    %746 = vector.broadcast %745 : f32 to vector<5x5xf32>
    %747 = arith.mulf %746, %617 : vector<5x5xf32>
    %748 = arith.addf %744, %747 : vector<5x5xf32>
    %c0_360 = arith.constant 0 : index
    %c32 = arith.constant 32 : index
    %749 = memref.load %arg6[%c0_360, %c32] : memref<8x36xf32, #tpu.memory_space<smem>>
    %750 = vector.broadcast %749 : f32 to vector<5x5xf32>
    %751 = arith.mulf %750, %618 : vector<5x5xf32>
    %752 = arith.addf %748, %751 : vector<5x5xf32>
    %c0_361 = arith.constant 0 : index
    %c33 = arith.constant 33 : index
    %753 = memref.load %arg6[%c0_361, %c33] : memref<8x36xf32, #tpu.memory_space<smem>>
    %754 = vector.broadcast %753 : f32 to vector<5x5xf32>
    %755 = arith.mulf %754, %619 : vector<5x5xf32>
    %756 = arith.addf %752, %755 : vector<5x5xf32>
    %c0_362 = arith.constant 0 : index
    %c34 = arith.constant 34 : index
    %757 = memref.load %arg6[%c0_362, %c34] : memref<8x36xf32, #tpu.memory_space<smem>>
    %758 = vector.broadcast %757 : f32 to vector<5x5xf32>
    %759 = arith.mulf %758, %620 : vector<5x5xf32>
    %760 = arith.addf %756, %759 : vector<5x5xf32>
    %c0_363 = arith.constant 0 : index
    %c35 = arith.constant 35 : index
    %761 = memref.load %arg6[%c0_363, %c35] : memref<8x36xf32, #tpu.memory_space<smem>>
    %762 = vector.broadcast %761 : f32 to vector<5x5xf32>
    %763 = arith.mulf %762, %621 : vector<5x5xf32>
    %764 = arith.addf %760, %763 : vector<5x5xf32>
    %c0_364 = arith.constant 0 : index
    %765 = memref.load %arg7[%c0_364] : memref<8xf32, #tpu.memory_space<smem>>
    %766 = vector.broadcast %765 : f32 to vector<5x5xf32>
    %767 = arith.addf %764, %766 : vector<5x5xf32>
    %cst_365 = arith.constant 0.000000e+00 : f32
    %768 = vector.broadcast %cst_365 : f32 to vector<5x5xf32>
    %769 = arith.maximumf %767, %768 : vector<5x5xf32>
    %c1_366 = arith.constant 1 : index
    %c0_367 = arith.constant 0 : index
    %770 = memref.load %arg6[%c1_366, %c0_367] : memref<8x36xf32, #tpu.memory_space<smem>>
    %771 = vector.broadcast %770 : f32 to vector<5x5xf32>
    %772 = arith.mulf %771, %586 : vector<5x5xf32>
    %c1_368 = arith.constant 1 : index
    %c1_369 = arith.constant 1 : index
    %773 = memref.load %arg6[%c1_368, %c1_369] : memref<8x36xf32, #tpu.memory_space<smem>>
    %774 = vector.broadcast %773 : f32 to vector<5x5xf32>
    %775 = arith.mulf %774, %587 : vector<5x5xf32>
    %776 = arith.addf %772, %775 : vector<5x5xf32>
    %c1_370 = arith.constant 1 : index
    %c2_371 = arith.constant 2 : index
    %777 = memref.load %arg6[%c1_370, %c2_371] : memref<8x36xf32, #tpu.memory_space<smem>>
    %778 = vector.broadcast %777 : f32 to vector<5x5xf32>
    %779 = arith.mulf %778, %588 : vector<5x5xf32>
    %780 = arith.addf %776, %779 : vector<5x5xf32>
    %c1_372 = arith.constant 1 : index
    %c3_373 = arith.constant 3 : index
    %781 = memref.load %arg6[%c1_372, %c3_373] : memref<8x36xf32, #tpu.memory_space<smem>>
    %782 = vector.broadcast %781 : f32 to vector<5x5xf32>
    %783 = arith.mulf %782, %589 : vector<5x5xf32>
    %784 = arith.addf %780, %783 : vector<5x5xf32>
    %c1_374 = arith.constant 1 : index
    %c4_375 = arith.constant 4 : index
    %785 = memref.load %arg6[%c1_374, %c4_375] : memref<8x36xf32, #tpu.memory_space<smem>>
    %786 = vector.broadcast %785 : f32 to vector<5x5xf32>
    %787 = arith.mulf %786, %590 : vector<5x5xf32>
    %788 = arith.addf %784, %787 : vector<5x5xf32>
    %c1_376 = arith.constant 1 : index
    %c5_377 = arith.constant 5 : index
    %789 = memref.load %arg6[%c1_376, %c5_377] : memref<8x36xf32, #tpu.memory_space<smem>>
    %790 = vector.broadcast %789 : f32 to vector<5x5xf32>
    %791 = arith.mulf %790, %591 : vector<5x5xf32>
    %792 = arith.addf %788, %791 : vector<5x5xf32>
    %c1_378 = arith.constant 1 : index
    %c6_379 = arith.constant 6 : index
    %793 = memref.load %arg6[%c1_378, %c6_379] : memref<8x36xf32, #tpu.memory_space<smem>>
    %794 = vector.broadcast %793 : f32 to vector<5x5xf32>
    %795 = arith.mulf %794, %592 : vector<5x5xf32>
    %796 = arith.addf %792, %795 : vector<5x5xf32>
    %c1_380 = arith.constant 1 : index
    %c7_381 = arith.constant 7 : index
    %797 = memref.load %arg6[%c1_380, %c7_381] : memref<8x36xf32, #tpu.memory_space<smem>>
    %798 = vector.broadcast %797 : f32 to vector<5x5xf32>
    %799 = arith.mulf %798, %593 : vector<5x5xf32>
    %800 = arith.addf %796, %799 : vector<5x5xf32>
    %c1_382 = arith.constant 1 : index
    %c8_383 = arith.constant 8 : index
    %801 = memref.load %arg6[%c1_382, %c8_383] : memref<8x36xf32, #tpu.memory_space<smem>>
    %802 = vector.broadcast %801 : f32 to vector<5x5xf32>
    %803 = arith.mulf %802, %594 : vector<5x5xf32>
    %804 = arith.addf %800, %803 : vector<5x5xf32>
    %c1_384 = arith.constant 1 : index
    %c9_385 = arith.constant 9 : index
    %805 = memref.load %arg6[%c1_384, %c9_385] : memref<8x36xf32, #tpu.memory_space<smem>>
    %806 = vector.broadcast %805 : f32 to vector<5x5xf32>
    %807 = arith.mulf %806, %595 : vector<5x5xf32>
    %808 = arith.addf %804, %807 : vector<5x5xf32>
    %c1_386 = arith.constant 1 : index
    %c10_387 = arith.constant 10 : index
    %809 = memref.load %arg6[%c1_386, %c10_387] : memref<8x36xf32, #tpu.memory_space<smem>>
    %810 = vector.broadcast %809 : f32 to vector<5x5xf32>
    %811 = arith.mulf %810, %596 : vector<5x5xf32>
    %812 = arith.addf %808, %811 : vector<5x5xf32>
    %c1_388 = arith.constant 1 : index
    %c11_389 = arith.constant 11 : index
    %813 = memref.load %arg6[%c1_388, %c11_389] : memref<8x36xf32, #tpu.memory_space<smem>>
    %814 = vector.broadcast %813 : f32 to vector<5x5xf32>
    %815 = arith.mulf %814, %597 : vector<5x5xf32>
    %816 = arith.addf %812, %815 : vector<5x5xf32>
    %c1_390 = arith.constant 1 : index
    %c12_391 = arith.constant 12 : index
    %817 = memref.load %arg6[%c1_390, %c12_391] : memref<8x36xf32, #tpu.memory_space<smem>>
    %818 = vector.broadcast %817 : f32 to vector<5x5xf32>
    %819 = arith.mulf %818, %598 : vector<5x5xf32>
    %820 = arith.addf %816, %819 : vector<5x5xf32>
    %c1_392 = arith.constant 1 : index
    %c13_393 = arith.constant 13 : index
    %821 = memref.load %arg6[%c1_392, %c13_393] : memref<8x36xf32, #tpu.memory_space<smem>>
    %822 = vector.broadcast %821 : f32 to vector<5x5xf32>
    %823 = arith.mulf %822, %599 : vector<5x5xf32>
    %824 = arith.addf %820, %823 : vector<5x5xf32>
    %c1_394 = arith.constant 1 : index
    %c14_395 = arith.constant 14 : index
    %825 = memref.load %arg6[%c1_394, %c14_395] : memref<8x36xf32, #tpu.memory_space<smem>>
    %826 = vector.broadcast %825 : f32 to vector<5x5xf32>
    %827 = arith.mulf %826, %600 : vector<5x5xf32>
    %828 = arith.addf %824, %827 : vector<5x5xf32>
    %c1_396 = arith.constant 1 : index
    %c15_397 = arith.constant 15 : index
    %829 = memref.load %arg6[%c1_396, %c15_397] : memref<8x36xf32, #tpu.memory_space<smem>>
    %830 = vector.broadcast %829 : f32 to vector<5x5xf32>
    %831 = arith.mulf %830, %601 : vector<5x5xf32>
    %832 = arith.addf %828, %831 : vector<5x5xf32>
    %c1_398 = arith.constant 1 : index
    %c16_399 = arith.constant 16 : index
    %833 = memref.load %arg6[%c1_398, %c16_399] : memref<8x36xf32, #tpu.memory_space<smem>>
    %834 = vector.broadcast %833 : f32 to vector<5x5xf32>
    %835 = arith.mulf %834, %602 : vector<5x5xf32>
    %836 = arith.addf %832, %835 : vector<5x5xf32>
    %c1_400 = arith.constant 1 : index
    %c17_401 = arith.constant 17 : index
    %837 = memref.load %arg6[%c1_400, %c17_401] : memref<8x36xf32, #tpu.memory_space<smem>>
    %838 = vector.broadcast %837 : f32 to vector<5x5xf32>
    %839 = arith.mulf %838, %603 : vector<5x5xf32>
    %840 = arith.addf %836, %839 : vector<5x5xf32>
    %c1_402 = arith.constant 1 : index
    %c18_403 = arith.constant 18 : index
    %841 = memref.load %arg6[%c1_402, %c18_403] : memref<8x36xf32, #tpu.memory_space<smem>>
    %842 = vector.broadcast %841 : f32 to vector<5x5xf32>
    %843 = arith.mulf %842, %604 : vector<5x5xf32>
    %844 = arith.addf %840, %843 : vector<5x5xf32>
    %c1_404 = arith.constant 1 : index
    %c19_405 = arith.constant 19 : index
    %845 = memref.load %arg6[%c1_404, %c19_405] : memref<8x36xf32, #tpu.memory_space<smem>>
    %846 = vector.broadcast %845 : f32 to vector<5x5xf32>
    %847 = arith.mulf %846, %605 : vector<5x5xf32>
    %848 = arith.addf %844, %847 : vector<5x5xf32>
    %c1_406 = arith.constant 1 : index
    %c20_407 = arith.constant 20 : index
    %849 = memref.load %arg6[%c1_406, %c20_407] : memref<8x36xf32, #tpu.memory_space<smem>>
    %850 = vector.broadcast %849 : f32 to vector<5x5xf32>
    %851 = arith.mulf %850, %606 : vector<5x5xf32>
    %852 = arith.addf %848, %851 : vector<5x5xf32>
    %c1_408 = arith.constant 1 : index
    %c21_409 = arith.constant 21 : index
    %853 = memref.load %arg6[%c1_408, %c21_409] : memref<8x36xf32, #tpu.memory_space<smem>>
    %854 = vector.broadcast %853 : f32 to vector<5x5xf32>
    %855 = arith.mulf %854, %607 : vector<5x5xf32>
    %856 = arith.addf %852, %855 : vector<5x5xf32>
    %c1_410 = arith.constant 1 : index
    %c22_411 = arith.constant 22 : index
    %857 = memref.load %arg6[%c1_410, %c22_411] : memref<8x36xf32, #tpu.memory_space<smem>>
    %858 = vector.broadcast %857 : f32 to vector<5x5xf32>
    %859 = arith.mulf %858, %608 : vector<5x5xf32>
    %860 = arith.addf %856, %859 : vector<5x5xf32>
    %c1_412 = arith.constant 1 : index
    %c23_413 = arith.constant 23 : index
    %861 = memref.load %arg6[%c1_412, %c23_413] : memref<8x36xf32, #tpu.memory_space<smem>>
    %862 = vector.broadcast %861 : f32 to vector<5x5xf32>
    %863 = arith.mulf %862, %609 : vector<5x5xf32>
    %864 = arith.addf %860, %863 : vector<5x5xf32>
    %c1_414 = arith.constant 1 : index
    %c24_415 = arith.constant 24 : index
    %865 = memref.load %arg6[%c1_414, %c24_415] : memref<8x36xf32, #tpu.memory_space<smem>>
    %866 = vector.broadcast %865 : f32 to vector<5x5xf32>
    %867 = arith.mulf %866, %610 : vector<5x5xf32>
    %868 = arith.addf %864, %867 : vector<5x5xf32>
    %c1_416 = arith.constant 1 : index
    %c25_417 = arith.constant 25 : index
    %869 = memref.load %arg6[%c1_416, %c25_417] : memref<8x36xf32, #tpu.memory_space<smem>>
    %870 = vector.broadcast %869 : f32 to vector<5x5xf32>
    %871 = arith.mulf %870, %611 : vector<5x5xf32>
    %872 = arith.addf %868, %871 : vector<5x5xf32>
    %c1_418 = arith.constant 1 : index
    %c26_419 = arith.constant 26 : index
    %873 = memref.load %arg6[%c1_418, %c26_419] : memref<8x36xf32, #tpu.memory_space<smem>>
    %874 = vector.broadcast %873 : f32 to vector<5x5xf32>
    %875 = arith.mulf %874, %612 : vector<5x5xf32>
    %876 = arith.addf %872, %875 : vector<5x5xf32>
    %c1_420 = arith.constant 1 : index
    %c27_421 = arith.constant 27 : index
    %877 = memref.load %arg6[%c1_420, %c27_421] : memref<8x36xf32, #tpu.memory_space<smem>>
    %878 = vector.broadcast %877 : f32 to vector<5x5xf32>
    %879 = arith.mulf %878, %613 : vector<5x5xf32>
    %880 = arith.addf %876, %879 : vector<5x5xf32>
    %c1_422 = arith.constant 1 : index
    %c28_423 = arith.constant 28 : index
    %881 = memref.load %arg6[%c1_422, %c28_423] : memref<8x36xf32, #tpu.memory_space<smem>>
    %882 = vector.broadcast %881 : f32 to vector<5x5xf32>
    %883 = arith.mulf %882, %614 : vector<5x5xf32>
    %884 = arith.addf %880, %883 : vector<5x5xf32>
    %c1_424 = arith.constant 1 : index
    %c29_425 = arith.constant 29 : index
    %885 = memref.load %arg6[%c1_424, %c29_425] : memref<8x36xf32, #tpu.memory_space<smem>>
    %886 = vector.broadcast %885 : f32 to vector<5x5xf32>
    %887 = arith.mulf %886, %615 : vector<5x5xf32>
    %888 = arith.addf %884, %887 : vector<5x5xf32>
    %c1_426 = arith.constant 1 : index
    %c30_427 = arith.constant 30 : index
    %889 = memref.load %arg6[%c1_426, %c30_427] : memref<8x36xf32, #tpu.memory_space<smem>>
    %890 = vector.broadcast %889 : f32 to vector<5x5xf32>
    %891 = arith.mulf %890, %616 : vector<5x5xf32>
    %892 = arith.addf %888, %891 : vector<5x5xf32>
    %c1_428 = arith.constant 1 : index
    %c31_429 = arith.constant 31 : index
    %893 = memref.load %arg6[%c1_428, %c31_429] : memref<8x36xf32, #tpu.memory_space<smem>>
    %894 = vector.broadcast %893 : f32 to vector<5x5xf32>
    %895 = arith.mulf %894, %617 : vector<5x5xf32>
    %896 = arith.addf %892, %895 : vector<5x5xf32>
    %c1_430 = arith.constant 1 : index
    %c32_431 = arith.constant 32 : index
    %897 = memref.load %arg6[%c1_430, %c32_431] : memref<8x36xf32, #tpu.memory_space<smem>>
    %898 = vector.broadcast %897 : f32 to vector<5x5xf32>
    %899 = arith.mulf %898, %618 : vector<5x5xf32>
    %900 = arith.addf %896, %899 : vector<5x5xf32>
    %c1_432 = arith.constant 1 : index
    %c33_433 = arith.constant 33 : index
    %901 = memref.load %arg6[%c1_432, %c33_433] : memref<8x36xf32, #tpu.memory_space<smem>>
    %902 = vector.broadcast %901 : f32 to vector<5x5xf32>
    %903 = arith.mulf %902, %619 : vector<5x5xf32>
    %904 = arith.addf %900, %903 : vector<5x5xf32>
    %c1_434 = arith.constant 1 : index
    %c34_435 = arith.constant 34 : index
    %905 = memref.load %arg6[%c1_434, %c34_435] : memref<8x36xf32, #tpu.memory_space<smem>>
    %906 = vector.broadcast %905 : f32 to vector<5x5xf32>
    %907 = arith.mulf %906, %620 : vector<5x5xf32>
    %908 = arith.addf %904, %907 : vector<5x5xf32>
    %c1_436 = arith.constant 1 : index
    %c35_437 = arith.constant 35 : index
    %909 = memref.load %arg6[%c1_436, %c35_437] : memref<8x36xf32, #tpu.memory_space<smem>>
    %910 = vector.broadcast %909 : f32 to vector<5x5xf32>
    %911 = arith.mulf %910, %621 : vector<5x5xf32>
    %912 = arith.addf %908, %911 : vector<5x5xf32>
    %c1_438 = arith.constant 1 : index
    %913 = memref.load %arg7[%c1_438] : memref<8xf32, #tpu.memory_space<smem>>
    %914 = vector.broadcast %913 : f32 to vector<5x5xf32>
    %915 = arith.addf %912, %914 : vector<5x5xf32>
    %cst_439 = arith.constant 0.000000e+00 : f32
    %916 = vector.broadcast %cst_439 : f32 to vector<5x5xf32>
    %917 = arith.maximumf %915, %916 : vector<5x5xf32>
    %c2_440 = arith.constant 2 : index
    %c0_441 = arith.constant 0 : index
    %918 = memref.load %arg6[%c2_440, %c0_441] : memref<8x36xf32, #tpu.memory_space<smem>>
    %919 = vector.broadcast %918 : f32 to vector<5x5xf32>
    %920 = arith.mulf %919, %586 : vector<5x5xf32>
    %c2_442 = arith.constant 2 : index
    %c1_443 = arith.constant 1 : index
    %921 = memref.load %arg6[%c2_442, %c1_443] : memref<8x36xf32, #tpu.memory_space<smem>>
    %922 = vector.broadcast %921 : f32 to vector<5x5xf32>
    %923 = arith.mulf %922, %587 : vector<5x5xf32>
    %924 = arith.addf %920, %923 : vector<5x5xf32>
    %c2_444 = arith.constant 2 : index
    %c2_445 = arith.constant 2 : index
    %925 = memref.load %arg6[%c2_444, %c2_445] : memref<8x36xf32, #tpu.memory_space<smem>>
    %926 = vector.broadcast %925 : f32 to vector<5x5xf32>
    %927 = arith.mulf %926, %588 : vector<5x5xf32>
    %928 = arith.addf %924, %927 : vector<5x5xf32>
    %c2_446 = arith.constant 2 : index
    %c3_447 = arith.constant 3 : index
    %929 = memref.load %arg6[%c2_446, %c3_447] : memref<8x36xf32, #tpu.memory_space<smem>>
    %930 = vector.broadcast %929 : f32 to vector<5x5xf32>
    %931 = arith.mulf %930, %589 : vector<5x5xf32>
    %932 = arith.addf %928, %931 : vector<5x5xf32>
    %c2_448 = arith.constant 2 : index
    %c4_449 = arith.constant 4 : index
    %933 = memref.load %arg6[%c2_448, %c4_449] : memref<8x36xf32, #tpu.memory_space<smem>>
    %934 = vector.broadcast %933 : f32 to vector<5x5xf32>
    %935 = arith.mulf %934, %590 : vector<5x5xf32>
    %936 = arith.addf %932, %935 : vector<5x5xf32>
    %c2_450 = arith.constant 2 : index
    %c5_451 = arith.constant 5 : index
    %937 = memref.load %arg6[%c2_450, %c5_451] : memref<8x36xf32, #tpu.memory_space<smem>>
    %938 = vector.broadcast %937 : f32 to vector<5x5xf32>
    %939 = arith.mulf %938, %591 : vector<5x5xf32>
    %940 = arith.addf %936, %939 : vector<5x5xf32>
    %c2_452 = arith.constant 2 : index
    %c6_453 = arith.constant 6 : index
    %941 = memref.load %arg6[%c2_452, %c6_453] : memref<8x36xf32, #tpu.memory_space<smem>>
    %942 = vector.broadcast %941 : f32 to vector<5x5xf32>
    %943 = arith.mulf %942, %592 : vector<5x5xf32>
    %944 = arith.addf %940, %943 : vector<5x5xf32>
    %c2_454 = arith.constant 2 : index
    %c7_455 = arith.constant 7 : index
    %945 = memref.load %arg6[%c2_454, %c7_455] : memref<8x36xf32, #tpu.memory_space<smem>>
    %946 = vector.broadcast %945 : f32 to vector<5x5xf32>
    %947 = arith.mulf %946, %593 : vector<5x5xf32>
    %948 = arith.addf %944, %947 : vector<5x5xf32>
    %c2_456 = arith.constant 2 : index
    %c8_457 = arith.constant 8 : index
    %949 = memref.load %arg6[%c2_456, %c8_457] : memref<8x36xf32, #tpu.memory_space<smem>>
    %950 = vector.broadcast %949 : f32 to vector<5x5xf32>
    %951 = arith.mulf %950, %594 : vector<5x5xf32>
    %952 = arith.addf %948, %951 : vector<5x5xf32>
    %c2_458 = arith.constant 2 : index
    %c9_459 = arith.constant 9 : index
    %953 = memref.load %arg6[%c2_458, %c9_459] : memref<8x36xf32, #tpu.memory_space<smem>>
    %954 = vector.broadcast %953 : f32 to vector<5x5xf32>
    %955 = arith.mulf %954, %595 : vector<5x5xf32>
    %956 = arith.addf %952, %955 : vector<5x5xf32>
    %c2_460 = arith.constant 2 : index
    %c10_461 = arith.constant 10 : index
    %957 = memref.load %arg6[%c2_460, %c10_461] : memref<8x36xf32, #tpu.memory_space<smem>>
    %958 = vector.broadcast %957 : f32 to vector<5x5xf32>
    %959 = arith.mulf %958, %596 : vector<5x5xf32>
    %960 = arith.addf %956, %959 : vector<5x5xf32>
    %c2_462 = arith.constant 2 : index
    %c11_463 = arith.constant 11 : index
    %961 = memref.load %arg6[%c2_462, %c11_463] : memref<8x36xf32, #tpu.memory_space<smem>>
    %962 = vector.broadcast %961 : f32 to vector<5x5xf32>
    %963 = arith.mulf %962, %597 : vector<5x5xf32>
    %964 = arith.addf %960, %963 : vector<5x5xf32>
    %c2_464 = arith.constant 2 : index
    %c12_465 = arith.constant 12 : index
    %965 = memref.load %arg6[%c2_464, %c12_465] : memref<8x36xf32, #tpu.memory_space<smem>>
    %966 = vector.broadcast %965 : f32 to vector<5x5xf32>
    %967 = arith.mulf %966, %598 : vector<5x5xf32>
    %968 = arith.addf %964, %967 : vector<5x5xf32>
    %c2_466 = arith.constant 2 : index
    %c13_467 = arith.constant 13 : index
    %969 = memref.load %arg6[%c2_466, %c13_467] : memref<8x36xf32, #tpu.memory_space<smem>>
    %970 = vector.broadcast %969 : f32 to vector<5x5xf32>
    %971 = arith.mulf %970, %599 : vector<5x5xf32>
    %972 = arith.addf %968, %971 : vector<5x5xf32>
    %c2_468 = arith.constant 2 : index
    %c14_469 = arith.constant 14 : index
    %973 = memref.load %arg6[%c2_468, %c14_469] : memref<8x36xf32, #tpu.memory_space<smem>>
    %974 = vector.broadcast %973 : f32 to vector<5x5xf32>
    %975 = arith.mulf %974, %600 : vector<5x5xf32>
    %976 = arith.addf %972, %975 : vector<5x5xf32>
    %c2_470 = arith.constant 2 : index
    %c15_471 = arith.constant 15 : index
    %977 = memref.load %arg6[%c2_470, %c15_471] : memref<8x36xf32, #tpu.memory_space<smem>>
    %978 = vector.broadcast %977 : f32 to vector<5x5xf32>
    %979 = arith.mulf %978, %601 : vector<5x5xf32>
    %980 = arith.addf %976, %979 : vector<5x5xf32>
    %c2_472 = arith.constant 2 : index
    %c16_473 = arith.constant 16 : index
    %981 = memref.load %arg6[%c2_472, %c16_473] : memref<8x36xf32, #tpu.memory_space<smem>>
    %982 = vector.broadcast %981 : f32 to vector<5x5xf32>
    %983 = arith.mulf %982, %602 : vector<5x5xf32>
    %984 = arith.addf %980, %983 : vector<5x5xf32>
    %c2_474 = arith.constant 2 : index
    %c17_475 = arith.constant 17 : index
    %985 = memref.load %arg6[%c2_474, %c17_475] : memref<8x36xf32, #tpu.memory_space<smem>>
    %986 = vector.broadcast %985 : f32 to vector<5x5xf32>
    %987 = arith.mulf %986, %603 : vector<5x5xf32>
    %988 = arith.addf %984, %987 : vector<5x5xf32>
    %c2_476 = arith.constant 2 : index
    %c18_477 = arith.constant 18 : index
    %989 = memref.load %arg6[%c2_476, %c18_477] : memref<8x36xf32, #tpu.memory_space<smem>>
    %990 = vector.broadcast %989 : f32 to vector<5x5xf32>
    %991 = arith.mulf %990, %604 : vector<5x5xf32>
    %992 = arith.addf %988, %991 : vector<5x5xf32>
    %c2_478 = arith.constant 2 : index
    %c19_479 = arith.constant 19 : index
    %993 = memref.load %arg6[%c2_478, %c19_479] : memref<8x36xf32, #tpu.memory_space<smem>>
    %994 = vector.broadcast %993 : f32 to vector<5x5xf32>
    %995 = arith.mulf %994, %605 : vector<5x5xf32>
    %996 = arith.addf %992, %995 : vector<5x5xf32>
    %c2_480 = arith.constant 2 : index
    %c20_481 = arith.constant 20 : index
    %997 = memref.load %arg6[%c2_480, %c20_481] : memref<8x36xf32, #tpu.memory_space<smem>>
    %998 = vector.broadcast %997 : f32 to vector<5x5xf32>
    %999 = arith.mulf %998, %606 : vector<5x5xf32>
    %1000 = arith.addf %996, %999 : vector<5x5xf32>
    %c2_482 = arith.constant 2 : index
    %c21_483 = arith.constant 21 : index
    %1001 = memref.load %arg6[%c2_482, %c21_483] : memref<8x36xf32, #tpu.memory_space<smem>>
    %1002 = vector.broadcast %1001 : f32 to vector<5x5xf32>
    %1003 = arith.mulf %1002, %607 : vector<5x5xf32>
    %1004 = arith.addf %1000, %1003 : vector<5x5xf32>
    %c2_484 = arith.constant 2 : index
    %c22_485 = arith.constant 22 : index
    %1005 = memref.load %arg6[%c2_484, %c22_485] : memref<8x36xf32, #tpu.memory_space<smem>>
    %1006 = vector.broadcast %1005 : f32 to vector<5x5xf32>
    %1007 = arith.mulf %1006, %608 : vector<5x5xf32>
    %1008 = arith.addf %1004, %1007 : vector<5x5xf32>
    %c2_486 = arith.constant 2 : index
    %c23_487 = arith.constant 23 : index
    %1009 = memref.load %arg6[%c2_486, %c23_487] : memref<8x36xf32, #tpu.memory_space<smem>>
    %1010 = vector.broadcast %1009 : f32 to vector<5x5xf32>
    %1011 = arith.mulf %1010, %609 : vector<5x5xf32>
    %1012 = arith.addf %1008, %1011 : vector<5x5xf32>
    %c2_488 = arith.constant 2 : index
    %c24_489 = arith.constant 24 : index
    %1013 = memref.load %arg6[%c2_488, %c24_489] : memref<8x36xf32, #tpu.memory_space<smem>>
    %1014 = vector.broadcast %1013 : f32 to vector<5x5xf32>
    %1015 = arith.mulf %1014, %610 : vector<5x5xf32>
    %1016 = arith.addf %1012, %1015 : vector<5x5xf32>
    %c2_490 = arith.constant 2 : index
    %c25_491 = arith.constant 25 : index
    %1017 = memref.load %arg6[%c2_490, %c25_491] : memref<8x36xf32, #tpu.memory_space<smem>>
    %1018 = vector.broadcast %1017 : f32 to vector<5x5xf32>
    %1019 = arith.mulf %1018, %611 : vector<5x5xf32>
    %1020 = arith.addf %1016, %1019 : vector<5x5xf32>
    %c2_492 = arith.constant 2 : index
    %c26_493 = arith.constant 26 : index
    %1021 = memref.load %arg6[%c2_492, %c26_493] : memref<8x36xf32, #tpu.memory_space<smem>>
    %1022 = vector.broadcast %1021 : f32 to vector<5x5xf32>
    %1023 = arith.mulf %1022, %612 : vector<5x5xf32>
    %1024 = arith.addf %1020, %1023 : vector<5x5xf32>
    %c2_494 = arith.constant 2 : index
    %c27_495 = arith.constant 27 : index
    %1025 = memref.load %arg6[%c2_494, %c27_495] : memref<8x36xf32, #tpu.memory_space<smem>>
    %1026 = vector.broadcast %1025 : f32 to vector<5x5xf32>
    %1027 = arith.mulf %1026, %613 : vector<5x5xf32>
    %1028 = arith.addf %1024, %1027 : vector<5x5xf32>
    %c2_496 = arith.constant 2 : index
    %c28_497 = arith.constant 28 : index
    %1029 = memref.load %arg6[%c2_496, %c28_497] : memref<8x36xf32, #tpu.memory_space<smem>>
    %1030 = vector.broadcast %1029 : f32 to vector<5x5xf32>
    %1031 = arith.mulf %1030, %614 : vector<5x5xf32>
    %1032 = arith.addf %1028, %1031 : vector<5x5xf32>
    %c2_498 = arith.constant 2 : index
    %c29_499 = arith.constant 29 : index
    %1033 = memref.load %arg6[%c2_498, %c29_499] : memref<8x36xf32, #tpu.memory_space<smem>>
    %1034 = vector.broadcast %1033 : f32 to vector<5x5xf32>
    %1035 = arith.mulf %1034, %615 : vector<5x5xf32>
    %1036 = arith.addf %1032, %1035 : vector<5x5xf32>
    %c2_500 = arith.constant 2 : index
    %c30_501 = arith.constant 30 : index
    %1037 = memref.load %arg6[%c2_500, %c30_501] : memref<8x36xf32, #tpu.memory_space<smem>>
    %1038 = vector.broadcast %1037 : f32 to vector<5x5xf32>
    %1039 = arith.mulf %1038, %616 : vector<5x5xf32>
    %1040 = arith.addf %1036, %1039 : vector<5x5xf32>
    %c2_502 = arith.constant 2 : index
    %c31_503 = arith.constant 31 : index
    %1041 = memref.load %arg6[%c2_502, %c31_503] : memref<8x36xf32, #tpu.memory_space<smem>>
    %1042 = vector.broadcast %1041 : f32 to vector<5x5xf32>
    %1043 = arith.mulf %1042, %617 : vector<5x5xf32>
    %1044 = arith.addf %1040, %1043 : vector<5x5xf32>
    %c2_504 = arith.constant 2 : index
    %c32_505 = arith.constant 32 : index
    %1045 = memref.load %arg6[%c2_504, %c32_505] : memref<8x36xf32, #tpu.memory_space<smem>>
    %1046 = vector.broadcast %1045 : f32 to vector<5x5xf32>
    %1047 = arith.mulf %1046, %618 : vector<5x5xf32>
    %1048 = arith.addf %1044, %1047 : vector<5x5xf32>
    %c2_506 = arith.constant 2 : index
    %c33_507 = arith.constant 33 : index
    %1049 = memref.load %arg6[%c2_506, %c33_507] : memref<8x36xf32, #tpu.memory_space<smem>>
    %1050 = vector.broadcast %1049 : f32 to vector<5x5xf32>
    %1051 = arith.mulf %1050, %619 : vector<5x5xf32>
    %1052 = arith.addf %1048, %1051 : vector<5x5xf32>
    %c2_508 = arith.constant 2 : index
    %c34_509 = arith.constant 34 : index
    %1053 = memref.load %arg6[%c2_508, %c34_509] : memref<8x36xf32, #tpu.memory_space<smem>>
    %1054 = vector.broadcast %1053 : f32 to vector<5x5xf32>
    %1055 = arith.mulf %1054, %620 : vector<5x5xf32>
    %1056 = arith.addf %1052, %1055 : vector<5x5xf32>
    %c2_510 = arith.constant 2 : index
    %c35_511 = arith.constant 35 : index
    %1057 = memref.load %arg6[%c2_510, %c35_511] : memref<8x36xf32, #tpu.memory_space<smem>>
    %1058 = vector.broadcast %1057 : f32 to vector<5x5xf32>
    %1059 = arith.mulf %1058, %621 : vector<5x5xf32>
    %1060 = arith.addf %1056, %1059 : vector<5x5xf32>
    %c2_512 = arith.constant 2 : index
    %1061 = memref.load %arg7[%c2_512] : memref<8xf32, #tpu.memory_space<smem>>
    %1062 = vector.broadcast %1061 : f32 to vector<5x5xf32>
    %1063 = arith.addf %1060, %1062 : vector<5x5xf32>
    %cst_513 = arith.constant 0.000000e+00 : f32
    %1064 = vector.broadcast %cst_513 : f32 to vector<5x5xf32>
    %1065 = arith.maximumf %1063, %1064 : vector<5x5xf32>
    %c3_514 = arith.constant 3 : index
    %c0_515 = arith.constant 0 : index
    %1066 = memref.load %arg6[%c3_514, %c0_515] : memref<8x36xf32, #tpu.memory_space<smem>>
    %1067 = vector.broadcast %1066 : f32 to vector<5x5xf32>
    %1068 = arith.mulf %1067, %586 : vector<5x5xf32>
    %c3_516 = arith.constant 3 : index
    %c1_517 = arith.constant 1 : index
    %1069 = memref.load %arg6[%c3_516, %c1_517] : memref<8x36xf32, #tpu.memory_space<smem>>
    %1070 = vector.broadcast %1069 : f32 to vector<5x5xf32>
    %1071 = arith.mulf %1070, %587 : vector<5x5xf32>
    %1072 = arith.addf %1068, %1071 : vector<5x5xf32>
    %c3_518 = arith.constant 3 : index
    %c2_519 = arith.constant 2 : index
    %1073 = memref.load %arg6[%c3_518, %c2_519] : memref<8x36xf32, #tpu.memory_space<smem>>
    %1074 = vector.broadcast %1073 : f32 to vector<5x5xf32>
    %1075 = arith.mulf %1074, %588 : vector<5x5xf32>
    %1076 = arith.addf %1072, %1075 : vector<5x5xf32>
    %c3_520 = arith.constant 3 : index
    %c3_521 = arith.constant 3 : index
    %1077 = memref.load %arg6[%c3_520, %c3_521] : memref<8x36xf32, #tpu.memory_space<smem>>
    %1078 = vector.broadcast %1077 : f32 to vector<5x5xf32>
    %1079 = arith.mulf %1078, %589 : vector<5x5xf32>
    %1080 = arith.addf %1076, %1079 : vector<5x5xf32>
    %c3_522 = arith.constant 3 : index
    %c4_523 = arith.constant 4 : index
    %1081 = memref.load %arg6[%c3_522, %c4_523] : memref<8x36xf32, #tpu.memory_space<smem>>
    %1082 = vector.broadcast %1081 : f32 to vector<5x5xf32>
    %1083 = arith.mulf %1082, %590 : vector<5x5xf32>
    %1084 = arith.addf %1080, %1083 : vector<5x5xf32>
    %c3_524 = arith.constant 3 : index
    %c5_525 = arith.constant 5 : index
    %1085 = memref.load %arg6[%c3_524, %c5_525] : memref<8x36xf32, #tpu.memory_space<smem>>
    %1086 = vector.broadcast %1085 : f32 to vector<5x5xf32>
    %1087 = arith.mulf %1086, %591 : vector<5x5xf32>
    %1088 = arith.addf %1084, %1087 : vector<5x5xf32>
    %c3_526 = arith.constant 3 : index
    %c6_527 = arith.constant 6 : index
    %1089 = memref.load %arg6[%c3_526, %c6_527] : memref<8x36xf32, #tpu.memory_space<smem>>
    %1090 = vector.broadcast %1089 : f32 to vector<5x5xf32>
    %1091 = arith.mulf %1090, %592 : vector<5x5xf32>
    %1092 = arith.addf %1088, %1091 : vector<5x5xf32>
    %c3_528 = arith.constant 3 : index
    %c7_529 = arith.constant 7 : index
    %1093 = memref.load %arg6[%c3_528, %c7_529] : memref<8x36xf32, #tpu.memory_space<smem>>
    %1094 = vector.broadcast %1093 : f32 to vector<5x5xf32>
    %1095 = arith.mulf %1094, %593 : vector<5x5xf32>
    %1096 = arith.addf %1092, %1095 : vector<5x5xf32>
    %c3_530 = arith.constant 3 : index
    %c8_531 = arith.constant 8 : index
    %1097 = memref.load %arg6[%c3_530, %c8_531] : memref<8x36xf32, #tpu.memory_space<smem>>
    %1098 = vector.broadcast %1097 : f32 to vector<5x5xf32>
    %1099 = arith.mulf %1098, %594 : vector<5x5xf32>
    %1100 = arith.addf %1096, %1099 : vector<5x5xf32>
    %c3_532 = arith.constant 3 : index
    %c9_533 = arith.constant 9 : index
    %1101 = memref.load %arg6[%c3_532, %c9_533] : memref<8x36xf32, #tpu.memory_space<smem>>
    %1102 = vector.broadcast %1101 : f32 to vector<5x5xf32>
    %1103 = arith.mulf %1102, %595 : vector<5x5xf32>
    %1104 = arith.addf %1100, %1103 : vector<5x5xf32>
    %c3_534 = arith.constant 3 : index
    %c10_535 = arith.constant 10 : index
    %1105 = memref.load %arg6[%c3_534, %c10_535] : memref<8x36xf32, #tpu.memory_space<smem>>
    %1106 = vector.broadcast %1105 : f32 to vector<5x5xf32>
    %1107 = arith.mulf %1106, %596 : vector<5x5xf32>
    %1108 = arith.addf %1104, %1107 : vector<5x5xf32>
    %c3_536 = arith.constant 3 : index
    %c11_537 = arith.constant 11 : index
    %1109 = memref.load %arg6[%c3_536, %c11_537] : memref<8x36xf32, #tpu.memory_space<smem>>
    %1110 = vector.broadcast %1109 : f32 to vector<5x5xf32>
    %1111 = arith.mulf %1110, %597 : vector<5x5xf32>
    %1112 = arith.addf %1108, %1111 : vector<5x5xf32>
    %c3_538 = arith.constant 3 : index
    %c12_539 = arith.constant 12 : index
    %1113 = memref.load %arg6[%c3_538, %c12_539] : memref<8x36xf32, #tpu.memory_space<smem>>
    %1114 = vector.broadcast %1113 : f32 to vector<5x5xf32>
    %1115 = arith.mulf %1114, %598 : vector<5x5xf32>
    %1116 = arith.addf %1112, %1115 : vector<5x5xf32>
    %c3_540 = arith.constant 3 : index
    %c13_541 = arith.constant 13 : index
    %1117 = memref.load %arg6[%c3_540, %c13_541] : memref<8x36xf32, #tpu.memory_space<smem>>
    %1118 = vector.broadcast %1117 : f32 to vector<5x5xf32>
    %1119 = arith.mulf %1118, %599 : vector<5x5xf32>
    %1120 = arith.addf %1116, %1119 : vector<5x5xf32>
    %c3_542 = arith.constant 3 : index
    %c14_543 = arith.constant 14 : index
    %1121 = memref.load %arg6[%c3_542, %c14_543] : memref<8x36xf32, #tpu.memory_space<smem>>
    %1122 = vector.broadcast %1121 : f32 to vector<5x5xf32>
    %1123 = arith.mulf %1122, %600 : vector<5x5xf32>
    %1124 = arith.addf %1120, %1123 : vector<5x5xf32>
    %c3_544 = arith.constant 3 : index
    %c15_545 = arith.constant 15 : index
    %1125 = memref.load %arg6[%c3_544, %c15_545] : memref<8x36xf32, #tpu.memory_space<smem>>
    %1126 = vector.broadcast %1125 : f32 to vector<5x5xf32>
    %1127 = arith.mulf %1126, %601 : vector<5x5xf32>
    %1128 = arith.addf %1124, %1127 : vector<5x5xf32>
    %c3_546 = arith.constant 3 : index
    %c16_547 = arith.constant 16 : index
    %1129 = memref.load %arg6[%c3_546, %c16_547] : memref<8x36xf32, #tpu.memory_space<smem>>
    %1130 = vector.broadcast %1129 : f32 to vector<5x5xf32>
    %1131 = arith.mulf %1130, %602 : vector<5x5xf32>
    %1132 = arith.addf %1128, %1131 : vector<5x5xf32>
    %c3_548 = arith.constant 3 : index
    %c17_549 = arith.constant 17 : index
    %1133 = memref.load %arg6[%c3_548, %c17_549] : memref<8x36xf32, #tpu.memory_space<smem>>
    %1134 = vector.broadcast %1133 : f32 to vector<5x5xf32>
    %1135 = arith.mulf %1134, %603 : vector<5x5xf32>
    %1136 = arith.addf %1132, %1135 : vector<5x5xf32>
    %c3_550 = arith.constant 3 : index
    %c18_551 = arith.constant 18 : index
    %1137 = memref.load %arg6[%c3_550, %c18_551] : memref<8x36xf32, #tpu.memory_space<smem>>
    %1138 = vector.broadcast %1137 : f32 to vector<5x5xf32>
    %1139 = arith.mulf %1138, %604 : vector<5x5xf32>
    %1140 = arith.addf %1136, %1139 : vector<5x5xf32>
    %c3_552 = arith.constant 3 : index
    %c19_553 = arith.constant 19 : index
    %1141 = memref.load %arg6[%c3_552, %c19_553] : memref<8x36xf32, #tpu.memory_space<smem>>
    %1142 = vector.broadcast %1141 : f32 to vector<5x5xf32>
    %1143 = arith.mulf %1142, %605 : vector<5x5xf32>
    %1144 = arith.addf %1140, %1143 : vector<5x5xf32>
    %c3_554 = arith.constant 3 : index
    %c20_555 = arith.constant 20 : index
    %1145 = memref.load %arg6[%c3_554, %c20_555] : memref<8x36xf32, #tpu.memory_space<smem>>
    %1146 = vector.broadcast %1145 : f32 to vector<5x5xf32>
    %1147 = arith.mulf %1146, %606 : vector<5x5xf32>
    %1148 = arith.addf %1144, %1147 : vector<5x5xf32>
    %c3_556 = arith.constant 3 : index
    %c21_557 = arith.constant 21 : index
    %1149 = memref.load %arg6[%c3_556, %c21_557] : memref<8x36xf32, #tpu.memory_space<smem>>
    %1150 = vector.broadcast %1149 : f32 to vector<5x5xf32>
    %1151 = arith.mulf %1150, %607 : vector<5x5xf32>
    %1152 = arith.addf %1148, %1151 : vector<5x5xf32>
    %c3_558 = arith.constant 3 : index
    %c22_559 = arith.constant 22 : index
    %1153 = memref.load %arg6[%c3_558, %c22_559] : memref<8x36xf32, #tpu.memory_space<smem>>
    %1154 = vector.broadcast %1153 : f32 to vector<5x5xf32>
    %1155 = arith.mulf %1154, %608 : vector<5x5xf32>
    %1156 = arith.addf %1152, %1155 : vector<5x5xf32>
    %c3_560 = arith.constant 3 : index
    %c23_561 = arith.constant 23 : index
    %1157 = memref.load %arg6[%c3_560, %c23_561] : memref<8x36xf32, #tpu.memory_space<smem>>
    %1158 = vector.broadcast %1157 : f32 to vector<5x5xf32>
    %1159 = arith.mulf %1158, %609 : vector<5x5xf32>
    %1160 = arith.addf %1156, %1159 : vector<5x5xf32>
    %c3_562 = arith.constant 3 : index
    %c24_563 = arith.constant 24 : index
    %1161 = memref.load %arg6[%c3_562, %c24_563] : memref<8x36xf32, #tpu.memory_space<smem>>
    %1162 = vector.broadcast %1161 : f32 to vector<5x5xf32>
    %1163 = arith.mulf %1162, %610 : vector<5x5xf32>
    %1164 = arith.addf %1160, %1163 : vector<5x5xf32>
    %c3_564 = arith.constant 3 : index
    %c25_565 = arith.constant 25 : index
    %1165 = memref.load %arg6[%c3_564, %c25_565] : memref<8x36xf32, #tpu.memory_space<smem>>
    %1166 = vector.broadcast %1165 : f32 to vector<5x5xf32>
    %1167 = arith.mulf %1166, %611 : vector<5x5xf32>
    %1168 = arith.addf %1164, %1167 : vector<5x5xf32>
    %c3_566 = arith.constant 3 : index
    %c26_567 = arith.constant 26 : index
    %1169 = memref.load %arg6[%c3_566, %c26_567] : memref<8x36xf32, #tpu.memory_space<smem>>
    %1170 = vector.broadcast %1169 : f32 to vector<5x5xf32>
    %1171 = arith.mulf %1170, %612 : vector<5x5xf32>
    %1172 = arith.addf %1168, %1171 : vector<5x5xf32>
    %c3_568 = arith.constant 3 : index
    %c27_569 = arith.constant 27 : index
    %1173 = memref.load %arg6[%c3_568, %c27_569] : memref<8x36xf32, #tpu.memory_space<smem>>
    %1174 = vector.broadcast %1173 : f32 to vector<5x5xf32>
    %1175 = arith.mulf %1174, %613 : vector<5x5xf32>
    %1176 = arith.addf %1172, %1175 : vector<5x5xf32>
    %c3_570 = arith.constant 3 : index
    %c28_571 = arith.constant 28 : index
    %1177 = memref.load %arg6[%c3_570, %c28_571] : memref<8x36xf32, #tpu.memory_space<smem>>
    %1178 = vector.broadcast %1177 : f32 to vector<5x5xf32>
    %1179 = arith.mulf %1178, %614 : vector<5x5xf32>
    %1180 = arith.addf %1176, %1179 : vector<5x5xf32>
    %c3_572 = arith.constant 3 : index
    %c29_573 = arith.constant 29 : index
    %1181 = memref.load %arg6[%c3_572, %c29_573] : memref<8x36xf32, #tpu.memory_space<smem>>
    %1182 = vector.broadcast %1181 : f32 to vector<5x5xf32>
    %1183 = arith.mulf %1182, %615 : vector<5x5xf32>
    %1184 = arith.addf %1180, %1183 : vector<5x5xf32>
    %c3_574 = arith.constant 3 : index
    %c30_575 = arith.constant 30 : index
    %1185 = memref.load %arg6[%c3_574, %c30_575] : memref<8x36xf32, #tpu.memory_space<smem>>
    %1186 = vector.broadcast %1185 : f32 to vector<5x5xf32>
    %1187 = arith.mulf %1186, %616 : vector<5x5xf32>
    %1188 = arith.addf %1184, %1187 : vector<5x5xf32>
    %c3_576 = arith.constant 3 : index
    %c31_577 = arith.constant 31 : index
    %1189 = memref.load %arg6[%c3_576, %c31_577] : memref<8x36xf32, #tpu.memory_space<smem>>
    %1190 = vector.broadcast %1189 : f32 to vector<5x5xf32>
    %1191 = arith.mulf %1190, %617 : vector<5x5xf32>
    %1192 = arith.addf %1188, %1191 : vector<5x5xf32>
    %c3_578 = arith.constant 3 : index
    %c32_579 = arith.constant 32 : index
    %1193 = memref.load %arg6[%c3_578, %c32_579] : memref<8x36xf32, #tpu.memory_space<smem>>
    %1194 = vector.broadcast %1193 : f32 to vector<5x5xf32>
    %1195 = arith.mulf %1194, %618 : vector<5x5xf32>
    %1196 = arith.addf %1192, %1195 : vector<5x5xf32>
    %c3_580 = arith.constant 3 : index
    %c33_581 = arith.constant 33 : index
    %1197 = memref.load %arg6[%c3_580, %c33_581] : memref<8x36xf32, #tpu.memory_space<smem>>
    %1198 = vector.broadcast %1197 : f32 to vector<5x5xf32>
    %1199 = arith.mulf %1198, %619 : vector<5x5xf32>
    %1200 = arith.addf %1196, %1199 : vector<5x5xf32>
    %c3_582 = arith.constant 3 : index
    %c34_583 = arith.constant 34 : index
    %1201 = memref.load %arg6[%c3_582, %c34_583] : memref<8x36xf32, #tpu.memory_space<smem>>
    %1202 = vector.broadcast %1201 : f32 to vector<5x5xf32>
    %1203 = arith.mulf %1202, %620 : vector<5x5xf32>
    %1204 = arith.addf %1200, %1203 : vector<5x5xf32>
    %c3_584 = arith.constant 3 : index
    %c35_585 = arith.constant 35 : index
    %1205 = memref.load %arg6[%c3_584, %c35_585] : memref<8x36xf32, #tpu.memory_space<smem>>
    %1206 = vector.broadcast %1205 : f32 to vector<5x5xf32>
    %1207 = arith.mulf %1206, %621 : vector<5x5xf32>
    %1208 = arith.addf %1204, %1207 : vector<5x5xf32>
    %c3_586 = arith.constant 3 : index
    %1209 = memref.load %arg7[%c3_586] : memref<8xf32, #tpu.memory_space<smem>>
    %1210 = vector.broadcast %1209 : f32 to vector<5x5xf32>
    %1211 = arith.addf %1208, %1210 : vector<5x5xf32>
    %cst_587 = arith.constant 0.000000e+00 : f32
    %1212 = vector.broadcast %cst_587 : f32 to vector<5x5xf32>
    %1213 = arith.maximumf %1211, %1212 : vector<5x5xf32>
    %c4_588 = arith.constant 4 : index
    %c0_589 = arith.constant 0 : index
    %1214 = memref.load %arg6[%c4_588, %c0_589] : memref<8x36xf32, #tpu.memory_space<smem>>
    %1215 = vector.broadcast %1214 : f32 to vector<5x5xf32>
    %1216 = arith.mulf %1215, %586 : vector<5x5xf32>
    %c4_590 = arith.constant 4 : index
    %c1_591 = arith.constant 1 : index
    %1217 = memref.load %arg6[%c4_590, %c1_591] : memref<8x36xf32, #tpu.memory_space<smem>>
    %1218 = vector.broadcast %1217 : f32 to vector<5x5xf32>
    %1219 = arith.mulf %1218, %587 : vector<5x5xf32>
    %1220 = arith.addf %1216, %1219 : vector<5x5xf32>
    %c4_592 = arith.constant 4 : index
    %c2_593 = arith.constant 2 : index
    %1221 = memref.load %arg6[%c4_592, %c2_593] : memref<8x36xf32, #tpu.memory_space<smem>>
    %1222 = vector.broadcast %1221 : f32 to vector<5x5xf32>
    %1223 = arith.mulf %1222, %588 : vector<5x5xf32>
    %1224 = arith.addf %1220, %1223 : vector<5x5xf32>
    %c4_594 = arith.constant 4 : index
    %c3_595 = arith.constant 3 : index
    %1225 = memref.load %arg6[%c4_594, %c3_595] : memref<8x36xf32, #tpu.memory_space<smem>>
    %1226 = vector.broadcast %1225 : f32 to vector<5x5xf32>
    %1227 = arith.mulf %1226, %589 : vector<5x5xf32>
    %1228 = arith.addf %1224, %1227 : vector<5x5xf32>
    %c4_596 = arith.constant 4 : index
    %c4_597 = arith.constant 4 : index
    %1229 = memref.load %arg6[%c4_596, %c4_597] : memref<8x36xf32, #tpu.memory_space<smem>>
    %1230 = vector.broadcast %1229 : f32 to vector<5x5xf32>
    %1231 = arith.mulf %1230, %590 : vector<5x5xf32>
    %1232 = arith.addf %1228, %1231 : vector<5x5xf32>
    %c4_598 = arith.constant 4 : index
    %c5_599 = arith.constant 5 : index
    %1233 = memref.load %arg6[%c4_598, %c5_599] : memref<8x36xf32, #tpu.memory_space<smem>>
    %1234 = vector.broadcast %1233 : f32 to vector<5x5xf32>
    %1235 = arith.mulf %1234, %591 : vector<5x5xf32>
    %1236 = arith.addf %1232, %1235 : vector<5x5xf32>
    %c4_600 = arith.constant 4 : index
    %c6_601 = arith.constant 6 : index
    %1237 = memref.load %arg6[%c4_600, %c6_601] : memref<8x36xf32, #tpu.memory_space<smem>>
    %1238 = vector.broadcast %1237 : f32 to vector<5x5xf32>
    %1239 = arith.mulf %1238, %592 : vector<5x5xf32>
    %1240 = arith.addf %1236, %1239 : vector<5x5xf32>
    %c4_602 = arith.constant 4 : index
    %c7_603 = arith.constant 7 : index
    %1241 = memref.load %arg6[%c4_602, %c7_603] : memref<8x36xf32, #tpu.memory_space<smem>>
    %1242 = vector.broadcast %1241 : f32 to vector<5x5xf32>
    %1243 = arith.mulf %1242, %593 : vector<5x5xf32>
    %1244 = arith.addf %1240, %1243 : vector<5x5xf32>
    %c4_604 = arith.constant 4 : index
    %c8_605 = arith.constant 8 : index
    %1245 = memref.load %arg6[%c4_604, %c8_605] : memref<8x36xf32, #tpu.memory_space<smem>>
    %1246 = vector.broadcast %1245 : f32 to vector<5x5xf32>
    %1247 = arith.mulf %1246, %594 : vector<5x5xf32>
    %1248 = arith.addf %1244, %1247 : vector<5x5xf32>
    %c4_606 = arith.constant 4 : index
    %c9_607 = arith.constant 9 : index
    %1249 = memref.load %arg6[%c4_606, %c9_607] : memref<8x36xf32, #tpu.memory_space<smem>>
    %1250 = vector.broadcast %1249 : f32 to vector<5x5xf32>
    %1251 = arith.mulf %1250, %595 : vector<5x5xf32>
    %1252 = arith.addf %1248, %1251 : vector<5x5xf32>
    %c4_608 = arith.constant 4 : index
    %c10_609 = arith.constant 10 : index
    %1253 = memref.load %arg6[%c4_608, %c10_609] : memref<8x36xf32, #tpu.memory_space<smem>>
    %1254 = vector.broadcast %1253 : f32 to vector<5x5xf32>
    %1255 = arith.mulf %1254, %596 : vector<5x5xf32>
    %1256 = arith.addf %1252, %1255 : vector<5x5xf32>
    %c4_610 = arith.constant 4 : index
    %c11_611 = arith.constant 11 : index
    %1257 = memref.load %arg6[%c4_610, %c11_611] : memref<8x36xf32, #tpu.memory_space<smem>>
    %1258 = vector.broadcast %1257 : f32 to vector<5x5xf32>
    %1259 = arith.mulf %1258, %597 : vector<5x5xf32>
    %1260 = arith.addf %1256, %1259 : vector<5x5xf32>
    %c4_612 = arith.constant 4 : index
    %c12_613 = arith.constant 12 : index
    %1261 = memref.load %arg6[%c4_612, %c12_613] : memref<8x36xf32, #tpu.memory_space<smem>>
    %1262 = vector.broadcast %1261 : f32 to vector<5x5xf32>
    %1263 = arith.mulf %1262, %598 : vector<5x5xf32>
    %1264 = arith.addf %1260, %1263 : vector<5x5xf32>
    %c4_614 = arith.constant 4 : index
    %c13_615 = arith.constant 13 : index
    %1265 = memref.load %arg6[%c4_614, %c13_615] : memref<8x36xf32, #tpu.memory_space<smem>>
    %1266 = vector.broadcast %1265 : f32 to vector<5x5xf32>
    %1267 = arith.mulf %1266, %599 : vector<5x5xf32>
    %1268 = arith.addf %1264, %1267 : vector<5x5xf32>
    %c4_616 = arith.constant 4 : index
    %c14_617 = arith.constant 14 : index
    %1269 = memref.load %arg6[%c4_616, %c14_617] : memref<8x36xf32, #tpu.memory_space<smem>>
    %1270 = vector.broadcast %1269 : f32 to vector<5x5xf32>
    %1271 = arith.mulf %1270, %600 : vector<5x5xf32>
    %1272 = arith.addf %1268, %1271 : vector<5x5xf32>
    %c4_618 = arith.constant 4 : index
    %c15_619 = arith.constant 15 : index
    %1273 = memref.load %arg6[%c4_618, %c15_619] : memref<8x36xf32, #tpu.memory_space<smem>>
    %1274 = vector.broadcast %1273 : f32 to vector<5x5xf32>
    %1275 = arith.mulf %1274, %601 : vector<5x5xf32>
    %1276 = arith.addf %1272, %1275 : vector<5x5xf32>
    %c4_620 = arith.constant 4 : index
    %c16_621 = arith.constant 16 : index
    %1277 = memref.load %arg6[%c4_620, %c16_621] : memref<8x36xf32, #tpu.memory_space<smem>>
    %1278 = vector.broadcast %1277 : f32 to vector<5x5xf32>
    %1279 = arith.mulf %1278, %602 : vector<5x5xf32>
    %1280 = arith.addf %1276, %1279 : vector<5x5xf32>
    %c4_622 = arith.constant 4 : index
    %c17_623 = arith.constant 17 : index
    %1281 = memref.load %arg6[%c4_622, %c17_623] : memref<8x36xf32, #tpu.memory_space<smem>>
    %1282 = vector.broadcast %1281 : f32 to vector<5x5xf32>
    %1283 = arith.mulf %1282, %603 : vector<5x5xf32>
    %1284 = arith.addf %1280, %1283 : vector<5x5xf32>
    %c4_624 = arith.constant 4 : index
    %c18_625 = arith.constant 18 : index
    %1285 = memref.load %arg6[%c4_624, %c18_625] : memref<8x36xf32, #tpu.memory_space<smem>>
    %1286 = vector.broadcast %1285 : f32 to vector<5x5xf32>
    %1287 = arith.mulf %1286, %604 : vector<5x5xf32>
    %1288 = arith.addf %1284, %1287 : vector<5x5xf32>
    %c4_626 = arith.constant 4 : index
    %c19_627 = arith.constant 19 : index
    %1289 = memref.load %arg6[%c4_626, %c19_627] : memref<8x36xf32, #tpu.memory_space<smem>>
    %1290 = vector.broadcast %1289 : f32 to vector<5x5xf32>
    %1291 = arith.mulf %1290, %605 : vector<5x5xf32>
    %1292 = arith.addf %1288, %1291 : vector<5x5xf32>
    %c4_628 = arith.constant 4 : index
    %c20_629 = arith.constant 20 : index
    %1293 = memref.load %arg6[%c4_628, %c20_629] : memref<8x36xf32, #tpu.memory_space<smem>>
    %1294 = vector.broadcast %1293 : f32 to vector<5x5xf32>
    %1295 = arith.mulf %1294, %606 : vector<5x5xf32>
    %1296 = arith.addf %1292, %1295 : vector<5x5xf32>
    %c4_630 = arith.constant 4 : index
    %c21_631 = arith.constant 21 : index
    %1297 = memref.load %arg6[%c4_630, %c21_631] : memref<8x36xf32, #tpu.memory_space<smem>>
    %1298 = vector.broadcast %1297 : f32 to vector<5x5xf32>
    %1299 = arith.mulf %1298, %607 : vector<5x5xf32>
    %1300 = arith.addf %1296, %1299 : vector<5x5xf32>
    %c4_632 = arith.constant 4 : index
    %c22_633 = arith.constant 22 : index
    %1301 = memref.load %arg6[%c4_632, %c22_633] : memref<8x36xf32, #tpu.memory_space<smem>>
    %1302 = vector.broadcast %1301 : f32 to vector<5x5xf32>
    %1303 = arith.mulf %1302, %608 : vector<5x5xf32>
    %1304 = arith.addf %1300, %1303 : vector<5x5xf32>
    %c4_634 = arith.constant 4 : index
    %c23_635 = arith.constant 23 : index
    %1305 = memref.load %arg6[%c4_634, %c23_635] : memref<8x36xf32, #tpu.memory_space<smem>>
    %1306 = vector.broadcast %1305 : f32 to vector<5x5xf32>
    %1307 = arith.mulf %1306, %609 : vector<5x5xf32>
    %1308 = arith.addf %1304, %1307 : vector<5x5xf32>
    %c4_636 = arith.constant 4 : index
    %c24_637 = arith.constant 24 : index
    %1309 = memref.load %arg6[%c4_636, %c24_637] : memref<8x36xf32, #tpu.memory_space<smem>>
    %1310 = vector.broadcast %1309 : f32 to vector<5x5xf32>
    %1311 = arith.mulf %1310, %610 : vector<5x5xf32>
    %1312 = arith.addf %1308, %1311 : vector<5x5xf32>
    %c4_638 = arith.constant 4 : index
    %c25_639 = arith.constant 25 : index
    %1313 = memref.load %arg6[%c4_638, %c25_639] : memref<8x36xf32, #tpu.memory_space<smem>>
    %1314 = vector.broadcast %1313 : f32 to vector<5x5xf32>
    %1315 = arith.mulf %1314, %611 : vector<5x5xf32>
    %1316 = arith.addf %1312, %1315 : vector<5x5xf32>
    %c4_640 = arith.constant 4 : index
    %c26_641 = arith.constant 26 : index
    %1317 = memref.load %arg6[%c4_640, %c26_641] : memref<8x36xf32, #tpu.memory_space<smem>>
    %1318 = vector.broadcast %1317 : f32 to vector<5x5xf32>
    %1319 = arith.mulf %1318, %612 : vector<5x5xf32>
    %1320 = arith.addf %1316, %1319 : vector<5x5xf32>
    %c4_642 = arith.constant 4 : index
    %c27_643 = arith.constant 27 : index
    %1321 = memref.load %arg6[%c4_642, %c27_643] : memref<8x36xf32, #tpu.memory_space<smem>>
    %1322 = vector.broadcast %1321 : f32 to vector<5x5xf32>
    %1323 = arith.mulf %1322, %613 : vector<5x5xf32>
    %1324 = arith.addf %1320, %1323 : vector<5x5xf32>
    %c4_644 = arith.constant 4 : index
    %c28_645 = arith.constant 28 : index
    %1325 = memref.load %arg6[%c4_644, %c28_645] : memref<8x36xf32, #tpu.memory_space<smem>>
    %1326 = vector.broadcast %1325 : f32 to vector<5x5xf32>
    %1327 = arith.mulf %1326, %614 : vector<5x5xf32>
    %1328 = arith.addf %1324, %1327 : vector<5x5xf32>
    %c4_646 = arith.constant 4 : index
    %c29_647 = arith.constant 29 : index
    %1329 = memref.load %arg6[%c4_646, %c29_647] : memref<8x36xf32, #tpu.memory_space<smem>>
    %1330 = vector.broadcast %1329 : f32 to vector<5x5xf32>
    %1331 = arith.mulf %1330, %615 : vector<5x5xf32>
    %1332 = arith.addf %1328, %1331 : vector<5x5xf32>
    %c4_648 = arith.constant 4 : index
    %c30_649 = arith.constant 30 : index
    %1333 = memref.load %arg6[%c4_648, %c30_649] : memref<8x36xf32, #tpu.memory_space<smem>>
    %1334 = vector.broadcast %1333 : f32 to vector<5x5xf32>
    %1335 = arith.mulf %1334, %616 : vector<5x5xf32>
    %1336 = arith.addf %1332, %1335 : vector<5x5xf32>
    %c4_650 = arith.constant 4 : index
    %c31_651 = arith.constant 31 : index
    %1337 = memref.load %arg6[%c4_650, %c31_651] : memref<8x36xf32, #tpu.memory_space<smem>>
    %1338 = vector.broadcast %1337 : f32 to vector<5x5xf32>
    %1339 = arith.mulf %1338, %617 : vector<5x5xf32>
    %1340 = arith.addf %1336, %1339 : vector<5x5xf32>
    %c4_652 = arith.constant 4 : index
    %c32_653 = arith.constant 32 : index
    %1341 = memref.load %arg6[%c4_652, %c32_653] : memref<8x36xf32, #tpu.memory_space<smem>>
    %1342 = vector.broadcast %1341 : f32 to vector<5x5xf32>
    %1343 = arith.mulf %1342, %618 : vector<5x5xf32>
    %1344 = arith.addf %1340, %1343 : vector<5x5xf32>
    %c4_654 = arith.constant 4 : index
    %c33_655 = arith.constant 33 : index
    %1345 = memref.load %arg6[%c4_654, %c33_655] : memref<8x36xf32, #tpu.memory_space<smem>>
    %1346 = vector.broadcast %1345 : f32 to vector<5x5xf32>
    %1347 = arith.mulf %1346, %619 : vector<5x5xf32>
    %1348 = arith.addf %1344, %1347 : vector<5x5xf32>
    %c4_656 = arith.constant 4 : index
    %c34_657 = arith.constant 34 : index
    %1349 = memref.load %arg6[%c4_656, %c34_657] : memref<8x36xf32, #tpu.memory_space<smem>>
    %1350 = vector.broadcast %1349 : f32 to vector<5x5xf32>
    %1351 = arith.mulf %1350, %620 : vector<5x5xf32>
    %1352 = arith.addf %1348, %1351 : vector<5x5xf32>
    %c4_658 = arith.constant 4 : index
    %c35_659 = arith.constant 35 : index
    %1353 = memref.load %arg6[%c4_658, %c35_659] : memref<8x36xf32, #tpu.memory_space<smem>>
    %1354 = vector.broadcast %1353 : f32 to vector<5x5xf32>
    %1355 = arith.mulf %1354, %621 : vector<5x5xf32>
    %1356 = arith.addf %1352, %1355 : vector<5x5xf32>
    %c4_660 = arith.constant 4 : index
    %1357 = memref.load %arg7[%c4_660] : memref<8xf32, #tpu.memory_space<smem>>
    %1358 = vector.broadcast %1357 : f32 to vector<5x5xf32>
    %1359 = arith.addf %1356, %1358 : vector<5x5xf32>
    %cst_661 = arith.constant 0.000000e+00 : f32
    %1360 = vector.broadcast %cst_661 : f32 to vector<5x5xf32>
    %1361 = arith.maximumf %1359, %1360 : vector<5x5xf32>
    %c5_662 = arith.constant 5 : index
    %c0_663 = arith.constant 0 : index
    %1362 = memref.load %arg6[%c5_662, %c0_663] : memref<8x36xf32, #tpu.memory_space<smem>>
    %1363 = vector.broadcast %1362 : f32 to vector<5x5xf32>
    %1364 = arith.mulf %1363, %586 : vector<5x5xf32>
    %c5_664 = arith.constant 5 : index
    %c1_665 = arith.constant 1 : index
    %1365 = memref.load %arg6[%c5_664, %c1_665] : memref<8x36xf32, #tpu.memory_space<smem>>
    %1366 = vector.broadcast %1365 : f32 to vector<5x5xf32>
    %1367 = arith.mulf %1366, %587 : vector<5x5xf32>
    %1368 = arith.addf %1364, %1367 : vector<5x5xf32>
    %c5_666 = arith.constant 5 : index
    %c2_667 = arith.constant 2 : index
    %1369 = memref.load %arg6[%c5_666, %c2_667] : memref<8x36xf32, #tpu.memory_space<smem>>
    %1370 = vector.broadcast %1369 : f32 to vector<5x5xf32>
    %1371 = arith.mulf %1370, %588 : vector<5x5xf32>
    %1372 = arith.addf %1368, %1371 : vector<5x5xf32>
    %c5_668 = arith.constant 5 : index
    %c3_669 = arith.constant 3 : index
    %1373 = memref.load %arg6[%c5_668, %c3_669] : memref<8x36xf32, #tpu.memory_space<smem>>
    %1374 = vector.broadcast %1373 : f32 to vector<5x5xf32>
    %1375 = arith.mulf %1374, %589 : vector<5x5xf32>
    %1376 = arith.addf %1372, %1375 : vector<5x5xf32>
    %c5_670 = arith.constant 5 : index
    %c4_671 = arith.constant 4 : index
    %1377 = memref.load %arg6[%c5_670, %c4_671] : memref<8x36xf32, #tpu.memory_space<smem>>
    %1378 = vector.broadcast %1377 : f32 to vector<5x5xf32>
    %1379 = arith.mulf %1378, %590 : vector<5x5xf32>
    %1380 = arith.addf %1376, %1379 : vector<5x5xf32>
    %c5_672 = arith.constant 5 : index
    %c5_673 = arith.constant 5 : index
    %1381 = memref.load %arg6[%c5_672, %c5_673] : memref<8x36xf32, #tpu.memory_space<smem>>
    %1382 = vector.broadcast %1381 : f32 to vector<5x5xf32>
    %1383 = arith.mulf %1382, %591 : vector<5x5xf32>
    %1384 = arith.addf %1380, %1383 : vector<5x5xf32>
    %c5_674 = arith.constant 5 : index
    %c6_675 = arith.constant 6 : index
    %1385 = memref.load %arg6[%c5_674, %c6_675] : memref<8x36xf32, #tpu.memory_space<smem>>
    %1386 = vector.broadcast %1385 : f32 to vector<5x5xf32>
    %1387 = arith.mulf %1386, %592 : vector<5x5xf32>
    %1388 = arith.addf %1384, %1387 : vector<5x5xf32>
    %c5_676 = arith.constant 5 : index
    %c7_677 = arith.constant 7 : index
    %1389 = memref.load %arg6[%c5_676, %c7_677] : memref<8x36xf32, #tpu.memory_space<smem>>
    %1390 = vector.broadcast %1389 : f32 to vector<5x5xf32>
    %1391 = arith.mulf %1390, %593 : vector<5x5xf32>
    %1392 = arith.addf %1388, %1391 : vector<5x5xf32>
    %c5_678 = arith.constant 5 : index
    %c8_679 = arith.constant 8 : index
    %1393 = memref.load %arg6[%c5_678, %c8_679] : memref<8x36xf32, #tpu.memory_space<smem>>
    %1394 = vector.broadcast %1393 : f32 to vector<5x5xf32>
    %1395 = arith.mulf %1394, %594 : vector<5x5xf32>
    %1396 = arith.addf %1392, %1395 : vector<5x5xf32>
    %c5_680 = arith.constant 5 : index
    %c9_681 = arith.constant 9 : index
    %1397 = memref.load %arg6[%c5_680, %c9_681] : memref<8x36xf32, #tpu.memory_space<smem>>
    %1398 = vector.broadcast %1397 : f32 to vector<5x5xf32>
    %1399 = arith.mulf %1398, %595 : vector<5x5xf32>
    %1400 = arith.addf %1396, %1399 : vector<5x5xf32>
    %c5_682 = arith.constant 5 : index
    %c10_683 = arith.constant 10 : index
    %1401 = memref.load %arg6[%c5_682, %c10_683] : memref<8x36xf32, #tpu.memory_space<smem>>
    %1402 = vector.broadcast %1401 : f32 to vector<5x5xf32>
    %1403 = arith.mulf %1402, %596 : vector<5x5xf32>
    %1404 = arith.addf %1400, %1403 : vector<5x5xf32>
    %c5_684 = arith.constant 5 : index
    %c11_685 = arith.constant 11 : index
    %1405 = memref.load %arg6[%c5_684, %c11_685] : memref<8x36xf32, #tpu.memory_space<smem>>
    %1406 = vector.broadcast %1405 : f32 to vector<5x5xf32>
    %1407 = arith.mulf %1406, %597 : vector<5x5xf32>
    %1408 = arith.addf %1404, %1407 : vector<5x5xf32>
    %c5_686 = arith.constant 5 : index
    %c12_687 = arith.constant 12 : index
    %1409 = memref.load %arg6[%c5_686, %c12_687] : memref<8x36xf32, #tpu.memory_space<smem>>
    %1410 = vector.broadcast %1409 : f32 to vector<5x5xf32>
    %1411 = arith.mulf %1410, %598 : vector<5x5xf32>
    %1412 = arith.addf %1408, %1411 : vector<5x5xf32>
    %c5_688 = arith.constant 5 : index
    %c13_689 = arith.constant 13 : index
    %1413 = memref.load %arg6[%c5_688, %c13_689] : memref<8x36xf32, #tpu.memory_space<smem>>
    %1414 = vector.broadcast %1413 : f32 to vector<5x5xf32>
    %1415 = arith.mulf %1414, %599 : vector<5x5xf32>
    %1416 = arith.addf %1412, %1415 : vector<5x5xf32>
    %c5_690 = arith.constant 5 : index
    %c14_691 = arith.constant 14 : index
    %1417 = memref.load %arg6[%c5_690, %c14_691] : memref<8x36xf32, #tpu.memory_space<smem>>
    %1418 = vector.broadcast %1417 : f32 to vector<5x5xf32>
    %1419 = arith.mulf %1418, %600 : vector<5x5xf32>
    %1420 = arith.addf %1416, %1419 : vector<5x5xf32>
    %c5_692 = arith.constant 5 : index
    %c15_693 = arith.constant 15 : index
    %1421 = memref.load %arg6[%c5_692, %c15_693] : memref<8x36xf32, #tpu.memory_space<smem>>
    %1422 = vector.broadcast %1421 : f32 to vector<5x5xf32>
    %1423 = arith.mulf %1422, %601 : vector<5x5xf32>
    %1424 = arith.addf %1420, %1423 : vector<5x5xf32>
    %c5_694 = arith.constant 5 : index
    %c16_695 = arith.constant 16 : index
    %1425 = memref.load %arg6[%c5_694, %c16_695] : memref<8x36xf32, #tpu.memory_space<smem>>
    %1426 = vector.broadcast %1425 : f32 to vector<5x5xf32>
    %1427 = arith.mulf %1426, %602 : vector<5x5xf32>
    %1428 = arith.addf %1424, %1427 : vector<5x5xf32>
    %c5_696 = arith.constant 5 : index
    %c17_697 = arith.constant 17 : index
    %1429 = memref.load %arg6[%c5_696, %c17_697] : memref<8x36xf32, #tpu.memory_space<smem>>
    %1430 = vector.broadcast %1429 : f32 to vector<5x5xf32>
    %1431 = arith.mulf %1430, %603 : vector<5x5xf32>
    %1432 = arith.addf %1428, %1431 : vector<5x5xf32>
    %c5_698 = arith.constant 5 : index
    %c18_699 = arith.constant 18 : index
    %1433 = memref.load %arg6[%c5_698, %c18_699] : memref<8x36xf32, #tpu.memory_space<smem>>
    %1434 = vector.broadcast %1433 : f32 to vector<5x5xf32>
    %1435 = arith.mulf %1434, %604 : vector<5x5xf32>
    %1436 = arith.addf %1432, %1435 : vector<5x5xf32>
    %c5_700 = arith.constant 5 : index
    %c19_701 = arith.constant 19 : index
    %1437 = memref.load %arg6[%c5_700, %c19_701] : memref<8x36xf32, #tpu.memory_space<smem>>
    %1438 = vector.broadcast %1437 : f32 to vector<5x5xf32>
    %1439 = arith.mulf %1438, %605 : vector<5x5xf32>
    %1440 = arith.addf %1436, %1439 : vector<5x5xf32>
    %c5_702 = arith.constant 5 : index
    %c20_703 = arith.constant 20 : index
    %1441 = memref.load %arg6[%c5_702, %c20_703] : memref<8x36xf32, #tpu.memory_space<smem>>
    %1442 = vector.broadcast %1441 : f32 to vector<5x5xf32>
    %1443 = arith.mulf %1442, %606 : vector<5x5xf32>
    %1444 = arith.addf %1440, %1443 : vector<5x5xf32>
    %c5_704 = arith.constant 5 : index
    %c21_705 = arith.constant 21 : index
    %1445 = memref.load %arg6[%c5_704, %c21_705] : memref<8x36xf32, #tpu.memory_space<smem>>
    %1446 = vector.broadcast %1445 : f32 to vector<5x5xf32>
    %1447 = arith.mulf %1446, %607 : vector<5x5xf32>
    %1448 = arith.addf %1444, %1447 : vector<5x5xf32>
    %c5_706 = arith.constant 5 : index
    %c22_707 = arith.constant 22 : index
    %1449 = memref.load %arg6[%c5_706, %c22_707] : memref<8x36xf32, #tpu.memory_space<smem>>
    %1450 = vector.broadcast %1449 : f32 to vector<5x5xf32>
    %1451 = arith.mulf %1450, %608 : vector<5x5xf32>
    %1452 = arith.addf %1448, %1451 : vector<5x5xf32>
    %c5_708 = arith.constant 5 : index
    %c23_709 = arith.constant 23 : index
    %1453 = memref.load %arg6[%c5_708, %c23_709] : memref<8x36xf32, #tpu.memory_space<smem>>
    %1454 = vector.broadcast %1453 : f32 to vector<5x5xf32>
    %1455 = arith.mulf %1454, %609 : vector<5x5xf32>
    %1456 = arith.addf %1452, %1455 : vector<5x5xf32>
    %c5_710 = arith.constant 5 : index
    %c24_711 = arith.constant 24 : index
    %1457 = memref.load %arg6[%c5_710, %c24_711] : memref<8x36xf32, #tpu.memory_space<smem>>
    %1458 = vector.broadcast %1457 : f32 to vector<5x5xf32>
    %1459 = arith.mulf %1458, %610 : vector<5x5xf32>
    %1460 = arith.addf %1456, %1459 : vector<5x5xf32>
    %c5_712 = arith.constant 5 : index
    %c25_713 = arith.constant 25 : index
    %1461 = memref.load %arg6[%c5_712, %c25_713] : memref<8x36xf32, #tpu.memory_space<smem>>
    %1462 = vector.broadcast %1461 : f32 to vector<5x5xf32>
    %1463 = arith.mulf %1462, %611 : vector<5x5xf32>
    %1464 = arith.addf %1460, %1463 : vector<5x5xf32>
    %c5_714 = arith.constant 5 : index
    %c26_715 = arith.constant 26 : index
    %1465 = memref.load %arg6[%c5_714, %c26_715] : memref<8x36xf32, #tpu.memory_space<smem>>
    %1466 = vector.broadcast %1465 : f32 to vector<5x5xf32>
    %1467 = arith.mulf %1466, %612 : vector<5x5xf32>
    %1468 = arith.addf %1464, %1467 : vector<5x5xf32>
    %c5_716 = arith.constant 5 : index
    %c27_717 = arith.constant 27 : index
    %1469 = memref.load %arg6[%c5_716, %c27_717] : memref<8x36xf32, #tpu.memory_space<smem>>
    %1470 = vector.broadcast %1469 : f32 to vector<5x5xf32>
    %1471 = arith.mulf %1470, %613 : vector<5x5xf32>
    %1472 = arith.addf %1468, %1471 : vector<5x5xf32>
    %c5_718 = arith.constant 5 : index
    %c28_719 = arith.constant 28 : index
    %1473 = memref.load %arg6[%c5_718, %c28_719] : memref<8x36xf32, #tpu.memory_space<smem>>
    %1474 = vector.broadcast %1473 : f32 to vector<5x5xf32>
    %1475 = arith.mulf %1474, %614 : vector<5x5xf32>
    %1476 = arith.addf %1472, %1475 : vector<5x5xf32>
    %c5_720 = arith.constant 5 : index
    %c29_721 = arith.constant 29 : index
    %1477 = memref.load %arg6[%c5_720, %c29_721] : memref<8x36xf32, #tpu.memory_space<smem>>
    %1478 = vector.broadcast %1477 : f32 to vector<5x5xf32>
    %1479 = arith.mulf %1478, %615 : vector<5x5xf32>
    %1480 = arith.addf %1476, %1479 : vector<5x5xf32>
    %c5_722 = arith.constant 5 : index
    %c30_723 = arith.constant 30 : index
    %1481 = memref.load %arg6[%c5_722, %c30_723] : memref<8x36xf32, #tpu.memory_space<smem>>
    %1482 = vector.broadcast %1481 : f32 to vector<5x5xf32>
    %1483 = arith.mulf %1482, %616 : vector<5x5xf32>
    %1484 = arith.addf %1480, %1483 : vector<5x5xf32>
    %c5_724 = arith.constant 5 : index
    %c31_725 = arith.constant 31 : index
    %1485 = memref.load %arg6[%c5_724, %c31_725] : memref<8x36xf32, #tpu.memory_space<smem>>
    %1486 = vector.broadcast %1485 : f32 to vector<5x5xf32>
    %1487 = arith.mulf %1486, %617 : vector<5x5xf32>
    %1488 = arith.addf %1484, %1487 : vector<5x5xf32>
    %c5_726 = arith.constant 5 : index
    %c32_727 = arith.constant 32 : index
    %1489 = memref.load %arg6[%c5_726, %c32_727] : memref<8x36xf32, #tpu.memory_space<smem>>
    %1490 = vector.broadcast %1489 : f32 to vector<5x5xf32>
    %1491 = arith.mulf %1490, %618 : vector<5x5xf32>
    %1492 = arith.addf %1488, %1491 : vector<5x5xf32>
    %c5_728 = arith.constant 5 : index
    %c33_729 = arith.constant 33 : index
    %1493 = memref.load %arg6[%c5_728, %c33_729] : memref<8x36xf32, #tpu.memory_space<smem>>
    %1494 = vector.broadcast %1493 : f32 to vector<5x5xf32>
    %1495 = arith.mulf %1494, %619 : vector<5x5xf32>
    %1496 = arith.addf %1492, %1495 : vector<5x5xf32>
    %c5_730 = arith.constant 5 : index
    %c34_731 = arith.constant 34 : index
    %1497 = memref.load %arg6[%c5_730, %c34_731] : memref<8x36xf32, #tpu.memory_space<smem>>
    %1498 = vector.broadcast %1497 : f32 to vector<5x5xf32>
    %1499 = arith.mulf %1498, %620 : vector<5x5xf32>
    %1500 = arith.addf %1496, %1499 : vector<5x5xf32>
    %c5_732 = arith.constant 5 : index
    %c35_733 = arith.constant 35 : index
    %1501 = memref.load %arg6[%c5_732, %c35_733] : memref<8x36xf32, #tpu.memory_space<smem>>
    %1502 = vector.broadcast %1501 : f32 to vector<5x5xf32>
    %1503 = arith.mulf %1502, %621 : vector<5x5xf32>
    %1504 = arith.addf %1500, %1503 : vector<5x5xf32>
    %c5_734 = arith.constant 5 : index
    %1505 = memref.load %arg7[%c5_734] : memref<8xf32, #tpu.memory_space<smem>>
    %1506 = vector.broadcast %1505 : f32 to vector<5x5xf32>
    %1507 = arith.addf %1504, %1506 : vector<5x5xf32>
    %cst_735 = arith.constant 0.000000e+00 : f32
    %1508 = vector.broadcast %cst_735 : f32 to vector<5x5xf32>
    %1509 = arith.maximumf %1507, %1508 : vector<5x5xf32>
    %c6_736 = arith.constant 6 : index
    %c0_737 = arith.constant 0 : index
    %1510 = memref.load %arg6[%c6_736, %c0_737] : memref<8x36xf32, #tpu.memory_space<smem>>
    %1511 = vector.broadcast %1510 : f32 to vector<5x5xf32>
    %1512 = arith.mulf %1511, %586 : vector<5x5xf32>
    %c6_738 = arith.constant 6 : index
    %c1_739 = arith.constant 1 : index
    %1513 = memref.load %arg6[%c6_738, %c1_739] : memref<8x36xf32, #tpu.memory_space<smem>>
    %1514 = vector.broadcast %1513 : f32 to vector<5x5xf32>
    %1515 = arith.mulf %1514, %587 : vector<5x5xf32>
    %1516 = arith.addf %1512, %1515 : vector<5x5xf32>
    %c6_740 = arith.constant 6 : index
    %c2_741 = arith.constant 2 : index
    %1517 = memref.load %arg6[%c6_740, %c2_741] : memref<8x36xf32, #tpu.memory_space<smem>>
    %1518 = vector.broadcast %1517 : f32 to vector<5x5xf32>
    %1519 = arith.mulf %1518, %588 : vector<5x5xf32>
    %1520 = arith.addf %1516, %1519 : vector<5x5xf32>
    %c6_742 = arith.constant 6 : index
    %c3_743 = arith.constant 3 : index
    %1521 = memref.load %arg6[%c6_742, %c3_743] : memref<8x36xf32, #tpu.memory_space<smem>>
    %1522 = vector.broadcast %1521 : f32 to vector<5x5xf32>
    %1523 = arith.mulf %1522, %589 : vector<5x5xf32>
    %1524 = arith.addf %1520, %1523 : vector<5x5xf32>
    %c6_744 = arith.constant 6 : index
    %c4_745 = arith.constant 4 : index
    %1525 = memref.load %arg6[%c6_744, %c4_745] : memref<8x36xf32, #tpu.memory_space<smem>>
    %1526 = vector.broadcast %1525 : f32 to vector<5x5xf32>
    %1527 = arith.mulf %1526, %590 : vector<5x5xf32>
    %1528 = arith.addf %1524, %1527 : vector<5x5xf32>
    %c6_746 = arith.constant 6 : index
    %c5_747 = arith.constant 5 : index
    %1529 = memref.load %arg6[%c6_746, %c5_747] : memref<8x36xf32, #tpu.memory_space<smem>>
    %1530 = vector.broadcast %1529 : f32 to vector<5x5xf32>
    %1531 = arith.mulf %1530, %591 : vector<5x5xf32>
    %1532 = arith.addf %1528, %1531 : vector<5x5xf32>
    %c6_748 = arith.constant 6 : index
    %c6_749 = arith.constant 6 : index
    %1533 = memref.load %arg6[%c6_748, %c6_749] : memref<8x36xf32, #tpu.memory_space<smem>>
    %1534 = vector.broadcast %1533 : f32 to vector<5x5xf32>
    %1535 = arith.mulf %1534, %592 : vector<5x5xf32>
    %1536 = arith.addf %1532, %1535 : vector<5x5xf32>
    %c6_750 = arith.constant 6 : index
    %c7_751 = arith.constant 7 : index
    %1537 = memref.load %arg6[%c6_750, %c7_751] : memref<8x36xf32, #tpu.memory_space<smem>>
    %1538 = vector.broadcast %1537 : f32 to vector<5x5xf32>
    %1539 = arith.mulf %1538, %593 : vector<5x5xf32>
    %1540 = arith.addf %1536, %1539 : vector<5x5xf32>
    %c6_752 = arith.constant 6 : index
    %c8_753 = arith.constant 8 : index
    %1541 = memref.load %arg6[%c6_752, %c8_753] : memref<8x36xf32, #tpu.memory_space<smem>>
    %1542 = vector.broadcast %1541 : f32 to vector<5x5xf32>
    %1543 = arith.mulf %1542, %594 : vector<5x5xf32>
    %1544 = arith.addf %1540, %1543 : vector<5x5xf32>
    %c6_754 = arith.constant 6 : index
    %c9_755 = arith.constant 9 : index
    %1545 = memref.load %arg6[%c6_754, %c9_755] : memref<8x36xf32, #tpu.memory_space<smem>>
    %1546 = vector.broadcast %1545 : f32 to vector<5x5xf32>
    %1547 = arith.mulf %1546, %595 : vector<5x5xf32>
    %1548 = arith.addf %1544, %1547 : vector<5x5xf32>
    %c6_756 = arith.constant 6 : index
    %c10_757 = arith.constant 10 : index
    %1549 = memref.load %arg6[%c6_756, %c10_757] : memref<8x36xf32, #tpu.memory_space<smem>>
    %1550 = vector.broadcast %1549 : f32 to vector<5x5xf32>
    %1551 = arith.mulf %1550, %596 : vector<5x5xf32>
    %1552 = arith.addf %1548, %1551 : vector<5x5xf32>
    %c6_758 = arith.constant 6 : index
    %c11_759 = arith.constant 11 : index
    %1553 = memref.load %arg6[%c6_758, %c11_759] : memref<8x36xf32, #tpu.memory_space<smem>>
    %1554 = vector.broadcast %1553 : f32 to vector<5x5xf32>
    %1555 = arith.mulf %1554, %597 : vector<5x5xf32>
    %1556 = arith.addf %1552, %1555 : vector<5x5xf32>
    %c6_760 = arith.constant 6 : index
    %c12_761 = arith.constant 12 : index
    %1557 = memref.load %arg6[%c6_760, %c12_761] : memref<8x36xf32, #tpu.memory_space<smem>>
    %1558 = vector.broadcast %1557 : f32 to vector<5x5xf32>
    %1559 = arith.mulf %1558, %598 : vector<5x5xf32>
    %1560 = arith.addf %1556, %1559 : vector<5x5xf32>
    %c6_762 = arith.constant 6 : index
    %c13_763 = arith.constant 13 : index
    %1561 = memref.load %arg6[%c6_762, %c13_763] : memref<8x36xf32, #tpu.memory_space<smem>>
    %1562 = vector.broadcast %1561 : f32 to vector<5x5xf32>
    %1563 = arith.mulf %1562, %599 : vector<5x5xf32>
    %1564 = arith.addf %1560, %1563 : vector<5x5xf32>
    %c6_764 = arith.constant 6 : index
    %c14_765 = arith.constant 14 : index
    %1565 = memref.load %arg6[%c6_764, %c14_765] : memref<8x36xf32, #tpu.memory_space<smem>>
    %1566 = vector.broadcast %1565 : f32 to vector<5x5xf32>
    %1567 = arith.mulf %1566, %600 : vector<5x5xf32>
    %1568 = arith.addf %1564, %1567 : vector<5x5xf32>
    %c6_766 = arith.constant 6 : index
    %c15_767 = arith.constant 15 : index
    %1569 = memref.load %arg6[%c6_766, %c15_767] : memref<8x36xf32, #tpu.memory_space<smem>>
    %1570 = vector.broadcast %1569 : f32 to vector<5x5xf32>
    %1571 = arith.mulf %1570, %601 : vector<5x5xf32>
    %1572 = arith.addf %1568, %1571 : vector<5x5xf32>
    %c6_768 = arith.constant 6 : index
    %c16_769 = arith.constant 16 : index
    %1573 = memref.load %arg6[%c6_768, %c16_769] : memref<8x36xf32, #tpu.memory_space<smem>>
    %1574 = vector.broadcast %1573 : f32 to vector<5x5xf32>
    %1575 = arith.mulf %1574, %602 : vector<5x5xf32>
    %1576 = arith.addf %1572, %1575 : vector<5x5xf32>
    %c6_770 = arith.constant 6 : index
    %c17_771 = arith.constant 17 : index
    %1577 = memref.load %arg6[%c6_770, %c17_771] : memref<8x36xf32, #tpu.memory_space<smem>>
    %1578 = vector.broadcast %1577 : f32 to vector<5x5xf32>
    %1579 = arith.mulf %1578, %603 : vector<5x5xf32>
    %1580 = arith.addf %1576, %1579 : vector<5x5xf32>
    %c6_772 = arith.constant 6 : index
    %c18_773 = arith.constant 18 : index
    %1581 = memref.load %arg6[%c6_772, %c18_773] : memref<8x36xf32, #tpu.memory_space<smem>>
    %1582 = vector.broadcast %1581 : f32 to vector<5x5xf32>
    %1583 = arith.mulf %1582, %604 : vector<5x5xf32>
    %1584 = arith.addf %1580, %1583 : vector<5x5xf32>
    %c6_774 = arith.constant 6 : index
    %c19_775 = arith.constant 19 : index
    %1585 = memref.load %arg6[%c6_774, %c19_775] : memref<8x36xf32, #tpu.memory_space<smem>>
    %1586 = vector.broadcast %1585 : f32 to vector<5x5xf32>
    %1587 = arith.mulf %1586, %605 : vector<5x5xf32>
    %1588 = arith.addf %1584, %1587 : vector<5x5xf32>
    %c6_776 = arith.constant 6 : index
    %c20_777 = arith.constant 20 : index
    %1589 = memref.load %arg6[%c6_776, %c20_777] : memref<8x36xf32, #tpu.memory_space<smem>>
    %1590 = vector.broadcast %1589 : f32 to vector<5x5xf32>
    %1591 = arith.mulf %1590, %606 : vector<5x5xf32>
    %1592 = arith.addf %1588, %1591 : vector<5x5xf32>
    %c6_778 = arith.constant 6 : index
    %c21_779 = arith.constant 21 : index
    %1593 = memref.load %arg6[%c6_778, %c21_779] : memref<8x36xf32, #tpu.memory_space<smem>>
    %1594 = vector.broadcast %1593 : f32 to vector<5x5xf32>
    %1595 = arith.mulf %1594, %607 : vector<5x5xf32>
    %1596 = arith.addf %1592, %1595 : vector<5x5xf32>
    %c6_780 = arith.constant 6 : index
    %c22_781 = arith.constant 22 : index
    %1597 = memref.load %arg6[%c6_780, %c22_781] : memref<8x36xf32, #tpu.memory_space<smem>>
    %1598 = vector.broadcast %1597 : f32 to vector<5x5xf32>
    %1599 = arith.mulf %1598, %608 : vector<5x5xf32>
    %1600 = arith.addf %1596, %1599 : vector<5x5xf32>
    %c6_782 = arith.constant 6 : index
    %c23_783 = arith.constant 23 : index
    %1601 = memref.load %arg6[%c6_782, %c23_783] : memref<8x36xf32, #tpu.memory_space<smem>>
    %1602 = vector.broadcast %1601 : f32 to vector<5x5xf32>
    %1603 = arith.mulf %1602, %609 : vector<5x5xf32>
    %1604 = arith.addf %1600, %1603 : vector<5x5xf32>
    %c6_784 = arith.constant 6 : index
    %c24_785 = arith.constant 24 : index
    %1605 = memref.load %arg6[%c6_784, %c24_785] : memref<8x36xf32, #tpu.memory_space<smem>>
    %1606 = vector.broadcast %1605 : f32 to vector<5x5xf32>
    %1607 = arith.mulf %1606, %610 : vector<5x5xf32>
    %1608 = arith.addf %1604, %1607 : vector<5x5xf32>
    %c6_786 = arith.constant 6 : index
    %c25_787 = arith.constant 25 : index
    %1609 = memref.load %arg6[%c6_786, %c25_787] : memref<8x36xf32, #tpu.memory_space<smem>>
    %1610 = vector.broadcast %1609 : f32 to vector<5x5xf32>
    %1611 = arith.mulf %1610, %611 : vector<5x5xf32>
    %1612 = arith.addf %1608, %1611 : vector<5x5xf32>
    %c6_788 = arith.constant 6 : index
    %c26_789 = arith.constant 26 : index
    %1613 = memref.load %arg6[%c6_788, %c26_789] : memref<8x36xf32, #tpu.memory_space<smem>>
    %1614 = vector.broadcast %1613 : f32 to vector<5x5xf32>
    %1615 = arith.mulf %1614, %612 : vector<5x5xf32>
    %1616 = arith.addf %1612, %1615 : vector<5x5xf32>
    %c6_790 = arith.constant 6 : index
    %c27_791 = arith.constant 27 : index
    %1617 = memref.load %arg6[%c6_790, %c27_791] : memref<8x36xf32, #tpu.memory_space<smem>>
    %1618 = vector.broadcast %1617 : f32 to vector<5x5xf32>
    %1619 = arith.mulf %1618, %613 : vector<5x5xf32>
    %1620 = arith.addf %1616, %1619 : vector<5x5xf32>
    %c6_792 = arith.constant 6 : index
    %c28_793 = arith.constant 28 : index
    %1621 = memref.load %arg6[%c6_792, %c28_793] : memref<8x36xf32, #tpu.memory_space<smem>>
    %1622 = vector.broadcast %1621 : f32 to vector<5x5xf32>
    %1623 = arith.mulf %1622, %614 : vector<5x5xf32>
    %1624 = arith.addf %1620, %1623 : vector<5x5xf32>
    %c6_794 = arith.constant 6 : index
    %c29_795 = arith.constant 29 : index
    %1625 = memref.load %arg6[%c6_794, %c29_795] : memref<8x36xf32, #tpu.memory_space<smem>>
    %1626 = vector.broadcast %1625 : f32 to vector<5x5xf32>
    %1627 = arith.mulf %1626, %615 : vector<5x5xf32>
    %1628 = arith.addf %1624, %1627 : vector<5x5xf32>
    %c6_796 = arith.constant 6 : index
    %c30_797 = arith.constant 30 : index
    %1629 = memref.load %arg6[%c6_796, %c30_797] : memref<8x36xf32, #tpu.memory_space<smem>>
    %1630 = vector.broadcast %1629 : f32 to vector<5x5xf32>
    %1631 = arith.mulf %1630, %616 : vector<5x5xf32>
    %1632 = arith.addf %1628, %1631 : vector<5x5xf32>
    %c6_798 = arith.constant 6 : index
    %c31_799 = arith.constant 31 : index
    %1633 = memref.load %arg6[%c6_798, %c31_799] : memref<8x36xf32, #tpu.memory_space<smem>>
    %1634 = vector.broadcast %1633 : f32 to vector<5x5xf32>
    %1635 = arith.mulf %1634, %617 : vector<5x5xf32>
    %1636 = arith.addf %1632, %1635 : vector<5x5xf32>
    %c6_800 = arith.constant 6 : index
    %c32_801 = arith.constant 32 : index
    %1637 = memref.load %arg6[%c6_800, %c32_801] : memref<8x36xf32, #tpu.memory_space<smem>>
    %1638 = vector.broadcast %1637 : f32 to vector<5x5xf32>
    %1639 = arith.mulf %1638, %618 : vector<5x5xf32>
    %1640 = arith.addf %1636, %1639 : vector<5x5xf32>
    %c6_802 = arith.constant 6 : index
    %c33_803 = arith.constant 33 : index
    %1641 = memref.load %arg6[%c6_802, %c33_803] : memref<8x36xf32, #tpu.memory_space<smem>>
    %1642 = vector.broadcast %1641 : f32 to vector<5x5xf32>
    %1643 = arith.mulf %1642, %619 : vector<5x5xf32>
    %1644 = arith.addf %1640, %1643 : vector<5x5xf32>
    %c6_804 = arith.constant 6 : index
    %c34_805 = arith.constant 34 : index
    %1645 = memref.load %arg6[%c6_804, %c34_805] : memref<8x36xf32, #tpu.memory_space<smem>>
    %1646 = vector.broadcast %1645 : f32 to vector<5x5xf32>
    %1647 = arith.mulf %1646, %620 : vector<5x5xf32>
    %1648 = arith.addf %1644, %1647 : vector<5x5xf32>
    %c6_806 = arith.constant 6 : index
    %c35_807 = arith.constant 35 : index
    %1649 = memref.load %arg6[%c6_806, %c35_807] : memref<8x36xf32, #tpu.memory_space<smem>>
    %1650 = vector.broadcast %1649 : f32 to vector<5x5xf32>
    %1651 = arith.mulf %1650, %621 : vector<5x5xf32>
    %1652 = arith.addf %1648, %1651 : vector<5x5xf32>
    %c6_808 = arith.constant 6 : index
    %1653 = memref.load %arg7[%c6_808] : memref<8xf32, #tpu.memory_space<smem>>
    %1654 = vector.broadcast %1653 : f32 to vector<5x5xf32>
    %1655 = arith.addf %1652, %1654 : vector<5x5xf32>
    %cst_809 = arith.constant 0.000000e+00 : f32
    %1656 = vector.broadcast %cst_809 : f32 to vector<5x5xf32>
    %1657 = arith.maximumf %1655, %1656 : vector<5x5xf32>
    %c7_810 = arith.constant 7 : index
    %c0_811 = arith.constant 0 : index
    %1658 = memref.load %arg6[%c7_810, %c0_811] : memref<8x36xf32, #tpu.memory_space<smem>>
    %1659 = vector.broadcast %1658 : f32 to vector<5x5xf32>
    %1660 = arith.mulf %1659, %586 : vector<5x5xf32>
    %c7_812 = arith.constant 7 : index
    %c1_813 = arith.constant 1 : index
    %1661 = memref.load %arg6[%c7_812, %c1_813] : memref<8x36xf32, #tpu.memory_space<smem>>
    %1662 = vector.broadcast %1661 : f32 to vector<5x5xf32>
    %1663 = arith.mulf %1662, %587 : vector<5x5xf32>
    %1664 = arith.addf %1660, %1663 : vector<5x5xf32>
    %c7_814 = arith.constant 7 : index
    %c2_815 = arith.constant 2 : index
    %1665 = memref.load %arg6[%c7_814, %c2_815] : memref<8x36xf32, #tpu.memory_space<smem>>
    %1666 = vector.broadcast %1665 : f32 to vector<5x5xf32>
    %1667 = arith.mulf %1666, %588 : vector<5x5xf32>
    %1668 = arith.addf %1664, %1667 : vector<5x5xf32>
    %c7_816 = arith.constant 7 : index
    %c3_817 = arith.constant 3 : index
    %1669 = memref.load %arg6[%c7_816, %c3_817] : memref<8x36xf32, #tpu.memory_space<smem>>
    %1670 = vector.broadcast %1669 : f32 to vector<5x5xf32>
    %1671 = arith.mulf %1670, %589 : vector<5x5xf32>
    %1672 = arith.addf %1668, %1671 : vector<5x5xf32>
    %c7_818 = arith.constant 7 : index
    %c4_819 = arith.constant 4 : index
    %1673 = memref.load %arg6[%c7_818, %c4_819] : memref<8x36xf32, #tpu.memory_space<smem>>
    %1674 = vector.broadcast %1673 : f32 to vector<5x5xf32>
    %1675 = arith.mulf %1674, %590 : vector<5x5xf32>
    %1676 = arith.addf %1672, %1675 : vector<5x5xf32>
    %c7_820 = arith.constant 7 : index
    %c5_821 = arith.constant 5 : index
    %1677 = memref.load %arg6[%c7_820, %c5_821] : memref<8x36xf32, #tpu.memory_space<smem>>
    %1678 = vector.broadcast %1677 : f32 to vector<5x5xf32>
    %1679 = arith.mulf %1678, %591 : vector<5x5xf32>
    %1680 = arith.addf %1676, %1679 : vector<5x5xf32>
    %c7_822 = arith.constant 7 : index
    %c6_823 = arith.constant 6 : index
    %1681 = memref.load %arg6[%c7_822, %c6_823] : memref<8x36xf32, #tpu.memory_space<smem>>
    %1682 = vector.broadcast %1681 : f32 to vector<5x5xf32>
    %1683 = arith.mulf %1682, %592 : vector<5x5xf32>
    %1684 = arith.addf %1680, %1683 : vector<5x5xf32>
    %c7_824 = arith.constant 7 : index
    %c7_825 = arith.constant 7 : index
    %1685 = memref.load %arg6[%c7_824, %c7_825] : memref<8x36xf32, #tpu.memory_space<smem>>
    %1686 = vector.broadcast %1685 : f32 to vector<5x5xf32>
    %1687 = arith.mulf %1686, %593 : vector<5x5xf32>
    %1688 = arith.addf %1684, %1687 : vector<5x5xf32>
    %c7_826 = arith.constant 7 : index
    %c8_827 = arith.constant 8 : index
    %1689 = memref.load %arg6[%c7_826, %c8_827] : memref<8x36xf32, #tpu.memory_space<smem>>
    %1690 = vector.broadcast %1689 : f32 to vector<5x5xf32>
    %1691 = arith.mulf %1690, %594 : vector<5x5xf32>
    %1692 = arith.addf %1688, %1691 : vector<5x5xf32>
    %c7_828 = arith.constant 7 : index
    %c9_829 = arith.constant 9 : index
    %1693 = memref.load %arg6[%c7_828, %c9_829] : memref<8x36xf32, #tpu.memory_space<smem>>
    %1694 = vector.broadcast %1693 : f32 to vector<5x5xf32>
    %1695 = arith.mulf %1694, %595 : vector<5x5xf32>
    %1696 = arith.addf %1692, %1695 : vector<5x5xf32>
    %c7_830 = arith.constant 7 : index
    %c10_831 = arith.constant 10 : index
    %1697 = memref.load %arg6[%c7_830, %c10_831] : memref<8x36xf32, #tpu.memory_space<smem>>
    %1698 = vector.broadcast %1697 : f32 to vector<5x5xf32>
    %1699 = arith.mulf %1698, %596 : vector<5x5xf32>
    %1700 = arith.addf %1696, %1699 : vector<5x5xf32>
    %c7_832 = arith.constant 7 : index
    %c11_833 = arith.constant 11 : index
    %1701 = memref.load %arg6[%c7_832, %c11_833] : memref<8x36xf32, #tpu.memory_space<smem>>
    %1702 = vector.broadcast %1701 : f32 to vector<5x5xf32>
    %1703 = arith.mulf %1702, %597 : vector<5x5xf32>
    %1704 = arith.addf %1700, %1703 : vector<5x5xf32>
    %c7_834 = arith.constant 7 : index
    %c12_835 = arith.constant 12 : index
    %1705 = memref.load %arg6[%c7_834, %c12_835] : memref<8x36xf32, #tpu.memory_space<smem>>
    %1706 = vector.broadcast %1705 : f32 to vector<5x5xf32>
    %1707 = arith.mulf %1706, %598 : vector<5x5xf32>
    %1708 = arith.addf %1704, %1707 : vector<5x5xf32>
    %c7_836 = arith.constant 7 : index
    %c13_837 = arith.constant 13 : index
    %1709 = memref.load %arg6[%c7_836, %c13_837] : memref<8x36xf32, #tpu.memory_space<smem>>
    %1710 = vector.broadcast %1709 : f32 to vector<5x5xf32>
    %1711 = arith.mulf %1710, %599 : vector<5x5xf32>
    %1712 = arith.addf %1708, %1711 : vector<5x5xf32>
    %c7_838 = arith.constant 7 : index
    %c14_839 = arith.constant 14 : index
    %1713 = memref.load %arg6[%c7_838, %c14_839] : memref<8x36xf32, #tpu.memory_space<smem>>
    %1714 = vector.broadcast %1713 : f32 to vector<5x5xf32>
    %1715 = arith.mulf %1714, %600 : vector<5x5xf32>
    %1716 = arith.addf %1712, %1715 : vector<5x5xf32>
    %c7_840 = arith.constant 7 : index
    %c15_841 = arith.constant 15 : index
    %1717 = memref.load %arg6[%c7_840, %c15_841] : memref<8x36xf32, #tpu.memory_space<smem>>
    %1718 = vector.broadcast %1717 : f32 to vector<5x5xf32>
    %1719 = arith.mulf %1718, %601 : vector<5x5xf32>
    %1720 = arith.addf %1716, %1719 : vector<5x5xf32>
    %c7_842 = arith.constant 7 : index
    %c16_843 = arith.constant 16 : index
    %1721 = memref.load %arg6[%c7_842, %c16_843] : memref<8x36xf32, #tpu.memory_space<smem>>
    %1722 = vector.broadcast %1721 : f32 to vector<5x5xf32>
    %1723 = arith.mulf %1722, %602 : vector<5x5xf32>
    %1724 = arith.addf %1720, %1723 : vector<5x5xf32>
    %c7_844 = arith.constant 7 : index
    %c17_845 = arith.constant 17 : index
    %1725 = memref.load %arg6[%c7_844, %c17_845] : memref<8x36xf32, #tpu.memory_space<smem>>
    %1726 = vector.broadcast %1725 : f32 to vector<5x5xf32>
    %1727 = arith.mulf %1726, %603 : vector<5x5xf32>
    %1728 = arith.addf %1724, %1727 : vector<5x5xf32>
    %c7_846 = arith.constant 7 : index
    %c18_847 = arith.constant 18 : index
    %1729 = memref.load %arg6[%c7_846, %c18_847] : memref<8x36xf32, #tpu.memory_space<smem>>
    %1730 = vector.broadcast %1729 : f32 to vector<5x5xf32>
    %1731 = arith.mulf %1730, %604 : vector<5x5xf32>
    %1732 = arith.addf %1728, %1731 : vector<5x5xf32>
    %c7_848 = arith.constant 7 : index
    %c19_849 = arith.constant 19 : index
    %1733 = memref.load %arg6[%c7_848, %c19_849] : memref<8x36xf32, #tpu.memory_space<smem>>
    %1734 = vector.broadcast %1733 : f32 to vector<5x5xf32>
    %1735 = arith.mulf %1734, %605 : vector<5x5xf32>
    %1736 = arith.addf %1732, %1735 : vector<5x5xf32>
    %c7_850 = arith.constant 7 : index
    %c20_851 = arith.constant 20 : index
    %1737 = memref.load %arg6[%c7_850, %c20_851] : memref<8x36xf32, #tpu.memory_space<smem>>
    %1738 = vector.broadcast %1737 : f32 to vector<5x5xf32>
    %1739 = arith.mulf %1738, %606 : vector<5x5xf32>
    %1740 = arith.addf %1736, %1739 : vector<5x5xf32>
    %c7_852 = arith.constant 7 : index
    %c21_853 = arith.constant 21 : index
    %1741 = memref.load %arg6[%c7_852, %c21_853] : memref<8x36xf32, #tpu.memory_space<smem>>
    %1742 = vector.broadcast %1741 : f32 to vector<5x5xf32>
    %1743 = arith.mulf %1742, %607 : vector<5x5xf32>
    %1744 = arith.addf %1740, %1743 : vector<5x5xf32>
    %c7_854 = arith.constant 7 : index
    %c22_855 = arith.constant 22 : index
    %1745 = memref.load %arg6[%c7_854, %c22_855] : memref<8x36xf32, #tpu.memory_space<smem>>
    %1746 = vector.broadcast %1745 : f32 to vector<5x5xf32>
    %1747 = arith.mulf %1746, %608 : vector<5x5xf32>
    %1748 = arith.addf %1744, %1747 : vector<5x5xf32>
    %c7_856 = arith.constant 7 : index
    %c23_857 = arith.constant 23 : index
    %1749 = memref.load %arg6[%c7_856, %c23_857] : memref<8x36xf32, #tpu.memory_space<smem>>
    %1750 = vector.broadcast %1749 : f32 to vector<5x5xf32>
    %1751 = arith.mulf %1750, %609 : vector<5x5xf32>
    %1752 = arith.addf %1748, %1751 : vector<5x5xf32>
    %c7_858 = arith.constant 7 : index
    %c24_859 = arith.constant 24 : index
    %1753 = memref.load %arg6[%c7_858, %c24_859] : memref<8x36xf32, #tpu.memory_space<smem>>
    %1754 = vector.broadcast %1753 : f32 to vector<5x5xf32>
    %1755 = arith.mulf %1754, %610 : vector<5x5xf32>
    %1756 = arith.addf %1752, %1755 : vector<5x5xf32>
    %c7_860 = arith.constant 7 : index
    %c25_861 = arith.constant 25 : index
    %1757 = memref.load %arg6[%c7_860, %c25_861] : memref<8x36xf32, #tpu.memory_space<smem>>
    %1758 = vector.broadcast %1757 : f32 to vector<5x5xf32>
    %1759 = arith.mulf %1758, %611 : vector<5x5xf32>
    %1760 = arith.addf %1756, %1759 : vector<5x5xf32>
    %c7_862 = arith.constant 7 : index
    %c26_863 = arith.constant 26 : index
    %1761 = memref.load %arg6[%c7_862, %c26_863] : memref<8x36xf32, #tpu.memory_space<smem>>
    %1762 = vector.broadcast %1761 : f32 to vector<5x5xf32>
    %1763 = arith.mulf %1762, %612 : vector<5x5xf32>
    %1764 = arith.addf %1760, %1763 : vector<5x5xf32>
    %c7_864 = arith.constant 7 : index
    %c27_865 = arith.constant 27 : index
    %1765 = memref.load %arg6[%c7_864, %c27_865] : memref<8x36xf32, #tpu.memory_space<smem>>
    %1766 = vector.broadcast %1765 : f32 to vector<5x5xf32>
    %1767 = arith.mulf %1766, %613 : vector<5x5xf32>
    %1768 = arith.addf %1764, %1767 : vector<5x5xf32>
    %c7_866 = arith.constant 7 : index
    %c28_867 = arith.constant 28 : index
    %1769 = memref.load %arg6[%c7_866, %c28_867] : memref<8x36xf32, #tpu.memory_space<smem>>
    %1770 = vector.broadcast %1769 : f32 to vector<5x5xf32>
    %1771 = arith.mulf %1770, %614 : vector<5x5xf32>
    %1772 = arith.addf %1768, %1771 : vector<5x5xf32>
    %c7_868 = arith.constant 7 : index
    %c29_869 = arith.constant 29 : index
    %1773 = memref.load %arg6[%c7_868, %c29_869] : memref<8x36xf32, #tpu.memory_space<smem>>
    %1774 = vector.broadcast %1773 : f32 to vector<5x5xf32>
    %1775 = arith.mulf %1774, %615 : vector<5x5xf32>
    %1776 = arith.addf %1772, %1775 : vector<5x5xf32>
    %c7_870 = arith.constant 7 : index
    %c30_871 = arith.constant 30 : index
    %1777 = memref.load %arg6[%c7_870, %c30_871] : memref<8x36xf32, #tpu.memory_space<smem>>
    %1778 = vector.broadcast %1777 : f32 to vector<5x5xf32>
    %1779 = arith.mulf %1778, %616 : vector<5x5xf32>
    %1780 = arith.addf %1776, %1779 : vector<5x5xf32>
    %c7_872 = arith.constant 7 : index
    %c31_873 = arith.constant 31 : index
    %1781 = memref.load %arg6[%c7_872, %c31_873] : memref<8x36xf32, #tpu.memory_space<smem>>
    %1782 = vector.broadcast %1781 : f32 to vector<5x5xf32>
    %1783 = arith.mulf %1782, %617 : vector<5x5xf32>
    %1784 = arith.addf %1780, %1783 : vector<5x5xf32>
    %c7_874 = arith.constant 7 : index
    %c32_875 = arith.constant 32 : index
    %1785 = memref.load %arg6[%c7_874, %c32_875] : memref<8x36xf32, #tpu.memory_space<smem>>
    %1786 = vector.broadcast %1785 : f32 to vector<5x5xf32>
    %1787 = arith.mulf %1786, %618 : vector<5x5xf32>
    %1788 = arith.addf %1784, %1787 : vector<5x5xf32>
    %c7_876 = arith.constant 7 : index
    %c33_877 = arith.constant 33 : index
    %1789 = memref.load %arg6[%c7_876, %c33_877] : memref<8x36xf32, #tpu.memory_space<smem>>
    %1790 = vector.broadcast %1789 : f32 to vector<5x5xf32>
    %1791 = arith.mulf %1790, %619 : vector<5x5xf32>
    %1792 = arith.addf %1788, %1791 : vector<5x5xf32>
    %c7_878 = arith.constant 7 : index
    %c34_879 = arith.constant 34 : index
    %1793 = memref.load %arg6[%c7_878, %c34_879] : memref<8x36xf32, #tpu.memory_space<smem>>
    %1794 = vector.broadcast %1793 : f32 to vector<5x5xf32>
    %1795 = arith.mulf %1794, %620 : vector<5x5xf32>
    %1796 = arith.addf %1792, %1795 : vector<5x5xf32>
    %c7_880 = arith.constant 7 : index
    %c35_881 = arith.constant 35 : index
    %1797 = memref.load %arg6[%c7_880, %c35_881] : memref<8x36xf32, #tpu.memory_space<smem>>
    %1798 = vector.broadcast %1797 : f32 to vector<5x5xf32>
    %1799 = arith.mulf %1798, %621 : vector<5x5xf32>
    %1800 = arith.addf %1796, %1799 : vector<5x5xf32>
    %c7_882 = arith.constant 7 : index
    %1801 = memref.load %arg7[%c7_882] : memref<8xf32, #tpu.memory_space<smem>>
    %1802 = vector.broadcast %1801 : f32 to vector<5x5xf32>
    %1803 = arith.addf %1800, %1802 : vector<5x5xf32>
    %cst_883 = arith.constant 0.000000e+00 : f32
    %1804 = vector.broadcast %cst_883 : f32 to vector<5x5xf32>
    %1805 = arith.maximumf %1803, %1804 : vector<5x5xf32>
    %c0_884 = arith.constant 0 : index
    %c0_885 = arith.constant 0 : index
    %c0_886 = arith.constant 0 : index
    %1806 = vector.load %arg8[%c0_884, %c0_885, %c0_886] : memref<8x5x5xf32, #tpu.memory_space<vmem>>, vector<1x5x5xf32>
    %1807 = vector.shape_cast %1806 : vector<1x5x5xf32> to vector<5x5xf32>
    %1808 = arith.mulf %769, %1807 : vector<5x5xf32>
    %c1_887 = arith.constant 1 : index
    %c0_888 = arith.constant 0 : index
    %c0_889 = arith.constant 0 : index
    %1809 = vector.load %arg8[%c1_887, %c0_888, %c0_889] : memref<8x5x5xf32, #tpu.memory_space<vmem>>, vector<1x5x5xf32>
    %1810 = vector.shape_cast %1809 : vector<1x5x5xf32> to vector<5x5xf32>
    %1811 = arith.mulf %917, %1810 : vector<5x5xf32>
    %1812 = arith.addf %1808, %1811 : vector<5x5xf32>
    %c2_890 = arith.constant 2 : index
    %c0_891 = arith.constant 0 : index
    %c0_892 = arith.constant 0 : index
    %1813 = vector.load %arg8[%c2_890, %c0_891, %c0_892] : memref<8x5x5xf32, #tpu.memory_space<vmem>>, vector<1x5x5xf32>
    %1814 = vector.shape_cast %1813 : vector<1x5x5xf32> to vector<5x5xf32>
    %1815 = arith.mulf %1065, %1814 : vector<5x5xf32>
    %1816 = arith.addf %1812, %1815 : vector<5x5xf32>
    %c3_893 = arith.constant 3 : index
    %c0_894 = arith.constant 0 : index
    %c0_895 = arith.constant 0 : index
    %1817 = vector.load %arg8[%c3_893, %c0_894, %c0_895] : memref<8x5x5xf32, #tpu.memory_space<vmem>>, vector<1x5x5xf32>
    %1818 = vector.shape_cast %1817 : vector<1x5x5xf32> to vector<5x5xf32>
    %1819 = arith.mulf %1213, %1818 : vector<5x5xf32>
    %1820 = arith.addf %1816, %1819 : vector<5x5xf32>
    %c4_896 = arith.constant 4 : index
    %c0_897 = arith.constant 0 : index
    %c0_898 = arith.constant 0 : index
    %1821 = vector.load %arg8[%c4_896, %c0_897, %c0_898] : memref<8x5x5xf32, #tpu.memory_space<vmem>>, vector<1x5x5xf32>
    %1822 = vector.shape_cast %1821 : vector<1x5x5xf32> to vector<5x5xf32>
    %1823 = arith.mulf %1361, %1822 : vector<5x5xf32>
    %1824 = arith.addf %1820, %1823 : vector<5x5xf32>
    %c5_899 = arith.constant 5 : index
    %c0_900 = arith.constant 0 : index
    %c0_901 = arith.constant 0 : index
    %1825 = vector.load %arg8[%c5_899, %c0_900, %c0_901] : memref<8x5x5xf32, #tpu.memory_space<vmem>>, vector<1x5x5xf32>
    %1826 = vector.shape_cast %1825 : vector<1x5x5xf32> to vector<5x5xf32>
    %1827 = arith.mulf %1509, %1826 : vector<5x5xf32>
    %1828 = arith.addf %1824, %1827 : vector<5x5xf32>
    %c6_902 = arith.constant 6 : index
    %c0_903 = arith.constant 0 : index
    %c0_904 = arith.constant 0 : index
    %1829 = vector.load %arg8[%c6_902, %c0_903, %c0_904] : memref<8x5x5xf32, #tpu.memory_space<vmem>>, vector<1x5x5xf32>
    %1830 = vector.shape_cast %1829 : vector<1x5x5xf32> to vector<5x5xf32>
    %1831 = arith.mulf %1657, %1830 : vector<5x5xf32>
    %1832 = arith.addf %1828, %1831 : vector<5x5xf32>
    %c7_905 = arith.constant 7 : index
    %c0_906 = arith.constant 0 : index
    %c0_907 = arith.constant 0 : index
    %1833 = vector.load %arg8[%c7_905, %c0_906, %c0_907] : memref<8x5x5xf32, #tpu.memory_space<vmem>>, vector<1x5x5xf32>
    %1834 = vector.shape_cast %1833 : vector<1x5x5xf32> to vector<5x5xf32>
    %1835 = arith.mulf %1805, %1834 : vector<5x5xf32>
    %1836 = arith.addf %1832, %1835 : vector<5x5xf32>
    %cst_908 = arith.constant dense<0.000000e+00> : vector<5xf32>
    %1837 = vector.multi_reduction <add>, %1836, %cst_908 [1] : vector<5x5xf32> to vector<5xf32>
    %1838 = vector.shape_cast %1837 : vector<5xf32> to vector<5x1xf32>
    %cst_909 = arith.constant dense<0.000000e+00> : vector<1xf32>
    %1839 = vector.multi_reduction <add>, %1838, %cst_909 [0] : vector<5x1xf32> to vector<1xf32>
    %1840 = vector.shape_cast %1839 : vector<1xf32> to vector<1x1xf32>
    %c0_910 = arith.constant 0 : index
    %1841 = memref.load %arg9[%c0_910] : memref<1xf32, #tpu.memory_space<smem>>
    %1842 = vector.broadcast %1841 : f32 to vector<1x1xf32>
    %1843 = arith.addf %1840, %1842 : vector<1x1xf32>
    %1844 = vector.shape_cast %1843 : vector<1x1xf32> to vector<1x1x1xf32>
    %c0_911 = arith.constant 0 : index
    %c0_912 = arith.constant 0 : index
    %c0_913 = arith.constant 0 : index
    %1845 = vector.load %arg10[%c0_911, %c0_912, %c0_913] : memref<1x1x1xf32, #tpu.memory_space<vmem>>, vector<1x1x1xf32>
    tpu.vector_store %arg10[%c0_911, %c0_912, %c0_913], %1844 {strides = array<i32>} : memref<1x1x1xf32, #tpu.memory_space<vmem>>, vector<1x1x1xf32>,
    return
  }
  func.func @transform_0(%arg0: i32) -> (i32, i32, i32) {
    %c0_i32 = arith.constant 0 : i32
    %c0_i32_0 = arith.constant 0 : i32
    %c0_i32_1 = arith.constant 0 : i32
    return %arg0, %c0_i32, %c0_i32_0 : i32, i32, i32
  }
  func.func @transform_1(%arg0: i32) -> (i32, i32) {
    %c0_i32 = arith.constant 0 : i32
    %c0_i32_0 = arith.constant 0 : i32
    %c0_i32_1 = arith.constant 0 : i32
    return %c0_i32, %c0_i32_0 : i32, i32
  }
  func.func @transform_2(%arg0: i32) -> i32 {
    %c0_i32 = arith.constant 0 : i32
    %c0_i32_0 = arith.constant 0 : i32
    return %c0_i32 : i32
  }
  func.func @transform_3(%arg0: i32) -> (i32, i32) {
    %c0_i32 = arith.constant 0 : i32
    %c0_i32_0 = arith.constant 0 : i32
    %c0_i32_1 = arith.constant 0 : i32
    return %c0_i32, %c0_i32_0 : i32, i32
  }
  func.func @transform_4(%arg0: i32) -> i32 {
    %c0_i32 = arith.constant 0 : i32
    %c0_i32_0 = arith.constant 0 : i32
    return %c0_i32 : i32
  }
  func.func @transform_5(%arg0: i32) -> (i32, i32) {
    %c0_i32 = arith.constant 0 : i32
    %c0_i32_0 = arith.constant 0 : i32
    %c0_i32_1 = arith.constant 0 : i32
    return %c0_i32, %c0_i32_0 : i32, i32
  }
  func.func @transform_6(%arg0: i32) -> i32 {
    %c0_i32 = arith.constant 0 : i32
    %c0_i32_0 = arith.constant 0 : i32
    return %c0_i32 : i32
  }
  func.func @transform_7(%arg0: i32) -> (i32, i32, i32) {
    %c0_i32 = arith.constant 0 : i32
    %c0_i32_0 = arith.constant 0 : i32
    %c0_i32_1 = arith.constant 0 : i32
    %c0_i32_2 = arith.constant 0 : i32
    return %c0_i32, %c0_i32_0, %c0_i32_1 : i32, i32, i32
  }
  func.func @transform_8(%arg0: i32) -> i32 {
    %c0_i32 = arith.constant 0 : i32
    %c0_i32_0 = arith.constant 0 : i32
    return %c0_i32 : i32
  }
  func.func @transform_9(%arg0: i32) -> (i32, i32, i32) {
    %c0_i32 = arith.constant 0 : i32
    %c0_i32_0 = arith.constant 0 : i32
    %c0_i32_1 = arith.constant 0 : i32
    return %arg0, %c0_i32, %c0_i32_0 : i32, i32, i32
  }
}

</mosaic_0001>

<bundles_post_ra>
// kernel: dnet_forward.1
= control target key start
LH: loop header
LB: loop body
LE: loop exit
PB: predicated region body
PF: predicated region fallthrough
CT: control target
= control target key end

     0   :  { %s8751_s0 = inlined_call_operand.vmem [shape: f32[2,28,28], index: 0, kind: input, shape index: {}]   ;;  %s8752_s1 = inlined_call_operand.vmem [shape: f32[2,9], index: 1, kind: input, shape index: {}]   ;;  %s8753_s2 = inlined_call_operand.vmem [shape: f32[2], index: 2, kind: input, shape index: {}]   ;;  %s8754_s3 = inlined_call_operand.vmem [shape: f32[4,18], index: 3, kind: input, shape index: {}]   ;;  %s8755_s4 = inlined_call_operand.vmem [shape: f32[4], index: 4, kind: input, shape index: {}]   ;;  %s8756_s5 = inlined_call_operand.vmem [shape: f32[8,36], index: 5, kind: input, shape index: {}]   ;;  %s8757_s6 = inlined_call_operand.vmem [shape: f32[8], index: 6, kind: input, shape index: {}]   ;;  %s8758_s7 = inlined_call_operand.vmem [shape: f32[8,5,5], index: 7, kind: input, shape index: {}]   ;;  %s8759_s8 = inlined_call_operand.<no memory space> [shape: f32[1], index: 8, kind: input, shape index: {}]   ;;  %s8760_s9 = inlined_call_operand.vmem [shape: f32[2,1,1], index: 9, kind: output, shape index: {}]  }
   0x1   :  { %14 = sst [smem:[#allocation4]] %s8759_s8 }
   0x2   :  { %15 = vsyncpa [#allocation6], 0 }
   0x3   :  { %16 = vsyncpa [#allocation8], 0 }
   0x4   :  { %17 = vsyncpa [#allocation11], 0 }
   0x5   :  { %18 = vsyncpa [#allocation14], 0  ;;  %s6251_s11 = smov 0  }
   0x6 LB: > { %s273_s14 = sshll.u32 %s8753_s2, 4  ;;  %s6260_s8 = sadd.s32 4294967295, %s6181_s11   ;;  %s6181_s11 = sphi %s6251_s11, %s24_s11   ;;  %s274_s14 = int_to_ptr.vmem [resolvable:$true] %s273_s14 }
   0x7   : > { %p5287_p0 = scmp.ge.s32.totalorder %s6181_s11, 1  ;;  %p249_p1 = scmp.lt.s32.totalorder %s6181_s11, 3 }
   0x8   : > { %p8761_p2 = scmp.eq.s32.totalorder %s6260_s8, 0  ;;  %s295_s18 = sshll.u32 %s8755_s4, 4  ;;  %s6272_s18 = int_to_ptr.vmem [resolvable:$true] %s295_s18 }
   0x9   : > { %p6265_p3 = pnand %p5287_p0, %p249_p1  ;;  %s262_s21 = sshll.u32 %s8752_s1, 4  ;;  %s6279_s21 = int_to_ptr.vmem [resolvable:$true] %s262_s21 }
   0xa   : > { %s284_s25 = sshll.u32 %s8754_s3, 4  ;;  %s306_s28 = sshll.u32 %s8756_s5, 4  ;;  %s6290_s25 = int_to_ptr.vmem [resolvable:$true] %s284_s25  ;;  %s307_s28 = int_to_ptr.vmem [resolvable:$true] %s306_s28 }
   0xb   : > { %p6012_p4 = pneg %p6265_p3  ;;  %s6069_s29 = scalar_lea.vmem %s274_s14, 16 }
   0xc   : > { %p6070_p6 = scmp.ne.s32.totalorder %s274_s14, %s6069_s29  ;;  %p6077_p10 = scmp.lt.s32.totalorder %s274_s14, %s274_s14 }
   0xd   : > { %p6283_p5 = pnand %p8761_p2, %p6012_p4  ;;  %p6078_p11 = scmp.lt.s32.totalorder %s6069_s29, %s6069_s29 }
   0xf   : > { %p6297_p7 = pneg %p6283_p5  ;;  %p6079_p12 = por %p6078_p11, %p6077_p10 }
  0x11   : > { %p6072_p8 = pnand %p6297_p7, %p6070_p6 }
  0x13   : > { %p6073_p9 = pneg %p6072_p8 }
  0x15   : > { %p6080_p13 = pnand %p6079_p12, %p6073_p9 }
  0x17   : > { %6083 = shalt.err (!%p6080_p13)
}
  0x18   : > { %s6183_s10 = smov [#allocation7]   ;;  %s6084_s12 = scalar_lea.vmem %s6272_s18, 16 }
  0x19   : > { %6018 = dma.vmem_to_smem (!%p6283_p5), %s274_s14, 16, %s6183_s10, [#allocation8]  }
  0x1a   : > { %p6085_p0 = scmp.ne.s32.totalorder %s6272_s18, %s6084_s12  ;;  %p6092_p6 = scmp.lt.s32.totalorder %s6272_s18, %s6272_s18 }
  0x1b   : > { %p6093_p8 = scmp.lt.s32.totalorder %s6084_s12, %s6084_s12 }
  0x1c   : > { %p6087_p1 = pnand %p6085_p0, %p6297_p7 }
  0x1d   : > { %p6094_p2 = por %p6093_p8, %p6092_p6 }
  0x1e   : > { %p6088_p4 = pneg %p6087_p1 }
  0x20   : > { %p6095_p10 = pnand %p6094_p2, %p6088_p4 }
  0x22   : > { %6098 = shalt.err (!%p6095_p10)
}
  0x23   : > { %s6184_s13 = smov [#allocation10]   ;;  %s6099_s14 = scalar_lea.vmem %s6279_s21, 32 }
  0x24   : > { %6024 = dma.vmem_to_smem (!%p6283_p5), %s6272_s18, 16, %s6184_s13, [#allocation11]  }
  0x25   : > { %p6100_p9 = scmp.ne.s32.totalorder %s6279_s21, %s6099_s14  ;;  %p6107_p13 = scmp.lt.s32.totalorder %s6279_s21, %s6279_s21 }
  0x26   : > { %p6108_p0 = scmp.lt.s32.totalorder %s6099_s14, %s6099_s14 }
  0x27   : > { %p6102_p11 = pnand %p6100_p9, %p6297_p7 }
  0x28   : > { %p6109_p1 = por %p6108_p0, %p6107_p13 }
  0x29   : > { %p6103_p12 = pneg %p6102_p11 }
  0x2b   : > { %p6110_p2 = pnand %p6109_p1, %p6103_p12 }
  0x2d   : > { %6113 = shalt.err (!%p6110_p2)
}
  0x2e   : > { %s6185_s16 = smov [#allocation5]   ;;  %s6114_s17 = scalar_lea.vmem %s6290_s25, 64 }
  0x2f   : > { %6015 = dma.vmem_to_smem (!%p6283_p5), %s6279_s21, 32, %s6185_s16, [#allocation6]  }
  0x30   : > { %p6115_p4 = scmp.ne.s32.totalorder %s6290_s25, %s6114_s17  ;;  %p6122_p10 = scmp.lt.s32.totalorder %s6290_s25, %s6290_s25 }
  0x31   : > { %p6123_p9 = scmp.lt.s32.totalorder %s6114_s17, %s6114_s17 }
  0x32   : > { %p6117_p6 = pnand %p6115_p4, %p6297_p7 }
  0x33   : > { %p6124_p11 = por %p6123_p9, %p6122_p10 }
  0x34   : > { %p6118_p8 = pneg %p6117_p6 }
  0x36   : > { %p6125_p12 = pnand %p6124_p11, %p6118_p8 }
  0x38   : > { %6128 = shalt.err (!%p6125_p12)
}
  0x39   : > { %s6186_s18 = smov [#allocation9]   ;;  %s6129_s21 = scalar_lea.vmem %s307_s28, 128 }
  0x3a   : > { %6021 = dma.vmem_to_smem (!%p6283_p5), %s6290_s25, 64, %s6186_s18, [#allocation8]  }
  0x3b   : > { %p6130_p13 = scmp.ne.s32.totalorder %s307_s28, %s6129_s21  ;;  %p6137_p2 = scmp.lt.s32.totalorder %s307_s28, %s307_s28 }
  0x3c   : > { %p6138_p4 = scmp.lt.s32.totalorder %s6129_s21, %s6129_s21 }
  0x3d   : > { %p6132_p0 = pnand %p6130_p13, %p6297_p7 }
  0x3e   : > { %p6139_p6 = por %p6138_p4, %p6137_p2 }
  0x3f   : > { %p6133_p1 = pneg %p6132_p0 }
  0x41   : > { %p6140_p8 = pnand %p6139_p6, %p6133_p1 }
  0x43   : > { %6143 = shalt.err (!%p6140_p8)
}
  0x44   : > { %s6187_s23 = smov [#allocation12]   ;;  %s317_s26 = sshll.u32 %s8757_s6, 4  ;;  %s318_s26 = int_to_ptr.vmem [resolvable:$true] %s317_s26 }
  0x45   : > { %6027 = dma.vmem_to_smem (!%p6283_p5), %s307_s28, 128, %s6187_s23, [#allocation11]  }
  0x46   : > { %s6144_s27 = scalar_lea.vmem %s318_s26, 16  ;;  %p6152_p12 = scmp.lt.s32.totalorder %s318_s26, %s318_s26 }
  0x47   : > { %p6145_p10 = scmp.ne.s32.totalorder %s318_s26, %s6144_s27  ;;  %p6153_p13 = scmp.lt.s32.totalorder %s6144_s27, %s6144_s27 }
  0x49   : > { %p6147_p9 = pnand %p6145_p10, %p6297_p7  ;;  %p6154_p0 = por %p6153_p13, %p6152_p12 }
  0x4b   : > { %p6148_p11 = pneg %p6147_p9 }
  0x4d   : > { %p6155_p1 = pnand %p6154_p0, %p6148_p11 }
  0x4f   : > { %6158 = shalt.err (!%p6155_p1)
}
  0x50   : > { %s6188_s29 = smov [#allocation13]   ;;  %344 = sbr.rel (%p6265_p3) target bundleno = 2553 (0x9f9), region = 56 }
  0x51   : > { %6030 = dma.vmem_to_smem (!%p6283_p5), %s318_s26, 16, %s6188_s29, [#allocation14]  }
  0x52   : > { %p8765_p2 = scmp.eq.s32.totalorder (!%p6265_p3), %s6260_s8, 0 }
  0x57   : > { %6164 = dma.done.wait (%p8765_p2), [#allocation6], 32   ;;  %p8766_p4 = pmov %p8765_p2 }
  0x58   : > { %p8767_p7 = pmov %p8765_p2 }
  0x59   : > { %6166 = vsyncadd (%p8766_p4), [#allocation6], 4294967264 }
  0x5a   : > { %6168 = dma.done.wait (%p8767_p7), [#allocation8], 80   ;;  %p8768_p6 = pmov %p8765_p2 }
  0x5b   : > { %p8769_p8 = pmov %p8765_p2 }
  0x5c   : > { %6170 = vsyncadd (%p8768_p6), [#allocation8], 4294967216 }
  0x5d   : > { %6172 = dma.done.wait (%p8769_p8), [#allocation11], 144   ;;  %p8770_p5 = pmov %p8765_p2 }
  0x5e   : > { %p8771_p3 = pmov %p8765_p2 }
  0x5f   : > { %6174 = vsyncadd (%p8770_p5), [#allocation11], 4294967152 }
  0x60   : > { %6176 = dma.done.wait (%p8771_p3), [#allocation14], 16   ;;  %p8772_p10 = pmov %p8765_p2 }
  0x62   : > { %6178 = vsyncadd (%p8772_p10), [#allocation14], 4294967280 }
  0x63   : > { %370 = sfence }
  0x64   : > { %p399_p9 = scmp.lt.s32.totalorder %s6260_s8, 1  ;;  %vm407_vm0 = vcmask 244736   ;;  %vm411_vm1 = vcmask 242688   ;;  %v6189_v0 = vmov 0.0   ;;  %s6190_s10 = smov 1   ;;  %vm433_vm2 = vcmask 236552  }
  0x65   : > { %408 = vst.msk [vmem:[#allocation2] sm:$0xff] %vm407_vm0, %v6189_v0  ;;  %409 = vst.msk [vmem:[#allocation2 + $0x8] sm:$0xff] %vm407_vm0, %v6189_v0  ;;  %s5304_s12 = sld [smem:[#allocation5 + $0x1]]  ;;  %vm437_vm3 = vcmask 232456   ;;  %s5305_s13 = sld [smem:[#allocation5 + $0x2]]  ;;  %vm910_vm7 = vcmask 1042432  }
  0x66   : > { %410 = vst.msk [vmem:[#allocation2 + $0x10] sm:$0xff] %vm407_vm0, %v6189_v0  ;;  %s8784_s8 = smov (!%p399_p9, %s6260_s8), 1  ;;  %s6191_s14 = smov 127   ;;  %vm839_vm11 = vcmask 1046528   ;;  %vm897_vm12 = vcmask 220160   ;;  %vm6195_vm14 = vmmov 1  }
  0x67   : > { %412 = vst.msk [vmem:[#allocation2 + $0x18] sm:$0x3f] %vm411_vm1, %v6189_v0  ;;  %s5745_s15 = sshll.u32 %s8784_s8, 5  ;;  %s5307_s16 = sld [smem:[#allocation5 + $0x4]]  ;;  %vm6635_vm15 = vmpackc.low %vm910_vm7, %vm6195_vm14  ;;  %vm2195_vm1 = vcmask 1044480  }
  0x68   : > { %s403_s30 = scalar_lea.vmem %s8751_s0, %s5745_s15  ;;  %s6192_s17 = smov 126  }
  0x69   : > { %v413_v1 = vld [vmem:[%s403_s30] sm:$0xff]  ;;  %v415_v2 = vld [vmem:[%s403_s30 + $0x10] sm:$0xff]  ;;  %v414_v3 = vld [vmem:[%s403_s30 + $0x8] sm:$0xff]  ;;  %s5308_s18 = sld [smem:[#allocation5 + $0x5]]  ;;  %s5310_s19 = sld [smem:[#allocation5 + $0x7]] }
  0x6a   : > { %421 = vrot.lane.b32.xlu0 %v413_v1, %s6190_s10  ;;  %425 = vrot.lane.b32.xlu1 %v415_v2, %s6190_s10  ;;  %v416_v4 = vld [vmem:[%s403_s30 + $0x18] sm:$0xf]  ;;  %s5311_s20 = sld [smem:[#allocation5 + $0x8]]  ;;  %s5313_s21 = sld [smem:[#allocation5 + $0x81]] }
  0x6b   : > { %v458_v9 = vstv %s5304_s12  ;;  %v484_v16 = vstv %s5305_s13  ;;  %s5314_s23 = sld [smem:[#allocation5 + $0x82]]  ;;  %s5316_s24 = sld [smem:[#allocation5 + $0x84]] }
  0x6c   : > { %s5317_s25 = sld [smem:[#allocation5 + $0x85]]  ;;  %s5319_s26 = sld [smem:[#allocation5 + $0x87]] }
  0x6d   : > { %v520_v23 = vstv %s5307_s16  ;;  %s5320_s27 = sld [smem:[#allocation5 + $0x88]]  ;;  %s5306_s15 = sld [smem:[#allocation5 + $0x3]] }
  0x6e   : > { %423 = vrot.lane.b32.xlu0 %v414_v3, %s6190_s10  ;;  %427 = vrot.lane.b32.xlu1 %v416_v4, %s6190_s10  ;;  %s451_s29 = sld [smem:[#allocation5]]  ;;  %s5309_s22 = sld [smem:[#allocation5 + $0x6]] }
  0x6f   : > { %v546_v30 = vstv %s5308_s18  ;;  %v582_v37 = vstv %s5310_s19  ;;  %s633_s28 = sld [smem:[#allocation7]]  ;;  %s5315_s12 = sld [smem:[#allocation5 + $0x83]] }
  0x70   : > { %v608_v44 = vstv %s5311_s20  ;;  %v650_v50 = vstv %s5313_s21  ;;  %s5312_s30 = sld [smem:[#allocation5 + $0x80]]  ;;  %s5318_s13 = sld [smem:[#allocation5 + $0x86]] }
  0x71   : > { %v676_v55 = vstv %s5314_s23  ;;  %v712_v60 = vstv %s5316_s24  ;;  %s5321_s16 = sld [smem:[#allocation7 + $0x1]]  ;;  %s5347_s18 = sld [smem:[#allocation9 + $0x4]] }
  0x72   : > { %v738_v2 = vstv %s5317_s25  ;;  %s6678_s19 = sld [smem:[#allocation9 + $0x1]]  ;;  %s5348_s20 = sld [smem:[#allocation9 + $0x5]] }
  0x73   : > { %s6682_s21 = sld [smem:[#allocation9 + $0x2]]  ;;  %s6695_s23 = sld [smem:[#allocation9 + $0x8]] }
  0x74   : > { %s6707_s24 = sld [smem:[#allocation9 + $0x84]]  ;;  %s6716_s25 = sld [smem:[#allocation9 + $0x85]] }
  0xdc   : > { %v422_v5 = vpop.permute.xlu0 %421  ;;  %v426_v6 = vpop.permute.xlu1 %425 }
  0xdd   : > { %434 = vst.msk [vmem:[#allocation2 + $0x1] sm:$0xff] %vm433_vm2, %v422_v5  ;;  %436 = vst.msk [vmem:[#allocation2 + $0x11] sm:$0xff] %vm433_vm2, %v426_v6 }
  0xe0   : > { %v424_v7 = vpop.permute.xlu0 %423  ;;  %v428_v8 = vpop.permute.xlu1 %427 }
  0xe1   : > { %435 = vst.msk [vmem:[#allocation2 + $0x9] sm:$0xff] %vm433_vm2, %v424_v7  ;;  %v774_v7 = vstv %s5319_s26  ;;  %s6723_s26 = sld [smem:[#allocation9 + $0x87]] }
  0xe2   : > { %438 = vst.msk [vmem:[#allocation2 + $0x19] sm:$0xf] %vm437_vm3, %v428_v8  ;;  %vm1297_vm3 = vcmask 130048  }
  0xe3   : > { %1299 = vst.msk [vmem:[#allocation3 + $0x8] sm:$0xff] %vm1297_vm3, %v6189_v0  ;;  %1298 = vst.msk [vmem:[#allocation3] sm:$0xff] %vm1297_vm3, %v6189_v0 }
  0xe4   : > { %v6381_v10 = vld [vmem:[#allocation2] sm:$0xff]  ;;  %v6407_v26 = vld [vmem:[#allocation2 + $0x11] sm:$0xff]  ;;  %1300 = vst.msk [vmem:[#allocation3 + $0x10] sm:$0xff] %vm1297_vm3, %v6189_v0  ;;  %1301 = vst.msk [vmem:[#allocation3 + $0x18] sm:$0xff] %vm1297_vm3, %v6189_v0 }
  0xe5   : > { %v459_v11 = vmul.f32 %v458_v9, %v6381_v10  ;;  %v485_v18 = vmul.f32 %v484_v16, %v6381_v10  ;;  %v6401_v22 = vld [vmem:[#allocation2 + $0x1] sm:$0xff]  ;;  %v523_v28 = vmul.f32 %v520_v23, %v6407_v26  ;;  %v549_v35 = vmul.f32 %v546_v30, %v6407_v26 }
  0xe6   : > { %v521_v24 = vmul.f32 %v520_v23, %v6401_v22  ;;  %v547_v32 = vmul.f32 %v546_v30, %v6401_v22  ;;  %v651_v51 = vmul.f32 %v650_v50, %v6381_v10  ;;  %v677_v57 = vmul.f32 %v676_v55, %v6381_v10 }
  0xe7   : > { %467 = vrot.lane.b32.xlu0 %v459_v11, %s6191_s14  ;;  %v713_v61 = vmul.f32 %v712_v60, %v6401_v22  ;;  %v715_v63 = vmul.f32 %v712_v60, %v6407_v26  ;;  %v739_v4 = vmul.f32 %v738_v2, %v6401_v22  ;;  %v741_v6 = vmul.f32 %v738_v2, %v6407_v26 }
  0xe8   : > { %v6385_v12 = vld [vmem:[#allocation2 + $0x10] sm:$0xff]  ;;  %v6387_v13 = vld [vmem:[#allocation2 + $0x8] sm:$0xff] }
  0xe9   : > { %v461_v14 = vmul.f32 %v458_v9, %v6385_v12  ;;  %v460_v15 = vmul.f32 %v458_v9, %v6387_v13  ;;  %v486_v17 = vmul.f32 %v484_v16, %v6387_v13  ;;  %v6395_v19 = vld [vmem:[#allocation2 + $0x18] sm:$0xf]  ;;  %v487_v21 = vmul.f32 %v484_v16, %v6385_v12  ;;  %v6409_v27 = vld [vmem:[#allocation2 + $0x9] sm:$0xff] }
  0xea   : > { %v462_v20 = vmul.f32 %v458_v9, %v6395_v19  ;;  %v488_v25 = vmul.f32 %v484_v16, %v6395_v19  ;;  %v522_v29 = vmul.f32 %v520_v23, %v6409_v27  ;;  %v548_v31 = vmul.f32 %v546_v30, %v6409_v27  ;;  %v6419_v33 = vld [vmem:[#allocation2 + $0x19] sm:$0xf]  ;;  %v6425_v36 = vld [vmem:[#allocation2 + $0x2] sm:$0xff]  ;;  %v6433_v41 = vld [vmem:[#allocation2 + $0xa] sm:$0xff] }
  0xeb   : > { %471 = vrot.lane.b32.xlu0 %v461_v14, %s6191_s14  ;;  %469 = vrot.lane.b32.xlu1 %v460_v15, %s6191_s14  ;;  %v524_v34 = vmul.f32 %v520_v23, %v6419_v33  ;;  %v583_v38 = vmul.f32 %v582_v37, %v6425_v36  ;;  %v550_v39 = vmul.f32 %v546_v30, %v6419_v33  ;;  %v6431_v40 = vld [vmem:[#allocation2 + $0x12] sm:$0xff]  ;;  %v6443_v47 = vld [vmem:[#allocation2 + $0x1a] sm:$0xf]  ;;  %v800_v15 = vstv %s5320_s27  ;;  %s6728_s27 = sld [smem:[#allocation9 + $0x81]] }
  0xec   : > { %v585_v42 = vmul.f32 %v582_v37, %v6431_v40  ;;  %v584_v43 = vmul.f32 %v582_v37, %v6433_v41  ;;  %v610_v45 = vmul.f32 %v608_v44, %v6433_v41  ;;  %v609_v46 = vmul.f32 %v608_v44, %v6425_v36 }
  0xed   : > { %v586_v48 = vmul.f32 %v582_v37, %v6443_v47  ;;  %v611_v49 = vmul.f32 %v608_v44, %v6431_v40  ;;  %v612_v52 = vmul.f32 %v608_v44, %v6443_v47  ;;  %v653_v53 = vmul.f32 %v650_v50, %v6385_v12 }
  0xee   : > { %v652_v54 = vmul.f32 %v650_v50, %v6387_v13  ;;  %v678_v56 = vmul.f32 %v676_v55, %v6387_v13  ;;  %v654_v58 = vmul.f32 %v650_v50, %v6395_v19  ;;  %v679_v59 = vmul.f32 %v676_v55, %v6385_v12 }
  0xef   : > { %495 = vrot.lane.b32.xlu0 %v486_v17, %s6192_s17  ;;  %493 = vrot.lane.b32.xlu1 %v485_v18, %s6192_s17  ;;  %v680_v62 = vmul.f32 %v676_v55, %v6395_v19  ;;  %v714_v1 = vmul.f32 %v712_v60, %v6409_v27  ;;  %v740_v3 = vmul.f32 %v738_v2, %v6409_v27  ;;  %v875_v23 = vlaneseq }
  0xf0   : > { %v716_v5 = vmul.f32 %v712_v60, %v6419_v33  ;;  %v775_v8 = vmul.f32 %v774_v7, %v6425_v36  ;;  %v742_v9 = vmul.f32 %v738_v2, %v6419_v33  ;;  %v777_v11 = vmul.f32 %v774_v7, %v6431_v40 }
  0xf1   : > { %v776_v14 = vmul.f32 %v774_v7, %v6433_v41  ;;  %v802_v16 = vmul.f32 %v800_v15, %v6433_v41  ;;  %v801_v17 = vmul.f32 %v800_v15, %v6425_v36  ;;  %v778_v18 = vmul.f32 %v774_v7, %v6443_v47 }
  0xf3   : > { %473 = vrot.lane.b32.xlu0 %v462_v20, %s6191_s14  ;;  %497 = vrot.lane.b32.xlu1 %v487_v21, %s6192_s17  ;;  %v803_v20 = vmul.f32 %v800_v15, %v6431_v40  ;;  %v804_v21 = vmul.f32 %v800_v15, %v6443_v47 }
  0xf7   : > { %529 = vrot.lane.b32.xlu0 %v521_v24, %s6191_s14  ;;  %499 = vrot.lane.b32.xlu1 %v488_v25, %s6192_s17  ;;  %v6501_v24 = vshrl.u32 %v875_v23, 7  ;;  %v6503_v25 = vand.u32 127, %v875_v23 }
  0xfb   : > { %533 = vrot.lane.b32.xlu0 %v523_v28, %s6191_s14  ;;  %531 = vrot.lane.b32.xlu1 %v522_v29, %s6191_s14  ;;  %v6506_v28 = vadd.s32 8, %v6501_v24  ;;  %v6509_v29 = vmul.u32 2, %v6503_v25 }
  0xfd   : > { %vm883_vm4 = vcmp.eq.s32.totalorder %v6501_v24, %v6509_v29  ;;  %vm884_vm5 = vcmp.eq.s32.totalorder %v6506_v28, %v6509_v29 }
  0xfe   : > { %v888_v30 = vsel %vm884_vm5, 1.0, %v6189_v0  ;;  %vm6519_vm6 = vmpackc.low %vm884_vm5, %vm883_vm4  ;;  %vm1310_vm5 = vcmask 121864  }
  0xff   : > { %557 = vrot.lane.b32.xlu0 %v548_v31, %s6192_s17  ;;  %555 = vrot.lane.b32.xlu1 %v547_v32, %s6192_s17  ;;  %v6193_v32 = vmov 1.0|1.0   ;;  %vm6652_vm2 = vmpackc.low %vm2195_vm1, %vm883_vm4  ;;  %vm1312_vm4 = vcmask 119816  }
 0x100   : > { %5909 = vmatprep.subr.msk.bf16.mxu0 %vm6519_vm6, %v6193_v32 }
 0x101   : > { %5911 = vmatpush3.bf16.msk.msra.mxu0 %vm6519_vm6, %v6193_v32 }
 0x103   : > { %535 = vrot.lane.b32.xlu0 %v524_v34, %s6191_s14  ;;  %559 = vrot.lane.b32.xlu1 %v549_v35, %s6192_s17  ;;  %v6194_v34 = vmov 1.0  }
 0x104   : > { %v6527_v35 = vpack.c.bf16 %v888_v30, %v6194_v34 }
 0x107   : > { %591 = vrot.lane.b32.xlu0 %v583_v38, %s6191_s14  ;;  %561 = vrot.lane.b32.xlu1 %v550_v39, %s6192_s17  ;;  %v452_v38 = vstv %s451_s29  ;;  %s6734_s29 = sld [smem:[#allocation9 + $0x88]] }
 0x108   : > { %v454_v44 = vmul.f32 %v452_v38, %v6387_v13 }
 0x10b   : > { %595 = vrot.lane.b32.xlu0 %v585_v42, %s6191_s14  ;;  %593 = vrot.lane.b32.xlu1 %v584_v43, %s6191_s14  ;;  %v453_v43 = vmul.f32 %v452_v38, %v6381_v10 }
 0x10f   : > { %619 = vrot.lane.b32.xlu0 %v610_v45, %s6192_s17  ;;  %617 = vrot.lane.b32.xlu1 %v609_v46, %s6192_s17  ;;  %v510_v45 = vstv %s5306_s15  ;;  %s6737_s15 = sld [smem:[#allocation9 + $0x82]] }
 0x110   : > { %v512_v55 = vmul.f32 %v510_v45, %v6409_v27 }
 0x113   : > { %597 = vrot.lane.b32.xlu0 %v586_v48, %s6191_s14  ;;  %621 = vrot.lane.b32.xlu1 %v611_v49, %s6192_s17 }
 0x117   : > { %659 = vrot.lane.b32.xlu0 %v651_v51, %s6191_s14  ;;  %623 = vrot.lane.b32.xlu1 %v612_v52, %s6192_s17  ;;  %v511_v51 = vmul.f32 %v510_v45, %v6401_v22  ;;  %v455_v52 = vmul.f32 %v452_v38, %v6385_v12 }
 0x11b   : > { %663 = vrot.lane.b32.xlu0 %v653_v53, %s6191_s14  ;;  %661 = vrot.lane.b32.xlu1 %v652_v54, %s6191_s14 }
 0x11f   : > { %687 = vrot.lane.b32.xlu0 %v678_v56, %s6192_s17  ;;  %685 = vrot.lane.b32.xlu1 %v677_v57, %s6192_s17 }
 0x123   : > { %665 = vrot.lane.b32.xlu0 %v654_v58, %s6191_s14  ;;  %689 = vrot.lane.b32.xlu1 %v679_v59, %s6192_s17 }
 0x127   : > { %721 = vrot.lane.b32.xlu0 %v713_v61, %s6191_s14  ;;  %691 = vrot.lane.b32.xlu1 %v680_v62, %s6192_s17  ;;  %v456_v62 = vmul.f32 %v452_v38, %v6395_v19 }
 0x12b   : > { %725 = vrot.lane.b32.xlu0 %v715_v63, %s6191_s14  ;;  %723 = vrot.lane.b32.xlu1 %v714_v1, %s6191_s14  ;;  %v513_v63 = vmul.f32 %v510_v45, %v6407_v26 }
 0x12f   : > { %749 = vrot.lane.b32.xlu0 %v740_v3, %s6192_s17  ;;  %747 = vrot.lane.b32.xlu1 %v739_v4, %s6192_s17 }
 0x133   : > { %727 = vrot.lane.b32.xlu0 %v716_v5, %s6191_s14  ;;  %751 = vrot.lane.b32.xlu1 %v741_v6, %s6192_s17  ;;  %v514_v6 = vmul.f32 %v510_v45, %v6419_v33 }
 0x137   : > { %783 = vrot.lane.b32.xlu0 %v775_v8, %s6191_s14  ;;  %753 = vrot.lane.b32.xlu1 %v742_v9, %s6192_s17 }
 0x13b   : > { %787 = vrot.lane.b32.xlu0 %v777_v11, %s6191_s14  ;;  %785 = vrot.lane.b32.xlu1 %v776_v14, %s6191_s14  ;;  %v572_v11 = vstv %s5309_s22  ;;  %s6743_s22 = sld [smem:[#allocation9 + $0x104]] }
 0x13c   : > { %v574_v23 = vmul.f32 %v572_v11, %v6433_v41 }
 0x13f   : > { %811 = vrot.lane.b32.xlu0 %v802_v16, %s6192_s17  ;;  %809 = vrot.lane.b32.xlu1 %v801_v17, %s6192_s17 }
 0x143   : > { %789 = vrot.lane.b32.xlu0 %v778_v18, %s6191_s14  ;;  %813 = vrot.lane.b32.xlu1 %v803_v20, %s6192_s17 }
 0x147   : > { %815 = vrot.lane.b32.xlu1 %v804_v21, %s6192_s17  ;;  %v573_v21 = vmul.f32 %v572_v11, %v6425_v36 }
 0x159   : > { %v468_v37 = vpop.permute.xlu0 %467 }
 0x15a   : > { %v479_v46 = vadd.f32 %v468_v37, %v453_v43 }
 0x15d   : > { %v470_v39 = vpop.permute.xlu1 %469  ;;  %v472_v42 = vpop.permute.xlu0 %471 }
 0x15e   : > { %v480_v48 = vadd.f32 %v470_v39, %v454_v44  ;;  %v481_v56 = vadd.f32 %v472_v42, %v455_v52  ;;  %v575_v44 = vmul.f32 %v572_v11, %v6431_v40 }
 0x161   : > { %v494_v49 = vpop.permute.xlu1 %493  ;;  %v496_v50 = vpop.permute.xlu0 %495 }
 0x162   : > { %v505_v53 = vadd.f32 %v494_v49, %v479_v46  ;;  %v506_v54 = vadd.f32 %v496_v50, %v480_v48 }
 0x164   : > { %v515_v57 = vadd.f32 %v511_v51, %v505_v53  ;;  %v516_v58 = vadd.f32 %v512_v55, %v506_v54  ;;  %v576_v51 = vmul.f32 %v572_v11, %v6443_v47  ;;  %v878_v55 = vadd.s32 16, %v6501_v24 }
 0x165   : > { %v498_v59 = vpop.permute.xlu1 %497  ;;  %v474_v60 = vpop.permute.xlu0 %473 }
 0x166   : > { %v507_v61 = vadd.f32 %v498_v59, %v481_v56  ;;  %v482_v1 = vadd.f32 %v474_v60, %v456_v62  ;;  %v879_v56 = vadd.s32 24, %v6501_v24  ;;  %v634_v59 = vstv %s633_s28  ;;  %s6751_s28 = sld [smem:[#allocation9 + $0x105]] }
 0x167   : > { %vm885_vm8 = vcmp.eq.s32.totalorder %v878_v55, %v6509_v29 }
 0x168   : > { %v517_v2 = vadd.f32 %v513_v63, %v507_v61  ;;  %vm886_vm9 = vcmp.eq.s32.totalorder %v879_v56, %v6509_v29  ;;  %vm6550_vm10 = vmpackc.low %vm910_vm7, %vm885_vm8  ;;  %vm6197_vm7 = vmmov 0  }
 0x169   : > { %v500_v3 = vpop.permute.xlu1 %499  ;;  %v530_v4 = vpop.permute.xlu0 %529  ;;  %vm7399_vm8 = vmpackc.low %vm2195_vm1, %vm6195_vm14 }
 0x16a   : > { %v508_v5 = vadd.f32 %v500_v3, %v482_v1  ;;  %v541_v14 = vadd.f32 %v530_v4, %v515_v57  ;;  %v890_v1 = vsel %vm886_vm9, 1.0, %v6189_v0  ;;  %vm5162_vm9 = vcmask 36864  }
 0x16b   : > { %v6555_v3 = vpack.c.bf16 %v890_v1, %v6194_v34 }
 0x16c   : > { %v518_v7 = vadd.f32 %v514_v6, %v508_v5 }
 0x16d   : > { %v532_v8 = vpop.permute.xlu1 %531  ;;  %v534_v9 = vpop.permute.xlu0 %533  ;;  %5914 = vmatprep.subr.msk.bf16.mxu0 %vm6550_vm10, %v6555_v3 }
 0x16e   : > { %v542_v15 = vadd.f32 %v532_v8, %v516_v58  ;;  %v543_v30 = vadd.f32 %v534_v9, %v517_v2  ;;  %5917 = vmatpush3.bf16.msk.msra.mxu0 %vm6550_vm10, %v6555_v3 }
 0x16f   : > { %5929 = vmatprep.subr.msk.bf16.mxu0 %vm6519_vm6, %v6193_v32 }
 0x171   : > { %v556_v16 = vpop.permute.xlu1 %555  ;;  %v558_v17 = vpop.permute.xlu0 %557 }
 0x172   : > { %v567_v18 = vadd.f32 %v556_v16, %v541_v14  ;;  %v568_v20 = vadd.f32 %v558_v17, %v542_v15 }
 0x174   : > { %v577_v37 = vadd.f32 %v573_v21, %v567_v18  ;;  %v578_v38 = vadd.f32 %v574_v23, %v568_v20 }
 0x175   : > { %v560_v39 = vpop.permute.xlu1 %559  ;;  %v536_v42 = vpop.permute.xlu0 %535 }
 0x176   : > { %v569_v43 = vadd.f32 %v560_v39, %v543_v30  ;;  %v544_v45 = vadd.f32 %v536_v42, %v518_v7 }
 0x178   : > { %v579_v46 = vadd.f32 %v575_v44, %v569_v43 }
 0x179   : > { %v562_v48 = vpop.permute.xlu1 %561  ;;  %v592_v49 = vpop.permute.xlu0 %591 }
 0x17a   : > { %v570_v50 = vadd.f32 %v562_v48, %v544_v45  ;;  %v603_v57 = vadd.f32 %v592_v49, %v577_v37  ;;  %v644_v37 = vstv %s5312_s30  ;;  %v702_v45 = vstv %s5315_s12  ;;  %s6759_s30 = sld [smem:[#allocation9 + $0x107]]  ;;  %s6766_s12 = sld [smem:[#allocation9 + $0x108]] }
 0x17b   : > { %v645_v48 = vmul.f32 %v644_v37, %v6381_v10  ;;  %v646_v49 = vmul.f32 %v644_v37, %v6387_v13  ;;  %v647_v55 = vmul.f32 %v644_v37, %v6385_v12  ;;  %v704_v10 = vmul.f32 %v702_v45, %v6409_v27 }
 0x17c   : > { %v580_v52 = vadd.f32 %v576_v51, %v570_v50 }
 0x17d   : > { %v594_v53 = vpop.permute.xlu1 %593  ;;  %v596_v54 = vpop.permute.xlu0 %595 }
 0x17e   : > { %v604_v58 = vadd.f32 %v594_v53, %v578_v38  ;;  %v605_v4 = vadd.f32 %v596_v54, %v579_v46 }
 0x181   : > { %v618_v60 = vpop.permute.xlu1 %617  ;;  %v620_v61 = vpop.permute.xlu0 %619 }
 0x182   : > { %v629_v62 = vadd.f32 %v618_v60, %v603_v57  ;;  %v630_v63 = vadd.f32 %v620_v61, %v604_v58  ;;  %v703_v58 = vmul.f32 %v702_v45, %v6401_v22 }
 0x184   : > { %v635_v5 = vadd.f32 %v634_v59, %v629_v62  ;;  %v636_v6 = vadd.f32 %v634_v59, %v630_v63 }
 0x185   : > { %v622_v7 = vpop.permute.xlu1 %621  ;;  %v598_v8 = vpop.permute.xlu0 %597 }
 0x186   : > { %v639_v9 = vmax.f32 %v635_v5, 0.0  ;;  %v640_v11 = vmax.f32 %v636_v6, 0.0  ;;  %v631_v14 = vadd.f32 %v622_v7, %v605_v4  ;;  %v606_v17 = vadd.f32 %v598_v8, %v580_v52 }
 0x187   : > { %v648_v5 = vmul.f32 %v644_v37, %v6395_v19  ;;  %v705_v6 = vmul.f32 %v702_v45, %v6407_v26 }
 0x188   : > { %v840_v34 = vrot.slane %v639_v9, 1  ;;  %v841_v15 = vrot.slane %v640_v11, 1  ;;  %v637_v16 = vadd.f32 %v634_v59, %v631_v14 }
 0x189   : > { %v624_v18 = vpop.permute.xlu1 %623  ;;  %v660_v20 = vpop.permute.xlu0 %659 }
 0x18a   : > { %v641_v21 = vmax.f32 %v637_v16, 0.0  ;;  %v632_v23 = vadd.f32 %v624_v18, %v606_v17  ;;  %v842_v30 = vsel %vm839_vm11, %v840_v34, %v841_v15  ;;  %v671_v52 = vadd.f32 %v660_v20, %v645_v48 }
 0x18b   : > { %v6567_v38 = vmax.f32 %v639_v9, %v842_v30  ;;  %v706_v34 = vmul.f32 %v702_v45, %v6419_v33  ;;  %v764_v18 = vstv %s5318_s13  ;;  %s6774_s13 = sld [smem:[#allocation9 + $0x101]] }
 0x18c   : > { %v843_v39 = vrot.slane %v641_v21, 1  ;;  %v638_v42 = vadd.f32 %v634_v59, %v632_v23  ;;  %v765_v26 = vmul.f32 %v764_v18, %v6425_v36  ;;  %v766_v37 = vmul.f32 %v764_v18, %v6433_v41 }
 0x18d   : > { %v662_v43 = vpop.permute.xlu1 %661  ;;  %859 = vrot.lane.b32.xlu0 %v6567_v38, %s6191_s14  ;;  %v664_v44 = vpop.permute.xlu0 %663  ;;  %v767_v45 = vmul.f32 %v764_v18, %v6431_v40 }
 0x18e   : > { %v642_v46 = vmax.f32 %v638_v42, 0.0  ;;  %v844_v50 = vsel %vm839_vm11, %v841_v15, %v843_v39  ;;  %v672_v53 = vadd.f32 %v662_v43, %v646_v49  ;;  %v673_v63 = vadd.f32 %v664_v44, %v647_v55 }
 0x18f   : > { %v6574_v51 = vmax.f32 %v640_v11, %v844_v50  ;;  %v768_v55 = vmul.f32 %v764_v18, %v6443_v47 }
 0x190   : > { %v845_v54 = vrot.slane %v642_v46, 1 }
 0x191   : > { %v686_v56 = vpop.permute.xlu1 %685  ;;  %861 = vrot.lane.b32.xlu1 %v6574_v51, %s6191_s14  ;;  %v688_v57 = vpop.permute.xlu0 %687 }
 0x192   : > { %v697_v59 = vadd.f32 %v686_v56, %v671_v52  ;;  %v698_v13 = vadd.f32 %v688_v57, %v672_v53  ;;  %v6581_v60 = vmax.f32 %v642_v46, %v845_v54  ;;  %v846_v61 = vsel %vm839_vm11, %v843_v39, %v845_v54 }
 0x193   : > { %v6584_v62 = vmax.f32 %v641_v21, %v846_v61 }
 0x194   : > { %v707_v1 = vadd.f32 %v703_v58, %v697_v59  ;;  %v708_v12 = vadd.f32 %v704_v10, %v698_v13  ;;  %v826_v10 = vstv %s5321_s16  ;;  %s6783_s16 = sld [smem:[#allocation9 + $0x102]] }
 0x195   : > { %v690_v4 = vpop.permute.xlu1 %689  ;;  %865 = vrot.lane.b32.xlu1 %v6581_v60, %s6191_s14  ;;  %863 = vrot.lane.b32.xlu0 %v6584_v62, %s6191_s14  ;;  %v666_v22 = vpop.permute.xlu0 %665 }
 0x196   : > { %v699_v27 = vadd.f32 %v690_v4, %v673_v63  ;;  %v674_v7 = vadd.f32 %v666_v22, %v648_v5 }
 0x198   : > { %v709_v8 = vadd.f32 %v705_v6, %v699_v27 }
 0x199   : > { %v692_v9 = vpop.permute.xlu1 %691  ;;  %v722_v11 = vpop.permute.xlu0 %721 }
 0x19a   : > { %v700_v14 = vadd.f32 %v692_v9, %v674_v7  ;;  %v733_v20 = vadd.f32 %v722_v11, %v707_v1 }
 0x19c   : > { %v710_v15 = vadd.f32 %v706_v34, %v700_v14 }
 0x19d   : > { %v724_v16 = vpop.permute.xlu1 %723  ;;  %v726_v17 = vpop.permute.xlu0 %725 }
 0x19e   : > { %v734_v21 = vadd.f32 %v724_v16, %v708_v12  ;;  %v735_v42 = vadd.f32 %v726_v17, %v709_v8 }
 0x1a1   : > { %v748_v23 = vpop.permute.xlu1 %747  ;;  %v750_v30 = vpop.permute.xlu0 %749 }
 0x1a2   : > { %v759_v39 = vadd.f32 %v748_v23, %v733_v20  ;;  %v760_v19 = vadd.f32 %v750_v30, %v734_v21 }
 0x1a4   : > { %v769_v43 = vadd.f32 %v765_v26, %v759_v39  ;;  %v770_v44 = vadd.f32 %v766_v37, %v760_v19 }
 0x1a5   : > { %v752_v46 = vpop.permute.xlu1 %751  ;;  %v728_v48 = vpop.permute.xlu0 %727 }
 0x1a6   : > { %v761_v33 = vadd.f32 %v752_v46, %v735_v42  ;;  %v736_v49 = vadd.f32 %v728_v48, %v710_v15 }
 0x1a8   : > { %v771_v50 = vadd.f32 %v767_v45, %v761_v33 }
 0x1a9   : > { %v754_v52 = vpop.permute.xlu1 %753  ;;  %v784_v53 = vpop.permute.xlu0 %783 }
 0x1aa   : > { %v762_v54 = vadd.f32 %v754_v52, %v736_v49  ;;  %v795_v41 = vadd.f32 %v784_v53, %v769_v43  ;;  %v891_v52 = vmul.u32 2, %v6501_v24 }
 0x1ac   : > { %v772_v56 = vadd.f32 %v768_v55, %v762_v54  ;;  %vm893_vm13 = vcmp.eq.s32.totalorder %v6503_v25, %v891_v52  ;;  %v892_v55 = vmul.u32 2, %v6506_v28 }
 0x1ad   : > { %v786_v36 = vpop.permute.xlu1 %785  ;;  %v788_v57 = vpop.permute.xlu0 %787  ;;  %v6628_v2 = vsel %vm893_vm13, 1.0, %v6189_v0 }
 0x1ae   : > { %v796_v58 = vadd.f32 %v786_v36, %v770_v44  ;;  %v797_v1 = vadd.f32 %v788_v57, %v771_v50  ;;  %5824 = vmatprep.mubr.msk.f32.mxu1 %vm897_vm12, %v6628_v2  ;;  %vm894_vm0 = vcmp.eq.s32.totalorder %v6503_v25, %v892_v55 }
 0x1af   : > { %v896_v28 = vsel %vm894_vm0, 1.0, %v6189_v0 }
 0x1b1   : > { %v810_v59 = vpop.permute.xlu1 %809  ;;  %v812_v13 = vpop.permute.xlu0 %811 }
 0x1b2   : > { %v821_v61 = vadd.f32 %v810_v59, %v795_v41  ;;  %v822_v63 = vadd.f32 %v812_v13, %v796_v58 }
 0x1b4   : > { %v827_v40 = vadd.f32 %v826_v10, %v821_v61  ;;  %v828_v12 = vadd.f32 %v826_v10, %v822_v63 }
 0x1b5   : > { %v814_v4 = vpop.permute.xlu1 %813  ;;  %v790_v22 = vpop.permute.xlu0 %789 }
 0x1b6   : > { %v831_v27 = vmax.f32 %v827_v40, 0.0  ;;  %v832_v5 = vmax.f32 %v828_v12, 0.0  ;;  %v823_v6 = vadd.f32 %v814_v4, %v797_v1  ;;  %v798_v9 = vadd.f32 %v790_v22, %v772_v56 }
 0x1b7   : > { %v1376_v22 = vstv %s5347_s18  ;;  %s5400_s18 = sld [smem:[#allocation9 + $0x181]] }
 0x1b8   : > { %v1087_v7 = vrot.slane %v831_v27, 1  ;;  %v1088_v47 = vrot.slane %v832_v5, 1  ;;  %v829_v8 = vadd.f32 %v826_v10, %v823_v6 }
 0x1b9   : > { %v816_v11 = vpop.permute.xlu1 %815 }
 0x1ba   : > { %v833_v14 = vmax.f32 %v829_v8, 0.0  ;;  %v824_v34 = vadd.f32 %v816_v11, %v798_v9  ;;  %v1089_v15 = vsel %vm839_vm11, %v1087_v7, %v1088_v47  ;;  %v1390_v8 = vstv %s5348_s20  ;;  %s6818_s20 = sld [smem:[#allocation9 + $0xd]] }
 0x1bb   : > { %v1098_v16 = vmax.f32 %v831_v27, %v1089_v15  ;;  %v1342_v27 = vstv %s6678_s19  ;;  %v1356_v9 = vstv %s6682_s21  ;;  %s5401_s19 = sld [smem:[#allocation9 + $0x182]]  ;;  %s6823_s21 = sld [smem:[#allocation9 + $0x184]] }
 0x1bc   : > { %v1090_v17 = vrot.slane %v833_v14, 1  ;;  %v830_v18 = vadd.f32 %v826_v10, %v824_v34 }
 0x1bd   : > { %1106 = vrot.lane.b32.xlu0 %v1098_v16, %s6191_s14 }
 0x1be   : > { %v834_v20 = vmax.f32 %v830_v18, 0.0  ;;  %v1091_v21 = vsel %vm839_vm11, %v1088_v47, %v1090_v17 }
 0x1bf   : > { %v1099_v23 = vmax.f32 %v832_v5, %v1091_v21 }
 0x1c0   : > { %v1092_v30 = vrot.slane %v834_v20, 1 }
 0x1c1   : > { %1108 = vrot.lane.b32.xlu1 %v1099_v23, %s6191_s14 }
 0x1c2   : > { %v1101_v39 = vmax.f32 %v834_v20, %v1092_v30  ;;  %v1093_v19 = vsel %vm839_vm11, %v1090_v17, %v1092_v30  ;;  %v1424_v20 = vstv %s6695_s23  ;;  %v1584_v30 = vstv %s6707_s24  ;;  %s6831_s23 = sld [smem:[#allocation9 + $0xa]]  ;;  %s6839_s24 = sld [smem:[#allocation9 + $0x10]] }
 0x1c3   : > { %v1100_v26 = vmax.f32 %v833_v14, %v1093_v19 }
 0x1c5   : > { %1112 = vrot.lane.b32.xlu1 %v1101_v39, %s6191_s14  ;;  %1110 = vrot.lane.b32.xlu0 %v1100_v26, %s6191_s14 }
 0x1ff   : > { %v860_v37 = vpop.permute.xlu0 %859 }
 0x200   : > { %v871_v42 = vmax.f32 %v6567_v38, %v860_v37  ;;  %v1598_v37 = vstv %s6716_s25  ;;  %s6844_s25 = sld [smem:[#allocation9 + $0xb]] }
 0x202   : > { %5810 = vmatprep.mubr.msk.f32.mxu0 %vm897_vm12, %v871_v42 }
 0x203   : > { %v862_v43 = vpop.permute.xlu1 %861 }
 0x204   : > { %v872_v44 = vmax.f32 %v6574_v51, %v862_v43 }
 0x206   : > { %5811 = vmatmul.mubr.msk.f32.vlgmr.msra.gmra.mrb[0].mxu0 %vm897_vm12, %v872_v44  ;;  %v1618_v44 = vstv %s6723_s26  ;;  %s6851_s26 = sld [smem:[#allocation9 + $0x11]] }
 0x207   : > { %v866_v46 = vpop.permute.xlu1 %865  ;;  %v864_v48 = vpop.permute.xlu0 %863  ;;  %5931 = vmatpush3.bf16.msk.msra.mxu0 %vm6519_vm6, %v6193_v32  ;;  %vm2188_vm6 = vcmask 105472  }
 0x208   : > { %v874_v33 = vmax.f32 %v6581_v60, %v866_v46  ;;  %v873_v45 = vmax.f32 %v6584_v62, %v864_v48  ;;  %5934 = vmatprep.subr.msk.bf16.mxu0 %vm6550_vm10, %v6555_v3  ;;  %v1550_v46 = vstv %s6728_s27  ;;  %s6857_s27 = sld [smem:[#allocation9 + $0x185]] }
 0x20a   : > { %5813 = vmatprep.mubr.msk.f32.mxu0 %vm897_vm12, %v873_v45  ;;  %v1632_v45 = vstv %s6734_s29  ;;  %s6865_s29 = sld [smem:[#allocation9 + $0x8d]] }
 0x20b   : > { %5814 = vmatmul.mubr.msk.f32.gmra.mrb[2].mxu0 %vm897_vm12, %v874_v33 }
 0x20c   : > { %5937 = vmatpush3.bf16.msk.msra.mxu0 %vm6550_vm10, %v6555_v3  ;;  %vm5176_vm10 = vcmask 0  }
 0x22f   : > { %v1107_v38 = vpop.permute.xlu0 %1106 }
 0x230   : > { %v1118_v51 = vmax.f32 %v1098_v16, %v1107_v38  ;;  %v1564_v38 = vstv %s6737_s15  ;;  %s6875_s15 = sld [smem:[#allocation9 + $0x8e]] }
 0x232   : > { %5835 = vmatprep.mubr.msk.f32.mxu0 %vm897_vm12, %v1118_v51 }
 0x233   : > { %v1109_v31 = vpop.permute.xlu1 %1108 }
 0x234   : > { %v1119_v32 = vmax.f32 %v1099_v23, %v1109_v31 }
 0x236   : > { %5836 = vmatmul.mubr.msk.f32.vlgmr.msra.gmra.mrb[4].mxu0 %vm897_vm12, %v1119_v32  ;;  %v1792_v32 = vstv %s6743_s22  ;;  %s6885_s22 = sld [smem:[#allocation9 + $0x90]] }
 0x237   : > { %v1113_v60 = vpop.permute.xlu1 %1112  ;;  %v1111_v62 = vpop.permute.xlu0 %1110 }
 0x238   : > { %v1121_v49 = vmax.f32 %v1101_v39, %v1113_v60  ;;  %v1120_v50 = vmax.f32 %v1100_v26, %v1111_v62 }
 0x23a   : > { %5838 = vmatprep.mubr.msk.f32.mxu0 %vm897_vm12, %v1120_v50 }
 0x23b   : > { %5839 = vmatmul.mubr.msk.f32.gmra.mrb[6].mxu0 %vm897_vm12, %v1121_v49  ;;  %v1806_v49 = vstv %s6751_s28  ;;  %s6896_s28 = sld [smem:[#allocation9 + $0x91]] }
 0x23c   : > { %5863 = vmatprep.mubr.msk.f32.mxu0 %vm6197_vm7, %v6189_v0 }
 0x2d9   : > { %v5812_v3 = vpop.f32.mrb[0].mxu0 }
 0x2da   : > { %v980_v53 = vpop.f32.mrb[1].mxu0 }
 0x2db   : > { %v5918_v54 = vpack.c.bf16 %v5812_v3, %v980_v53  ;;  %v1826_v3 = vstv %s6759_s30  ;;  %s6905_s30 = sld [smem:[#allocation9 + $0x10d]] }
 0x2dd   : > { %5919 = vmatprep.subr.bf16.mxu1 %v5918_v54 }
 0x2de   : > { %v5815_v56 = vpop.f32.mrb[2].mxu0  ;;  %5921 = vmatpush3.bf16.msra.mxu1 %v5918_v54 }
 0x2df   : > { %v990_v36 = vpop.f32.mrb[3].mxu0 }
 0x2e0   : > { %v5922_v41 = vpack.c.bf16 %v5815_v56, %v990_v36  ;;  %v1840_v36 = vstv %s6766_s12  ;;  %s6910_s12 = sld [smem:[#allocation9 + $0x8a]] }
 0x2e2   : > { %5924 = vmatprep.subr.msk.bf16.mxu1 %vm6635_vm15, %v5922_v41 }
 0x2e3   : > { %5927 = vmatpush3.bf16.msk.msra.mxu1 %vm6635_vm15, %v5922_v41 }
 0x2e6   : > { %5825 = vmatmul.mubr.msk.f32.vlgmr.msra.gmra.mrb[0].mxu1 %vm897_vm12, %v896_v28 }
 0x2e7   : > { %5849 = vmatprep.mubr.msk.f32.mxu1 %vm897_vm12, %v6628_v2 }
 0x309   : > { %v5837_v58 = vpop.f32.mrb[4].mxu0 }
 0x30a   : > { %v1200_v10 = vpop.f32.mrb[5].mxu0 }
 0x30b   : > { %v5938_v59 = vpack.c.bf16 %v5837_v58, %v1200_v10  ;;  %v1758_v58 = vstv %s6774_s13  ;;  %s6919_s13 = sld [smem:[#allocation9 + $0x8b]] }
 0x30d   : > { %5939 = vmatprep.subr.bf16.mxu1 %v5938_v59 }
 0x30e   : > { %v5840_v13 = vpop.f32.mrb[6].mxu0  ;;  %5941 = vmatpush3.bf16.msra.mxu1 %v5938_v59 }
 0x30f   : > { %v1210_v25 = vpop.f32.mrb[7].mxu0 }
 0x310   : > { %v5942_v61 = vpack.c.bf16 %v5840_v13, %v1210_v25  ;;  %v1772_v13 = vstv %s6783_s16  ;;  %s6922_s16 = sld [smem:[#allocation9]] }
 0x312   : > { %5944 = vmatprep.subr.msk.bf16.mxu1 %vm6635_vm15, %v5942_v61 }
 0x313   : > { %5947 = vmatpush3.bf16.msk.msra.mxu1 %vm6635_vm15, %v5942_v61 }
 0x314   : > { %5950 = vmatprep.subr.msk.bf16.mxu1 %vm6652_vm2, %v6527_v35 }
 0x316   : > { %5850 = vmatmul.mubr.msk.f32.vlgmr.msra.gmra.mrb[2].mxu1 %vm897_vm12, %v896_v28 }
 0x317   : > { %5953 = vmatpush3.bf16.msk.msra.mxu1 %vm6652_vm2, %v6527_v35 }
 0x318   : > { %5960 = vmatprep.subr.msk.bf16.mxu1 %vm6652_vm2, %v6527_v35 }
 0x3b9   : > { %v5826_v24 = vpop.f32.mrb[0].mxu1 }
 0x3ba   : > { %1306 = vrot.lane.b32.xlu1 %v5826_v24, %s6190_s10  ;;  %v1074_v29 = vpop.f32.mrb[1].mxu1 }
 0x3bb   : > { %1304 = vrot.lane.b32.xlu0 %v1074_v29, %s6190_s10 }
 0x3e9   : > { %v5851_v1 = vpop.f32.mrb[2].mxu1 }
 0x3ea   : > { %v1288_v40 = vpop.f32.mrb[3].mxu1  ;;  %1318 = vrot.lane.b32.xlu1 %v5851_v1, %s6190_s10 }
 0x3eb   : > { %1316 = vrot.lane.b32.xlu0 %v1288_v40, %s6190_s10  ;;  %s6684_s10 = sld [smem:[#allocation9 + $0x7]] }
 0x3f1   : > { %v1410_v15 = vstv %s6684_s10  ;;  %s6828_s10 = sld [smem:[#allocation9 + $0xe]] }
 0x42c   : > { %v1307_v12 = vpop.permute.xlu1 %1306 }
 0x42d   : > { %1313 = vst.msk [vmem:[#allocation3 + $0x9] sm:$0x3f] %vm1312_vm4, %v1307_v12  ;;  %v1305_v4 = vpop.permute.xlu0 %1304 }
 0x42e   : > { %1311 = vst.msk [vmem:[#allocation3 + $0x1] sm:$0xff] %vm1310_vm5, %v1305_v4 }
 0x434   : > { %v6687_v5 = vld [vmem:[#allocation3 + $0x9] sm:$0x3f] }
 0x435   : > { %v6689_v6 = vld [vmem:[#allocation3] sm:$0xff]  ;;  %v1378_v7 = vmul.f32 %v1376_v22, %v6687_v5  ;;  %v1392_v11 = vmul.f32 %v1390_v8, %v6687_v5  ;;  %v6701_v14 = vld [vmem:[#allocation3 + $0xa] sm:$0x3f]  ;;  %v1586_v19 = vmul.f32 %v1584_v30, %v6687_v5  ;;  %v1600_v42 = vmul.f32 %v1598_v37, %v6687_v5 }
 0x436   : > { %v1343_v47 = vmul.f32 %v1342_v27, %v6689_v6  ;;  %v1357_v34 = vmul.f32 %v1356_v9, %v6689_v6  ;;  %v6709_v16 = vld [vmem:[#allocation3 + $0x1] sm:$0xff]  ;;  %v1412_v17 = vmul.f32 %v1410_v15, %v6701_v14  ;;  %v1426_v21 = vmul.f32 %v1424_v20, %v6701_v14 }
 0x437   : > { %1383 = vrot.lane.b32.xlu1 %v1378_v7, %s6191_s14  ;;  %v1377_v18 = vmul.f32 %v1376_v22, %v6709_v16  ;;  %v1391_v23 = vmul.f32 %v1390_v8, %v6709_v16  ;;  %v6725_v39 = vld [vmem:[#allocation3 + $0x2] sm:$0xff]  ;;  %v1620_v48 = vmul.f32 %v1618_v44, %v6701_v14  ;;  %v1551_v33 = vmul.f32 %v1550_v46, %v6689_v6 }
 0x438   : > { %1347 = vrot.lane.b32.xlu0 %v1343_v47, %s6191_s14  ;;  %v1411_v26 = vmul.f32 %v1410_v15, %v6725_v39  ;;  %v1425_v43 = vmul.f32 %v1424_v20, %v6725_v39  ;;  %v1634_v51 = vmul.f32 %v1632_v45, %v6701_v14  ;;  %v1565_v31 = vmul.f32 %v1564_v38, %v6689_v6  ;;  %v6787_v41 = vld [vmem:[#allocation3 + $0x8] sm:$0x3f] }
 0x439   : > { %v1794_v60 = vmul.f32 %v1792_v32, %v6687_v5  ;;  %v1585_v62 = vmul.f32 %v1584_v30, %v6709_v16  ;;  %v1808_v50 = vmul.f32 %v1806_v49, %v6687_v5  ;;  %v1599_v52 = vmul.f32 %v1598_v37, %v6709_v16 }
 0x43a   : > { %v1828_v54 = vmul.f32 %v1826_v3, %v6701_v14  ;;  %v1619_v56 = vmul.f32 %v1618_v44, %v6725_v39  ;;  %v1842_v57 = vmul.f32 %v1840_v36, %v6701_v14  ;;  %v1633_v28 = vmul.f32 %v1632_v45, %v6725_v39 }
 0x43b   : > { %1397 = vrot.lane.b32.xlu1 %v1392_v11, %s6192_s17  ;;  %v1344_v10 = vmul.f32 %v1342_v27, %v6787_v41  ;;  %v1759_v59 = vmul.f32 %v1758_v58, %v6689_v6  ;;  %v1358_v25 = vmul.f32 %v1356_v9, %v6787_v41  ;;  %v1773_v61 = vmul.f32 %v1772_v13, %v6689_v6 }
 0x43c   : > { %1361 = vrot.lane.b32.xlu0 %v1357_v34, %s6192_s17  ;;  %v1552_v24 = vmul.f32 %v1550_v46, %v6787_v41  ;;  %v1793_v29 = vmul.f32 %v1792_v32, %v6709_v16  ;;  %v1566_v1 = vmul.f32 %v1564_v38, %v6787_v41  ;;  %v1807_v40 = vmul.f32 %v1806_v49, %v6709_v16 }
 0x43d   : > { %v1760_v12 = vmul.f32 %v1758_v58, %v6787_v41  ;;  %v1827_v4 = vmul.f32 %v1826_v3, %v6725_v39  ;;  %v1774_v22 = vmul.f32 %v1772_v13, %v6787_v41  ;;  %v1841_v27 = vmul.f32 %v1840_v36, %v6725_v39 }
 0x43e   : > { %v1966_v7 = vstv %s5400_s18  ;;  %v1980_v9 = vstv %s5401_s19  ;;  %v1478_v34 = vstv %s6818_s20  ;;  %v2000_v20 = vstv %s6823_s21  ;;  %s6931_s18 = sld [smem:[#allocation9 + $0x187]]  ;;  %s6934_s19 = sld [smem:[#allocation9 + $0x3]] }
 0x43f   : > { %1417 = vrot.lane.b32.xlu1 %v1412_v17, %s6191_s14  ;;  %v1968_v47 = vmul.f32 %v1966_v7, %v6787_v41  ;;  %v1967_v8 = vmul.f32 %v1966_v7, %v6689_v6  ;;  %v1982_v15 = vmul.f32 %v1980_v9, %v6787_v41  ;;  %v1981_v17 = vmul.f32 %v1980_v9, %v6689_v6  ;;  %s6954_s20 = sld [smem:[#allocation9 + $0x10e]]  ;;  %s7004_s21 = sld [smem:[#allocation9 + $0x10a]] }
 0x440   : > { %1381 = vrot.lane.b32.xlu0 %v1377_v18, %s6191_s14  ;;  %v1458_v44 = vstv %s6844_s25  ;;  %v2014_v45 = vstv %s6857_s27  ;;  %v1700_v49 = vstv %s6875_s15  ;;  %s7017_s25 = sld [smem:[#allocation9 + $0x110]]  ;;  %s7059_s15 = sld [smem:[#allocation9 + $0x86]] }
 0x441   : > { %v1720_v3 = vstv %s6885_s22  ;;  %v1652_v58 = vstv %s6910_s12  ;;  %s7036_s27 = sld [smem:[#allocation9 + $0x188]]  ;;  %s7077_s22 = sld [smem:[#allocation9 + $0x111]] }
 0x442   : > { %s7095_s12 = sld [smem:[#allocation9 + $0x100]] }
 0x443   : > { %1431 = vrot.lane.b32.xlu1 %v1426_v21, %s6192_s17  ;;  %v2001_v21 = vmul.f32 %v2000_v20, %v6709_v16 }
 0x444   : > { %1395 = vrot.lane.b32.xlu0 %v1391_v23, %s6192_s17  ;;  %v1492_v23 = vstv %s6828_s10  ;;  %s6963_s10 = sld [smem:[#allocation9 + $0x6]] }
 0x447   : > { %1591 = vrot.lane.b32.xlu1 %v1586_v19, %s6191_s14  ;;  %v1444_v19 = vstv %s6831_s23  ;;  %s6990_s23 = sld [smem:[#allocation9 + $0x9]] }
 0x448   : > { %1415 = vrot.lane.b32.xlu0 %v1411_v26, %s6191_s14 }
 0x44b   : > { %1605 = vrot.lane.b32.xlu1 %v1600_v42, %s6192_s17 }
 0x44c   : > { %1429 = vrot.lane.b32.xlu0 %v1425_v43, %s6192_s17  ;;  %v1512_v43 = vstv %s6839_s24  ;;  %s7007_s24 = sld [smem:[#allocation9 + $0x80]] }
 0x44f   : > { %1625 = vrot.lane.b32.xlu1 %v1620_v48, %s6191_s14 }
 0x450   : > { %1555 = vrot.lane.b32.xlu0 %v1551_v33, %s6191_s14  ;;  %v1526_v33 = vstv %s6851_s26  ;;  %s7020_s26 = sld [smem:[#allocation9 + $0x10b]] }
 0x453   : > { %1639 = vrot.lane.b32.xlu1 %v1634_v51, %s6192_s17  ;;  %v2015_v51 = vmul.f32 %v2014_v45, %v6709_v16 }
 0x454   : > { %1569 = vrot.lane.b32.xlu0 %v1565_v31, %s6192_s17  ;;  %v1686_v31 = vstv %s6865_s29  ;;  %s7023_s29 = sld [smem:[#allocation9 + $0x83]] }
 0x457   : > { %1799 = vrot.lane.b32.xlu1 %v1794_v60, %s6191_s14 }
 0x458   : > { %1589 = vrot.lane.b32.xlu0 %v1585_v62, %s6191_s14 }
 0x45b   : > { %1813 = vrot.lane.b32.xlu1 %v1808_v50, %s6192_s17 }
 0x45c   : > { %1603 = vrot.lane.b32.xlu0 %v1599_v52, %s6192_s17  ;;  %v1319_v53 = vpop.permute.xlu1 %1318 }
 0x45d   : > { %1324 = vst.msk [vmem:[#allocation3 + $0x19] sm:$0x3f] %vm1312_vm4, %v1319_v53  ;;  %v1317_v55 = vpop.permute.xlu0 %1316 }
 0x45e   : > { %1323 = vst.msk [vmem:[#allocation3 + $0x11] sm:$0xff] %vm1310_vm5, %v1317_v55 }
 0x45f   : > { %1833 = vrot.lane.b32.xlu1 %v1828_v54, %s6191_s14 }
 0x460   : > { %1623 = vrot.lane.b32.xlu0 %v1619_v56, %s6191_s14  ;;  %v1734_v56 = vstv %s6896_s28  ;;  %s7082_s28 = sld [smem:[#allocation9 + $0x89]] }
 0x463   : > { %1847 = vrot.lane.b32.xlu1 %v1842_v57, %s6192_s17 }
 0x464   : > { %1637 = vrot.lane.b32.xlu0 %v1633_v28, %s6192_s17  ;;  %v6833_v11 = vld [vmem:[#allocation3 + $0x19] sm:$0x3f]  ;;  %v1894_v28 = vstv %s6905_s30  ;;  %s7104_s30 = sld [smem:[#allocation9 + $0x18d]] }
 0x465   : > { %v1480_v18 = vmul.f32 %v1478_v34, %v6833_v11  ;;  %v6853_v30 = vld [vmem:[#allocation3 + $0x10] sm:$0xff]  ;;  %v1494_v26 = vmul.f32 %v1492_v23, %v6833_v11  ;;  %v6861_v37 = vld [vmem:[#allocation3 + $0x1a] sm:$0x3f]  ;;  %v1688_v60 = vmul.f32 %v1686_v31, %v6833_v11  ;;  %v1702_v50 = vmul.f32 %v1700_v49, %v6833_v11 }
 0x466   : > { %v1445_v42 = vmul.f32 %v1444_v19, %v6853_v30  ;;  %v1514_v46 = vmul.f32 %v1512_v43, %v6861_v37  ;;  %v1459_v48 = vmul.f32 %v1458_v44, %v6853_v30  ;;  %v1528_v38 = vmul.f32 %v1526_v33, %v6861_v37  ;;  %v6887_v32 = vld [vmem:[#allocation3 + $0x11] sm:$0xff] }
 0x467   : > { %1349 = vrot.lane.b32.xlu1 %v1344_v10, %s6191_s14  ;;  %v1479_v62 = vmul.f32 %v1478_v34, %v6887_v32  ;;  %v1493_v52 = vmul.f32 %v1492_v23, %v6887_v32  ;;  %v6907_v53 = vld [vmem:[#allocation3 + $0x12] sm:$0xff]  ;;  %v1722_v54 = vmul.f32 %v1720_v3, %v6861_v37  ;;  %v1736_v36 = vmul.f32 %v1734_v56, %v6861_v37 }
 0x468   : > { %1763 = vrot.lane.b32.xlu0 %v1759_v59, %s6191_s14  ;;  %v1513_v55 = vmul.f32 %v1512_v43, %v6907_v53  ;;  %v1527_v57 = vmul.f32 %v1526_v33, %v6907_v53  ;;  %v1896_v10 = vmul.f32 %v1894_v28, %v6833_v11  ;;  %v6939_v59 = vld [vmem:[#allocation3 + $0x18] sm:$0x3f]  ;;  %v1653_v13 = vmul.f32 %v1652_v58, %v6853_v30 }
 0x46b   : > { %1363 = vrot.lane.b32.xlu1 %v1358_v25, %s6192_s17  ;;  %v1666_v25 = vstv %s6919_s13  ;;  %s7107_s13 = sld [smem:[#allocation9 + $0x18a]] }
 0x46c   : > { %1777 = vrot.lane.b32.xlu0 %v1773_v61, %s6192_s17  ;;  %v1338_v61 = vstv %s6922_s16  ;;  %s7141_s16 = sld [smem:[#allocation9 + $0x18e]] }
 0x46f   : > { %1557 = vrot.lane.b32.xlu1 %v1552_v24, %s6191_s14 }
 0x470   : > { %1797 = vrot.lane.b32.xlu0 %v1793_v29, %s6191_s14  ;;  %v1446_v29 = vmul.f32 %v1444_v19, %v6939_v59  ;;  %v1687_v19 = vmul.f32 %v1686_v31, %v6887_v32 }
 0x473   : > { %1571 = vrot.lane.b32.xlu1 %v1566_v1, %s6192_s17 }
 0x474   : > { %1811 = vrot.lane.b32.xlu0 %v1807_v40, %s6192_s17  ;;  %v1667_v40 = vmul.f32 %v1666_v25, %v6853_v30 }
 0x477   : > { %1765 = vrot.lane.b32.xlu1 %v1760_v12, %s6191_s14  ;;  %v1339_v12 = vmul.f32 %v1338_v61, %v6689_v6 }
 0x478   : > { %1831 = vrot.lane.b32.xlu0 %v1827_v4, %s6191_s14  ;;  %v2034_v4 = vstv %s6931_s18  ;;  %s7110_s18 = sld [smem:[#allocation9 + $0x103]] }
 0x479   : > { %v2035_v9 = vmul.f32 %v2034_v4, %v6725_v39 }
 0x47b   : > { %1779 = vrot.lane.b32.xlu1 %v1774_v22, %s6192_s17  ;;  %v1370_v22 = vstv %s6934_s19  ;;  %s7154_s19 = sld [smem:[#allocation9 + $0x190]] }
 0x47c   : > { %1845 = vrot.lane.b32.xlu0 %v1841_v27, %s6192_s17 }
 0x47f   : > { %1973 = vrot.lane.b32.xlu1 %v1968_v47, %s6191_s14  ;;  %v1460_v47 = vmul.f32 %v1458_v44, %v6939_v59 }
 0x480   : > { %1971 = vrot.lane.b32.xlu0 %v1967_v8, %s6191_s14 }
 0x483   : > { %1987 = vrot.lane.b32.xlu1 %v1982_v15, %s6192_s17  ;;  %v1371_v15 = vmul.f32 %v1370_v22, %v6709_v16 }
 0x484   : > { %1985 = vrot.lane.b32.xlu0 %v1981_v17, %s6192_s17 }
 0x487   : > { %1485 = vrot.lane.b32.xlu1 %v1480_v18, %s6191_s14 }
 0x488   : > { %2005 = vrot.lane.b32.xlu0 %v2001_v21, %s6191_s14  ;;  %v2002_v21 = vmul.f32 %v2000_v20, %v6687_v5 }
 0x48b   : > { %1499 = vrot.lane.b32.xlu1 %v1494_v26, %s6192_s17  ;;  %v1908_v26 = vstv %s6954_s20  ;;  %s7118_s20 = sld [smem:[#allocation9 + $0x18b]] }
 0x48c   : > { %1449 = vrot.lane.b32.xlu0 %v1445_v42, %s6191_s14  ;;  %v1404_v42 = vstv %s6963_s10  ;;  %v1910_v20 = vmul.f32 %v1908_v26, %v6833_v11  ;;  %s7196_s10 = sld [smem:[#allocation9 + $0x183]] }
 0x48f   : > { %1519 = vrot.lane.b32.xlu1 %v1514_v46, %s6191_s14 }
 0x490   : > { %1463 = vrot.lane.b32.xlu0 %v1459_v48, %s6192_s17  ;;  %v1701_v48 = vmul.f32 %v1700_v49, %v6887_v32  ;;  %v1721_v49 = vmul.f32 %v1720_v3, %v6907_v53  ;;  %v1654_v3 = vmul.f32 %v1652_v58, %v6939_v59 }
 0x493   : > { %1533 = vrot.lane.b32.xlu1 %v1528_v38, %s6192_s17  ;;  %v1405_v38 = vmul.f32 %v1404_v42, %v6725_v39 }
 0x494   : > { %2019 = vrot.lane.b32.xlu0 %v2015_v51, %s6192_s17 }
 0x497   : > { %1693 = vrot.lane.b32.xlu1 %v1688_v60, %s6191_s14  ;;  %v2016_v60 = vmul.f32 %v2014_v45, %v6687_v5 }
 0x498   : > { %1483 = vrot.lane.b32.xlu0 %v1479_v62, %s6191_s14 }
 0x49b   : > { %1707 = vrot.lane.b32.xlu1 %v1702_v50, %s6192_s17  ;;  %v1438_v50 = vstv %s6990_s23  ;;  %s7239_s23 = sld [smem:[#allocation9 + $0xc]] }
 0x49c   : > { %1497 = vrot.lane.b32.xlu0 %v1493_v52, %s6192_s17 }
 0x49f   : > { %1727 = vrot.lane.b32.xlu1 %v1722_v54, %s6191_s14 }
 0x4a0   : > { %1517 = vrot.lane.b32.xlu0 %v1513_v55, %s6191_s14  ;;  %v1735_v55 = vmul.f32 %v1734_v56, %v6907_v53 }
 0x4a3   : > { %1741 = vrot.lane.b32.xlu1 %v1736_v36, %s6192_s17 }
 0x4a4   : > { %1531 = vrot.lane.b32.xlu0 %v1527_v57, %s6192_s17  ;;  %v1860_v57 = vstv %s7004_s21  ;;  %s7138_s21 = sld [smem:[#allocation9 + $0x106]] }
 0x4a7   : > { %1901 = vrot.lane.b32.xlu1 %v1896_v10, %s6191_s14  ;;  %v1439_v10 = vmul.f32 %v1438_v50, %v6853_v30 }
 0x4a8   : > { %1657 = vrot.lane.b32.xlu0 %v1653_v13, %s6191_s14  ;;  %v1546_v13 = vstv %s7007_s24  ;;  %s7172_s24 = sld [smem:[#allocation9 + $0x180]] }
 0x4a9   : > { %v6948_v24 = vpop.permute.xlu1 %1383 }
 0x4aa   : > { %v1348_v1 = vpop.permute.xlu0 %1347 }
 0x4ab   : > { %1451 = vrot.lane.b32.xlu1 %v1446_v29, %s6191_s14  ;;  %v1353_v27 = vadd.f32 %v1348_v1, %v1339_v12  ;;  %v1668_v29 = vmul.f32 %v1666_v25, %v6939_v59  ;;  %v1928_v12 = vstv %s7017_s25  ;;  %s7162_s25 = sld [smem:[#allocation9 + $0x109]] }
 0x4ac   : > { %1671 = vrot.lane.b32.xlu0 %v1667_v40, %s6192_s17  ;;  %v1861_v40 = vmul.f32 %v1860_v57, %v6853_v30 }
 0x4ad   : > { %v6965_v7 = vpop.permute.xlu1 %1397 }
 0x4ae   : > { %v1362_v8 = vpop.permute.xlu0 %1361 }
 0x4af   : > { %v1367_v34 = vadd.f32 %v1362_v8, %v1353_v27  ;;  %1465 = vrot.lane.b32.xlu1 %v1460_v47, %s6192_s17  ;;  %v1547_v27 = vmul.f32 %v1546_v13, %v6689_v6  ;;  %v1874_v47 = vstv %s7020_s26  ;;  %v1578_v8 = vstv %s7023_s29  ;;  %s7174_s26 = sld [smem:[#allocation9 + $0x191]]  ;;  %s7246_s29 = sld [smem:[#allocation9 + $0x186]] }
 0x4b0   : > { %2039 = vrot.lane.b32.xlu0 %v2035_v9, %s6191_s14 }
 0x4b1   : > { %v6978_v17 = vpop.permute.xlu1 %1417  ;;  %v1373_v18 = vadd.f32 %v1371_v15, %v1367_v34  ;;  %v1930_v34 = vmul.f32 %v1928_v12, %v6861_v37 }
 0x4b2   : > { %v1382_v23 = vpop.permute.xlu0 %1381 }
 0x4b3   : > { %2007 = vrot.lane.b32.xlu1 %v2002_v21, %s6191_s14  ;;  %v1387_v43 = vadd.f32 %v1382_v23, %v1373_v18  ;;  %v1875_v18 = vmul.f32 %v1874_v47, %v6853_v30  ;;  %v1579_v23 = vmul.f32 %v1578_v8, %v6709_v16 }
 0x4b4   : > { %1691 = vrot.lane.b32.xlu0 %v1687_v19, %s6191_s14  ;;  %v2048_v19 = vstv %s7036_s27  ;;  %s7253_s27 = sld [smem:[#allocation9 + $0xf]] }
 0x4b5   : > { %v6992_v44 = vpop.permute.xlu1 %1431 }
 0x4b6   : > { %v1396_v46 = vpop.permute.xlu0 %1395 }
 0x4b7   : > { %v1401_v33 = vadd.f32 %v1396_v46, %v1387_v43  ;;  %1915 = vrot.lane.b32.xlu1 %v1910_v20, %s6192_s17  ;;  %v2036_v46 = vmul.f32 %v2034_v4, %v6701_v14 }
 0x4b8   : > { %1705 = vrot.lane.b32.xlu0 %v1701_v48, %s6192_s17 }
 0x4b9   : > { %v7009_v51 = vpop.permute.xlu1 %1591  ;;  %v1407_v31 = vadd.f32 %v1405_v38, %v1401_v33  ;;  %v2049_v33 = vmul.f32 %v2048_v19, %v6725_v39  ;;  %v1612_v38 = vstv %s7059_s15  ;;  %s7269_s15 = sld [smem:[#allocation9 + $0x8c]] }
 0x4ba   : > { %v1416_v62 = vpop.permute.xlu0 %1415 }
 0x4bb   : > { %2021 = vrot.lane.b32.xlu1 %v2016_v60, %s6192_s17  ;;  %v1421_v45 = vadd.f32 %v1416_v62, %v1407_v31  ;;  %v1862_v62 = vmul.f32 %v1860_v57, %v6939_v59 }
 0x4bc   : > { %1725 = vrot.lane.b32.xlu0 %v1721_v49, %s6191_s14  ;;  %v1895_v49 = vmul.f32 %v1894_v28, %v6887_v32  ;;  %v1909_v28 = vmul.f32 %v1908_v26, %v6887_v32 }
 0x4bd   : > { %v7026_v52 = vpop.permute.xlu1 %1605 }
 0x4be   : > { %v1430_v54 = vpop.permute.xlu0 %1429 }
 0x4bf   : > { %v1435_v36 = vadd.f32 %v1430_v54, %v1421_v45  ;;  %1659 = vrot.lane.b32.xlu1 %v1654_v3, %s6191_s14  ;;  %v1613_v3 = vmul.f32 %v1612_v38, %v6725_v39 }
 0x4c0   : > { %1739 = vrot.lane.b32.xlu0 %v1735_v55, %s6192_s17 }
 0x4c1   : > { %v7043_v58 = vpop.permute.xlu1 %1625  ;;  %v7048_v56 = vadd.f32 %v1439_v10, %v1435_v36  ;;  %v1876_v36 = vmul.f32 %v1874_v47, %v6939_v59  ;;  %v1942_v10 = vstv %s7077_s22  ;;  %v1929_v47 = vmul.f32 %v1928_v12, %v6907_v53  ;;  %s7279_s22 = sld [smem:[#allocation9 + $0x8f]] }
 0x4c2   : > { %v1556_v1 = vpop.permute.xlu0 %1555  ;;  %v1944_v26 = vmul.f32 %v1942_v10, %v6861_v37  ;;  %v1340_v12 = vmul.f32 %v1338_v61, %v6787_v41 }
 0x4c3   : > { %1673 = vrot.lane.b32.xlu1 %v1668_v29, %s6192_s17  ;;  %v1561_v25 = vadd.f32 %v1556_v1, %v1547_v27  ;;  %v1646_v29 = vstv %s7082_s28  ;;  %s7281_s28 = sld [smem:[#allocation10]] }
 0x4c4   : > { %1865 = vrot.lane.b32.xlu0 %v1861_v40, %s6191_s14 }
 0x4c5   : > { %v7061_v9 = vpop.permute.xlu1 %1639 }
 0x4c6   : > { %v1570_v15 = vpop.permute.xlu0 %1569 }
 0x4c7   : > { %v1575_v21 = vadd.f32 %v1570_v15, %v1561_v25  ;;  %1935 = vrot.lane.b32.xlu1 %v1930_v34, %s6191_s14  ;;  %v1647_v34 = vmul.f32 %v1646_v29, %v6853_v30  ;;  %v1754_v15 = vstv %s7095_s12  ;;  %s7295_s12 = sld [smem:[#allocation9 + $0x10c]] }
 0x4c8   : > { %1879 = vrot.lane.b32.xlu0 %v1875_v18, %s6192_s17 }
 0x4c9   : > { %v7071_v43 = vpop.permute.xlu1 %1799  ;;  %v1581_v20 = vadd.f32 %v1579_v23, %v1575_v21  ;;  %v2050_v21 = vmul.f32 %v2048_v19, %v6701_v14  ;;  %v1786_v19 = vstv %s7110_s18  ;;  %s7320_s18 = sld [smem:[#allocation9 + $0x10f]] }
 0x4ca   : > { %v1590_v48 = vpop.permute.xlu0 %1589 }
 0x4cb   : > { %2041 = vrot.lane.b32.xlu1 %v2036_v46, %s6191_s14  ;;  %v1595_v31 = vadd.f32 %v1590_v48, %v1581_v20  ;;  %v1943_v46 = vmul.f32 %v1942_v10, %v6907_v53  ;;  %v2102_v48 = vstv %s7104_s30  ;;  %v2082_v10 = vstv %s7118_s20  ;;  %s7298_s30 = sld [smem:[#allocation9 + $0x189]]  ;;  %s7331_s20 = sld [smem:[#allocation10 + $0x2]] }
 0x4cc   : > { %2053 = vrot.lane.b32.xlu0 %v2049_v33, %s6192_s17  ;;  %v1755_v33 = vmul.f32 %v1754_v15, %v6689_v6  ;;  %v2104_v61 = vmul.f32 %v2102_v48, %v6833_v11 }
 0x4cd   : > { %v7084_v60 = vpop.permute.xlu1 %1813 }
 0x4ce   : > { %v1604_v4 = vpop.permute.xlu0 %1603 }
 0x4cf   : > { %v1609_v45 = vadd.f32 %v1604_v4, %v1595_v31  ;;  %1867 = vrot.lane.b32.xlu1 %v1862_v62, %s6191_s14  ;;  %v2068_v31 = vstv %s7107_s13  ;;  %s7300_s13 = sld [smem:[#allocation10 + $0x1]] }
 0x4d0   : > { %1899 = vrot.lane.b32.xlu0 %v1895_v49, %s6191_s14 }
 0x4d1   : > { %v7097_v54 = vpop.permute.xlu1 %1833  ;;  %v1615_v55 = vadd.f32 %v1613_v3, %v1609_v45  ;;  %v1372_v45 = vmul.f32 %v1370_v22, %v6687_v5  ;;  %v2070_v22 = vmul.f32 %v2068_v31, %v6939_v59 }
 0x4d2   : > { %v1624_v57 = vpop.permute.xlu0 %1623 }
 0x4d3   : > { %1881 = vrot.lane.b32.xlu1 %v1876_v36, %s6192_s17  ;;  %v1629_v1 = vadd.f32 %v1624_v57, %v1615_v55  ;;  %v2069_v36 = vmul.f32 %v2068_v31, %v6853_v30  ;;  %v2116_v31 = vstv %s7141_s16  ;;  %s7353_s16 = sld [smem:[#allocation9 + $0x18f]] }
 0x4d4   : > { %1913 = vrot.lane.b32.xlu0 %v1909_v28, %s6192_s17  ;;  %v1787_v28 = vmul.f32 %v1786_v19, %v6709_v16 }
 0x4d5   : > { %v7113_v40 = vpop.permute.xlu1 %1847 }
 0x4d6   : > { %v1638_v27 = vpop.permute.xlu0 %1637 }
 0x4d7   : > { %v1643_v25 = vadd.f32 %v1638_v27, %v1629_v1  ;;  %1949 = vrot.lane.b32.xlu1 %v1944_v26, %s6192_s17 }
 0x4d8   : > { %1933 = vrot.lane.b32.xlu0 %v1929_v47, %s6191_s14 }
 0x4d9   : > { %v1350_v18 = vpop.permute.xlu1 %1349  ;;  %v7126_v23 = vadd.f32 %v1647_v34, %v1643_v25  ;;  %v1548_v25 = vmul.f32 %v1546_v13, %v6787_v41 }
 0x4da   : > { %v1764_v20 = vpop.permute.xlu0 %1763  ;;  %v1354_v62 = vadd.f32 %v1350_v18, %v1340_v12  ;;  %v2083_v18 = vmul.f32 %v2082_v10, %v6853_v30 }
 0x4db   : > { %2055 = vrot.lane.b32.xlu1 %v2050_v21, %s6192_s17  ;;  %v1769_v4 = vadd.f32 %v1764_v20, %v1755_v33  ;;  %v1406_v21 = vmul.f32 %v1404_v42, %v6701_v14  ;;  %v2084_v33 = vmul.f32 %v2082_v10, %v6939_v59  ;;  %v1580_v42 = vmul.f32 %v1578_v8, %v6687_v5 }
 0x4dc   : > { %1947 = vrot.lane.b32.xlu0 %v1943_v46, %s6192_s17  ;;  %v1756_v8 = vmul.f32 %v1754_v15, %v6787_v41  ;;  %v1854_v15 = vstv %s7162_s25  ;;  %s5443_s25 = sld [smem:[#allocation12 + $0x2]] }
 0x4dd   : > { %v1364_v49 = vpop.permute.xlu1 %1363 }
 0x4de   : > { %v1368_v3 = vadd.f32 %v1364_v49, %v1354_v62  ;;  %v1778_v55 = vpop.permute.xlu0 %1777 }
 0x4df   : > { %v1783_v57 = vadd.f32 %v1778_v55, %v1769_v4  ;;  %2109 = vrot.lane.b32.xlu1 %v2104_v61, %s6191_s14  ;;  %v2103_v4 = vmul.f32 %v2102_v48, %v6887_v32  ;;  %v2118_v48 = vmul.f32 %v2116_v31, %v6833_v11 }
 0x4e0   : > { %v1374_v1 = vadd.f32 %v1372_v45, %v1368_v3  ;;  %2073 = vrot.lane.b32.xlu0 %v2069_v36, %s6191_s14 }
 0x4e1   : > { %v1558_v26 = vpop.permute.xlu1 %1557  ;;  %v1789_v27 = vadd.f32 %v1787_v28, %v1783_v57  ;;  %v2136_v28 = vstv %s7154_s19  ;;  %s5417_s19 = sld [smem:[#allocation10 + $0x3]] }
 0x4e2   : > { %v1388_v47 = vadd.f32 %v6948_v24, %v1374_v1  ;;  %v1798_v34 = vpop.permute.xlu0 %1797  ;;  %v1562_v20 = vadd.f32 %v1558_v26, %v1548_v25  ;;  %v1820_v24 = vstv %s7138_s21  ;;  %v2117_v26 = vmul.f32 %v2116_v31, %v6887_v32  ;;  %s7345_s21 = sld [smem:[#allocation9 + $0x18c]] }
 0x4e3   : > { %2075 = vrot.lane.b32.xlu1 %v2070_v22, %s6191_s14  ;;  %v1803_v46 = vadd.f32 %v1798_v34, %v1789_v27  ;;  %v1821_v45 = vmul.f32 %v1820_v24, %v6725_v39  ;;  %v1614_v22 = vmul.f32 %v1612_v38, %v6701_v14  ;;  %v2137_v38 = vmul.f32 %v2136_v28, %v6907_v53 }
 0x4e4   : > { %v1402_v12 = vadd.f32 %v6965_v7, %v1388_v47  ;;  %2087 = vrot.lane.b32.xlu0 %v2083_v18, %s6192_s17  ;;  %v2138_v18 = vmul.f32 %v2136_v28, %v6861_v37 }
 0x4e5   : > { %v1572_v13 = vpop.permute.xlu1 %1571 }
 0x4e6   : > { %v1576_v62 = vadd.f32 %v1572_v13, %v1562_v20  ;;  %v1812_v7 = vpop.permute.xlu0 %1811  ;;  %v1408_v49 = vadd.f32 %v1406_v21, %v1402_v12  ;;  %v2150_v21 = vstv %s7174_s26  ;;  %v1788_v12 = vmul.f32 %v1786_v19, %v6687_v5  ;;  %s5479_s26 = sld [smem:[#allocation12 + $0x82]] }
 0x4e7   : > { %v1817_v61 = vadd.f32 %v1812_v7, %v1803_v46  ;;  %2089 = vrot.lane.b32.xlu1 %v2084_v33, %s6192_s17  ;;  %v1855_v33 = vmul.f32 %v1854_v15, %v6853_v30  ;;  %v2152_v7 = vmul.f32 %v2150_v21, %v6861_v37 }
 0x4e8   : > { %v1582_v3 = vadd.f32 %v1580_v42, %v1576_v62  ;;  %2107 = vrot.lane.b32.xlu0 %v2103_v4, %s6191_s14  ;;  %v1422_v55 = vadd.f32 %v6978_v17, %v1408_v49  ;;  %v1440_v17 = vmul.f32 %v1438_v50, %v6939_v59  ;;  %v1962_v50 = vstv %s7172_s24  ;;  %s5442_s24 = sld [smem:[#allocation12 + $0x1]] }
 0x4e9   : > { %v1766_v36 = vpop.permute.xlu1 %1765  ;;  %v1823_v57 = vadd.f32 %v1821_v45, %v1817_v61  ;;  %v1964_v19 = vmul.f32 %v1962_v50, %v6787_v41  ;;  %v2151_v45 = vmul.f32 %v2150_v21, %v6907_v53  ;;  %v1994_v41 = vstv %s7196_s10  ;;  %s5478_s10 = sld [smem:[#allocation12 + $0x81]] }
 0x4ea   : > { %v1596_v10 = vadd.f32 %v7009_v51, %v1582_v3  ;;  %v1832_v1 = vpop.permute.xlu0 %1831  ;;  %v1436_v27 = vadd.f32 %v6992_v44, %v1422_v55  ;;  %v1770_v47 = vadd.f32 %v1766_v36, %v1756_v8  ;;  %v1648_v55 = vmul.f32 %v1646_v29, %v6939_v59 }
 0x4eb   : > { %2123 = vrot.lane.b32.xlu1 %v2118_v48, %s6192_s17  ;;  %v1837_v34 = vadd.f32 %v1832_v1, %v1823_v57  ;;  %v1963_v8 = vmul.f32 %v1962_v50, %v6689_v6  ;;  %v1996_v29 = vmul.f32 %v1994_v41, %v6687_v5 }
 0x4ec   : > { %v1610_v51 = vadd.f32 %v7026_v52, %v1596_v10  ;;  %2121 = vrot.lane.b32.xlu0 %v2117_v26, %s6192_s17  ;;  %v7204_v25 = vadd.f32 %v1440_v17, %v1436_v27  ;;  %v1995_v26 = vmul.f32 %v1994_v41, %v6709_v16 }
 0x4ed   : > { %v1780_v44 = vpop.permute.xlu1 %1779 }
 0x4ee   : > { %v1784_v20 = vadd.f32 %v1780_v44, %v1770_v47  ;;  %v1846_v46 = vpop.permute.xlu0 %1845  ;;  %v1616_v52 = vadd.f32 %v1614_v22, %v1610_v51  ;;  %v1856_v51 = vmul.f32 %v1854_v15, %v6939_v59 }
 0x4ef   : > { %v1851_v13 = vadd.f32 %v1846_v46, %v1837_v34  ;;  %2143 = vrot.lane.b32.xlu1 %v2138_v18, %s6191_s14  ;;  %v1472_v34 = vstv %s7239_s23  ;;  %s5516_s23 = sld [smem:[#allocation12 + $0x102]] }
 0x4f0   : > { %v1790_v31 = vadd.f32 %v1788_v12, %v1784_v20  ;;  %2141 = vrot.lane.b32.xlu0 %v2137_v38, %s6191_s14  ;;  %v1630_v42 = vadd.f32 %v7043_v58, %v1616_v52  ;;  %v1822_v58 = vmul.f32 %v1820_v24, %v6701_v14  ;;  %v1473_v21 = vmul.f32 %v1472_v34, %v6887_v32 }
 0x4f1   : > { %v1974_v62 = vpop.permute.xlu1 %1973  ;;  %v7219_v4 = vadd.f32 %v1855_v33, %v1851_v13 }
 0x4f2   : > { %v1804_v49 = vadd.f32 %v7071_v43, %v1790_v31  ;;  %v1972_v61 = vpop.permute.xlu0 %1971  ;;  %v1644_v3 = vadd.f32 %v7061_v9, %v1630_v42  ;;  %v1978_v57 = vadd.f32 %v1974_v62, %v1964_v19  ;;  %v1506_v31 = vstv %s7253_s27  ;;  %s5553_s27 = sld [smem:[#allocation12 + $0x182]] }
 0x4f3   : > { %2157 = vrot.lane.b32.xlu1 %v2152_v7, %s6192_s17  ;;  %v1977_v48 = vadd.f32 %v1972_v61, %v1963_v8 }
 0x4f4   : > { %v1818_v36 = vadd.f32 %v7084_v60, %v1804_v49  ;;  %2155 = vrot.lane.b32.xlu0 %v2151_v45, %s6192_s17  ;;  %v7235_v43 = vadd.f32 %v1648_v55, %v1644_v3  ;;  %v1507_v49 = vmul.f32 %v1506_v31, %v6907_v53 }
 0x4f5   : > { %v1988_v9 = vpop.permute.xlu1 %1987 }
 0x4f6   : > { %v1992_v28 = vadd.f32 %v1988_v9, %v1978_v57  ;;  %v1986_v10 = vpop.permute.xlu0 %1985  ;;  %v1824_v6 = vadd.f32 %v1822_v58, %v1818_v36  ;;  %v1680_v58 = vstv %s7269_s15  ;;  %s5552_s15 = sld [smem:[#allocation12 + $0x181]] }
 0x4f7   : > { %v1991_v1 = vadd.f32 %v1986_v10, %v1977_v48 }
 0x4f8   : > { %v7241_v14 = vadd.f32 %v1996_v29, %v1992_v28  ;;  %v1838_v60 = vadd.f32 %v7097_v54, %v1824_v6  ;;  %v1681_v28 = vmul.f32 %v1680_v58, %v6887_v32 }
 0x4f9   : > { %v1486_v24 = vpop.permute.xlu1 %1485  ;;  %v1997_v27 = vadd.f32 %v1995_v26, %v1991_v1  ;;  %v1474_v1 = vmul.f32 %v1472_v34, %v6833_v11 }
 0x4fa   : > { %v2006_v17 = vpop.permute.xlu0 %2005  ;;  %v1852_v22 = vadd.f32 %v7113_v40, %v1838_v60  ;;  %v2028_v40 = vstv %s7246_s29  ;;  %s5515_s29 = sld [smem:[#allocation12 + $0x101]] }
 0x4fb   : > { %v2011_v15 = vadd.f32 %v2006_v17, %v1997_v27  ;;  %v2029_v52 = vmul.f32 %v2028_v40, %v6725_v39 }
 0x4fc   : > { %v7248_v5 = vadd.f32 %v1856_v51, %v1852_v22 }
 0x4fd   : > { %v1500_v16 = vpop.permute.xlu1 %1499 }
 0x4fe   : > { %v1450_v47 = vpop.permute.xlu0 %1449 }
 0x4ff   : > { %v1455_v44 = vadd.f32 %v1450_v47, %v7048_v56  ;;  %v1508_v47 = vmul.f32 %v1506_v31, %v6861_v37 }
 0x501   : > { %v1520_v18 = vpop.permute.xlu1 %1519 }
 0x502   : > { %v1464_v54 = vpop.permute.xlu0 %1463 }
 0x503   : > { %v1469_v50 = vadd.f32 %v1464_v54, %v1455_v44  ;;  %v1714_v54 = vstv %s7279_s22  ;;  %s5589_s22 = sld [smem:[#allocation12 + $0x201]] }
 0x505   : > { %v1534_v12 = vpop.permute.xlu1 %1533  ;;  %v1475_v20 = vadd.f32 %v1473_v21, %v1469_v50  ;;  %v1540_v50 = vstv %s7281_s28  ;;  %s5590_s28 = sld [smem:[#allocation12 + $0x202]] }
 0x506   : > { %v2020_v46 = vpop.permute.xlu0 %2019 }
 0x507   : > { %v2025_v38 = vadd.f32 %v2020_v46, %v2011_v15 }
 0x509   : > { %v7259_v13 = vpop.permute.xlu1 %1693  ;;  %v7261_v56 = vadd.f32 %v2029_v52, %v2025_v38  ;;  %v1715_v38 = vmul.f32 %v1714_v54, %v6907_v53 }
 0x50a   : > { %v1484_v33 = vpop.permute.xlu0 %1483 }
 0x50b   : > { %v1489_v42 = vadd.f32 %v1484_v33, %v1475_v20 }
 0x50d   : > { %v7264_v19 = vpop.permute.xlu1 %1707 }
 0x50e   : > { %v1498_v62 = vpop.permute.xlu0 %1497 }
 0x50f   : > { %v1503_v7 = vadd.f32 %v1498_v62, %v1489_v42 }
 0x511   : > { %v7267_v61 = vpop.permute.xlu1 %1727  ;;  %v1509_v45 = vadd.f32 %v1507_v49, %v1503_v7  ;;  %v6066_v49 = vld [vmem:[#allocation3 + $0xa] sm:$0x3f] }
 0x512   : > { %v1518_v3 = vpop.permute.xlu0 %1517 }
 0x513   : > { %v1523_v17 = vadd.f32 %v1518_v3, %v1509_v45  ;;  %v2030_v45 = vmul.f32 %v6066_v49, %v2028_v40  ;;  %v1682_v40 = vmul.f32 %v1680_v58, %v6833_v11 }
 0x515   : > { %v7271_v39 = vpop.permute.xlu1 %1741 }
 0x516   : > { %v1532_v55 = vpop.permute.xlu0 %1531 }
 0x519   : > { %v7273_v8 = vpop.permute.xlu1 %1901 }
 0x51a   : > { %v1658_v41 = vpop.permute.xlu0 %1657 }
 0x51b   : > { %v1663_v36 = vadd.f32 %v1658_v41, %v7126_v23 }
 0x51d   : > { %v1452_v57 = vpop.permute.xlu1 %1451 }
 0x51e   : > { %v1672_v48 = vpop.permute.xlu0 %1671  ;;  %v1456_v10 = vadd.f32 %v1452_v57, %v7204_v25  ;;  %v1537_v25 = vadd.f32 %v1532_v55, %v1523_v17 }
 0x51f   : > { %v1677_v9 = vadd.f32 %v1672_v48, %v1663_v36 }
 0x520   : > { %v1541_v52 = vadd.f32 %v1540_v50, %v1537_v25  ;;  %v1716_v25 = vmul.f32 %v1714_v54, %v6861_v37 }
 0x521   : > { %v1466_v29 = vpop.permute.xlu1 %1465  ;;  %v1683_v6 = vadd.f32 %v1681_v28, %v1677_v9 }
 0x522   : > { %v1470_v26 = vadd.f32 %v1466_v29, %v1456_v10  ;;  %v2040_v60 = vpop.permute.xlu0 %2039  ;;  %v1543_v3 = vmax.f32 %v1541_v52, 0.0 }
 0x524   : > { %v1476_v23 = vadd.f32 %v1474_v1, %v1470_v26  ;;  %v2171_v48 = vrot.slane %v1543_v3, 1 }
 0x525   : > { %v2008_v27 = vpop.permute.xlu1 %2007 }
 0x526   : > { %v1490_v22 = vadd.f32 %v1486_v24, %v1476_v23  ;;  %v1692_v51 = vpop.permute.xlu0 %1691  ;;  %v2012_v24 = vadd.f32 %v2008_v27, %v7241_v14 }
 0x527   : > { %v1697_v21 = vadd.f32 %v1692_v51, %v1683_v6 }
 0x528   : > { %v1504_v44 = vadd.f32 %v1500_v16, %v1490_v22 }
 0x529   : > { %v7287_v15 = vpop.permute.xlu1 %1915 }
 0x52a   : > { %v1510_v20 = vadd.f32 %v1508_v47, %v1504_v44  ;;  %v1706_v46 = vpop.permute.xlu0 %1705 }
 0x52b   : > { %v1711_v34 = vadd.f32 %v1706_v46, %v1697_v21  ;;  %v2045_v21 = vadd.f32 %v2040_v60, %v7261_v56  ;;  %v1922_v60 = vstv %s7320_s18  ;;  %s5700_s18 = sld [smem:[#allocation12 + $0x381]] }
 0x52c   : > { %v1524_v33 = vadd.f32 %v1520_v18, %v1510_v20  ;;  %v1748_v20 = vstv %s7300_s13  ;;  %s5663_s13 = sld [smem:[#allocation12 + $0x301]] }
 0x52d   : > { %v2022_v42 = vpop.permute.xlu1 %2021  ;;  %v1717_v62 = vadd.f32 %v1715_v38, %v1711_v34 }
 0x52e   : > { %v2026_v31 = vadd.f32 %v2022_v42, %v2012_v24  ;;  %v1726_v7 = vpop.permute.xlu0 %1725  ;;  %v1538_v16 = vadd.f32 %v1534_v12, %v1524_v33 }
 0x52f   : > { %v1731_v58 = vadd.f32 %v1726_v7, %v1717_v62 }
 0x530   : > { %v1542_v55 = vadd.f32 %v1540_v50, %v1538_v16  ;;  %v7293_v41 = vadd.f32 %v2030_v45, %v2026_v31 }
 0x531   : > { %v1660_v36 = vpop.permute.xlu1 %1659 }
 0x532   : > { %v1740_v57 = vpop.permute.xlu0 %1739  ;;  %v1544_v18 = vmax.f32 %v1542_v55, 0.0  ;;  %v1664_v14 = vadd.f32 %v1660_v36, %v7235_v43  ;;  %v1888_v43 = vstv %s7295_s12  ;;  %s5626_s12 = sld [smem:[#allocation12 + $0x281]] }
 0x533   : > { %v1889_v47 = vmul.f32 %v1888_v43, %v6887_v32  ;;  %v1745_v44 = vadd.f32 %v1740_v57, %v1731_v58  ;;  %v1923_v57 = vmul.f32 %v1922_v60, %v6907_v53  ;;  %v1956_v58 = vstv %s7331_s20  ;;  %s5445_s20 = sld [smem:[#allocation12 + $0x4]] }
 0x534   : > { %v2172_v9 = vrot.slane %v1544_v18, 1 }
 0x535   : > { %v1674_v12 = vpop.permute.xlu1 %1673  ;;  %v1749_v24 = vadd.f32 %v1748_v20, %v1745_v44 }
 0x536   : > { %v1678_v28 = vadd.f32 %v1674_v12, %v1664_v14  ;;  %v1866_v10 = vpop.permute.xlu0 %1865  ;;  %v7303_v29 = vmax.f32 %v1544_v18, %v2172_v9  ;;  %v2173_v6 = vsel %vm839_vm11, %v2171_v48, %v2172_v9 }
 0x537   : > { %v7306_v1 = vmax.f32 %v1543_v3, %v2173_v6  ;;  %v1871_v23 = vadd.f32 %v1866_v10, %v7219_v4  ;;  %v2062_v4 = vstv %s7298_s30  ;;  %v1751_v7 = vmax.f32 %v1749_v24, 0.0  ;;  %s5627_s30 = sld [smem:[#allocation12 + $0x282]] }
 0x538   : > { %v1684_v26 = vadd.f32 %v1682_v40, %v1678_v28  ;;  %2182 = vrot.lane.b32.xlu1 %v7303_v29, %s6191_s14  ;;  %v2063_v33 = vmul.f32 %v2062_v4, %v6853_v30  ;;  %v1890_v3 = vmul.f32 %v1888_v43, %v6833_v11 }
 0x539   : > { %v7312_v27 = vpop.permute.xlu1 %1935  ;;  %2180 = vrot.lane.b32.xlu0 %v7306_v1, %s6191_s14  ;;  %v2351_v18 = vrot.slane %v1751_v7, 1 }
 0x53a   : > { %v1698_v17 = vadd.f32 %v7259_v13, %v1684_v26  ;;  %v1880_v22 = vpop.permute.xlu0 %1879  ;;  %v1924_v26 = vmul.f32 %v1922_v60, %v6861_v37 }
 0x53b   : > { %v1885_v51 = vadd.f32 %v1880_v22, %v1871_v23 }
 0x53c   : > { %v1712_v50 = vadd.f32 %v7264_v19, %v1698_v17 }
 0x53d   : > { %v2042_v46 = vpop.permute.xlu1 %2041  ;;  %v1891_v34 = vadd.f32 %v1889_v47, %v1885_v51 }
 0x53e   : > { %v1718_v38 = vadd.f32 %v1716_v25, %v1712_v50  ;;  %v2054_v13 = vpop.permute.xlu0 %2053  ;;  %v2046_v10 = vadd.f32 %v2042_v46, %v7293_v41  ;;  %v2064_v41 = vmul.f32 %v2062_v4, %v6939_v59  ;;  %v2096_v46 = vstv %s7345_s21  ;;  %s5664_s21 = sld [smem:[#allocation12 + $0x302]] }
 0x53f   : > { %v2059_v52 = vadd.f32 %v2054_v13, %v2045_v21  ;;  %v2097_v59 = vmul.f32 %v2096_v46, %v6887_v32 }
 0x540   : > { %v1732_v54 = vadd.f32 %v7267_v61, %v1718_v38 }
 0x541   : > { %v1868_v42 = vpop.permute.xlu1 %1867  ;;  %v2065_v62 = vadd.f32 %v2063_v33, %v2059_v52 }
 0x542   : > { %v1900_v19 = vpop.permute.xlu0 %1899  ;;  %v1746_v31 = vadd.f32 %v7271_v39, %v1732_v54  ;;  %v1872_v56 = vadd.f32 %v1868_v42, %v7248_v5 }
 0x543   : > { %v1905_v49 = vadd.f32 %v1900_v19, %v1891_v34 }
 0x544   : > { %v1750_v16 = vadd.f32 %v1748_v20, %v1746_v31 }
 0x545   : > { %v1882_v45 = vpop.permute.xlu1 %1881 }
 0x546   : > { %v1886_v55 = vadd.f32 %v1882_v45, %v1872_v56  ;;  %v1914_v36 = vpop.permute.xlu0 %1913  ;;  %v1752_v30 = vmax.f32 %v1750_v16, 0.0  ;;  %v2130_v45 = vstv %s7353_s16  ;;  %s5448_s16 = sld [smem:[#allocation12 + $0x7]] }
 0x547   : > { %v1919_v61 = vadd.f32 %v1914_v36, %v1905_v49 }
 0x548   : > { %v1892_v48 = vadd.f32 %v1890_v3, %v1886_v55  ;;  %v2352_v39 = vrot.slane %v1752_v30, 1 }
 0x549   : > { %v1950_v14 = vpop.permute.xlu1 %1949  ;;  %v1925_v5 = vadd.f32 %v1923_v57, %v1919_v61  ;;  %v2131_v61 = vmul.f32 %v2130_v45, %v6907_v53 }
 0x54a   : > { %v1906_v9 = vadd.f32 %v7273_v8, %v1892_v48  ;;  %v1934_v12 = vpop.permute.xlu0 %1933  ;;  %v7335_v40 = vmax.f32 %v1752_v30, %v2352_v39  ;;  %v2353_v11 = vsel %vm839_vm11, %v2351_v18, %v2352_v39  ;;  %v6068_v18 = vld [vmem:[#allocation3 + $0x1a] sm:$0x3f] }
 0x54b   : > { %v7338_v28 = vmax.f32 %v1751_v7, %v2353_v11  ;;  %v1939_v43 = vadd.f32 %v1934_v12, %v1925_v5  ;;  %v6067_v7 = vld [vmem:[#allocation3 + $0x19] sm:$0x3f]  ;;  %v2132_v48 = vmul.f32 %v6068_v18, %v2130_v45 }
 0x54c   : > { %v1920_v6 = vadd.f32 %v7287_v15, %v1906_v9  ;;  %2362 = vrot.lane.b32.xlu1 %v7335_v40, %s6191_s14  ;;  %v2098_v56 = vmul.f32 %v6067_v7, %v2096_v46 }
 0x54d   : > { %v2056_v8 = vpop.permute.xlu1 %2055  ;;  %2360 = vrot.lane.b32.xlu0 %v7338_v28, %s6191_s14 }
 0x54e   : > { %v1926_v23 = vadd.f32 %v1924_v26, %v1920_v6  ;;  %v2060_v17 = vadd.f32 %v2056_v8, %v2046_v10  ;;  %v1948_v22 = vpop.permute.xlu0 %1947  ;;  %v2164_v10 = vstv %s5417_s19  ;;  %s5701_s19 = sld [smem:[#allocation12 + $0x382]] }
 0x54f   : > { %v1953_v15 = vadd.f32 %v1948_v22, %v1939_v43 }
 0x550   : > { %v1940_v37 = vadd.f32 %v7312_v27, %v1926_v23  ;;  %v2066_v51 = vadd.f32 %v2064_v41, %v2060_v17 }
 0x551   : > { %v1957_v47 = vadd.f32 %v1956_v58, %v1953_v15  ;;  %v2110_v25 = vpop.permute.xlu1 %2109 }
 0x552   : > { %v1954_v44 = vadd.f32 %v1950_v14, %v1940_v37  ;;  %v2074_v50 = vpop.permute.xlu0 %2073 }
 0x553   : > { %v1959_v20 = vmax.f32 %v1957_v47, 0.0  ;;  %v2079_v34 = vadd.f32 %v2074_v50, %v2065_v62 }
 0x554   : > { %v1958_v21 = vadd.f32 %v1956_v58, %v1954_v44 }
 0x555   : > { %v2076_v38 = vpop.permute.xlu1 %2075  ;;  %v2524_v27 = vrot.slane %v1959_v20, 1 }
 0x556   : > { %v1960_v13 = vmax.f32 %v1958_v21, 0.0  ;;  %v2088_v52 = vpop.permute.xlu0 %2087  ;;  %v2080_v24 = vadd.f32 %v2076_v38, %v2066_v51 }
 0x557   : > { %v2093_v33 = vadd.f32 %v2088_v52, %v2079_v34 }
 0x558   : > { %v2525_v4 = vrot.slane %v1960_v13, 1 }
 0x559   : > { %v2090_v54 = vpop.permute.xlu1 %2089  ;;  %v2099_v42 = vadd.f32 %v2097_v59, %v2093_v33  ;;  %v6196_v59 = vmov 0.0|0.0  }
 0x55a   : > { %v7356_v19 = vmax.f32 %v1960_v13, %v2525_v4  ;;  %v2526_v31 = vsel %vm839_vm11, %v2524_v27, %v2525_v4  ;;  %v2094_v60 = vadd.f32 %v2090_v54, %v2080_v24  ;;  %v2108_v62 = vpop.permute.xlu0 %2107  ;;  %5954 = vmatprep.subr.bf16.mxu0 %v6196_v59 }
 0x55b   : > { %v2529_v16 = vmax.f32 %v1959_v20, %v2526_v31  ;;  %v2113_v32 = vadd.f32 %v2108_v62, %v2099_v42 }
 0x55c   : > { %v2100_v49 = vadd.f32 %v2098_v56, %v2094_v60  ;;  %2535 = vrot.lane.b32.xlu1 %v7356_v19, %s6191_s14 }
 0x55d   : > { %v2124_v3 = vpop.permute.xlu1 %2123  ;;  %2533 = vrot.lane.b32.xlu0 %v2529_v16, %s6191_s14 }
 0x55e   : > { %v2114_v55 = vadd.f32 %v2110_v25, %v2100_v49  ;;  %v2122_v36 = vpop.permute.xlu0 %2121  ;;  %v2872_v49 = vstv %s5442_s24  ;;  %s5481_s24 = sld [smem:[#allocation12 + $0x84]] }
 0x55f   : > { %v2127_v30 = vadd.f32 %v2122_v36, %v2113_v32  ;;  %v3155_v36 = vstv %s5478_s10  ;;  %s5484_s10 = sld [smem:[#allocation12 + $0x87]] }
 0x560   : > { %v2128_v57 = vadd.f32 %v2124_v3, %v2114_v55  ;;  %v3163_v55 = vstv %s5479_s26  ;;  %s5449_s26 = sld [smem:[#allocation12 + $0x8]] }
 0x561   : > { %v2144_v39 = vpop.permute.xlu1 %2143  ;;  %v2133_v14 = vadd.f32 %v2131_v61, %v2127_v30  ;;  %v3446_v61 = vstv %s5516_s23  ;;  %s5482_s23 = sld [smem:[#allocation12 + $0x85]] }
 0x562   : > { %v2134_v5 = vadd.f32 %v2132_v48, %v2128_v57  ;;  %v2142_v9 = vpop.permute.xlu0 %2141  ;;  %v3438_v57 = vstv %s5515_s29  ;;  %s5518_s29 = sld [smem:[#allocation12 + $0x104]] }
 0x563   : > { %v2147_v11 = vadd.f32 %v2142_v9, %v2133_v14  ;;  %v3721_v14 = vstv %s5552_s15  ;;  %s5521_s15 = sld [smem:[#allocation12 + $0x107]] }
 0x564   : > { %v2148_v12 = vadd.f32 %v2144_v39, %v2134_v5  ;;  %v3729_v39 = vstv %s5553_s27  ;;  %s5485_s27 = sld [smem:[#allocation12 + $0x88]] }
 0x565   : > { %v2158_v6 = vpop.permute.xlu1 %2157 }
 0x566   : > { %v2162_v26 = vadd.f32 %v2158_v6, %v2148_v12  ;;  %v2156_v43 = vpop.permute.xlu0 %2155  ;;  %v4004_v12 = vstv %s5589_s22  ;;  %s5519_s22 = sld [smem:[#allocation12 + $0x105]] }
 0x567   : > { %v2161_v8 = vadd.f32 %v2156_v43, %v2147_v11  ;;  %v4012_v11 = vstv %s5590_s28  ;;  %v4295_v43 = vstv %s5627_s30  ;;  %v3187_v63 = vstv %s5482_s23  ;;  %s5555_s28 = sld [smem:[#allocation12 + $0x184]]  ;;  %s5558_s30 = sld [smem:[#allocation12 + $0x187]] }
 0x568   : > { %v2166_v23 = vadd.f32 %v2164_v10, %v2162_v26  ;;  %v4287_v26 = vstv %s5626_s12  ;;  %s5522_s12 = sld [smem:[#allocation12 + $0x108]] }
 0x569   : > { %v2165_v58 = vadd.f32 %v2164_v10, %v2161_v8  ;;  %s5596_s23 = sld [smem:[#allocation12 + $0x208]] }
 0x56a   : > { %v2168_v17 = vmax.f32 %v2166_v23, 0.0 }
 0x56b   : > { %v2167_v22 = vmax.f32 %v2165_v58, 0.0 }
 0x56c   : > { %v2698_v41 = vrot.slane %v2168_v17, 1 }
 0x56d   : > { %v2697_v53 = vrot.slane %v2167_v22, 1 }
 0x56e   : > { %v2703_v15 = vmax.f32 %v2168_v17, %v2698_v41 }
 0x56f   : > { %v2699_v37 = vsel %vm839_vm11, %v2697_v53, %v2698_v41  ;;  %v4853_v41 = vstv %s5700_s18  ;;  %v2895_v53 = vstv %s5445_s20  ;;  %s5592_s18 = sld [smem:[#allocation12 + $0x204]]  ;;  %s5559_s20 = sld [smem:[#allocation12 + $0x188]] }
 0x570   : > { %v2702_v51 = vmax.f32 %v2167_v22, %v2699_v37  ;;  %2708 = vrot.lane.b32.xlu1 %v2703_v15, %s6191_s14  ;;  %v4570_v22 = vstv %s5663_s13  ;;  %s5556_s13 = sld [smem:[#allocation12 + $0x185]] }
 0x572   : > { %2706 = vrot.lane.b32.xlu0 %v2702_v51, %s6191_s14 }
 0x5aa   : > { %v2183_v47 = vpop.permute.xlu1 %2182 }
 0x5ab   : > { %v2181_v25 = vpop.permute.xlu0 %2180  ;;  %v2187_v50 = vmax.f32 %v7303_v29, %v2183_v47  ;;  %v4578_v47 = vstv %s5664_s21  ;;  %s5629_s21 = sld [smem:[#allocation12 + $0x284]] }
 0x5ac   : > { %v2186_v44 = vmax.f32 %v7306_v1, %v2181_v25  ;;  %v2920_v25 = vstv %s5448_s16  ;;  %s5593_s16 = sld [smem:[#allocation12 + $0x205]] }
 0x5ae   : > { %5856 = vmatprep.mubr.msk.f32.mxu1 %vm2188_vm6, %v2186_v44 }
 0x5af   : > { %5857 = vmatmul.mubr.msk.f32.vlgmr.msra.gmra.mrb[4].mxu1 %vm2188_vm6, %v2187_v50 }
 0x5b0   : > { %5963 = vmatpush3.bf16.msk.msra.mxu1 %vm6652_vm2, %v6527_v35 }
 0x5b1   : > { %5970 = vmatprep.subr.msk.bf16.mxu1 %vm6652_vm2, %v6527_v35 }
 0x5be   : > { %v2363_v21 = vpop.permute.xlu1 %2362 }
 0x5bf   : > { %v2361_v20 = vpop.permute.xlu0 %2360  ;;  %v2367_v1 = vmax.f32 %v7335_v40, %v2363_v21 }
 0x5c0   : > { %v2366_v46 = vmax.f32 %v7338_v28, %v2361_v20  ;;  %v4861_v20 = vstv %s5701_s19  ;;  %s5630_s19 = sld [smem:[#allocation12 + $0x285]] }
 0x5c2   : > { %5870 = vmatprep.mubr.msk.f32.mxu1 %vm2188_vm6, %v2366_v46 }
 0x5c3   : > { %5871 = vmatmul.mubr.msk.f32.vlgmr.msra.gmra.mrb[6].mxu1 %vm2188_vm6, %v2367_v1  ;;  %v3178_v1 = vstv %s5481_s24  ;;  %s5595_s24 = sld [smem:[#allocation12 + $0x207]] }
 0x5c4   : > { %5973 = vmatpush3.bf16.msk.msra.mxu1 %vm6652_vm2, %v6527_v35 }
 0x5c5   : > { %5980 = vmatprep.subr.msk.bf16.mxu1 %vm6652_vm2, %v6527_v35 }
 0x5ce   : > { %v2536_v29 = vpop.permute.xlu1 %2535 }
 0x5cf   : > { %v2534_v34 = vpop.permute.xlu0 %2533  ;;  %v2540_v13 = vmax.f32 %v7356_v19, %v2536_v29 }
 0x5d0   : > { %v2539_v38 = vmax.f32 %v2529_v16, %v2534_v34  ;;  %v2880_v16 = vstv %s5443_s25  ;;  %s5446_s25 = sld [smem:[#allocation12 + $0x5]] }
 0x5d2   : > { %5884 = vmatprep.mubr.msk.f32.mxu1 %vm2188_vm6, %v2539_v38 }
 0x5d3   : > { %5885 = vmatmul.mubr.msk.f32.vlgmr.msra.gmra.mrb[8].mxu1 %vm2188_vm6, %v2540_v13 }
 0x5d4   : > { %5983 = vmatpush3.bf16.msk.msra.mxu1 %vm6652_vm2, %v6527_v35 }
 0x5d6   : > { %v2904_v46 = vstv %s5446_s25  ;;  %s5666_s25 = sld [smem:[#allocation12 + $0x304]] }
 0x5e2   : > { %v2709_v40 = vpop.permute.xlu1 %2708 }
 0x5e3   : > { %v2713_v33 = vmax.f32 %v2703_v15, %v2709_v40  ;;  %v2929_v40 = vstv %s5449_s26  ;;  %s5667_s26 = sld [smem:[#allocation12 + $0x305]] }
 0x5e4   : > { %v2707_v28 = vpop.permute.xlu0 %2706 }
 0x5e5   : > { %v2712_v52 = vmax.f32 %v2702_v51, %v2707_v28  ;;  %v3203_v28 = vstv %s5484_s10  ;;  %s5703_s10 = sld [smem:[#allocation12 + $0x384]] }
 0x5e7   : > { %5898 = vmatprep.mubr.msk.f32.mxu1 %vm2188_vm6, %v2712_v52 }
 0x5e8   : > { %5899 = vmatmul.mubr.msk.f32.vlgmr.msra.gmra.mrb[10].mxu1 %vm2188_vm6, %v2713_v33 }
 0x682   : > { %v5858_v4 = vpop.f32.mrb[4].mxu1 }
 0x683   : > { %v2265_v35 = vpop.f32.mrb[5].mxu1 }
 0x684   : > { %v5955_v27 = vpack.c.bf16 %v5858_v4, %v2265_v35  ;;  %v3461_v35 = vstv %s5518_s29  ;;  %s5632_s29 = sld [smem:[#allocation12 + $0x287]] }
 0x686   : > { %5957 = vmatpush3.bf16.msk.msra.mxu0 %vm7399_vm8, %v5955_v27 }
 0x687   : > { %5964 = vmatprep.subr.bf16.mxu0 %v6196_v59 }
 0x689   : > { %5864 = vmatmul.mubr.msk.f32.vlgmr.msra.gmra.mrb[8].mxu0 %vm2188_vm6, %v6628_v2 }
 0x68a   : > { %5877 = vmatprep.mubr.msk.f32.mxu0 %vm6197_vm7, %v6189_v0 }
 0x696   : > { %v5872_v24 = vpop.f32.mrb[6].mxu1 }
 0x697   : > { %v2440_v54 = vpop.f32.mrb[7].mxu1 }
 0x698   : > { %v5965_v42 = vpack.c.bf16 %v5872_v24, %v2440_v54 }
 0x69a   : > { %5967 = vmatpush3.bf16.msk.msra.mxu0 %vm7399_vm8, %v5965_v42 }
 0x69b   : > { %5974 = vmatprep.subr.bf16.mxu0 %v6196_v59 }
 0x69d   : > { %5878 = vmatmul.mubr.msk.f32.vlgmr.msra.gmra.mrb[10].mxu0 %vm2188_vm6, %v6628_v2 }
 0x69e   : > { %5891 = vmatprep.mubr.msk.f32.mxu0 %vm6197_vm7, %v6189_v0 }
 0x6a6   : > { %v5886_v19 = vpop.f32.mrb[8].mxu1 }
 0x6a7   : > { %v2613_v31 = vpop.f32.mrb[9].mxu1 }
 0x6a8   : > { %v5975_v7 = vpack.c.bf16 %v5886_v19, %v2613_v31  ;;  %v3212_v19 = vstv %s5485_s27  ;;  %v3486_v31 = vstv %s5521_s15  ;;  %s5704_s27 = sld [smem:[#allocation12 + $0x385]]  ;;  %s5633_s15 = sld [smem:[#allocation12 + $0x288]] }
 0x6aa   : > { %5977 = vmatpush3.bf16.msk.msra.mxu0 %vm7399_vm8, %v5975_v7 }
 0x6ab   : > { %5984 = vmatprep.subr.bf16.mxu0 %v6196_v59 }
 0x6ad   : > { %5892 = vmatmul.mubr.msk.f32.vlgmr.msra.gmra.mrb[12].mxu0 %vm2188_vm6, %v6628_v2 }
 0x6ae   : > { %5905 = vmatprep.mubr.msk.f32.mxu0 %vm6197_vm7, %v6189_v0 }
 0x6bb   : > { %v5900_v56 = vpop.f32.mrb[10].mxu1 }
 0x6bc   : > { %v2786_v60 = vpop.f32.mrb[11].mxu1 }
 0x6bd   : > { %v5985_v62 = vpack.c.bf16 %v5900_v56, %v2786_v60 }
 0x6bf   : > { %5987 = vmatpush3.bf16.msk.msra.mxu0 %vm7399_vm8, %v5985_v62 }
 0x6c2   : > { %5906 = vmatmul.mubr.msk.f32.vlgmr.msra.gmra.mrb[14].mxu0 %vm2188_vm6, %v6628_v2 }
 0x75c   : > { %v7425_v45 = vpop.f32.mrb[8].mxu0 }
 0x75d   : > { %v2881_v0 = vmul.f32 %v2880_v16, %v7425_v45  ;;  %v2873_v32 = vmul.f32 %v2872_v49, %v7425_v45  ;;  %v5865_v3 = vpop.f32.mrb[9].mxu0  ;;  %v3164_v2 = vmul.f32 %v3163_v55, %v7425_v45  ;;  %v3156_v30 = vmul.f32 %v3155_v36, %v7425_v45 }
 0x75e   : > { %v3447_v18 = vmul.f32 %v3446_v61, %v7425_v45  ;;  %v3439_v48 = vmul.f32 %v3438_v57, %v7425_v45  ;;  %v3730_v5 = vmul.f32 %v3729_v39, %v7425_v45  ;;  %v3722_v9 = vmul.f32 %v3721_v14, %v7425_v45 }
 0x75f   : > { %2883 = vrot.lane.b32.xlu1 %v2881_v0, %s6192_s17  ;;  %2875 = vrot.lane.b32.xlu0 %v2873_v32, %s6191_s14  ;;  %v4005_v10 = vmul.f32 %v4004_v12, %v7425_v45  ;;  %v4013_v6 = vmul.f32 %v4012_v11, %v7425_v45  ;;  %v4288_v23 = vmul.f32 %v4287_v26, %v7425_v45  ;;  %v3470_v16 = vstv %s5519_s22  ;;  %s5669_s22 = sld [smem:[#allocation12 + $0x307]] }
 0x760   : > { %v4296_v58 = vmul.f32 %v4295_v43, %v7425_v45  ;;  %v4571_v15 = vmul.f32 %v4570_v22, %v7425_v45  ;;  %v4854_v37 = vmul.f32 %v4853_v41, %v7425_v45  ;;  %v2896_v51 = vmul.f32 %v2895_v53, %v7425_v45 }
 0x761   : > { %v4579_v44 = vmul.f32 %v4578_v47, %v7425_v45  ;;  %v2921_v21 = vmul.f32 %v2920_v25, %v7425_v45  ;;  %v4862_v29 = vmul.f32 %v4861_v20, %v7425_v45  ;;  %v2905_v38 = vmul.f32 %v2904_v46, %v7425_v45 }
 0x762   : > { %v2898_v50 = vrot.slane %v2896_v51, 1  ;;  %v3179_v13 = vmul.f32 %v3178_v1, %v7425_v45  ;;  %v2930_v59 = vmul.f32 %v2929_v40, %v7425_v45  ;;  %v3204_v4 = vmul.f32 %v3203_v28, %v7425_v45 }
 0x763   : > { %3166 = vrot.lane.b32.xlu1 %v3164_v2, %s6192_s17  ;;  %3158 = vrot.lane.b32.xlu0 %v3156_v30, %s6191_s14  ;;  %v2923_v34 = vrot.slane %v2921_v21, 2  ;;  %v2907_v52 = vrot.slane %v2905_v38, 1  ;;  %v3188_v54 = vmul.f32 %v3187_v63, %v7425_v45  ;;  %v3462_v42 = vmul.f32 %v3461_v35, %v7425_v45 }
 0x764   : > { %v3181_v33 = vrot.slane %v3179_v13, 1  ;;  %v2932_v27 = vrot.slane %v2930_v59, 2  ;;  %v3206_v24 = vrot.slane %v3204_v4, 2  ;;  %v3213_v60 = vmul.f32 %v3212_v19, %v7425_v45 }
 0x765   : > { %v3190_v7 = vrot.slane %v3188_v54, 1  ;;  %v3464_v56 = vrot.slane %v3462_v42, 1  ;;  %v3487_v62 = vmul.f32 %v3486_v31, %v7425_v45  ;;  %v3744_v49 = vstv %s5555_s28  ;;  %s5706_s28 = sld [smem:[#allocation12 + $0x387]] }
 0x766   : > { %v3215_v0 = vrot.slane %v3213_v60, 2  ;;  %v3471_v3 = vmul.f32 %v3470_v16, %v7425_v45  ;;  %v3745_v55 = vmul.f32 %v3744_v49, %v7425_v45  ;;  %v3495_v36 = vstv %s5522_s12  ;;  %s5670_s12 = sld [smem:[#allocation12 + $0x308]] }
 0x767   : > { %3449 = vrot.lane.b32.xlu1 %v3447_v18, %s6192_s17  ;;  %3441 = vrot.lane.b32.xlu0 %v3439_v48, %s6191_s14  ;;  %v3489_v32 = vrot.slane %v3487_v62, 2  ;;  %v3769_v2 = vstv %s5558_s30  ;;  %v3496_v57 = vmul.f32 %v3495_v36, %v7425_v45  ;;  %v3753_v48 = vstv %s5556_s13  ;;  %s5451_s30 = sld [smem:[#allocation12 + $0xa]]  ;;  %s5707_s13 = sld [smem:[#allocation12 + $0x388]] }
 0x768   : > { %v3473_v30 = vrot.slane %v3471_v3, 1  ;;  %v3747_v61 = vrot.slane %v3745_v55, 1  ;;  %v3770_v18 = vmul.f32 %v3769_v2, %v7425_v45  ;;  %v4027_v39 = vstv %s5592_s18  ;;  %s5487_s18 = sld [smem:[#allocation12 + $0x8a]] }
 0x769   : > { %v3498_v14 = vrot.slane %v3496_v57, 2  ;;  %v4028_v12 = vmul.f32 %v4027_v39, %v7425_v45  ;;  %v3778_v11 = vstv %s5559_s20  ;;  %v4593_v47 = vstv %s5666_s25  ;;  %s5452_s20 = sld [smem:[#allocation12 + $0xb]] }
 0x76a   : > { %v3779_v43 = vmul.f32 %v3778_v11, %v7425_v45  ;;  %v4052_v25 = vstv %s5595_s24  ;;  %v4594_v21 = vmul.f32 %v4593_v47, %v7425_v45  ;;  %v4602_v46 = vstv %s5667_s26  ;;  %s5525_s25 = sld [smem:[#allocation12 + $0x10b]]  ;;  %s5598_s24 = sld [smem:[#allocation12 + $0x20a]] }
 0x76b   : > { %3732 = vrot.lane.b32.xlu1 %v3730_v5, %s6192_s17  ;;  %3724 = vrot.lane.b32.xlu0 %v3722_v9, %s6191_s14  ;;  %v3772_v5 = vrot.slane %v3770_v18, 2  ;;  %v3754_v9 = vmul.f32 %v3753_v48, %v7425_v45  ;;  %v4030_v26 = vrot.slane %v4028_v12, 1  ;;  %v4053_v20 = vmul.f32 %v4052_v25, %v7425_v45  ;;  %s5562_s26 = sld [smem:[#allocation12 + $0x18b]] }
 0x76c   : > { %v3781_v53 = vrot.slane %v3779_v43, 2  ;;  %v4876_v1 = vstv %s5703_s10  ;;  %v4603_v38 = vmul.f32 %v4602_v46, %v7425_v45  ;;  %v4061_v40 = vstv %s5596_s23  ;;  %s5635_s10 = sld [smem:[#allocation12 + $0x28a]]  ;;  %s5599_s23 = sld [smem:[#allocation12 + $0x20b]] }
 0x76d   : > { %v4877_v13 = vmul.f32 %v4876_v1, %v7425_v45  ;;  %v4335_v28 = vstv %s5632_s29  ;;  %v4062_v59 = vmul.f32 %v4061_v40, %v7425_v45  ;;  %v4885_v63 = vstv %s5704_s27  ;;  %s5636_s29 = sld [smem:[#allocation12 + $0x28b]]  ;;  %s5672_s27 = sld [smem:[#allocation12 + $0x30a]] }
 0x76e   : > { %v4336_v4 = vmul.f32 %v4335_v28, %v7425_v45  ;;  %v4344_v35 = vstv %s5633_s15  ;;  %v4886_v54 = vmul.f32 %v4885_v63, %v7425_v45  ;;  %v4618_v19 = vstv %s5669_s22  ;;  %s5709_s15 = sld [smem:[#allocation12 + $0x38a]]  ;;  %s5454_s22 = sld [smem:[#allocation12 + $0xd]] }
 0x76f   : > { %4007 = vrot.lane.b32.xlu1 %v4005_v10, %s6191_s14  ;;  %4015 = vrot.lane.b32.xlu0 %v4013_v6, %s6192_s17  ;;  %v4310_v10 = vstv %s5629_s21  ;;  %v3756_v6 = vrot.slane %v3754_v9, 1  ;;  %v4345_v42 = vmul.f32 %v4344_v35, %v7425_v45  ;;  %v4901_v31 = vstv %s5706_s28  ;;  %s5524_s21 = sld [smem:[#allocation12 + $0x10a]]  ;;  %s5673_s28 = sld [smem:[#allocation12 + $0x30b]] }
 0x770   : > { %v7447_v8 = vpop.f32.mrb[10].mxu0  ;;  %v4619_v60 = vmul.f32 %v4618_v19, %v7425_v45  ;;  %v4902_v62 = vmul.f32 %v4901_v31, %v7425_v45  ;;  %v4627_v16 = vstv %s5670_s12  ;;  %v2942_v49 = vstv %s5451_s30  ;;  %s5457_s12 = sld [smem:[#allocation12 + $0x10]]  ;;  %s7553_s30 = sld [smem:[#allocation12 + $0x38b]] }
 0x771   : > { %v5879_v17 = vpop.f32.mrb[11].mxu0  ;;  %v4628_v3 = vmul.f32 %v4627_v16, %v7425_v45  ;;  %v4910_v55 = vstv %s5707_s13  ;;  %v2943_v36 = vmul.f32 %v2942_v49, %v7447_v8  ;;  %v2950_v48 = vstv %s5452_s20  ;;  %s7555_s13 = sld [smem:[#allocation12 + $0xe]]  ;;  %s7568_s20 = sld [smem:[#allocation12 + $0x11]] }
 0x772   : > { %v4319_v17 = vstv %s5630_s19  ;;  %s5561_s19 = sld [smem:[#allocation12 + $0x18a]] }
 0x773   : > { %4290 = vrot.lane.b32.xlu1 %v4288_v23, %s6191_s14  ;;  %4298 = vrot.lane.b32.xlu0 %v4296_v58, %s6192_s17  ;;  %v4311_v23 = vmul.f32 %v4310_v10, %v7425_v45  ;;  %v4036_v58 = vstv %s5593_s16  ;;  %v4320_v51 = vmul.f32 %v4319_v17, %v7425_v45  ;;  %v4630_v2 = vrot.slane %v4628_v3, 2  ;;  %s5488_s16 = sld [smem:[#allocation12 + $0x8b]] }
 0x774   : > { %v4357_v17 = vstv %s5635_s10  ;;  %s7606_s10 = sld [smem:[#allocation12 + $0x3]] }
 0x775   : > { %v3508_v39 = vstv %s5524_s21  ;;  %s7570_s21 = sld [smem:[#allocation12 + $0x90]] }
 0x776   : > { %v2990_v40 = vstv %s5457_s12  ;;  %v4931_v63 = vstv %s7553_s30  ;;  %s7641_s12 = sld [smem:[#allocation12 + $0x6]]  ;;  %s7645_s30 = sld [smem:[#allocation12 + $0x83]] }
 0x777   : > { %4573 = vrot.lane.b32.xlu1 %v4571_v15, %s6191_s14  ;;  %4856 = vrot.lane.b32.xlu0 %v4854_v37, %s6191_s14  ;;  %v4313_v15 = vrot.slane %v4311_v23, 1  ;;  %v4037_v37 = vmul.f32 %v4036_v58, %v7425_v45  ;;  %v3799_v58 = vstv %s5562_s26  ;;  %v2974_v35 = vstv %s7555_s13  ;;  %s7602_s26 = sld [smem:[#allocation12 + $0x110]]  ;;  %s7647_s13 = sld [smem:[#allocation12 + $0x18e]] }
 0x778   : > { %v3791_v12 = vstv %s5561_s19  ;;  %s7585_s19 = sld [smem:[#allocation12 + $0x10d]]  ;;  %v2975_v31 = vmul.f32 %v2974_v35, %v7447_v8 }
 0x779   : > { %v3233_v9 = vstv %s5488_s16  ;;  %v3792_v10 = vmul.f32 %v3791_v12, %v7447_v8  ;;  %s7583_s16 = sld [smem:[#allocation12 + $0x8e]] }
 0x77a   : > { %v3234_v11 = vmul.f32 %v3233_v9, %v7447_v8  ;;  %v2977_v49 = vrot.slane %v2975_v31, 1  ;;  %v2888_v12 = vstv %s7606_s10  ;;  %s7696_s10 = sld [smem:[#allocation12 + $0x9]] }
 0x77b   : > { %4581 = vrot.lane.b32.xlu1 %v4579_v44, %s6192_s17  ;;  %2899 = vrot.lane.b32.xlu0 %v2898_v50, %s6191_s14  ;;  %v4039_v44 = vrot.slane %v4037_v37, 1  ;;  %v4322_v50 = vrot.slane %v4320_v51, 1  ;;  %v4365_v37 = vstv %s5636_s29  ;;  %s7618_s29 = sld [smem:[#allocation12 + $0x18d]] }
 0x77f   : > { %4864 = vrot.lane.b32.xlu1 %v4862_v29, %s6192_s17  ;;  %2924 = vrot.lane.b32.xlu0 %v2923_v34, %s6191_s14  ;;  %v4596_v29 = vrot.slane %v4594_v21, 1  ;;  %v4055_v34 = vrot.slane %v4053_v20, 2  ;;  %v4923_v21 = vstv %s5709_s15  ;;  %v2965_v20 = vstv %s5454_s22  ;;  %s7633_s15 = sld [smem:[#allocation12 + $0x111]]  ;;  %s7635_s22 = sld [smem:[#allocation12 + $0x190]] }
 0x780   : > { %v7495_v22 = vpop.f32.mrb[12].mxu0 }
 0x781   : > { %v5893_v41 = vpop.f32.mrb[13].mxu0 }
 0x782   : > { %v3800_v41 = vmul.f32 %v3799_v58, %v7447_v8 }
 0x783   : > { %2908 = vrot.lane.b32.xlu1 %v2907_v52, %s6192_s17  ;;  %3182 = vrot.lane.b32.xlu0 %v3181_v33, %s6191_s14  ;;  %v4605_v52 = vrot.slane %v4603_v38, 1  ;;  %v4879_v33 = vrot.slane %v4877_v13, 1  ;;  %v2966_v38 = vmul.f32 %v2965_v20, %v7447_v8  ;;  %v4648_v13 = vstv %s5673_s28  ;;  %s7637_s28 = sld [smem:[#allocation12 + $0x100]] }
 0x787   : > { %2933 = vrot.lane.b32.xlu1 %v2932_v27, %s6192_s17  ;;  %3207 = vrot.lane.b32.xlu0 %v3206_v24, %s6191_s14  ;;  %v4064_v27 = vrot.slane %v4062_v59, 2  ;;  %v4338_v24 = vrot.slane %v4336_v4, 2  ;;  %v2968_v59 = vrot.slane %v2966_v38, 1  ;;  %v2991_v4 = vmul.f32 %v2990_v40, %v7447_v8 }
 0x789   : > { %v2993_v19 = vrot.slane %v2991_v4, 2  ;;  %v3435_v38 = vstv %s7637_s28  ;;  %s7732_s28 = sld [smem:[#allocation12 + $0x89]] }
 0x78b   : > { %3191 = vrot.lane.b32.xlu1 %v3190_v7, %s6192_s17  ;;  %3465 = vrot.lane.b32.xlu0 %v3464_v56, %s6191_s14  ;;  %v4888_v7 = vrot.slane %v4886_v54, 1  ;;  %v4347_v56 = vrot.slane %v4345_v42, 2  ;;  %v4932_v42 = vmul.f32 %v4931_v63, %v7447_v8 }
 0x78f   : > { %3216 = vrot.lane.b32.xlu1 %v3215_v0, %s6192_s17  ;;  %3490 = vrot.lane.b32.xlu0 %v3489_v32, %s6191_s14  ;;  %v4621_v0 = vrot.slane %v4619_v60, 2  ;;  %v4904_v32 = vrot.slane %v4902_v62, 2  ;;  %v3273_v60 = vstv %s7570_s21  ;;  %s7664_s21 = sld [smem:[#allocation12 + $0x86]] }
 0x790   : > { %v3274_v3 = vmul.f32 %v3273_v60, %v7447_v8 }
 0x793   : > { %3474 = vrot.lane.b32.xlu1 %v3473_v30, %s6192_s17  ;;  %3748 = vrot.lane.b32.xlu0 %v3747_v61, %s6191_s14  ;;  %v4911_v30 = vmul.f32 %v4910_v55, %v7425_v45  ;;  %v3225_v61 = vstv %s5487_s18  ;;  %s7557_s18 = sld [smem:[#allocation12 + $0x8d]]  ;;  %v3257_v55 = vstv %s7583_s16  ;;  %s7668_s16 = sld [smem:[#allocation12 + $0x103]] }
 0x794   : > { %v3226_v18 = vmul.f32 %v3225_v61, %v7447_v8 }
 0x795   : > { %v4913_v57 = vrot.slane %v4911_v30, 2 }
 0x797   : > { %3499 = vrot.lane.b32.xlu1 %v3498_v14, %s6192_s17  ;;  %3773 = vrot.lane.b32.xlu0 %v3772_v5, %s6191_s14  ;;  %v2951_v14 = vmul.f32 %v2950_v48, %v7447_v8  ;;  %v3509_v5 = vmul.f32 %v3508_v39, %v7447_v8  ;;  %v3258_v48 = vmul.f32 %v3257_v55, %v7447_v8 }
 0x799   : > { %v3454_v55 = vstv %s7668_s16  ;;  %s7765_s16 = sld [smem:[#allocation12 + $0x203]] }
 0x79b   : > { %3757 = vrot.lane.b32.xlu1 %v3756_v6, %s6192_s17  ;;  %4031 = vrot.lane.b32.xlu0 %v4030_v26, %s6191_s14  ;;  %v3516_v6 = vstv %s5525_s25  ;;  %v4074_v26 = vstv %s5598_s24  ;;  %s7589_s25 = sld [smem:[#allocation12]]  ;;  %s7600_s24 = sld [smem:[#allocation12 + $0x91]] }
 0x79c   : > { %v3517_v43 = vmul.f32 %v3516_v6, %v7447_v8  ;;  %v4075_v23 = vmul.f32 %v4074_v26, %v7447_v8  ;;  %v3260_v6 = vrot.slane %v3258_v48, 1 }
 0x79f   : > { %3782 = vrot.lane.b32.xlu1 %v3781_v53, %s6192_s17  ;;  %4314 = vrot.lane.b32.xlu0 %v4313_v15, %s6191_s14  ;;  %v4358_v53 = vmul.f32 %v4357_v17, %v7447_v8  ;;  %v4082_v15 = vstv %s5599_s23  ;;  %s7616_s23 = sld [smem:[#allocation12 + $0x10e]] }
 0x7a0   : > { %v4083_v25 = vmul.f32 %v4082_v15, %v7447_v8  ;;  %v2889_v15 = vmul.f32 %v2888_v12, %v7425_v45 }
 0x7a3   : > { %4040 = vrot.lane.b32.xlu1 %v4039_v44, %s6192_s17  ;;  %4323 = vrot.lane.b32.xlu0 %v4322_v50, %s6192_s17  ;;  %v4366_v44 = vmul.f32 %v4365_v37, %v7447_v8  ;;  %v4640_v50 = vstv %s5672_s27  ;;  %s7623_s27 = sld [smem:[#allocation12 + $0x80]] }
 0x7a5   : > { %v3540_v17 = vstv %s7616_s23  ;;  %s7705_s23 = sld [smem:[#allocation12 + $0x106]] }
 0x7a7   : > { %4597 = vrot.lane.b32.xlu1 %v4596_v29, %s6191_s14  ;;  %4056 = vrot.lane.b32.xlu0 %v4055_v34, %s6191_s14  ;;  %v4641_v29 = vmul.f32 %v4640_v50, %v7447_v8  ;;  %v4924_v34 = vmul.f32 %v4923_v21, %v7447_v8  ;;  %v3541_v50 = vmul.f32 %v3540_v17, %v7447_v8 }
 0x7a9   : > { %v3543_v35 = vrot.slane %v3541_v50, 1  ;;  %v2938_v50 = vstv %s7696_s10  ;;  %s7793_s10 = sld [smem:[#allocation12 + $0x311]] }
 0x7ab   : > { %4606 = vrot.lane.b32.xlu1 %v4605_v52, %s6192_s17  ;;  %4880 = vrot.lane.b32.xlu0 %v4879_v33, %s6191_s14  ;;  %v4649_v33 = vmul.f32 %v4648_v13, %v7447_v8  ;;  %v2913_v13 = vstv %s7641_s12  ;;  %s7736_s12 = sld [smem:[#allocation12 + $0x38d]] }
 0x7af   : > { %4065 = vrot.lane.b32.xlu1 %v4064_v27, %s6192_s17  ;;  %4339 = vrot.lane.b32.xlu0 %v4338_v24, %s6191_s14  ;;  %v3248_v27 = vstv %s7557_s18  ;;  %s7658_s18 = sld [smem:[#allocation12 + $0x20d]] }
 0x7b3   : > { %4889 = vrot.lane.b32.xlu1 %v4888_v7, %s6192_s17  ;;  %4348 = vrot.lane.b32.xlu0 %v4347_v56, %s6192_s17  ;;  %v3249_v7 = vmul.f32 %v3248_v27, %v7447_v8  ;;  %v2999_v56 = vstv %s7568_s20  ;;  %s7660_s20 = sld [smem:[#allocation12 + $0x180]] }
 0x7b5   : > { %v4097_v60 = vstv %s7658_s18  ;;  %s7752_s18 = sld [smem:[#allocation12 + $0x290]] }
 0x7b6   : > { %v4098_v48 = vmul.f32 %v4097_v60, %v7447_v8 }
 0x7b7   : > { %4622 = vrot.lane.b32.xlu1 %v4621_v0, %s6191_s14  ;;  %4905 = vrot.lane.b32.xlu0 %v4904_v32, %s6191_s14  ;;  %v3251_v0 = vrot.slane %v3249_v7, 1  ;;  %v3000_v32 = vmul.f32 %v2999_v56, %v7447_v8  ;;  %v2914_v56 = vmul.f32 %v2913_v13, %v7425_v45  ;;  %v3479_v13 = vstv %s7705_s23  ;;  %s7798_s23 = sld [smem:[#allocation12 + $0x300]] }
 0x7bb   : > { %4631 = vrot.lane.b32.xlu1 %v4630_v2, %s6192_s17  ;;  %2945 = vrot.lane.b32.xlu0 %v2943_v36, %s6191_s14  ;;  %v3531_v36 = vstv %s7585_s19  ;;  %v2869_v2 = vstv %s7589_s25  ;;  %s7674_s19 = sld [smem:[#allocation12 + $0x191]]  ;;  %s7679_s25 = sld [smem:[#allocation12 + $0x28d]] }
 0x7bc   : > { %v3532_v39 = vmul.f32 %v3531_v36, %v7447_v8  ;;  %v2870_v9 = vmul.f32 %v2869_v2, %v7425_v45 }
 0x7be   : > { %v3534_v26 = vrot.slane %v3532_v39, 1 }
 0x7bf   : > { %4914 = vrot.lane.b32.xlu1 %v4913_v57, %s6192_s17  ;;  %3228 = vrot.lane.b32.xlu0 %v3226_v18, %s6191_s14  ;;  %v3002_v57 = vrot.slane %v3000_v32, 2  ;;  %v3276_v18 = vrot.slane %v3274_v3, 2 }
 0x7c1   : > { %v3848_v39 = vstv %s7674_s19  ;;  %v4380_v12 = vstv %s7679_s25  ;;  %s7768_s19 = sld [smem:[#allocation12 + $0x38e]]  ;;  %s7777_s25 = sld [smem:[#allocation12 + $0x291]] }
 0x7c3   : > { %2953 = vrot.lane.b32.xlu1 %v2951_v14, %s6192_s17  ;;  %3511 = vrot.lane.b32.xlu0 %v3509_v5, %s6191_s14  ;;  %v3282_v14 = vstv %s7600_s24  ;;  %v3556_v5 = vstv %s7602_s26  ;;  %s7685_s24 = sld [smem:[#allocation12 + $0x20e]] }
 0x7c4   : > { %s7687_s26 = sld [smem:[#allocation12 + $0x28e]] }
 0x7c7   : > { %3236 = vrot.lane.b32.xlu1 %v3234_v11, %s6192_s17  ;;  %3794 = vrot.lane.b32.xlu0 %v3792_v10, %s6191_s14 }
 0x7cb   : > { %3519 = vrot.lane.b32.xlu1 %v3517_v43, %s6192_s17  ;;  %4077 = vrot.lane.b32.xlu0 %v4075_v23, %s6191_s14  ;;  %v3283_v43 = vmul.f32 %v3282_v14, %v7447_v8  ;;  %v3557_v23 = vmul.f32 %v3556_v5, %v7447_v8  ;;  %v2916_v5 = vrot.slane %v2914_v56, 2 }
 0x7cf   : > { %3802 = vrot.lane.b32.xlu1 %v3800_v41, %s6192_s17  ;;  %4360 = vrot.lane.b32.xlu0 %v4358_v53, %s6191_s14  ;;  %v3814_v41 = vstv %s7618_s29  ;;  %v3152_v53 = vstv %s7623_s27  ;;  %s7707_s29 = sld [smem:[#allocation12 + $0x30d]]  ;;  %s7714_s27 = sld [smem:[#allocation12 + $0x210]] }
 0x7d0   : > { %v3815_v21 = vmul.f32 %v3814_v41, %v7447_v8  ;;  %v3153_v40 = vmul.f32 %v3152_v53, %v7425_v45 }
 0x7d1   : > { %v7547_v51 = vpop.permute.xlu1 %2883  ;;  %v7549_v47 = vpop.permute.xlu0 %2875 }
 0x7d2   : > { %v2878_v58 = vadd.f32 %v7549_v47, %v2870_v9  ;;  %v3817_v27 = vrot.slane %v3815_v21, 1 }
 0x7d3   : > { %4085 = vrot.lane.b32.xlu1 %v4083_v25, %s6192_s17  ;;  %4368 = vrot.lane.b32.xlu0 %v4366_v44, %s6192_s17  ;;  %v3285_v25 = vrot.slane %v3283_v43, 2  ;;  %v3559_v44 = vrot.slane %v3557_v23, 2  ;;  %v7724_v43 = vpop.f32.mrb[14].mxu0  ;;  %v3436_v23 = vmul.f32 %v3435_v38, %v7425_v45  ;;  %v3455_v38 = vmul.f32 %v3454_v55, %v7425_v45 }
 0x7d4   : > { %v2886_v20 = vadd.f32 %v7547_v51, %v2878_v58  ;;  %v3171_v51 = vstv %s7645_s30  ;;  %s7743_s30 = sld [smem:[#allocation12 + $0x186]] }
 0x7d5   : > { %v7561_v46 = vpop.permute.xlu1 %3166  ;;  %v7563_v1 = vpop.permute.xlu0 %3158  ;;  %v3172_v3 = vmul.f32 %v3171_v51, %v7425_v45  ;;  %v3457_v55 = vrot.slane %v3455_v38, 1 }
 0x7d6   : > { %v3161_v31 = vadd.f32 %v7563_v1, %v3153_v40  ;;  %v4663_v40 = vstv %s7707_s29  ;;  %s7803_s29 = sld [smem:[#allocation12 + $0x283]] }
 0x7d7   : > { %4643 = vrot.lane.b32.xlu1 %v4641_v29, %s6191_s14  ;;  %4926 = vrot.lane.b32.xlu0 %v4924_v34, %s6191_s14  ;;  %v3565_v29 = vstv %s7633_s15  ;;  %v3839_v34 = vstv %s7635_s22  ;;  %s7722_s15 = sld [smem:[#allocation12 + $0x183]]  ;;  %v3174_v17 = vrot.slane %v3172_v3, 1  ;;  %s7727_s22 = sld [smem:[#allocation12 + $0x30e]]  ;;  %v3480_v3 = vmul.f32 %v3479_v13, %v7425_v45 }
 0x7d8   : > { %v3169_v14 = vadd.f32 %v7561_v46, %v3161_v31  ;;  %v5907_v46 = vpop.f32.mrb[15].mxu0  ;;  %v4122_v31 = vstv %s7714_s27  ;;  %s7810_s27 = sld [smem:[#allocation12 + $0x189]] }
 0x7d9   : > { %v7574_v28 = vpop.permute.xlu1 %3449  ;;  %v7576_v52 = vpop.permute.xlu0 %3441 }
 0x7da   : > { %v3444_v21 = vadd.f32 %v7576_v52, %v3436_v23 }
 0x7db   : > { %4651 = vrot.lane.b32.xlu1 %v4649_v33, %s6192_s17  ;;  %2969 = vrot.lane.b32.xlu0 %v2968_v59, %s6191_s14  ;;  %v2891_v33 = vrot.slane %v2889_v15, 1  ;;  %v3823_v59 = vstv %s7647_s13  ;;  %s7749_s13 = sld [smem:[#allocation12 + $0x211]] }
 0x7dc   : > { %v3824_v1 = vmul.f32 %v3823_v59, %v7447_v8  ;;  %v2939_v59 = vmul.f32 %v2938_v50, %v7447_v8 }
 0x7dd   : > { %v7591_v24 = vpop.permute.xlu1 %3732  ;;  %v7593_v54 = vpop.permute.xlu0 %3724  ;;  %v2893_v7 = vadd.f32 %v2891_v33, %v2886_v20  ;;  %v3176_v20 = vadd.f32 %v3174_v17, %v3169_v14  ;;  %v3221_v14 = vstv %s7732_s28  ;;  %s7819_s28 = sld [smem:[#allocation12 + $0x380]] }
 0x7de   : > { %v3826_v41 = vrot.slane %v3824_v1, 1  ;;  %v3737_v1 = vstv %s7722_s15  ;;  %v3222_v46 = vmul.f32 %v3221_v14, %v7447_v8  ;;  %s7814_s15 = sld [smem:[#allocation12 + $0x390]] }
 0x7df   : > { %4934 = vrot.lane.b32.xlu1 %v4932_v42, %s6192_s17  ;;  %2994 = vrot.lane.b32.xlu0 %v2993_v19, %s6191_s14  ;;  %v3566_v42 = vmul.f32 %v3565_v29, %v7447_v8  ;;  %v3840_v19 = vmul.f32 %v3839_v34, %v7447_v8  ;;  %v3738_v23 = vmul.f32 %v3737_v1, %v7425_v45 }
 0x7e1   : > { %v7608_v62 = vpop.permute.xlu1 %4007  ;;  %v7610_v16 = vpop.permute.xlu0 %4015  ;;  %v4131_v50 = vstv %s7749_s13  ;;  %v3740_v13 = vrot.slane %v3738_v23, 1  ;;  %v4303_v23 = vstv %s7803_s29  ;;  %s7841_s13 = sld [smem:[#allocation12 + $0x383]] }
 0x7e2   : > { %s7892_s29 = sld [smem:[#allocation12 + $0x113]] }
 0x7e3   : > { %2978 = vrot.lane.b32.xlu1 %v2977_v49, %s6192_s17  ;;  %3252 = vrot.lane.b32.xlu0 %v3251_v0, %s6191_s14  ;;  %v3718_v49 = vstv %s7660_s20  ;;  %v3196_v0 = vstv %s7664_s21  ;;  %s7759_s21 = sld [smem:[#allocation12 + $0x200]]  ;;  %s7773_s20 = sld [smem:[#allocation12 + $0x109]] }
 0x7e4   : > { %v3197_v34 = vmul.f32 %v3196_v0, %v7425_v45 }
 0x7e5   : > { %v7625_v30 = vpop.permute.xlu1 %4290  ;;  %v7627_v61 = vpop.permute.xlu0 %4298 }
 0x7e6   : > { %v3199_v56 = vrot.slane %v3197_v34, 2 }
 0x7e7   : > { %3003 = vrot.lane.b32.xlu1 %v3002_v57, %s6192_s17  ;;  %3277 = vrot.lane.b32.xlu0 %v3276_v18, %s6191_s14  ;;  %v3568_v57 = vrot.slane %v3566_v42, 2  ;;  %v3842_v18 = vrot.slane %v3840_v19, 2 }
 0x7e9   : > { %v7649_v11 = vpop.permute.xlu1 %4573  ;;  %v7651_v10 = vpop.permute.xlu0 %4856  ;;  %v4001_v38 = vstv %s7759_s21  ;;  %s7846_s21 = sld [smem:[#allocation12 + $0x13]] }
 0x7eb   : > { %3261 = vrot.lane.b32.xlu1 %v3260_v6, %s6192_s17  ;;  %3535 = vrot.lane.b32.xlu0 %v3534_v26, %s6191_s14  ;;  %v4106_v6 = vstv %s7685_s24  ;;  %v4389_v26 = vstv %s7687_s26  ;;  %s7779_s24 = sld [smem:[#allocation12 + $0x280]] }
 0x7ec   : > { %v4107_v51 = vmul.f32 %v4106_v6, %v7447_v8  ;;  %v4390_v19 = vmul.f32 %v4389_v26, %v7447_v8  ;;  %v4946_v6 = vstv %s7736_s12  ;;  %v3482_v26 = vrot.slane %v3480_v3, 2  ;;  %s7791_s26 = sld [smem:[#allocation12 + $0x310]]  ;;  %s7825_s12 = sld [smem:[#allocation12 + $0x206]] }
 0x7ed   : > { %v7670_v37 = vpop.permute.xlu1 %4581  ;;  %v2900_v47 = vpop.permute.xlu0 %2899 }
 0x7ee   : > { %v2902_v32 = vadd.f32 %v2900_v47, %v2893_v7  ;;  %v4100_v47 = vrot.slane %v4098_v48, 1  ;;  %v3452_v7 = vadd.f32 %v7574_v28, %v3444_v21  ;;  %v4664_v48 = vmul.f32 %v4663_v40, %v7447_v8 }
 0x7ef   : > { %3286 = vrot.lane.b32.xlu1 %v3285_v25, %s6192_s17  ;;  %3560 = vrot.lane.b32.xlu0 %v3559_v44, %s6191_s14  ;;  %v3849_v25 = vmul.f32 %v3848_v39, %v7447_v8  ;;  %v4381_v44 = vmul.f32 %v4380_v12, %v7447_v8  ;;  %v4123_v39 = vmul.f32 %v4122_v31, %v7447_v8  ;;  %v4020_v40 = vstv %s7765_s16  ;;  %s7850_s16 = sld [smem:[#allocation12 + $0x286]] }
 0x7f0   : > { %v4002_v31 = vmul.f32 %v4001_v38, %v7425_v45  ;;  %v4021_v3 = vmul.f32 %v4020_v40, %v7425_v45 }
 0x7f1   : > { %v7692_v4 = vpop.permute.xlu1 %4864  ;;  %v2925_v63 = vpop.permute.xlu0 %2924  ;;  %v4383_v42 = vrot.slane %v4381_v44, 1  ;;  %v4947_v44 = vmul.f32 %v4946_v6, %v7447_v8 }
 0x7f2   : > { %v4045_v38 = vstv %s7825_s12  ;;  %s7925_s12 = sld [smem:[#allocation12 + $0x194]] }
 0x7f3   : > { %3544 = vrot.lane.b32.xlu1 %v3543_v35, %s6192_s17  ;;  %3818 = vrot.lane.b32.xlu0 %v3817_v27, %s6191_s14  ;;  %v3851_v27 = vrot.slane %v3849_v25, 2  ;;  %v4125_v25 = vrot.slane %v4123_v39, 2 }
 0x7f5   : > { %v2909_v36 = vpop.permute.xlu1 %2908  ;;  %v3183_v2 = vpop.permute.xlu0 %3182 }
 0x7f6   : > { %v2911_v9 = vadd.f32 %v2909_v36, %v2902_v32  ;;  %v3185_v33 = vadd.f32 %v3183_v2, %v3176_v20  ;;  %v3719_v32 = vmul.f32 %v3718_v49, %v7425_v45  ;;  %v4109_v36 = vrot.slane %v4107_v51, 1 }
 0x7f7   : > { %3569 = vrot.lane.b32.xlu1 %v3568_v57, %s6192_s17  ;;  %3843 = vrot.lane.b32.xlu0 %v3842_v18, %s6191_s14  ;;  %v4672_v2 = vstv %s7727_s22  ;;  %v4392_v18 = vrot.slane %v4390_v19, 1  ;;  %v4955_v51 = vstv %s7768_s19  ;;  %s7816_s22 = sld [smem:[#allocation12 + $0x391]]  ;;  %s7864_s19 = sld [smem:[#allocation12 + $0x94]] }
 0x7f8   : > { %v2918_v58 = vadd.f32 %v2916_v5, %v2911_v9  ;;  %v3727_v5 = vadd.f32 %v7593_v54, %v3719_v32  ;;  %v3459_v9 = vadd.f32 %v3457_v55, %v3452_v7  ;;  %v3504_v19 = vstv %s7773_s20  ;;  %s7866_s20 = sld [smem:[#allocation12 + $0x209]] }
 0x7f9   : > { %v2934_v53 = vpop.permute.xlu1 %2933  ;;  %v3208_v15 = vpop.permute.xlu0 %3207  ;;  %v4284_v32 = vstv %s7779_s24  ;;  %v4956_v1 = vmul.f32 %v4955_v51, %v7447_v8  ;;  %s7878_s24 = sld [smem:[#allocation12 + $0x306]] }
 0x7fa   : > { %v2927_v29 = vadd.f32 %v2925_v63, %v2918_v58  ;;  %v3762_v58 = vstv %s7743_s30  ;;  %v3735_v21 = vadd.f32 %v7591_v24, %v3727_v5  ;;  %s7839_s30 = sld [smem:[#allocation12 + $0x303]] }
 0x7fb   : > { %3827 = vrot.lane.b32.xlu1 %v3826_v41, %s6192_s17  ;;  %4101 = vrot.lane.b32.xlu0 %v4100_v47, %s6191_s14  ;;  %v4673_v41 = vmul.f32 %v4672_v2, %v7447_v8  ;;  %v4666_v47 = vrot.slane %v4664_v48, 1  ;;  %v3505_v2 = vmul.f32 %v3504_v19, %v7447_v8  ;;  %v4046_v19 = vmul.f32 %v4045_v38, %v7425_v45 }
 0x7fc   : > { %v2936_v52 = vadd.f32 %v2934_v53, %v2927_v29  ;;  %v4405_v29 = vstv %s7752_s18  ;;  %v3742_v7 = vadd.f32 %v3740_v13, %v3735_v21  ;;  %s7844_s18 = sld [smem:[#allocation12 + $0x14]]  ;;  %v4971_v21 = vstv %s7814_s15  ;;  %s7908_s15 = sld [smem:[#allocation12 + $0x193]] }
 0x7fd   : > { %v3192_v63 = vpop.permute.xlu1 %3191  ;;  %v3466_v35 = vpop.permute.xlu0 %3465 }
 0x7fe   : > { %v3194_v60 = vadd.f32 %v3192_v63, %v3185_v33  ;;  %v7754_v0 = vadd.f32 %v2939_v59, %v2936_v52  ;;  %v3468_v17 = vadd.f32 %v3466_v35, %v3459_v9  ;;  %v4675_v33 = vrot.slane %v4673_v41, 1 }
 0x7ff   : > { %3852 = vrot.lane.b32.xlu1 %v3851_v27, %s6192_s17  ;;  %4384 = vrot.lane.b32.xlu0 %v4383_v42, %s6191_s14  ;;  %v3763_v52 = vmul.f32 %v3762_v58, %v7425_v45  ;;  %v4949_v35 = vrot.slane %v4947_v44, 1  ;;  %v4132_v27 = vmul.f32 %v4131_v50, %v7447_v8  ;;  %v4406_v42 = vmul.f32 %v4405_v29, %v7447_v8 }
 0x800   : > { %v3201_v28 = vadd.f32 %v3199_v56, %v3194_v60  ;;  %v4414_v60 = vstv %s7777_s25  ;;  %v4688_v9 = vstv %s7791_s26  ;;  %v4958_v41 = vrot.slane %v4956_v1, 1  ;;  %s7870_s25 = sld [smem:[#allocation12 + $0x93]]  ;;  %s7880_s26 = sld [smem:[#allocation12 + $0x386]] }
 0x801   : > { %v3217_v49 = vpop.permute.xlu1 %3216  ;;  %v3491_v57 = vpop.permute.xlu0 %3490  ;;  %v4134_v48 = vrot.slane %v4132_v27, 2  ;;  %v4408_v39 = vrot.slane %v4406_v42, 2  ;;  %v4415_v14 = vmul.f32 %v4414_v60, %v7447_v8  ;;  %v4850_v29 = vstv %s7819_s28  ;;  %s7923_s28 = sld [smem:[#allocation12 + $0x293]] }
 0x802   : > { %v3210_v12 = vadd.f32 %v3208_v15, %v3201_v28  ;;  %v4010_v28 = vadd.f32 %v7608_v62, %v4002_v31  ;;  %v4567_v62 = vstv %s7798_s23  ;;  %s7888_s23 = sld [smem:[#allocation12 + $0x289]] }
 0x803   : > { %4110 = vrot.lane.b32.xlu1 %v4109_v36, %s6192_s17  ;;  %4393 = vrot.lane.b32.xlu0 %v4392_v18, %s6192_s17  ;;  %v4568_v1 = vmul.f32 %v4567_v62, %v7425_v45 }
 0x804   : > { %v3219_v54 = vadd.f32 %v3217_v49, %v3210_v12  ;;  %v3765_v49 = vrot.slane %v3763_v52, 2  ;;  %v4697_v12 = vstv %s7793_s10  ;;  %v4018_v58 = vadd.f32 %v7610_v16, %v4010_v28  ;;  %s7886_s10 = sld [smem:[#allocation12 + $0x114]] }
 0x805   : > { %v3475_v53 = vpop.permute.xlu1 %3474  ;;  %v3749_v15 = vpop.permute.xlu0 %3748  ;;  %v3787_v16 = vstv %s7810_s27  ;;  %s7902_s27 = sld [smem:[#allocation12 + $0x213]] }
 0x806   : > { %v3477_v20 = vadd.f32 %v3475_v53, %v3468_v17  ;;  %v7795_v34 = vadd.f32 %v3222_v46, %v3219_v54  ;;  %v3751_v55 = vadd.f32 %v3749_v15, %v3742_v7  ;;  %v4023_v54 = vrot.slane %v4021_v3, 1 }
 0x807   : > { %4667 = vrot.lane.b32.xlu1 %v4666_v47, %s6191_s14  ;;  %4126 = vrot.lane.b32.xlu0 %v4125_v25, %s6191_s14  ;;  %v4417_v15 = vrot.slane %v4415_v14, 2  ;;  %v4689_v47 = vmul.f32 %v4688_v9, %v7447_v8  ;;  %v4698_v25 = vmul.f32 %v4697_v12, %v7447_v8  ;;  %v4586_v7 = vstv %s7839_s30  ;;  %s7937_s30 = sld [smem:[#allocation12 + $0x389]] }
 0x808   : > { %v3484_v24 = vadd.f32 %v3482_v26, %v3477_v20  ;;  %v4285_v26 = vmul.f32 %v4284_v32, %v7425_v45  ;;  %v4980_v20 = vstv %s7816_s22  ;;  %v4025_v13 = vadd.f32 %v4023_v54, %v4018_v58  ;;  %s7920_s22 = sld [smem:[#allocation12 + $0x309]] }
 0x809   : > { %v3500_v59 = vpop.permute.xlu1 %3499  ;;  %v3774_v63 = vpop.permute.xlu0 %3773  ;;  %v3020_v32 = vstv %s7844_s18  ;;  %v3012_v3 = vstv %s7846_s21  ;;  %v4576_v12 = vadd.f32 %v7649_v11, %v4568_v1  ;;  %v3303_v54 = vstv %s7864_s19  ;;  %s7942_s18 = sld [smem:[#allocation12 + $0x313]]  ;;  %s7944_s21 = sld [smem:[#allocation12 + $0x214]] }
 0x80a   : > { %v3493_v56 = vadd.f32 %v3491_v57, %v3484_v24  ;;  %v4293_v44 = vadd.f32 %v7625_v30, %v4285_v26  ;;  %v4304_v24 = vmul.f32 %v4303_v23, %v7425_v45  ;;  %v4691_v30 = vrot.slane %v4689_v47, 2  ;;  %s7954_s19 = sld [smem:[#allocation12 + $0x8c]] }
 0x80b   : > { %4676 = vrot.lane.b32.xlu1 %v4675_v33, %s6192_s17  ;;  %4950 = vrot.lane.b32.xlu0 %v4949_v35, %s6191_s14  ;;  %v3788_v33 = vmul.f32 %v3787_v16, %v7447_v8  ;;  %v4981_v35 = vmul.f32 %v4980_v20, %v7447_v8  ;;  %v3013_v9 = vmul.f32 %v3012_v3, %v7495_v22  ;;  %v4611_v16 = vstv %s7878_s24  ;;  %s7969_s24 = sld [smem:[#allocation12 + $0x10c]] }
 0x80c   : > { %v3502_v36 = vadd.f32 %v3500_v59, %v3493_v56  ;;  %v4700_v59 = vrot.slane %v4698_v25, 2  ;;  %v4301_v27 = vadd.f32 %v7627_v61, %v4293_v44  ;;  %v4869_v56 = vstv %s7841_s13  ;;  %s7939_s13 = sld [smem:[#allocation12 + $0xc]] }
 0x80d   : > { %v3758_v57 = vpop.permute.xlu1 %3757  ;;  %v4032_v18 = vpop.permute.xlu0 %4031  ;;  %v4306_v60 = vrot.slane %v4304_v24, 1  ;;  %v4870_v14 = vmul.f32 %v4869_v56, %v7425_v45  ;;  %v3295_v25 = vstv %s7870_s25  ;;  %v4894_v44 = vstv %s7880_s26  ;;  %s7960_s25 = sld [smem:[#allocation12 + $0x17]]  ;;  %s7973_s26 = sld [smem:[#allocation12 + $0x314]] }
 0x80e   : > { %v3760_v5 = vadd.f32 %v3758_v57, %v3751_v55  ;;  %v7832_v6 = vadd.f32 %v3505_v2, %v3502_v36  ;;  %v4034_v42 = vadd.f32 %v4032_v18, %v4025_v13  ;;  %v4983_v2 = vrot.slane %v4981_v35, 2 }
 0x80f   : > { %4135 = vrot.lane.b32.xlu1 %v4134_v48, %s6192_s17  ;;  %4409 = vrot.lane.b32.xlu0 %v4408_v39, %s6191_s14  ;;  %v4851_v57 = vmul.f32 %v4850_v29, %v7425_v45  ;;  %v4308_v18 = vadd.f32 %v4306_v60, %v4301_v27  ;;  %v4587_v48 = vmul.f32 %v4586_v7, %v7425_v45  ;;  %v4048_v39 = vrot.slane %v4046_v19, 2 }
 0x810   : > { %v3767_v17 = vadd.f32 %v3765_v49, %v3760_v5  ;;  %v4328_v49 = vstv %s7850_s16  ;;  %v3021_v5 = vmul.f32 %v3020_v32, %v7495_v22  ;;  %v3304_v38 = vmul.f32 %v3303_v54, %v7495_v22  ;;  %s7952_s16 = sld [smem:[#allocation12 + $0x393]] }
 0x811   : > { %v3783_v46 = vpop.permute.xlu1 %3782  ;;  %v4315_v53 = vpop.permute.xlu0 %4314  ;;  %v4329_v23 = vmul.f32 %v4328_v49, %v7425_v45  ;;  %v4589_v11 = vrot.slane %v4587_v48, 1  ;;  %v3296_v13 = vmul.f32 %v3295_v25, %v7495_v22  ;;  %v4353_v24 = vstv %s7888_s23  ;;  %s7983_s23 = sld [smem:[#allocation12 + $0x18c]] }
 0x812   : > { %v3776_v50 = vadd.f32 %v3774_v63, %v3767_v17  ;;  %v4972_v63 = vmul.f32 %v4971_v21, %v7447_v8  ;;  %v4317_v26 = vadd.f32 %v4315_v53, %v4308_v18  ;;  %v4872_v53 = vrot.slane %v4870_v14, 1 }
 0x813   : > { %4959 = vrot.lane.b32.xlu1 %v4958_v41, %s6192_s17  ;;  %4418 = vrot.lane.b32.xlu0 %v4417_v15, %s6192_s17  ;;  %v4070_v41 = vstv %s7866_s20  ;;  %v4584_v15 = vadd.f32 %v7670_v37, %v4576_v12  ;;  %v4331_v21 = vrot.slane %v4329_v23, 2  ;;  %v4354_v32 = vmul.f32 %v4353_v24, %v7447_v8  ;;  %s7958_s20 = sld [smem:[#allocation12 + $0x294]] }
 0x814   : > { %v3785_v40 = vadd.f32 %v3783_v46, %v3776_v50  ;;  %v4974_v36 = vrot.slane %v4972_v63, 2  ;;  %v4859_v46 = vadd.f32 %v7651_v10, %v4851_v57  ;;  %v4071_v37 = vmul.f32 %v4070_v41, %v7447_v8 }
 0x815   : > { %v4041_v52 = vpop.permute.xlu1 %4040  ;;  %v4324_v51 = vpop.permute.xlu0 %4323  ;;  %v4636_v12 = vstv %s7920_s22  ;;  %v4152_v25 = vstv %s7944_s21  ;;  %v3044_v24 = vstv %s7960_s25  ;;  %s8004_s22 = sld [smem:[#allocation12 + $0x20c]]  ;;  %s8045_s21 = sld [smem:[#allocation12 + $0x11a]] }
 0x816   : > { %v7872_v31 = vadd.f32 %v3788_v33, %v3785_v40  ;;  %v4043_v61 = vadd.f32 %v4041_v52, %v4034_v42  ;;  %v4326_v47 = vadd.f32 %v4324_v51, %v4317_v26  ;;  %v4867_v50 = vadd.f32 %v7692_v4, %v4859_v46  ;;  %s8065_s25 = sld [smem:[#allocation12 + $0x116]] }
 0x817   : > { %4692 = vrot.lane.b32.xlu1 %v4691_v30, %s6191_s14  ;;  %4701 = vrot.lane.b32.xlu0 %v4700_v59, %s6192_s17  ;;  %v3586_v40 = vstv %s7886_s10  ;;  %v4591_v33 = vadd.f32 %v4589_v11, %v4584_v15  ;;  %v3578_v30 = vstv %s7892_s29  ;;  %v4612_v4 = vmul.f32 %v4611_v16, %v7425_v45  ;;  %s7975_s10 = sld [smem:[#allocation12 + $0x1a]]  ;;  %s7987_s29 = sld [smem:[#allocation12 + $0x394]] }
 0x818   : > { %v4050_v62 = vadd.f32 %v4048_v39, %v4043_v61  ;;  %v4333_v51 = vadd.f32 %v4331_v21, %v4326_v47  ;;  %v4895_v59 = vmul.f32 %v4894_v44, %v7425_v45  ;;  %v4874_v35 = vadd.f32 %v4872_v53, %v4867_v50 }
 0x819   : > { %v4598_v28 = vpop.permute.xlu1 %4597  ;;  %v4057_v55 = vpop.permute.xlu0 %4056  ;;  %v3587_v56 = vmul.f32 %v3586_v40, %v7495_v22  ;;  %v3579_v60 = vmul.f32 %v3578_v30, %v7495_v22  ;;  %v4144_v61 = vstv %s7902_s27  ;;  %v4637_v41 = vmul.f32 %v4636_v12, %v7447_v8  ;;  %s7994_s27 = sld [smem:[#allocation12 + $0x97]] }
 0x81a   : > { %v4059_v10 = vadd.f32 %v4057_v55, %v4050_v62  ;;  %v4600_v63 = vadd.f32 %v4598_v28, %v4591_v33  ;;  %v3861_v28 = vstv %s7908_s15  ;;  %v4897_v57 = vrot.slane %v4895_v59, 2  ;;  %s7996_s15 = sld [smem:[#allocation12 + $0x16]] }
 0x81b   : > { %4975 = vrot.lane.b32.xlu1 %v4974_v36, %s6191_s14  ;;  %4984 = vrot.lane.b32.xlu0 %v4983_v2, %s6192_s17  ;;  %v4614_v36 = vrot.slane %v4612_v4, 2  ;;  %v4145_v48 = vmul.f32 %v4144_v61, %v7495_v22  ;;  %v3862_v39 = vmul.f32 %v3861_v28, %v7495_v22  ;;  %v4919_v46 = vstv %s7937_s30  ;;  %s8018_s30 = sld [smem:[#allocation12 + $0x28c]] }
 0x81c   : > { %v4710_v47 = vstv %s7942_s18  ;;  %v2958_v11 = vstv %s7939_s13  ;;  %v4920_v44 = vmul.f32 %v4919_v46, %v7447_v8  ;;  %v4435_v40 = vstv %s7958_s20  ;;  %s8030_s13 = sld [smem:[#allocation12 + $0x117]]  ;;  %s8032_s18 = sld [smem:[#allocation12 + $0x96]] }
 0x81d   : > { %v4607_v58 = vpop.permute.xlu1 %4606  ;;  %v4881_v17 = vpop.permute.xlu0 %4880  ;;  %v4711_v21 = vmul.f32 %v4710_v47, %v7495_v22  ;;  %v4090_v12 = vstv %s8004_s22  ;;  %s8063_s20 = sld [smem:[#allocation12 + $0x196]]  ;;  %s8113_s22 = sld [smem:[#allocation12 + $0x217]] }
 0x81e   : > { %v4609_v45 = vadd.f32 %v4607_v58, %v4600_v63  ;;  %v4883_v3 = vadd.f32 %v4881_v17, %v4874_v35  ;;  %v4436_v63 = vmul.f32 %v4435_v40, %v7495_v22  ;;  %v3045_v35 = vmul.f32 %v3044_v24, %v7495_v22 }
 0x81f   : > { %3023 = vrot.lane.b32.xlu1 %v3021_v5, %s6192_s17  ;;  %3015 = vrot.lane.b32.xlu0 %v3013_v9, %s6191_s14  ;;  %v4427_v5 = vstv %s7923_s28  ;;  %v3869_v9 = vstv %s7925_s12  ;;  %s8009_s28 = sld [smem:[#allocation12 + $0x9a]]  ;;  %s8014_s12 = sld [smem:[#allocation12 + $0x19]] }
 0x820   : > { %v4616_v14 = vadd.f32 %v4614_v36, %v4609_v45  ;;  %v4428_v17 = vmul.f32 %v4427_v5, %v7495_v22  ;;  %v3870_v54 = vmul.f32 %v3869_v9, %v7495_v22  ;;  %v3807_v45 = vstv %s7983_s23  ;;  %s8084_s23 = sld [smem:[#allocation12 + $0x119]] }
 0x821   : > { %v4066_v20 = vpop.permute.xlu1 %4065  ;;  %v4340_v29 = vpop.permute.xlu0 %4339  ;;  %v3047_v28 = vrot.slane %v3045_v35, 1  ;;  %v4373_v47 = vstv %s8018_s30  ;;  %s8130_s30 = sld [smem:[#allocation12 + $0x316]] }
 0x822   : > { %v4068_v52 = vadd.f32 %v4066_v20, %v4059_v10  ;;  %v4342_v27 = vadd.f32 %v4340_v29, %v4333_v51  ;;  %v2959_v20 = vmul.f32 %v2958_v11, %v7447_v8  ;;  %v3241_v29 = vstv %s7954_s19  ;;  %s8054_s19 = sld [smem:[#allocation12 + $0x30c]] }
 0x823   : > { %3306 = vrot.lane.b32.xlu1 %v3304_v38, %s6192_s17  ;;  %3298 = vrot.lane.b32.xlu0 %v3296_v13, %s6191_s14  ;;  %v4993_v13 = vstv %s7952_s16  ;;  %v3242_v51 = vmul.f32 %v3241_v29, %v7447_v8  ;;  %s8048_s16 = sld [smem:[#allocation12 + $0x99]] }
 0x824   : > { %v7931_v42 = vadd.f32 %v4071_v37, %v4068_v52  ;;  %v4153_v37 = vmul.f32 %v4152_v25, %v7495_v22  ;;  %v4994_v59 = vmul.f32 %v4993_v13, %v7495_v22  ;;  %v3318_v13 = vstv %s8032_s18  ;;  %s8136_s18 = sld [smem:[#allocation12 + $0x10f]] }
 0x825   : > { %v4890_v19 = vpop.permute.xlu1 %4889  ;;  %v4349_v7 = vpop.permute.xlu0 %4348  ;;  %v3060_v46 = vstv %s8014_s12  ;;  %s8126_s12 = sld [smem:[#allocation12 + $0x12]] }
 0x826   : > { %v4351_v1 = vadd.f32 %v4349_v7, %v4342_v27  ;;  %v4892_v55 = vadd.f32 %v4890_v19, %v4883_v3  ;;  %v3524_v27 = vstv %s7969_s24  ;;  %v3069_v7 = vstv %s7975_s10  ;;  %s8070_s24 = sld [smem:[#allocation12 + $0x38c]]  ;;  %s8081_s10 = sld [smem:[#allocation12 + $0x216]] }
 0x827   : > { %3589 = vrot.lane.b32.xlu1 %v3587_v56, %s6192_s17  ;;  %3581 = vrot.lane.b32.xlu0 %v3579_v60, %s6191_s14  ;;  %v2961_v56 = vrot.slane %v2959_v20, 1  ;;  %v3070_v36 = vmul.f32 %v3069_v7, %v7495_v22 }
 0x828   : > { %v7948_v2 = vadd.f32 %v4354_v32, %v4351_v1  ;;  %v4899_v62 = vadd.f32 %v4897_v57, %v4892_v55  ;;  %v3525_v32 = vmul.f32 %v3524_v27, %v7447_v8  ;;  %v3319_v27 = vmul.f32 %v3318_v13, %v7495_v22 }
 0x829   : > { %v4623_v49 = vpop.permute.xlu1 %4622  ;;  %v4906_v18 = vpop.permute.xlu0 %4905 }
 0x82a   : > { %v4625_v26 = vadd.f32 %v4623_v49, %v4616_v14  ;;  %v4908_v53 = vadd.f32 %v4906_v18, %v4899_v62  ;;  %v5001_v49 = vstv %s7987_s29  ;;  %v3327_v18 = vstv %s7994_s27  ;;  %s8097_s29 = sld [smem:[#allocation12 + $0x296]]  ;;  %s8099_s27 = sld [smem:[#allocation12 + $0x197]] }
 0x82b   : > { %4147 = vrot.lane.b32.xlu1 %v4145_v48, %s6191_s14  ;;  %3864 = vrot.lane.b32.xlu0 %v3862_v39, %s6191_s14  ;;  %v3035_v48 = vstv %s7996_s15  ;;  %v3808_v39 = vmul.f32 %v3807_v45, %v7447_v8  ;;  %v5002_v5 = vmul.f32 %v5001_v49, %v7495_v22  ;;  %v3884_v49 = vstv %s8063_s20  ;;  %s8110_s15 = sld [smem:[#allocation12 + $0x199]]  ;;  %s8157_s20 = sld [smem:[#allocation12 + $0x92]] }
 0x82d   : > { %v4632_v23 = vpop.permute.xlu1 %4631  ;;  %v2946_v58 = vpop.permute.xlu0 %2945  ;;  %v3810_v20 = vrot.slane %v3808_v39, 1 }
 0x82e   : > { %v4634_v15 = vadd.f32 %v4632_v23, %v4625_v26  ;;  %v2948_v33 = vadd.f32 %v2946_v58, %v7754_v0  ;;  %v4718_v0 = vstv %s7973_s26  ;;  %v3072_v23 = vrot.slane %v3070_v36, 2  ;;  %s8074_s26 = sld [smem:[#allocation12 + $0xf]] }
 0x82f   : > { %4430 = vrot.lane.b32.xlu1 %v4428_v17, %s6191_s14  ;;  %3872 = vrot.lane.b32.xlu0 %v3870_v54, %s6192_s17  ;;  %v4719_v55 = vmul.f32 %v4718_v0, %v7495_v22  ;;  %v3328_v58 = vmul.f32 %v3327_v18, %v7495_v22  ;;  %v3036_v17 = vmul.f32 %v3035_v48, %v7495_v22  ;;  %v3352_v54 = vstv %s8009_s28  ;;  %s8118_s28 = sld [smem:[#allocation12 + $0x8f]] }
 0x830   : > { %v7980_v16 = vadd.f32 %v4637_v41, %v4634_v15  ;;  %v4091_v15 = vmul.f32 %v4090_v12, %v7447_v8  ;;  %v3353_v11 = vmul.f32 %v3352_v54, %v7495_v22  ;;  %v4939_v48 = vstv %s8070_s24  ;;  %s8168_s24 = sld [smem:[#allocation12 + $0x18f]] }
 0x831   : > { %v4915_v50 = vpop.permute.xlu1 %4914  ;;  %v3229_v10 = vpop.permute.xlu0 %3228  ;;  %v3626_v54 = vstv %s8084_s23  ;;  %s8188_s23 = sld [smem:[#allocation12 + $0x112]] }
 0x832   : > { %v4917_v38 = vadd.f32 %v4915_v50, %v4908_v53  ;;  %v3231_v60 = vadd.f32 %v3229_v10, %v7795_v34  ;;  %v3244_v34 = vrot.slane %v3242_v51, 1  ;;  %v3330_v10 = vrot.slane %v3328_v58, 1 }
 0x833   : > { %4713 = vrot.lane.b32.xlu1 %v4711_v21, %s6191_s14  ;;  %4155 = vrot.lane.b32.xlu0 %v4153_v37, %s6192_s17  ;;  %v3038_v21 = vrot.slane %v3036_v17, 1  ;;  %v3061_v37 = vmul.f32 %v3060_v46, %v7495_v22  ;;  %v4093_v40 = vrot.slane %v4091_v15, 1  ;;  %v3355_v51 = vrot.slane %v3353_v11, 2 }
 0x834   : > { %v8001_v52 = vadd.f32 %v4920_v44, %v4917_v38  ;;  %v3610_v38 = vstv %s8030_s13  ;;  %v4167_v58 = vstv %s8081_s10  ;;  %s8132_s13 = sld [smem:[#allocation12 + $0x297]]  ;;  %s8177_s10 = sld [smem:[#allocation12 + $0x21a]] }
 0x835   : > { %v2954_v30 = vpop.permute.xlu1 %2953  ;;  %v3512_v4 = vpop.permute.xlu0 %3511  ;;  %v3611_v35 = vmul.f32 %v3610_v38, %v7495_v22 }
 0x836   : > { %v2956_v19 = vadd.f32 %v2954_v30, %v2948_v33  ;;  %v3514_v14 = vadd.f32 %v3512_v4, %v7832_v6  ;;  %v3527_v6 = vrot.slane %v3525_v32, 1 }
 0x837   : > { %4996 = vrot.lane.b32.xlu1 %v4994_v59, %s6191_s14  ;;  %4438 = vrot.lane.b32.xlu0 %v4436_v63, %s6192_s17  ;;  %v3063_v63 = vrot.slane %v3061_v37, 2  ;;  %v4450_v37 = vstv %s8097_s29  ;;  %s8191_s29 = sld [smem:[#allocation12 + $0x319]] }
 0x838   : > { %v8021_v61 = vadd.f32 %v2961_v56, %v2956_v19  ;;  %v3635_v19 = vstv %s8045_s21  ;;  %v4656_v56 = vstv %s8054_s19  ;;  %s8138_s21 = sld [smem:[#allocation12 + $0x219]]  ;;  %s8154_s19 = sld [smem:[#allocation12 + $0x396]] }
 0x839   : > { %v3237_v3 = vpop.permute.xlu1 %3236  ;;  %v3795_v1 = vpop.permute.xlu0 %3794  ;;  %v4657_v18 = vmul.f32 %v4656_v56, %v7447_v8 }
 0x83a   : > { %v3239_v57 = vadd.f32 %v3237_v3, %v3231_v60  ;;  %v3797_v25 = vadd.f32 %v3795_v1, %v7872_v31  ;;  %v4374_v31 = vmul.f32 %v4373_v47, %v7447_v8  ;;  %v3636_v60 = vmul.f32 %v3635_v19, %v7495_v22 }
 0x83b   : > { %3048 = vrot.lane.b32.xlu1 %v3047_v28, %s6192_s17  ;;  %4721 = vrot.lane.b32.xlu0 %v4719_v55, %s6192_s17  ;;  %v3613_v28 = vrot.slane %v3611_v35, 1  ;;  %v3321_v55 = vrot.slane %v3319_v27, 1  ;;  %v4176_v35 = vstv %s8113_s22  ;;  %s8202_s22 = sld [smem:[#allocation12 + $0x28f]] }
 0x83c   : > { %v8039_v9 = vadd.f32 %v3244_v34, %v3239_v57  ;;  %v4376_v7 = vrot.slane %v4374_v31, 1  ;;  %v3601_v57 = vstv %s8065_s25  ;;  %v3638_v39 = vrot.slane %v3636_v60, 2  ;;  %s8162_s25 = sld [smem:[#allocation12 + $0x317]] }
 0x83d   : > { %v3520_v26 = vpop.permute.xlu1 %3519  ;;  %v4078_v62 = vpop.permute.xlu0 %4077  ;;  %v4177_v56 = vmul.f32 %v4176_v35, %v7495_v22  ;;  %v3008_v60 = vstv %s8126_s12  ;;  %s8210_s12 = sld [smem:[#allocation12 + $0x29a]] }
 0x83e   : > { %v3522_v41 = vadd.f32 %v3520_v26, %v3514_v14  ;;  %v4080_v24 = vadd.f32 %v4078_v62, %v7931_v42  ;;  %v2983_v14 = vstv %s8074_s26  ;;  %v3885_v62 = vmul.f32 %v3884_v49, %v7495_v22  ;;  %s8175_s26 = sld [smem:[#allocation12 + $0x299]] }
 0x83f   : > { %3073 = vrot.lane.b32.xlu1 %v3072_v23, %s6192_s17  ;;  %5004 = vrot.lane.b32.xlu0 %v5002_v5, %s6192_s17  ;;  %v3602_v23 = vmul.f32 %v3601_v57, %v7495_v22  ;;  %v4192_v49 = vstv %s8138_s21  ;;  %s8232_s21 = sld [smem:[#allocation12 + $0x1d]] }
 0x840   : > { %v8058_v53 = vadd.f32 %v3527_v6, %v3522_v41  ;;  %v4659_v41 = vrot.slane %v4657_v18, 1  ;;  %v4168_v6 = vmul.f32 %v4167_v58, %v7495_v22  ;;  %v3887_v11 = vrot.slane %v3885_v62, 1 }
 0x841   : > { %v3803_v44 = vpop.permute.xlu1 %3802  ;;  %v4361_v50 = vpop.permute.xlu0 %4360 }
 0x842   : > { %v3805_v29 = vadd.f32 %v3803_v44, %v3797_v25  ;;  %v4363_v33 = vadd.f32 %v4361_v50, %v7948_v2  ;;  %v3343_v2 = vstv %s8048_s16  ;;  %v3604_v44 = vrot.slane %v3602_v23, 1  ;;  %s8146_s16 = sld [smem:[#allocation12 + $0x19a]] }
 0x843   : > { %3331 = vrot.lane.b32.xlu1 %v3330_v10, %s6192_s17  ;;  %3039 = vrot.lane.b32.xlu0 %v3038_v21, %s6191_s14  ;;  %v3344_v36 = vmul.f32 %v3343_v2, %v7495_v22  ;;  %v2984_v50 = vmul.f32 %v2983_v14, %v7447_v8  ;;  %v3627_v10 = vmul.f32 %v3626_v54, %v7495_v22  ;;  %v4170_v38 = vrot.slane %v4168_v6, 1 }
 0x844   : > { %v8076_v30 = vadd.f32 %v3810_v20, %v3805_v29  ;;  %v3893_v20 = vstv %s8099_s27  ;;  %s8193_s27 = sld [smem:[#allocation12 + $0x397]] }
 0x845   : > { %v4086_v4 = vpop.permute.xlu1 %4085  ;;  %v4369_v59 = vpop.permute.xlu0 %4368  ;;  %v3346_v26 = vrot.slane %v3344_v36, 2  ;;  %v3549_v36 = vstv %s8136_s18  ;;  %s8229_s18 = sld [smem:[#allocation12 + $0x30f]] }
 0x846   : > { %v4088_v0 = vadd.f32 %v4086_v4, %v4080_v24  ;;  %v4371_v42 = vadd.f32 %v4369_v59, %v4363_v33  ;;  %v3629_v24 = vrot.slane %v3627_v10, 2  ;;  %v4451_v33 = vmul.f32 %v4450_v37, %v7495_v22 }
 0x847   : > { %3356 = vrot.lane.b32.xlu1 %v3355_v51, %s6192_s17  ;;  %3064 = vrot.lane.b32.xlu0 %v3063_v63, %s6191_s14  ;;  %v3894_v51 = vmul.f32 %v3893_v20, %v7495_v22  ;;  %v3909_v4 = vstv %s8110_s15  ;;  %v2986_v59 = vrot.slane %v2984_v50, 2  ;;  %v3550_v54 = vmul.f32 %v3549_v36, %v7447_v8  ;;  %s8198_s15 = sld [smem:[#allocation12 + $0x20f]] }
 0x848   : > { %v8090_v32 = vadd.f32 %v4093_v40, %v4088_v0  ;;  %v8092_v45 = vadd.f32 %v4376_v7, %v4371_v42  ;;  %v3910_v19 = vmul.f32 %v3909_v4, %v7495_v22  ;;  %v4453_v2 = vrot.slane %v4451_v33, 1 }
 0x849   : > { %v4644_v3 = vpop.permute.xlu1 %4643  ;;  %v4927_v1 = vpop.permute.xlu0 %4926  ;;  %v3896_v7 = vrot.slane %v3894_v51, 1  ;;  %v3918_v62 = vstv %s8146_s16  ;;  %v4742_v10 = vstv %s8162_s25  ;;  %s8240_s16 = sld [smem:[#allocation12 + $0x39a]] }
 0x84a   : > { %v4646_v34 = vadd.f32 %v4644_v3, %v7980_v16  ;;  %v4940_v16 = vmul.f32 %v4939_v48, %v7447_v8  ;;  %v4929_v46 = vadd.f32 %v4927_v1, %v8001_v52  ;;  %v3912_v48 = vrot.slane %v3910_v19, 2  ;;  %s8264_s25 = sld [smem:[#allocation12 + $0x212]] }
 0x84b   : > { %3614 = vrot.lane.b32.xlu1 %v3613_v28, %s6192_s17  ;;  %3322 = vrot.lane.b32.xlu0 %v3321_v55, %s6191_s14  ;;  %v4733_v28 = vstv %s8130_s30  ;;  %v4459_v55 = vstv %s8132_s13  ;;  %v4743_v51 = vmul.f32 %v4742_v10, %v7495_v22  ;;  %s8217_s30 = sld [smem:[#allocation12 + $0x192]] }
 0x84c   : > { %v4942_v52 = vrot.slane %v4940_v16, 1  ;;  %v3919_v16 = vmul.f32 %v3918_v62, %v7495_v22  ;;  %s8224_s13 = sld [smem:[#allocation12 + $0x31a]] }
 0x84d   : > { %v4652_v5 = vpop.permute.xlu1 %4651  ;;  %v2970_v12 = vpop.permute.xlu0 %2969 }
 0x84e   : > { %v4654_v17 = vadd.f32 %v4652_v5, %v4646_v34  ;;  %v2972_v29 = vadd.f32 %v2970_v12, %v8021_v61  ;;  %v3266_v61 = vstv %s8118_s28  ;;  %v3009_v34 = vmul.f32 %v3008_v60, %v7495_v22  ;;  %s8208_s28 = sld [smem:[#allocation12 + $0x399]] }
 0x84f   : > { %3639 = vrot.lane.b32.xlu1 %v3638_v39, %s6192_s17  ;;  %3347 = vrot.lane.b32.xlu0 %v3346_v26, %s6191_s14  ;;  %v3267_v1 = vmul.f32 %v3266_v61, %v7447_v8  ;;  %v4179_v5 = vrot.slane %v4177_v56, 1  ;;  %v4734_v12 = vmul.f32 %v4733_v28, %v7495_v22  ;;  %v4460_v26 = vmul.f32 %v4459_v55, %v7495_v22 }
 0x850   : > { %v8122_v15 = vadd.f32 %v4659_v41, %v4654_v17  ;;  %v4193_v41 = vmul.f32 %v4192_v49, %v7495_v22  ;;  %v3921_v33 = vrot.slane %v3919_v16, 2  ;;  %v3574_v56 = vstv %s8188_s23  ;;  %s8281_s23 = sld [smem:[#allocation12 + $0x19c]] }
 0x851   : > { %v4935_v47 = vpop.permute.xlu1 %4934  ;;  %v2995_v25 = vpop.permute.xlu0 %2994  ;;  %v3269_v23 = vrot.slane %v3267_v1, 2  ;;  %v5025_v1 = vstv %s8193_s27  ;;  %v4115_v55 = vstv %s8198_s15  ;;  %s8292_s27 = sld [smem:[#allocation12 + $0x21c]] }
 0x852   : > { %v4937_v21 = vadd.f32 %v4935_v47, %v4929_v46  ;;  %v4736_v47 = vrot.slane %v4734_v12, 1  ;;  %v5026_v12 = vmul.f32 %v5025_v1, %v7495_v22  ;;  %s8294_s15 = sld [smem:[#allocation12 + $0x11c]] }
 0x853   : > { %3888 = vrot.lane.b32.xlu1 %v3887_v11, %s6191_s14  ;;  %3605 = vrot.lane.b32.xlu0 %v3604_v44, %s6191_s14  ;;  %v5016_v11 = vstv %s8154_s19  ;;  %v3291_v44 = vstv %s8157_s20  ;;  %s8252_s19 = sld [smem:[#allocation12 + $0x9d]]  ;;  %s8261_s20 = sld [smem:[#allocation12 + $0x38f]] }
 0x854   : > { %v8141_v13 = vadd.f32 %v4942_v52, %v4937_v21  ;;  %v3832_v21 = vstv %s8168_s24  ;;  %v5017_v52 = vmul.f32 %v5016_v11, %v7495_v22  ;;  %v5041_v62 = vstv %s8208_s28  ;;  %s8267_s24 = sld [smem:[#allocation12 + $0x11d]]  ;;  %s8307_s28 = sld [smem:[#allocation12 + $0x29c]] }
 0x855   : > { %v2979_v31 = vpop.permute.xlu1 %2978  ;;  %v3253_v40 = vpop.permute.xlu0 %3252  ;;  %v3833_v35 = vmul.f32 %v3832_v21, %v7447_v8  ;;  %v4681_v21 = vstv %s8229_s18  ;;  %s8326_s18 = sld [smem:[#allocation12 + $0x31c]] }
 0x856   : > { %v2981_v63 = vadd.f32 %v2979_v31, %v2972_v29  ;;  %v3255_v57 = vadd.f32 %v3253_v40, %v8039_v9  ;;  %v3292_v29 = vmul.f32 %v3291_v44, %v7495_v22 }
 0x857   : > { %4171 = vrot.lane.b32.xlu1 %v4170_v38, %s6191_s14  ;;  %3630 = vrot.lane.b32.xlu0 %v3629_v24, %s6191_s14  ;;  %v3552_v38 = vrot.slane %v3550_v54, 2  ;;  %v4195_v24 = vrot.slane %v4193_v41, 2  ;;  %v3835_v28 = vrot.slane %v3833_v35, 2  ;;  %v3857_v41 = vstv %s8217_s30  ;;  %s8320_s30 = sld [smem:[#allocation12 + $0x392]] }
 0x858   : > { %v2988_v27 = vadd.f32 %v2986_v59, %v2981_v63  ;;  %v4475_v59 = vstv %s8175_s26  ;;  %v4201_v63 = vstv %s8177_s10  ;;  %v5050_v35 = vstv %s8240_s16  ;;  %s8269_s26 = sld [smem:[#allocation12 + $0x1c]]  ;;  %s8278_s10 = sld [smem:[#allocation12 + $0x292]] }
 0x859   : > { %v3004_v0 = vpop.permute.xlu1 %3003  ;;  %v3278_v42 = vpop.permute.xlu0 %3277  ;;  %s8336_s16 = sld [smem:[#allocation12 + $0x39c]] }
 0x85a   : > { %v2997_v3 = vadd.f32 %v2995_v25, %v2988_v27  ;;  %v4462_v25 = vrot.slane %v4460_v26, 1  ;;  %v5019_v27 = vrot.slane %v5017_v52, 1 }
 0x85b   : > { %4454 = vrot.lane.b32.xlu1 %v4453_v2, %s6191_s14  ;;  %3897 = vrot.lane.b32.xlu0 %v3896_v7, %s6192_s17  ;;  %v4476_v2 = vmul.f32 %v4475_v59, %v7495_v22  ;;  %v4202_v7 = vmul.f32 %v4201_v63, %v7495_v22 }
 0x85c   : > { %v3006_v18 = vadd.f32 %v3004_v0, %v2997_v3  ;;  %v4758_v3 = vstv %s8191_s29  ;;  %s8283_s29 = sld [smem:[#allocation12 + $0x9c]] }
 0x85d   : > { %v3262_v39 = vpop.permute.xlu1 %3261  ;;  %v3536_v14 = vpop.permute.xlu0 %3535 }
 0x85e   : > { %v3264_v58 = vadd.f32 %v3262_v39, %v3255_v57  ;;  %v8179_v9 = vadd.f32 %v3009_v34, %v3006_v18  ;;  %v3538_v37 = vadd.f32 %v3536_v14, %v8058_v53  ;;  %v4398_v57 = vstv %s8202_s22  ;;  %s8303_s22 = sld [smem:[#allocation12 + $0x312]] }
 0x85f   : > { %3913 = vrot.lane.b32.xlu1 %v3912_v48, %s6191_s14  ;;  %4180 = vrot.lane.b32.xlu0 %v4179_v5, %s6192_s17  ;;  %v3575_v18 = vmul.f32 %v3574_v56, %v7495_v22  ;;  %v4478_v39 = vrot.slane %v4476_v2, 2  ;;  %v4204_v14 = vrot.slane %v4202_v7, 2  ;;  %v4759_v5 = vmul.f32 %v4758_v3, %v7495_v22 }
 0x860   : > { %v3271_v17 = vadd.f32 %v3269_v23, %v3264_v58  ;;  %v4484_v23 = vstv %s8210_s12  ;;  %v4116_v58 = vmul.f32 %v4115_v55, %v7447_v8  ;;  %v4399_v54 = vmul.f32 %v4398_v57, %v7447_v8  ;;  %s8309_s12 = sld [smem:[#allocation12 + $0x19d]] }
 0x861   : > { %v3287_v46 = vpop.permute.xlu1 %3286  ;;  %v3561_v6 = vpop.permute.xlu0 %3560  ;;  %v4485_v11 = vmul.f32 %v4484_v23, %v7495_v22  ;;  %v5051_v2 = vmul.f32 %v5050_v35, %v7495_v22  ;;  %v4682_v7 = vmul.f32 %v4681_v21, %v7447_v8  ;;  %v3373_v56 = vstv %s8252_s19  ;;  %s8339_s19 = sld [smem:[#allocation12 + $0x95]] }
 0x862   : > { %v3280_v50 = vadd.f32 %v3278_v42, %v3271_v17  ;;  %v4745_v42 = vrot.slane %v4743_v51, 1  ;;  %v4118_v10 = vrot.slane %v4116_v58, 2 }
 0x863   : > { %4737 = vrot.lane.b32.xlu1 %v4736_v47, %s6191_s14  ;;  %4463 = vrot.lane.b32.xlu0 %v4462_v25, %s6192_s17  ;;  %v5028_v47 = vrot.slane %v5026_v12, 1  ;;  %v5042_v25 = vmul.f32 %v5041_v62, %v7495_v22  ;;  %v5053_v55 = vrot.slane %v5051_v2, 2  ;;  %v4780_v2 = vstv %s8326_s18  ;;  %s8417_s18 = sld [smem:[#allocation12 + $0x9f]] }
 0x864   : > { %v3289_v20 = vadd.f32 %v3287_v46, %v3280_v50  ;;  %v4767_v50 = vstv %s8224_s13  ;;  %s8322_s13 = sld [smem:[#allocation12 + $0x15]] }
 0x865   : > { %v3545_v31 = vpop.permute.xlu1 %3544  ;;  %v3819_v40 = vpop.permute.xlu0 %3818  ;;  %v4768_v51 = vmul.f32 %v4767_v50, %v7495_v22 }
 0x866   : > { %v3547_v4 = vadd.f32 %v3545_v31, %v3538_v37  ;;  %v8212_v53 = vadd.f32 %v3292_v29, %v3289_v20  ;;  %v3821_v36 = vadd.f32 %v3819_v40, %v8076_v30  ;;  %v3858_v37 = vmul.f32 %v3857_v41, %v7495_v22 }
 0x867   : > { %4196 = vrot.lane.b32.xlu1 %v4195_v24, %s6191_s14  ;;  %3922 = vrot.lane.b32.xlu0 %v3921_v33, %s6192_s17  ;;  %v5044_v24 = vrot.slane %v5042_v25, 2  ;;  %v4487_v33 = vrot.slane %v4485_v11, 2  ;;  %v4423_v41 = vstv %s8278_s10  ;;  %s8360_s10 = sld [smem:[#allocation12 + $0x23]] }
 0x868   : > { %v3554_v61 = vadd.f32 %v3552_v38, %v3547_v4  ;;  %v3090_v38 = vstv %s8232_s21  ;;  %v4401_v4 = vrot.slane %v4399_v54, 2  ;;  %v3365_v54 = vstv %s8283_s29  ;;  %s8328_s21 = sld [smem:[#allocation12 + $0x21d]] }
 0x869   : > { %v3570_v19 = vpop.permute.xlu1 %3569  ;;  %v3844_v0 = vpop.permute.xlu0 %3843  ;;  %v3366_v11 = vmul.f32 %v3365_v54, %v7724_v43  ;;  %v4424_v50 = vmul.f32 %v4423_v41, %v7495_v22  ;;  %s8373_s29 = sld [smem:[#allocation12 + $0x39d]] }
 0x86a   : > { %v3563_v60 = vadd.f32 %v3561_v6, %v3554_v61  ;;  %v4761_v6 = vrot.slane %v4759_v5, 2 }
 0x86b   : > { %5020 = vrot.lane.b32.xlu1 %v5019_v27, %s6191_s14  ;;  %4746 = vrot.lane.b32.xlu0 %v4745_v42, %s6192_s17  ;;  %v4770_v42 = vrot.slane %v4768_v51, 2  ;;  %v4497_v51 = vstv %s8307_s28  ;;  %s8393_s28 = sld [smem:[#allocation12 + $0xa3]] }
 0x86c   : > { %v3572_v49 = vadd.f32 %v3570_v19, %v3563_v60 }
 0x86d   : > { %v3828_v48 = vpop.permute.xlu1 %3827  ;;  %v4102_v34 = vpop.permute.xlu0 %4101 }
 0x86e   : > { %v3830_v26 = vadd.f32 %v3828_v48, %v3821_v36  ;;  %v8242_v30 = vadd.f32 %v3575_v18, %v3572_v49  ;;  %v4104_v20 = vadd.f32 %v4102_v34, %v8090_v32  ;;  %v4684_v36 = vrot.slane %v4682_v7, 2 }
 0x86f   : > { %4479 = vrot.lane.b32.xlu1 %v4478_v39, %s6191_s14  ;;  %4205 = vrot.lane.b32.xlu0 %v4204_v14, %s6192_s17  ;;  %v4964_v49 = vstv %s8261_s20  ;;  %v3656_v18 = vstv %s8267_s24  ;;  %s8343_s20 = sld [smem:[#allocation12 + $0x29d]] }
 0x870   : > { %v3837_v17 = vadd.f32 %v3835_v28, %v3830_v26  ;;  %v3374_v28 = vmul.f32 %v3373_v56, %v7724_v43  ;;  %v3082_v48 = vstv %s8269_s26  ;;  %v4140_v34 = vstv %s8264_s25  ;;  %s8345_s25 = sld [smem:[#allocation12 + $0x20]]  ;;  %s8354_s24 = sld [smem:[#allocation12 + $0x115]] }
 0x871   : > { %v3853_v16 = vpop.permute.xlu1 %3852  ;;  %v4385_v46 = vpop.permute.xlu0 %4384  ;;  %v3657_v12 = vmul.f32 %v3656_v18, %v7724_v43  ;;  %v3083_v26 = vmul.f32 %v3082_v48, %v7724_v43  ;;  %v4965_v62 = vmul.f32 %v4964_v49, %v7447_v8  ;;  %v4141_v23 = vmul.f32 %v4140_v34, %v7495_v22  ;;  %s8358_s26 = sld [smem:[#allocation12 + $0x31d]] }
 0x872   : > { %v3846_v44 = vadd.f32 %v3844_v0, %v3837_v17  ;;  %v4387_v29 = vadd.f32 %v4385_v46, %v8092_v45  ;;  %v3091_v45 = vmul.f32 %v3090_v38, %v7724_v43  ;;  %v3931_v17 = vstv %s8281_s23  ;;  %s8368_s23 = sld [smem:[#allocation12 + $0x195]] }
 0x873   : > { %4762 = vrot.lane.b32.xlu1 %v4761_v6, %s6191_s14  ;;  %5029 = vrot.lane.b32.xlu0 %v5028_v47, %s6192_s17  ;;  %v3932_v25 = vmul.f32 %v3931_v17, %v7724_v43  ;;  %v4222_v7 = vstv %s8328_s21  ;;  %v3311_v18 = vstv %s8339_s19  ;;  %s8426_s21 = sld [smem:[#allocation12 + $0x315]]  ;;  %s8436_s19 = sld [smem:[#allocation12 + $0xa2]] }
 0x874   : > { %v3855_v52 = vadd.f32 %v3853_v16, %v3846_v44  ;;  %v4967_v44 = vrot.slane %v4965_v62, 2  ;;  %v4223_v49 = vmul.f32 %v4222_v7, %v7724_v43 }
 0x875   : > { %v4111_v31 = vpop.permute.xlu1 %4110  ;;  %v4394_v40 = vpop.permute.xlu0 %4393  ;;  %v4505_v34 = vstv %s8343_s20  ;;  %s8449_s20 = sld [smem:[#allocation12 + $0x19f]] }
 0x876   : > { %v4113_v59 = vadd.f32 %v4111_v31, %v4104_v20  ;;  %v4396_v63 = vadd.f32 %v4394_v40, %v4387_v29  ;;  %v8271_v32 = vadd.f32 %v3858_v37, %v3855_v52  ;;  %v3648_v37 = vstv %s8294_s15  ;;  %s8381_s15 = sld [smem:[#allocation12 + $0x1f]] }
 0x877   : > { %5045 = vrot.lane.b32.xlu1 %v5044_v24, %s6191_s14  ;;  %4488 = vrot.lane.b32.xlu0 %v4487_v33, %s6192_s17  ;;  %v3649_v40 = vmul.f32 %v3648_v37, %v7724_v43  ;;  %v4706_v24 = vstv %s8303_s22  ;;  %s8388_s22 = sld [smem:[#allocation12 + $0x215]]  ;;  %v3594_v17 = vstv %s8354_s24 }
 0x878   : > { %v4120_v61 = vadd.f32 %v4118_v10, %v4113_v59  ;;  %v4403_v27 = vadd.f32 %v4401_v4, %v4396_v63  ;;  %v3939_v4 = vstv %s8309_s12  ;;  %v4707_v63 = vmul.f32 %v4706_v24, %v7495_v22  ;;  %s8399_s12 = sld [smem:[#allocation12 + $0x22]]  ;;  %s8455_s24 = sld [smem:[#allocation12 + $0x395]] }
 0x879   : > { %v4668_v19 = vpop.permute.xlu1 %4667  ;;  %v4127_v0 = vpop.permute.xlu0 %4126  ;;  %v4788_v41 = vstv %s8358_s26  ;;  %s8466_s26 = sld [smem:[#allocation12 + $0x21f]] }
 0x87a   : > { %v4670_v60 = vadd.f32 %v4668_v19, %v8122_v15  ;;  %v4129_v15 = vadd.f32 %v4127_v0, %v4120_v61  ;;  %v4498_v61 = vmul.f32 %v4497_v51, %v7724_v43  ;;  %v4989_v19 = vstv %s8320_s30  ;;  %s8407_s30 = sld [smem:[#allocation12 + $0x295]] }
 0x87b   : > { %3093 = vrot.lane.b32.xlu1 %v3091_v45, %s6192_s17  ;;  %4771 = vrot.lane.b32.xlu0 %v4770_v42, %s6192_s17  ;;  %v3028_v0 = vstv %s8322_s13  ;;  %s8415_s13 = sld [smem:[#allocation12 + $0x120]] }
 0x87d   : > { %v4677_v3 = vpop.permute.xlu1 %4676  ;;  %v4951_v1 = vpop.permute.xlu0 %4950 }
 0x87e   : > { %v4679_v57 = vadd.f32 %v4677_v3, %v4670_v60  ;;  %v4953_v8 = vadd.f32 %v4951_v1, %v8141_v13  ;;  %v4214_v13 = vstv %s8292_s27  ;;  %v4990_v3 = vmul.f32 %v4989_v19, %v7495_v22  ;;  %s8379_s27 = sld [smem:[#allocation12 + $0xa0]] }
 0x87f   : > { %3376 = vrot.lane.b32.xlu1 %v3374_v28, %s6192_s17  ;;  %5054 = vrot.lane.b32.xlu0 %v5053_v55, %s6192_s17  ;;  %v4215_v31 = vmul.f32 %v4214_v13, %v7724_v43  ;;  %v3029_v1 = vmul.f32 %v3028_v0, %v7495_v22  ;;  %v5071_v13 = vstv %s8373_s29  ;;  %v3130_v19 = vstv %s8399_s12  ;;  %s8482_s29 = sld [smem:[#allocation12 + $0x29f]] }
 0x880   : > { %v4686_v39 = vadd.f32 %v4684_v36, %v4679_v57  ;;  %v4781_v36 = vmul.f32 %v4780_v2, %v7724_v43  ;;  %v5063_v57 = vstv %s8336_s16  ;;  %v5072_v24 = vmul.f32 %v5071_v13, %v7724_v43  ;;  %s8434_s16 = sld [smem:[#allocation12 + $0x123]]  ;;  %s8511_s12 = sld [smem:[#allocation12 + $0x31f]] }
 0x881   : > { %v4136_v14 = vpop.permute.xlu1 %4135  ;;  %v4410_v5 = vpop.permute.xlu0 %4409  ;;  %v5064_v62 = vmul.f32 %v5063_v57, %v7724_v43  ;;  %v4443_v7 = vstv %s8407_s30  ;;  %v3388_v57 = vstv %s8417_s18  ;;  %v5009_v13 = vstv %s8455_s24  ;;  %s8513_s30 = sld [smem:[#allocation12 + $0x2a0]]  ;;  %s8520_s18 = sld [smem:[#allocation12 + $0x222]] }
 0x882   : > { %v4138_v58 = vadd.f32 %v4136_v14, %v4129_v15  ;;  %v4412_v16 = vadd.f32 %v4410_v5, %v4403_v27  ;;  %v3940_v27 = vmul.f32 %v3939_v4, %v7724_v43  ;;  %v3114_v15 = vstv %s8345_s25  ;;  %s8451_s25 = sld [smem:[#allocation12 + $0x11f]]  ;;  %s8553_s24 = sld [smem:[#allocation12 + $0x198]] }
 0x883   : > { %3659 = vrot.lane.b32.xlu1 %v3657_v12, %s6192_s17  ;;  %3085 = vrot.lane.b32.xlu0 %v3083_v26, %s6191_s14  ;;  %v3031_v5 = vrot.slane %v3029_v1, 1  ;;  %v3312_v12 = vmul.f32 %v3311_v18, %v7495_v22 }
 0x884   : > { %v8315_v46 = vadd.f32 %v4141_v23, %v4138_v58  ;;  %v4506_v23 = vmul.f32 %v4505_v34, %v7724_v43  ;;  %v3115_v58 = vmul.f32 %v3114_v15, %v7724_v43  ;;  %v4726_v34 = vstv %s8426_s21  ;;  %s8529_s21 = sld [smem:[#allocation12 + $0x1a3]] }
 0x885   : > { %v4960_v6 = vpop.permute.xlu1 %4959  ;;  %v4419_v47 = vpop.permute.xlu0 %4418 }
 0x886   : > { %v4962_v10 = vadd.f32 %v4960_v6, %v4953_v8  ;;  %v4421_v21 = vadd.f32 %v4419_v47, %v4412_v16  ;;  %v3139_v8 = vstv %s8360_s10  ;;  %v3314_v47 = vrot.slane %v3312_v12, 1  ;;  %s8468_s10 = sld [smem:[#allocation12 + $0x122]] }
 0x887   : > { %3934 = vrot.lane.b32.xlu1 %v3932_v25, %s6191_s14  ;;  %3368 = vrot.lane.b32.xlu0 %v3366_v11, %s6191_s14  ;;  %v3877_v25 = vstv %s8368_s23  ;;  %v3595_v11 = vmul.f32 %v3594_v17, %v7495_v22  ;;  %v3413_v17 = vstv %s8436_s19  ;;  %s8472_s23 = sld [smem:[#allocation12 + $0x18]]  ;;  %s8540_s19 = sld [smem:[#allocation12 + $0x39f]] }
 0x888   : > { %v4969_v20 = vadd.f32 %v4967_v44, %v4962_v10  ;;  %v8332_v52 = vadd.f32 %v4424_v50, %v4421_v21  ;;  %v3117_v50 = vrot.slane %v3115_v58, 1  ;;  %v4789_v10 = vmul.f32 %v4788_v41, %v7724_v43 }
 0x889   : > { %v4693_v29 = vpop.permute.xlu1 %4692  ;;  %v4702_v38 = vpop.permute.xlu0 %4701  ;;  %v3140_v21 = vmul.f32 %v3139_v8, %v7724_v43  ;;  %v3705_v58 = vstv %s8434_s16  ;;  %s8533_s16 = sld [smem:[#allocation12 + $0x118]] }
 0x88a   : > { %v4695_v33 = vadd.f32 %v4693_v29, %v4686_v39  ;;  %v3105_v29 = vstv %s8381_s15  ;;  %s8495_s15 = sld [smem:[#allocation12 + $0x1a2]] }
 0x88b   : > { %4217 = vrot.lane.b32.xlu1 %v4215_v31, %s6191_s14  ;;  %3651 = vrot.lane.b32.xlu0 %v3649_v40, %s6191_s14  ;;  %v3878_v31 = vmul.f32 %v3877_v25, %v7495_v22 }
 0x88c   : > { %v4704_v59 = vadd.f32 %v4702_v38, %v4695_v33  ;;  %v4160_v33 = vstv %s8388_s22  ;;  %s8497_s22 = sld [smem:[#allocation12 + $0x220]] }
 0x88d   : > { %v4976_v35 = vpop.permute.xlu1 %4975  ;;  %v4985_v45 = vpop.permute.xlu0 %4984  ;;  %v4161_v2 = vmul.f32 %v4160_v33, %v7495_v22 }
 0x88e   : > { %v4978_v42 = vadd.f32 %v4976_v35, %v4969_v20  ;;  %v8362_v56 = vadd.f32 %v4707_v63, %v4704_v59  ;;  %v3397_v20 = vstv %s8379_s27  ;;  %v3142_v59 = vrot.slane %v3140_v21, 2  ;;  %s8484_s27 = sld [smem:[#allocation12 + $0x1a0]] }
 0x88f   : > { %4500 = vrot.lane.b32.xlu1 %v4498_v61, %s6191_s14  ;;  %3942 = vrot.lane.b32.xlu0 %v3940_v27, %s6192_s17  ;;  %v3398_v63 = vmul.f32 %v3397_v20, %v7724_v43  ;;  %v3106_v35 = vmul.f32 %v3105_v29, %v7724_v43  ;;  %v3671_v21 = vstv %s8451_s25  ;;  %s8549_s25 = sld [smem:[#allocation12 + $0x9b]] }
 0x890   : > { %v4987_v60 = vadd.f32 %v4985_v45, %v4978_v42  ;;  %v3422_v45 = vstv %s8393_s28  ;;  %v3880_v42 = vrot.slane %v3878_v31, 1  ;;  %s8503_s28 = sld [smem:[#allocation12 + $0x98]] }
 0x891   : > { %v3024_v28 = vpop.permute.xlu1 %3023  ;;  %v3016_v55 = vpop.permute.xlu0 %3015  ;;  %v3423_v1 = vmul.f32 %v3422_v45, %v7724_v43 }
 0x892   : > { %v3018_v48 = vadd.f32 %v3016_v55, %v8179_v9  ;;  %v8383_v39 = vadd.f32 %v4990_v3, %v4987_v60  ;;  %v3108_v3 = vrot.slane %v3106_v35, 1 }
 0x893   : > { %4783 = vrot.lane.b32.xlu1 %v4781_v36, %s6191_s14  ;;  %4225 = vrot.lane.b32.xlu0 %v4223_v49, %s6192_s17  ;;  %v3680_v49 = vstv %s8415_s13  ;;  %s8517_s13 = sld [smem:[#allocation12 + $0x1b]] }
 0x894   : > { %v3026_v14 = vadd.f32 %v3024_v28, %v3018_v48  ;;  %v3131_v28 = vmul.f32 %v3130_v19, %v7724_v43  ;;  %v4163_v48 = vrot.slane %v4161_v2, 1 }
 0x895   : > { %v3307_v9 = vpop.permute.xlu1 %3306  ;;  %v3299_v26 = vpop.permute.xlu0 %3298 }
 0x896   : > { %v3301_v54 = vadd.f32 %v3299_v26, %v8212_v53  ;;  %v8401_v16 = vadd.f32 %v3031_v5, %v3026_v14  ;;  %v3425_v5 = vrot.slane %v3423_v1, 2  ;;  %v3133_v12 = vrot.slane %v3131_v28, 2 }
 0x897   : > { %5066 = vrot.lane.b32.xlu1 %v5064_v62, %s6191_s14  ;;  %4508 = vrot.lane.b32.xlu0 %v4506_v23, %s6192_s17  ;;  %v3389_v26 = vmul.f32 %v3388_v57, %v7724_v43 }
 0x898   : > { %v3309_v6 = vadd.f32 %v3307_v9, %v3301_v54  ;;  %v3681_v9 = vmul.f32 %v3680_v49, %v7724_v43 }
 0x899   : > { %v3590_v53 = vpop.permute.xlu1 %3589  ;;  %v3582_v44 = vpop.permute.xlu0 %3581  ;;  %v3391_v25 = vrot.slane %v3389_v26, 1 }
 0x89a   : > { %v3584_v37 = vadd.f32 %v3582_v44, %v8242_v30  ;;  %v8419_v38 = vadd.f32 %v3314_v47, %v3309_v6  ;;  %v3597_v30 = vrot.slane %v3595_v11, 1  ;;  %v3683_v47 = vrot.slane %v3681_v9, 1 }
 0x89b   : > { %3118 = vrot.lane.b32.xlu1 %v3117_v50, %s6192_s17  ;;  %4791 = vrot.lane.b32.xlu0 %v4789_v10, %s6192_s17  ;;  %v3706_v11 = vmul.f32 %v3705_v58, %v7724_v43  ;;  %v3954_v10 = vstv %s8449_s20  ;;  %s8544_s20 = sld [smem:[#allocation12 + $0x320]] }
 0x89c   : > { %v3592_v40 = vadd.f32 %v3590_v53, %v3584_v37  ;;  %v3414_v53 = vmul.f32 %v3413_v17, %v7724_v43 }
 0x89d   : > { %v4148_v51 = vpop.permute.xlu1 %4147  ;;  %v3865_v4 = vpop.permute.xlu0 %3864  ;;  %v3708_v31 = vrot.slane %v3706_v11, 2 }
 0x89e   : > { %v4150_v61 = vadd.f32 %v4148_v51, %v8315_v46  ;;  %v3867_v27 = vadd.f32 %v3865_v4, %v8271_v32  ;;  %v8438_v0 = vadd.f32 %v3597_v30, %v3592_v40  ;;  %v3400_v32 = vrot.slane %v3398_v63, 1 }
 0x89f   : > { %3143 = vrot.lane.b32.xlu1 %v3142_v59, %s6192_s17  ;;  %5074 = vrot.lane.b32.xlu0 %v5072_v24, %s6192_s17  ;;  %v3416_v40 = vrot.slane %v3414_v53, 2  ;;  %v3955_v24 = vmul.f32 %v3954_v10, %v7724_v43  ;;  %v3672_v30 = vmul.f32 %v3671_v21, %v7724_v43  ;;  %v4237_v51 = vstv %s8466_s26  ;;  %s8557_s26 = sld [smem:[#allocation12 + $0x2a2]] }
 0x8a0   : > { %v3696_v4 = vstv %s8468_s10  ;;  %v5010_v59 = vmul.f32 %v5009_v13, %v7495_v22  ;;  %v3053_v63 = vstv %s8472_s23  ;;  %s8559_s10 = sld [smem:[#allocation12 + $0x223]]  ;;  %s8568_s23 = sld [smem:[#allocation12 + $0x218]] }
 0x8a1   : > { %v4431_v46 = vpop.permute.xlu1 %4430  ;;  %v3873_v60 = vpop.permute.xlu0 %3872  ;;  %v3674_v19 = vrot.slane %v3672_v30, 1  ;;  %v3697_v2 = vmul.f32 %v3696_v4, %v7724_v43 }
 0x8a2   : > { %v4433_v55 = vadd.f32 %v4431_v46, %v8332_v52  ;;  %v3875_v36 = vadd.f32 %v3873_v60, %v3867_v27  ;;  %v4444_v52 = vmul.f32 %v4443_v7, %v7495_v22  ;;  %v3957_v27 = vrot.slane %v3955_v24, 1 }
 0x8a3   : > { %3401 = vrot.lane.b32.xlu1 %v3400_v32, %s6192_s17  ;;  %3109 = vrot.lane.b32.xlu0 %v3108_v3, %s6191_s14  ;;  %v4520_v46 = vstv %s8482_s29  ;;  %v3963_v60 = vstv %s8484_s27  ;;  %v5012_v32 = vrot.slane %v5010_v59, 1  ;;  %v3054_v3 = vmul.f32 %v3053_v63, %v7495_v22  ;;  %s8577_s29 = sld [smem:[#allocation12 + $0x2a3]]  ;;  %s8579_s27 = sld [smem:[#allocation12 + $0x3a0]] }
 0x8a4   : > { %v8457_v18 = vadd.f32 %v3880_v42, %v3875_v36  ;;  %v4446_v41 = vrot.slane %v4444_v52, 1  ;;  %v4238_v42 = vmul.f32 %v4237_v51, %v7724_v43  ;;  %v3699_v49 = vrot.slane %v3697_v2, 2 }
 0x8a5   : > { %v4714_v15 = vpop.permute.xlu1 %4713  ;;  %v4156_v14 = vpop.permute.xlu0 %4155  ;;  %v4521_v57 = vmul.f32 %v4520_v46, %v7724_v43 }
 0x8a6   : > { %v4716_v62 = vadd.f32 %v4714_v15, %v8362_v56  ;;  %v4158_v23 = vadd.f32 %v4156_v14, %v4150_v61  ;;  %v4727_v56 = vmul.f32 %v4726_v34, %v7495_v22  ;;  %v4240_v36 = vrot.slane %v4238_v42, 1 }
 0x8a7   : > { %3426 = vrot.lane.b32.xlu1 %v3425_v5, %s6192_s17  ;;  %3134 = vrot.lane.b32.xlu0 %v3133_v12, %s6191_s14  ;;  %v3979_v34 = vstv %s8495_s15  ;;  %v4246_v15 = vstv %s8497_s22  ;;  %v3056_v5 = vrot.slane %v3054_v3, 2  ;;  %s8585_s15 = sld [smem:[#allocation12 + $0x11b]] }
 0x8a8   : > { %v8474_v54 = vadd.f32 %v4163_v48, %v4158_v23  ;;  %v4729_v20 = vrot.slane %v4727_v56, 1  ;;  %v3964_v48 = vmul.f32 %v3963_v60, %v7724_v43  ;;  %v3336_v12 = vstv %s8503_s28  ;;  %s8589_s22 = sld [smem:[#allocation12 + $0x323]]  ;;  %s8591_s28 = sld [smem:[#allocation12 + $0x298]] }
 0x8a9   : > { %v4997_v8 = vpop.permute.xlu1 %4996  ;;  %v4439_v6 = vpop.permute.xlu0 %4438  ;;  %v3980_v23 = vmul.f32 %v3979_v34, %v7724_v43  ;;  %v4247_v58 = vmul.f32 %v4246_v15, %v7724_v43  ;;  %v4529_v56 = vstv %s8513_s30  ;;  %v3361_v42 = vstv %s8549_s25  ;;  %s8613_s30 = sld [smem:[#allocation12 + $0x3a3]]  ;;  %s5471_s25 = sld [smem:[#allocation12 + $0x1e]] }
 0x8aa   : > { %v4999_v44 = vadd.f32 %v4997_v8, %v8383_v39  ;;  %v4441_v50 = vadd.f32 %v4439_v6, %v4433_v55  ;;  %v3078_v8 = vstv %s8517_s13  ;;  %v4530_v21 = vmul.f32 %v4529_v56, %v7724_v43  ;;  %s8615_s13 = sld [smem:[#allocation12 + $0x3a2]] }
 0x8ab   : > { %3684 = vrot.lane.b32.xlu1 %v3683_v47, %s6192_s17  ;;  %3392 = vrot.lane.b32.xlu0 %v3391_v25, %s6191_s14  ;;  %v3337_v47 = vmul.f32 %v3336_v12, %v7495_v22  ;;  %v4262_v25 = vstv %s8520_s18  ;;  %v3902_v60 = vstv %s8553_s24  ;;  %v3362_v34 = vmul.f32 %v3361_v42, %v7724_v43  ;;  %s8631_s18 = sld [smem:[#allocation12 + $0x318]]  ;;  %s5507_s24 = sld [smem:[#allocation12 + $0x9e]] }
 0x8ac   : > { %v8489_v37 = vadd.f32 %v4446_v41, %v4441_v50  ;;  %v4803_v41 = vstv %s8511_s12  ;;  %v4249_v50 = vrot.slane %v4247_v58, 1  ;;  %v4263_v30 = vmul.f32 %v4262_v25, %v7724_v43  ;;  %s8596_s12 = sld [smem:[#allocation12 + $0x322]] }
 0x8ad   : > { %v3049_v29 = vpop.permute.xlu1 %3048  ;;  %v4722_v39 = vpop.permute.xlu0 %4721  ;;  %v4804_v10 = vmul.f32 %v4803_v41, %v7724_v43  ;;  %v3339_v24 = vrot.slane %v3337_v47, 2  ;;  %v4532_v59 = vrot.slane %v4530_v21, 1  ;;  %v4554_v41 = vstv %s8577_s29  ;;  %s5655_s29 = sld [smem:[#allocation12 + $0x29e]] }
 0x8ae   : > { %v4724_v33 = vadd.f32 %v4722_v39, %v4716_v62  ;;  %v3966_v62 = vrot.slane %v3964_v48, 1  ;;  %v3079_v39 = vmul.f32 %v3078_v8, %v7724_v43  ;;  %v5095_v56 = vstv %s8579_s27  ;;  %s5692_s27 = sld [smem:[#allocation12 + $0x31e]] }
 0x8af   : > { %3709 = vrot.lane.b32.xlu1 %v3708_v31, %s6192_s17  ;;  %3417 = vrot.lane.b32.xlu0 %v3416_v40, %s6191_s14  ;;  %v3619_v31 = vstv %s8533_s16  ;;  %v4806_v4 = vrot.slane %v4804_v10, 1  ;;  %v3644_v47 = vstv %s8585_s15  ;;  %v4555_v21 = vmul.f32 %v4554_v41, %v7724_v43  ;;  %s5723_s16 = sld [smem:[#allocation12 + $0x398]]  ;;  %s5729_s15 = sld [smem:[#allocation12 + $0x39e]] }
 0x8b0   : > { %v8505_v35 = vadd.f32 %v4729_v20, %v4724_v33  ;;  %v5120_v42 = vstv %s8613_s30  ;;  %s5547_s30 = sld [smem:[#allocation12 + $0x121]] }
 0x8b1   : > { %v3074_v45 = vpop.permute.xlu1 %3073  ;;  %v5005_v61 = vpop.permute.xlu0 %5004 }
 0x8b2   : > { %v5007_v7 = vadd.f32 %v5005_v61, %v4999_v44  ;;  %v3982_v44 = vrot.slane %v3980_v23, 2 }
 0x8b3   : > { %3958 = vrot.lane.b32.xlu1 %v3957_v27, %s6191_s14  ;;  %3675 = vrot.lane.b32.xlu0 %v3674_v19, %s6191_s14  ;;  %v4812_v27 = vstv %s8544_s20  ;;  %v3620_v19 = vmul.f32 %v3619_v31, %v7495_v22  ;;  %s5652_s20 = sld [smem:[#allocation12 + $0x29b]] }
 0x8b4   : > { %v8522_v1 = vadd.f32 %v5012_v32, %v5007_v7  ;;  %v4265_v7 = vrot.slane %v4263_v30, 2 }
 0x8b5   : > { %v3332_v28 = vpop.permute.xlu1 %3331  ;;  %v3040_v55 = vpop.permute.xlu0 %3039  ;;  %v3622_v15 = vrot.slane %v3620_v19, 2 }
 0x8b6   : > { %v3042_v52 = vadd.f32 %v3040_v55, %v8401_v16  ;;  %v4523_v16 = vrot.slane %v4521_v57, 1  ;;  %v4813_v55 = vmul.f32 %v4812_v27, %v7724_v43 }
 0x8b7   : > { %4241 = vrot.lane.b32.xlu1 %v4240_v36, %s6191_s14  ;;  %3700 = vrot.lane.b32.xlu0 %v3699_v49, %s6191_s14  ;;  %v4545_v36 = vstv %s8557_s26  ;;  %v4271_v49 = vstv %s8559_s10  ;;  %s5544_s26 = sld [smem:[#allocation12 + $0x11e]] }
 0x8b8   : > { %v3051_v14 = vadd.f32 %v3049_v29, %v3042_v52  ;;  %v3988_v29 = vstv %s8529_s21  ;;  %v4546_v12 = vmul.f32 %v4545_v36, %v7724_v43  ;;  %v4272_v23 = vmul.f32 %v4271_v49, %v7724_v43  ;;  %s8633_s21 = sld [smem:[#allocation12 + $0x19b]]  ;;  %s5581_s10 = sld [smem:[#allocation12 + $0x19e]] }
 0x8b9   : > { %v8536_v9 = vpop.permute.xlu1 %3356  ;;  %v3065_v26 = vpop.permute.xlu0 %3064  ;;  %v3989_v63 = vmul.f32 %v3988_v29, %v7724_v43 }
 0x8ba   : > { %v3058_v17 = vadd.f32 %v3056_v5, %v3051_v14  ;;  %v3903_v14 = vmul.f32 %v3902_v60, %v7495_v22  ;;  %v4274_v10 = vrot.slane %v4272_v23, 2 }
 0x8bb   : > { %4524 = vrot.lane.b32.xlu1 %v4523_v16, %s6191_s14  ;;  %3967 = vrot.lane.b32.xlu0 %v3966_v62, %s6192_s17  ;;  %v4815_v62 = vrot.slane %v4813_v55, 1 }
 0x8bc   : > { %v3067_v6 = vadd.f32 %v3065_v26, %v3058_v17  ;;  %v4185_v26 = vstv %s8568_s23  ;;  %v3905_v8 = vrot.slane %v3903_v14, 2  ;;  %s5618_s23 = sld [smem:[#allocation12 + $0x21e]] }
 0x8bd   : > { %v3615_v11 = vpop.permute.xlu1 %3614  ;;  %v3323_v53 = vpop.permute.xlu0 %3322 }
 0x8be   : > { %v3076_v13 = vadd.f32 %v3074_v45, %v3067_v6  ;;  %v3325_v20 = vadd.f32 %v3323_v53, %v8419_v38  ;;  %v5086_v45 = vstv %s8540_s19  ;;  %v4186_v6 = vmul.f32 %v4185_v26, %v7495_v22  ;;  %s5615_s19 = sld [smem:[#allocation12 + $0x21b]] }
 0x8bf   : > { %3983 = vrot.lane.b32.xlu1 %v3982_v44, %s6191_s14  ;;  %4250 = vrot.lane.b32.xlu0 %v4249_v50, %s6192_s17  ;;  %v5087_v46 = vmul.f32 %v5086_v45, %v7724_v43  ;;  %v4837_v53 = vstv %s8589_s22  ;;  %s5474_s22 = sld [smem:[#allocation12 + $0x21]] }
 0x8c0   : > { %v3334_v40 = vadd.f32 %v3332_v28, %v3325_v20  ;;  %v8570_v33 = vadd.f32 %v3079_v39, %v3076_v13  ;;  %v3991_v28 = vrot.slane %v3989_v63, 2  ;;  %v5096_v13 = vmul.f32 %v5095_v56, %v7724_v43 }
 0x8c1   : > { %v8572_v38 = vpop.permute.xlu1 %3639  ;;  %v3348_v51 = vpop.permute.xlu0 %3347  ;;  %v5089_v16 = vrot.slane %v5087_v46, 1  ;;  %v4828_v20 = vstv %s8596_s12  ;;  %v4188_v30 = vrot.slane %v4186_v6, 2  ;;  %v4838_v45 = vmul.f32 %v4837_v53, %v7724_v43  ;;  %s3147_s12 = sld [smem:[#allocation13]] }
 0x8c2   : > { %v3341_v61 = vadd.f32 %v3339_v24, %v3334_v40  ;;  %v3645_v40 = vmul.f32 %v3644_v47, %v7724_v43  ;;  %v5098_v63 = vrot.slane %v5096_v13, 1  ;;  %v5034_v56 = vstv %s5723_s16  ;;  %s8701_s16 = sld [smem:[#allocation13 + $0x2]] }
 0x8c3   : > { %4807 = vrot.lane.b32.xlu1 %v4806_v4, %s6191_s14  ;;  %4533 = vrot.lane.b32.xlu0 %v4532_v59, %s6192_s17  ;;  %v4557_v59 = vrot.slane %v4555_v21, 2 }
 0x8c4   : > { %v3350_v2 = vadd.f32 %v3348_v51, %v3341_v61  ;;  %v4829_v61 = vmul.f32 %v4828_v20, %v7724_v43 }
 0x8c5   : > { %v3889_v32 = vpop.permute.xlu1 %3888  ;;  %v3606_v3 = vpop.permute.xlu0 %3605 }
 0x8c6   : > { %v3359_v57 = vadd.f32 %v8536_v9, %v3350_v2  ;;  %v3891_v48 = vadd.f32 %v3889_v32, %v8457_v18  ;;  %v3608_v52 = vadd.f32 %v3606_v3, %v8438_v0  ;;  %v5111_v2 = vstv %s8615_s13  ;;  %s5513_s13 = sld [smem:[#allocation13 + $0x1]] }
 0x8c7   : > { %4266 = vrot.lane.b32.xlu1 %v4265_v7, %s6191_s14  ;;  %3992 = vrot.lane.b32.xlu0 %v3991_v28, %s6192_s17  ;;  %v4840_v32 = vrot.slane %v4838_v45, 2  ;;  %v4831_v3 = vrot.slane %v4829_v61, 2  ;;  %v5121_v28 = vmul.f32 %v5120_v42, %v7724_v43  ;;  %v5112_v55 = vmul.f32 %v5111_v2, %v7724_v43 }
 0x8c8   : > { %v3617_v5 = vadd.f32 %v3615_v11, %v3608_v52  ;;  %v8607_v9 = vadd.f32 %v3362_v34, %v3359_v57  ;;  %v4548_v11 = vrot.slane %v4546_v12, 2  ;;  %v3927_v52 = vstv %s8633_s21  ;;  %s8698_s21 = sld [smem:[#allocation12 + $0x221]] }
 0x8c9   : > { %v4172_v18 = vpop.permute.xlu1 %4171  ;;  %v3631_v0 = vpop.permute.xlu0 %3630  ;;  %v5114_v12 = vrot.slane %v5112_v55, 2  ;;  %v3098_v2 = vstv %s5471_s25  ;;  %v3381_v55 = vstv %s5507_s24  ;;  %s5695_s24 = sld [smem:[#allocation12 + $0x321]]  ;;  %s5173_s25 = sld [smem:[#allocation4]] }
 0x8ca   : > { %v4174_v58 = vadd.f32 %v4172_v18, %v8474_v54  ;;  %v3624_v17 = vadd.f32 %v3622_v15, %v3617_v5  ;;  %v4468_v54 = vstv %s8591_s28  ;;  %v5123_v5 = vrot.slane %v5121_v28, 2  ;;  %s5510_s28 = sld [smem:[#allocation12 + $0xa1]] }
 0x8cb   : > { %5090 = vrot.lane.b32.xlu1 %v5089_v16, %s6191_s14  ;;  %4816 = vrot.lane.b32.xlu0 %v4815_v62, %s6192_s17  ;;  %v4469_v51 = vmul.f32 %v4468_v54, %v7495_v22  ;;  %v5035_v54 = vmul.f32 %v5034_v56, %v7495_v22 }
 0x8cc   : > { %v3633_v25 = vadd.f32 %v3631_v0, %v3624_v17 }
 0x8cd   : > { %v4455_v44 = vpop.permute.xlu1 %4454  ;;  %v3898_v50 = vpop.permute.xlu0 %3897  ;;  %v4471_v57 = vrot.slane %v4469_v51, 2  ;;  %v5037_v20 = vrot.slane %v5035_v54, 2  ;;  %v4513_v54 = vstv %s5655_s29  ;;  %s5732_s29 = sld [smem:[#allocation12 + $0x3a1]] }
 0x8ce   : > { %v3642_v29 = vadd.f32 %v8572_v38, %v3633_v25  ;;  %v4457_v39 = vadd.f32 %v4455_v44, %v8489_v37  ;;  %v3900_v31 = vadd.f32 %v3898_v50, %v3891_v48  ;;  %v4751_v48 = vstv %s8631_s18  ;;  %s5584_s18 = sld [smem:[#allocation12 + $0x1a1]] }
 0x8cf   : > { %4549 = vrot.lane.b32.xlu1 %v4548_v11, %s6191_s14  ;;  %4275 = vrot.lane.b32.xlu0 %v4274_v10, %s6192_s17  ;;  %v4752_v0 = vmul.f32 %v4751_v48, %v7495_v22  ;;  %v3382_v48 = vmul.f32 %v3381_v55, %v7724_v43 }
 0x8d0   : > { %v3907_v24 = vadd.f32 %v3905_v8, %v3900_v31  ;;  %v8636_v38 = vadd.f32 %v3645_v40, %v3642_v29  ;;  %v4210_v8 = vstv %s5615_s19  ;;  %v4493_v29 = vstv %s5652_s20  ;;  %s8704_s19 = sld [smem:[#allocation12 + $0x2a1]] }
 0x8d1   : > { %v3914_v37 = vpop.permute.xlu1 %3913  ;;  %v4181_v4 = vpop.permute.xlu0 %4180  ;;  %v4754_v41 = vrot.slane %v4752_v0, 2  ;;  %v4211_v44 = vmul.f32 %v4210_v8, %v7724_v43  ;;  %v4494_v22 = vmul.f32 %v4493_v29, %v7724_v43 }
 0x8d2   : > { %v3916_v27 = vadd.f32 %v3914_v37, %v3907_v24  ;;  %v4183_v19 = vadd.f32 %v4181_v4, %v4174_v58 }
 0x8d3   : > { %4558 = vrot.lane.b32.xlu1 %v4557_v59, %s6192_s17  ;;  %5099 = vrot.lane.b32.xlu0 %v5098_v63, %s6192_s17 }
 0x8d4   : > { %v4190_v7 = vadd.f32 %v4188_v30, %v4183_v19 }
 0x8d5   : > { %v4738_v46 = vpop.permute.xlu1 %4737  ;;  %v4464_v60 = vpop.permute.xlu0 %4463 }
 0x8d6   : > { %v4740_v36 = vadd.f32 %v4738_v46, %v8505_v35  ;;  %v4466_v49 = vadd.f32 %v4464_v60, %v4457_v39  ;;  %v3928_v35 = vmul.f32 %v3927_v52, %v7724_v43 }
 0x8d7   : > { %4841 = vrot.lane.b32.xlu1 %v4840_v32, %s6192_s17  ;;  %4832 = vrot.lane.b32.xlu0 %v4831_v3, %s6191_s14  ;;  %v3099_v32 = vmul.f32 %v3098_v2, %v7724_v43 }
 0x8d8   : > { %v4473_v34 = vadd.f32 %v4471_v57, %v4466_v49 }
 0x8d9   : > { %v4197_v15 = vpop.permute.xlu1 %4196  ;;  %v3923_v14 = vpop.permute.xlu0 %3922  ;;  %v3101_v57 = vrot.slane %v3099_v32, 1 }
 0x8da   : > { %v4199_v26 = vadd.f32 %v4197_v15, %v4190_v7  ;;  %v3925_v18 = vadd.f32 %v3923_v14, %v3916_v27  ;;  %v3664_v15 = vstv %s5544_s26 }
 0x8db   : > { %5124 = vrot.lane.b32.xlu1 %v5123_v5, %s6192_s17  ;;  %5115 = vrot.lane.b32.xlu0 %v5114_v12, %s6191_s14  ;;  %s5689_s14 = sld [smem:[#allocation12 + $0x31b]]  ;;  %v3947_v12 = vstv %s5581_s10  ;;  %v3665_v0 = vmul.f32 %v3664_v15, %v7724_v43  ;;  %s406_s10 = scalar_lea.vmem %s8760_s9, %s8784_s8 }
 0x8dc   : > { %v8655_v16 = vadd.f32 %v3928_v35, %v3925_v18  ;;  %s5726_s17 = sld [smem:[#allocation12 + $0x39b]]  ;;  %v3384_v18 = vrot.slane %v3382_v48, 1 }
 0x8dd   : > { %v5021_v62 = vpop.permute.xlu1 %5020  ;;  %v4747_v23 = vpop.permute.xlu0 %4746  ;;  %v3667_v56 = vrot.slane %v3665_v0, 1 }
 0x8de   : > { %v5023_v58 = vadd.f32 %v5021_v62, %v8522_v1  ;;  %v4749_v17 = vadd.f32 %v4747_v23, %v4740_v36 }
 0x8e0   : > { %v4756_v6 = vadd.f32 %v4754_v41, %v4749_v17  ;;  %v4230_v17 = vstv %s5618_s23  ;;  %s5587_s23 = sld [smem:[#allocation13 + $0x3]] }
 0x8e1   : > { %v4480_v47 = vpop.permute.xlu1 %4479  ;;  %v4206_v25 = vpop.permute.xlu0 %4205  ;;  %v4776_v51 = vstv %s5689_s14 }
 0x8e2   : > { %v4482_v11 = vadd.f32 %v4480_v47, %v4473_v34  ;;  %v4208_v53 = vadd.f32 %v4206_v25, %v4199_v26  ;;  %v4777_v45 = vmul.f32 %v4776_v51, %v7724_v43  ;;  %v5059_v61 = vstv %s5726_s17 }
 0x8e3   : > { %v5060_v46 = vmul.f32 %v5059_v61, %v7724_v43 }
 0x8e4   : > { %v8660_v50 = vadd.f32 %v4211_v44, %v4208_v53  ;;  %v4231_v53 = vmul.f32 %v4230_v17, %v7724_v43 }
 0x8e5   : > { %v4763_v10 = vpop.permute.xlu1 %4762  ;;  %v5030_v21 = vpop.permute.xlu0 %5029 }
 0x8e6   : > { %v4765_v1 = vadd.f32 %v4763_v10, %v4756_v6  ;;  %v5032_v13 = vadd.f32 %v5030_v21, %v5023_v58  ;;  %v3948_v58 = vmul.f32 %v3947_v12, %v7724_v43 }
 0x8e8   : > { %v5039_v39 = vadd.f32 %v5037_v20, %v5032_v13  ;;  %v3950_v25 = vrot.slane %v3948_v58, 1  ;;  %v4514_v13 = vmul.f32 %v4513_v54, %v7724_v43  ;;  %v4796_v20 = vstv %s5692_s27  ;;  %s5624_s27 = sld [smem:[#allocation13 + $0x4]] }
 0x8e9   : > { %v5046_v31 = vpop.permute.xlu1 %5045  ;;  %v4489_v40 = vpop.permute.xlu0 %4488 }
 0x8ea   : > { %v5048_v24 = vadd.f32 %v5046_v31, %v5039_v39  ;;  %v4491_v30 = vadd.f32 %v4489_v40, %v4482_v11 }
 0x8ec   : > { %v4495_v37 = vadd.f32 %v4494_v22, %v4491_v30  ;;  %v4516_v30 = vrot.slane %v4514_v13, 1  ;;  %v4797_v22 = vmul.f32 %v4796_v20, %v7724_v43  ;;  %v5132_v13 = vld [vmem:[%s8758_s7] sm:$0x1f]  ;;  %v5736_v20 = vld [vmem:[%s8758_s7 + $0x8] sm:$0x1f] }
 0x8ed   : > { %v3094_v4 = vpop.permute.xlu1 %3093  ;;  %v4772_v59 = vpop.permute.xlu0 %4771 }
 0x8ee   : > { %v4774_v63 = vadd.f32 %v4772_v59, %v4765_v1  ;;  %v4799_v61 = vrot.slane %v4797_v22, 1 }
 0x8f0   : > { %v8664_v27 = vadd.f32 %v4777_v45, %v4774_v63 }
 0x8f1   : > { %v3377_v19 = vpop.permute.xlu1 %3376  ;;  %v5055_v42 = vpop.permute.xlu0 %5054 }
 0x8f2   : > { %v5057_v7 = vadd.f32 %v5055_v42, %v5048_v24 }
 0x8f4   : > { %v5061_v60 = vadd.f32 %v5060_v46, %v5057_v7  ;;  %v3123_v46 = vstv %s5474_s22 }
 0x8f5   : > { %v3660_v3 = vpop.permute.xlu1 %3659  ;;  %v3086_v28 = vpop.permute.xlu0 %3085 }
 0x8f6   : > { %v3088_v36 = vadd.f32 %v3086_v28, %v8570_v33  ;;  %v3124_v28 = vmul.f32 %v3123_v46, %v7724_v43 }
 0x8f8   : > { %v3096_v49 = vadd.f32 %v3094_v4, %v3088_v36  ;;  %v3126_v48 = vrot.slane %v3124_v28, 2 }
 0x8f9   : > { %v3935_v52 = vpop.permute.xlu1 %3934  ;;  %v3369_v34 = vpop.permute.xlu0 %3368 }
 0x8fa   : > { %v3371_v14 = vadd.f32 %v3369_v34, %v8607_v9  ;;  %v3103_v5 = vadd.f32 %v3101_v57, %v3096_v49  ;;  %v3937_v41 = vadd.f32 %v3935_v52, %v8655_v16  ;;  %v4233_v16 = vrot.slane %v4231_v53, 1 }
 0x8fb   : > { %v3406_v34 = vstv %s5510_s28  ;;  %s5661_s28 = sld [smem:[#allocation13 + $0x5]] }
 0x8fc   : > { %v3379_v26 = vadd.f32 %v3377_v19, %v3371_v14  ;;  %v3407_v12 = vmul.f32 %v3406_v34, %v7724_v43 }
 0x8fd   : > { %v4218_v35 = vpop.permute.xlu1 %4217  ;;  %v3652_v62 = vpop.permute.xlu0 %3651 }
 0x8fe   : > { %v3654_v33 = vadd.f32 %v3652_v62, %v8636_v38  ;;  %v8673_v23 = vadd.f32 %v3384_v18, %v3379_v26  ;;  %v4220_v38 = vadd.f32 %v4218_v35, %v8660_v50  ;;  %v5079_v50 = vstv %s5729_s15 }
 0x900   : > { %v3662_v9 = vadd.f32 %v3660_v3, %v3654_v33  ;;  %v3148_v33 = vstv %s3147_s12  ;;  %s5698_s12 = sld [smem:[#allocation13 + $0x6]] }
 0x901   : > { %v4501_v8 = vpop.permute.xlu1 %4500  ;;  %v3943_v6 = vpop.permute.xlu0 %3942 }
 0x902   : > { %v3945_v47 = vadd.f32 %v3943_v6, %v3937_v41  ;;  %v8677_v11 = vadd.f32 %v3667_v56, %v3662_v9  ;;  %v4503_v29 = vadd.f32 %v4501_v8, %v4495_v37  ;;  %v5080_v37 = vmul.f32 %v5079_v50, %v7724_v43 }
 0x903   : > { %v3689_v41 = vstv %s5547_s30 }
 0x904   : > { %v8681_v44 = vadd.f32 %v3950_v25, %v3945_v47  ;;  %v5082_v3 = vrot.slane %v5080_v37, 1  ;;  %v3690_v6 = vmul.f32 %v3689_v41, %v7724_v43  ;;  %v3431_v47 = vstv %s5513_s13 }
 0x905   : > { %v4784_v10 = vpop.permute.xlu1 %4783  ;;  %v4226_v21 = vpop.permute.xlu0 %4225 }
 0x906   : > { %v4228_v1 = vadd.f32 %v4226_v21, %v4220_v38  ;;  %v4786_v51 = vadd.f32 %v4784_v10, %v8664_v27  ;;  %v3972_v38 = vstv %s5584_s18  ;;  %s5735_s18 = sld [smem:[#allocation13 + $0x7]] }
 0x908   : > { %v8684_v39 = vadd.f32 %v4233_v16, %v4228_v1  ;;  %v3692_v16 = vrot.slane %v3690_v6, 2 }
 0x909   : > { %v5067_v31 = vpop.permute.xlu1 %5066  ;;  %v4509_v40 = vpop.permute.xlu0 %4508 }
 0x90a   : > { %v4511_v24 = vadd.f32 %v4509_v40, %v4503_v29  ;;  %v5069_v19 = vadd.f32 %v5067_v31, %v5061_v60 }
 0x90c   : > { %v8688_v4 = vadd.f32 %v4516_v30, %v4511_v24  ;;  %v4255_v30 = vstv %s8698_s21 }
 0x90d   : > { %v3119_v59 = vpop.permute.xlu1 %3118  ;;  %v4792_v63 = vpop.permute.xlu0 %4791  ;;  %v4256_v46 = vmul.f32 %v4255_v30, %v7724_v43  ;;  %v4563_v30 = vstv %s5661_s28 }
 0x90e   : > { %v4794_v45 = vadd.f32 %v4792_v63, %v4786_v51  ;;  %v3714_v63 = vstv %s8701_s16 }
 0x910   : > { %v8691_v42 = vadd.f32 %v4799_v61, %v4794_v45 }
 0x911   : > { %v3144_v2 = vpop.permute.xlu1 %3143  ;;  %v5075_v7 = vpop.permute.xlu0 %5074 }
 0x912   : > { %v5077_v32 = vadd.f32 %v5075_v7, %v5069_v19 }
 0x914   : > { %v8694_v27 = vadd.f32 %v5082_v3, %v5077_v32  ;;  %v4538_v32 = vstv %s8704_s19 }
 0x915   : > { %v3402_v55 = vpop.permute.xlu1 %3401  ;;  %v3110_v36 = vpop.permute.xlu0 %3109 }
 0x916   : > { %v3112_v49 = vadd.f32 %v3110_v36, %v3103_v5  ;;  %v3409_v5 = vrot.slane %v3407_v12, 2 }
 0x918   : > { %v3121_v57 = vadd.f32 %v3119_v59, %v3112_v49 }
 0x919   : > { %v3427_v52 = vpop.permute.xlu1 %3426  ;;  %v3135_v60 = vpop.permute.xlu0 %3134 }
 0x91a   : > { %v3128_v15 = vadd.f32 %v3126_v48, %v3121_v57 }
 0x91c   : > { %v3137_v14 = vadd.f32 %v3135_v60, %v3128_v15  ;;  %v4539_v60 = vmul.f32 %v4538_v32, %v7724_v43 }
 0x91d   : > { %v3685_v26 = vpop.permute.xlu1 %3684  ;;  %v3393_v18 = vpop.permute.xlu0 %3392 }
 0x91e   : > { %v3395_v0 = vadd.f32 %v3393_v18, %v8673_v23  ;;  %v3146_v35 = vadd.f32 %v3144_v2, %v3137_v14 }
 0x920   : > { %v3404_v62 = vadd.f32 %v3402_v55, %v3395_v0  ;;  %v3149_v56 = vadd.f32 %v3148_v33, %v3146_v35  ;;  %v4541_v0 = vrot.slane %v4539_v60, 2  ;;  %v4821_v35 = vstv %s5695_s24 }
 0x921   : > { %v3710_v58 = vpop.permute.xlu1 %3709  ;;  %v3418_v17 = vpop.permute.xlu0 %3417  ;;  %v5129_v60 = vstv %s5735_s18 }
 0x922   : > { %v3411_v9 = vadd.f32 %v3409_v5, %v3404_v62  ;;  %v3150_v10 = vmax.f32 %v3149_v56, 0.0 }
 0x924   : > { %v3420_v8 = vadd.f32 %v3418_v17, %v3411_v9  ;;  %v5133_v22 = vmul.f32 %v5132_v13, %v3150_v10  ;;  %v4822_v9 = vmul.f32 %v4821_v35, %v7724_v43 }
 0x925   : > { %v3959_v25 = vpop.permute.xlu1 %3958  ;;  %v3676_v53 = vpop.permute.xlu0 %3675 }
 0x926   : > { %v3429_v23 = vadd.f32 %v3427_v52, %v3420_v8  ;;  %v3678_v54 = vadd.f32 %v3676_v53, %v8677_v11  ;;  %v3973_v11 = vmul.f32 %v3972_v38, %v7724_v43  ;;  %v3961_v51 = vadd.f32 %v3959_v25, %v8681_v44  ;;  %v5737_v44 = vld [vmem:[%s8758_s7 + $0x10] sm:$0x1f]  ;;  %v5738_v8 = vld [vmem:[%s8758_s7 + $0x18] sm:$0x1f] }
 0x927   : > { %v4258_v52 = vrot.slane %v4256_v46, 2 }
 0x928   : > { %v3432_v21 = vadd.f32 %v3431_v47, %v3429_v23  ;;  %v3687_v1 = vadd.f32 %v3685_v26, %v3678_v54  ;;  %v3975_v37 = vrot.slane %v3973_v11, 2  ;;  %v4824_v23 = vrot.slane %v4822_v9, 2 }
 0x929   : > { %v4242_v29 = vpop.permute.xlu1 %4241  ;;  %v3701_v31 = vpop.permute.xlu0 %3700  ;;  %v5104_v54 = vstv %s5732_s29 }
 0x92a   : > { %v3433_v40 = vmax.f32 %v3432_v21, 0.0  ;;  %v3694_v24 = vadd.f32 %v3692_v16, %v3687_v1  ;;  %v4244_v3 = vadd.f32 %v4242_v29, %v8684_v39  ;;  %v4280_v16 = vstv %s5624_s27 }
 0x92b   : > { %v5105_v29 = vmul.f32 %v5104_v54, %v7724_v43 }
 0x92c   : > { %v5136_v50 = vmul.f32 %v5736_v20, %v3433_v40  ;;  %v3703_v59 = vadd.f32 %v3701_v31, %v3694_v24  ;;  %v5739_v24 = vld [vmem:[%s8758_s7 + $0x20] sm:$0x1f] }
 0x92d   : > { %v4525_v45 = vpop.permute.xlu1 %4524  ;;  %v3968_v61 = vpop.permute.xlu0 %3967 }
 0x92e   : > { %v5137_v19 = vadd.f32 %v5136_v50, %v5133_v22  ;;  %v3712_v2 = vadd.f32 %v3710_v58, %v3703_v59  ;;  %v3970_v7 = vadd.f32 %v3968_v61, %v3961_v51  ;;  %v4527_v15 = vadd.f32 %v4525_v45, %v8688_v4 }
 0x92f   : > { %v3997_v58 = vstv %s5587_s23  ;;  %v5107_v45 = vrot.slane %v5105_v29, 2 }
 0x930   : > { %v3715_v28 = vadd.f32 %v3714_v63, %v3712_v2  ;;  %v3977_v55 = vadd.f32 %v3975_v37, %v3970_v7 }
 0x931   : > { %v3984_v36 = vpop.permute.xlu1 %3983  ;;  %v4251_v49 = vpop.permute.xlu0 %4250 }
 0x932   : > { %v3716_v57 = vmax.f32 %v3715_v28, 0.0  ;;  %v4253_v48 = vadd.f32 %v4251_v49, %v4244_v3  ;;  %v3986_v62 = vadd.f32 %v3984_v36, %v3977_v55  ;;  %v4846_v3 = vstv %s5698_s12 }
 0x934   : > { %v5140_v34 = vmul.f32 %v5737_v44, %v3716_v57  ;;  %v4260_v14 = vadd.f32 %v4258_v52, %v4253_v48  ;;  %v5741_v48 = vld [vmem:[%s8758_s7 + $0x30] sm:$0x1f] }
 0x935   : > { %v4808_v12 = vpop.permute.xlu1 %4807  ;;  %v4534_v39 = vpop.permute.xlu0 %4533 }
 0x936   : > { %v4536_v26 = vadd.f32 %v4534_v39, %v4527_v15  ;;  %v5141_v18 = vadd.f32 %v5140_v34, %v5137_v19  ;;  %v4810_v56 = vadd.f32 %v4808_v12, %v8691_v42  ;;  %v5742_v39 = vld [vmem:[%s8758_s7 + $0x38] sm:$0x1f] }
 0x938   : > { %v4543_v5 = vadd.f32 %v4541_v0, %v4536_v26 }
 0x939   : > { %v4267_v33 = vpop.permute.xlu1 %4266  ;;  %v3993_v17 = vpop.permute.xlu0 %3992 }
 0x93a   : > { %v3995_v41 = vadd.f32 %v3993_v17, %v3986_v62  ;;  %v4269_v38 = vadd.f32 %v4267_v33, %v4260_v14 }
 0x93c   : > { %v3998_v4 = vadd.f32 %v3997_v58, %v3995_v41 }
 0x93d   : > { %v5091_v6 = vpop.permute.xlu1 %5090  ;;  %v4817_v47 = vpop.permute.xlu0 %4816 }
 0x93e   : > { %v3999_v25 = vmax.f32 %v3998_v4, 0.0  ;;  %v4819_v53 = vadd.f32 %v4817_v47, %v4810_v56  ;;  %v5093_v31 = vadd.f32 %v5091_v6, %v8694_v27  ;;  %v5740_v27 = vld [vmem:[%s8758_s7 + $0x28] sm:$0x1f]  ;;  %v5174_v4 = vstv %s5173_s25 }
 0x940   : > { %v5144_v10 = vmul.f32 %v5738_v8, %v3999_v25  ;;  %v4826_v21 = vadd.f32 %v4824_v23, %v4819_v53 }
 0x941   : > { %v4550_v1 = vpop.permute.xlu1 %4549  ;;  %v4276_v13 = vpop.permute.xlu0 %4275 }
 0x942   : > { %v5145_v20 = vadd.f32 %v5144_v10, %v5141_v18  ;;  %v4278_v42 = vadd.f32 %v4276_v13, %v4269_v38  ;;  %v4552_v11 = vadd.f32 %v4550_v1, %v4543_v5 }
 0x944   : > { %v4281_v40 = vadd.f32 %v4280_v16, %v4278_v42 }
 0x945   : > { %v4559_v22 = vpop.permute.xlu1 %4558  ;;  %v5100_v50 = vpop.permute.xlu0 %5099 }
 0x946   : > { %v4282_v51 = vmax.f32 %v4281_v40, 0.0  ;;  %v4561_v59 = vadd.f32 %v4559_v22, %v4552_v11  ;;  %v5102_v63 = vadd.f32 %v5100_v50, %v5093_v31 }
 0x948   : > { %v5148_v61 = vmul.f32 %v5739_v24, %v4282_v51  ;;  %v4564_v37 = vadd.f32 %v4563_v30, %v4561_v59  ;;  %v5109_v43 = vadd.f32 %v5107_v45, %v5102_v63 }
 0x949   : > { %v4842_v19 = vpop.permute.xlu1 %4841  ;;  %v4833_v2 = vpop.permute.xlu0 %4832 }
 0x94a   : > { %v5149_v7 = vadd.f32 %v5148_v61, %v5145_v20  ;;  %v4565_v46 = vmax.f32 %v4564_v37, 0.0  ;;  %v4835_v32 = vadd.f32 %v4833_v2, %v4826_v21 }
 0x94c   : > { %v5152_v28 = vmul.f32 %v5740_v27, %v4565_v46  ;;  %v4844_v55 = vadd.f32 %v4842_v19, %v4835_v32 }
 0x94d   : > { %v5116_v44 = vpop.permute.xlu0 %5115  ;;  %v5125_v52 = vpop.permute.xlu1 %5124 }
 0x94e   : > { %v5153_v36 = vadd.f32 %v5152_v28, %v5149_v7  ;;  %v4847_v49 = vadd.f32 %v4846_v3, %v4844_v55  ;;  %v5118_v57 = vadd.f32 %v5116_v44, %v5109_v43 }
 0x950   : > { %v4848_v34 = vmax.f32 %v4847_v49, 0.0  ;;  %v5127_v15 = vadd.f32 %v5125_v52, %v5118_v57 }
 0x952   : > { %v5156_v14 = vmul.f32 %v5741_v48, %v4848_v34  ;;  %v5130_v12 = vadd.f32 %v5129_v60, %v5127_v15 }
 0x954   : > { %v5131_v26 = vmax.f32 %v5130_v12, 0.0  ;;  %v5157_v18 = vadd.f32 %v5156_v14, %v5153_v36 }
 0x956   : > { %v5160_v0 = vmul.f32 %v5742_v39, %v5131_v26 }
 0x958   : > { %v5161_v35 = vadd.f32 %v5160_v0, %v5157_v18 }
 0x95a   : > { %v5163_v62 = vsel %vm5162_vm9, %v5161_v35, 0.0 }
 0x95b   : > { %5164 = vadd.xlane.f32.xlu0 %v5163_v62 }
 0x9e8   : > { %v5165_v5 = vpop.xlane.xlu0 %5164 }
 0x9e9   : > { %v5166_v33 = vsel %vm2195_vm1, %v5165_v5, 0.0 }
 0x9ea   : > { %v5167_v58 = vrot.slane %v5166_v33, 4 }
 0x9ec   : > { %v5168_v17 = vadd.f32 %v5167_v58, %v5166_v33 }
 0x9ee   : > { %v5169_v41 = vrot.slane %v5168_v17, 2 }
 0x9f0   : > { %v5170_v9 = vadd.f32 %v5169_v41, %v5168_v17 }
 0x9f2   : > { %v5171_v56 = vrot.slane %v5170_v9, 1 }
 0x9f4   : > { %v5172_v8 = vadd.f32 %v5171_v56, %v5170_v9 }
 0x9f6   : > { %v5175_v6 = vadd.f32 %v5174_v4, %v5172_v8 }
 0x9f8   : > { %5177 = vst.msk [vmem:[%s406_s10] sm:$0x1] %vm5176_vm10, %v5175_v6 }
 0x9f9 PF: > { %s24_s11 = sadd.s32 1, %s6181_s11  }
 0x9fa   : > { %p21_p11 = scmp.ge.s32.totalorder %s24_s11, 4  }
 0x9fc   :  { %23 = sbr.rel (!%p21_p11) target bundleno = 6 (0x6), region = 119 }
 0xa03   :  { %5195 = vsyncpa [#allocation6], 1 }
 0xa04   :  { %5197 = vsyncpa [#allocation6 + $0x1], 1 }
 0xa05   :  { %5198 = vsyncpa [#allocation8], 1 }
 0xa06   :  { %5199 = vsyncpa [#allocation11], 1 }
 0xa07   :  { %5200 = vsyncpa [#allocation14], 1 }

</bundles_post_ra>
